<compile_context>
chip_gen: v5e
topology: v5e:2x2
jax: 0.10.0
libtpu: 0.0.40
codegen_flags: <defaults>
</compile_context>

<pallas_src>
import jax
import jax.numpy as jnp
from jax import lax
from jax.experimental import pallas as pl
from jax.experimental.pallas import tpu as pltpu

# ------------------------- layer geometry -------------------------
H1 = W1 = 32
C0, C1 = 3, 16
H2 = W2 = 16
C2 = 32
H3 = W3 = 8
C3 = 64
FC_H = 512          # fc1 hidden, padded 500 -> 512 (lane multiple)
N_CLS = 10
TAPS = tuple((u, v) for u in range(3) for v in range(3))


# ------------------------- fused Pallas kernel -------------------------

def cnn_l2_kernel(slab1_ref, w1_ref, b1_ref, w2_ref, b2_ref, w3_ref, b3_ref,
                  wf1_ref, bf1_ref, wf2_ref, bf2_ref, out_ref,
                  act1_ref, g2_ref, act2_ref, g3_ref, feat_ref):
    f32 = jnp.float32

    # Zero activation scratch: rows {0,1} and {H+2,H+3} stay zero and provide
    # both the conv 'SAME' padding and slack for the shifted row reads below.
    act1_ref[...] = jnp.zeros_like(act1_ref)
    act2_ref[...] = jnp.zeros_like(act2_ref)

    # ---------- conv1 + ReLU + 2x2 maxpool (im2col slab from wrapper) ----------
    # slab1: (1, 1024, 27). Chunk M (128 rows = 4 image rows) to bound vregs.
    CH = 128
    rows_in = CH // W1        # 4 image rows / chunk
    rows_out = rows_in // 2   # 2 pooled rows / chunk

    def conv1_chunk(c, carry):
        r0 = pl.multiple_of(c * CH, CH)
        xs = slab1_ref[0, pl.ds(r0, CH), :]                                # (128, 27)
        y = jnp.dot(xs, w1_ref[...], preferred_element_type=f32)          # (128, 16)
        y = jnp.maximum(y + b1_ref[...], 0.0)
        y = y.reshape(rows_in // 2, 2, W1 // 2, 2, C1)
        y = jnp.max(jnp.max(y, axis=3), axis=1)                           # (2, 16, 16)
        act1_ref[pl.ds(2 + c * rows_out, rows_out), :, :] = y
        return carry

    lax.fori_loop(0, (H1 * W1) // CH, conv1_chunk, 0)

    # ---------- generic 3x3 conv (pad=1) + ReLU + 2x2 maxpool ----------
    def conv_relu_pool(act_ref, g_ref, wcat_ref, b_ref, H, W, Cout):
        # act_ref: (H+4, W, Cin), rows 2..H+1 hold the activation, rest zero.
        P = act_ref.shape[0] * act_ref.shape[1]
        Cin = act_ref.shape[2]
        f = act_ref[...].reshape(P, Cin)
        # One matmul: all 9 taps concatenated along the output dim.
        g_ref[...] = jnp.dot(f, wcat_ref[...], preferred_element_type=f32)  # (P, 9*Cout)
        jcol = lax.broadcasted_iota(jnp.int32, (H * W, Cout), 0) & (W - 1)  # j = p % W
        acc = jnp.zeros((H * W, Cout), f32)
        for k, (u, v) in enumerate(TAPS):
            start = (u + 1) * W + (v - 1)
            g = g_ref[start:start + H * W, k * Cout:(k + 1) * Cout]
            if v == 0:      # left neighbour: column 0 reads a wrapped value
                g = jnp.where(jcol >= 1, g, 0.0)
            elif v == 2:    # right neighbour: column W-1 reads a wrapped value
                g = jnp.where(jcol <= W - 2, g, 0.0)
            acc = acc + g
        acc = jnp.maximum(acc + b_ref[...], 0.0)
        acc = acc.reshape(H // 2, 2, W // 2, 2, Cout)
        return jnp.max(jnp.max(acc, axis=3), axis=1)                        # (H/2, W/2, Cout)

    p2 = conv_relu_pool(act1_ref, g2_ref, w2_ref, b2_ref, H2, W2, C2)       # (8, 8, 32)
    act2_ref[2:2 + H3, :, :] = p2

    p3 = conv_relu_pool(act2_ref, g3_ref, w3_ref, b3_ref, H3, W3, C3)       # (4, 4, 64)

    # ---------- flatten (h, w, c) into a lane-dense (1, 1024) feature row ------
    # (fc1 weights are pre-permuted wrapper-side to this order.)
    p3 = p3.reshape((H3 // 2) * (W3 // 2), C3)                              # (16, 64)
    for p in range(16):
        feat_ref[0:1, p * C3:(p + 1) * C3] = p3[p:p + 1, :]

    # ---------- fc1 + ReLU + fc2 ----------
    # TODO(synk): nn.Dropout(0.3) is identity in eval/inference; training-mode
    # dropout masks are not implemented.
    feat = feat_ref[...]                                                    # (1, 1024)
    h = jnp.dot(feat, wf1_ref[...], preferred_element_type=f32) + bf1_ref[...]
    h = jnp.maximum(h, 0.0)
    o = jnp.dot(h, wf2_ref[...], preferred_element_type=f32) + bf2_ref[...]
    out_ref[0] = o.astype(out_ref.dtype)


# ------------------------- wrapper -------------------------

def _prep_params(params):
    w1 = params["w_c1"].reshape(9 * C0, C1)                                  # (27, 16)
    b1 = params["b_c1"].reshape(1, C1)
    # taps concatenated on the output dim: (Cin, 9*Cout), cols = (u, v, co)
    w2 = jnp.transpose(params["w_c2"], (2, 0, 1, 3)).reshape(C1, 9 * C2)     # (16, 288)
    b2 = params["b_c2"].reshape(1, C2)
    w3 = jnp.transpose(params["w_c3"], (2, 0, 1, 3)).reshape(C2, 9 * C3)     # (32, 576)
    b3 = params["b_c3"].reshape(1, C3)
    # fc1 rows are in PyTorch NCHW-flatten order (c, h, w); permute to the
    # kernel's (h, w, c) order and pad 500 -> 512.
    wf1 = params["w_fc1"].reshape(C3, 16, 500)
    wf1 = jnp.transpose(wf1, (1, 0, 2)).reshape(16 * C3, 500)
    wf1 = jnp.pad(wf1, ((0, 0), (0, FC_H - 500)))                            # (1024, 512)
    bf1 = jnp.pad(params["b_fc1"], (0, FC_H - 500)).reshape(1, FC_H)
    wf2 = jnp.pad(params["w_fc2"], ((0, FC_H - 500), (0, 0)))                # (512, 10)
    bf2 = params["b_fc2"].reshape(1, N_CLS)
    return w1, b1, w2, b2, w3, b3, wf1, bf1, wf2, bf2


@jax.jit
def cnn_l2_forward(x_nchw, params):
    N = x_nchw.shape[0]
    x = jnp.transpose(x_nchw, (0, 2, 3, 1))                                  # NHWC
    xp = jnp.pad(x, ((0, 0), (1, 1), (1, 1), (0, 0)))
    # im2col for conv1 only, laid out (H*W, 9*Cin) for a single K=27 matmul.
    slab1 = jnp.concatenate(
        [xp[:, u:u + H1, v:v + W1, :] for (u, v) in TAPS], axis=-1
    ).reshape(N, H1 * W1, 9 * C0)

    w1, b1, w2, b2, w3, b3, wf1, bf1, wf2, bf2 = _prep_params(params)
    const = lambda n: (0, 0)

    out = pl.pallas_call(
        cnn_l2_kernel,
        out_shape=jax.ShapeDtypeStruct((N, 1, N_CLS), x_nchw.dtype),
        grid=(N,),
        in_specs=[
            pl.BlockSpec((1, H1 * W1, 9 * C0), lambda n: (n, 0, 0)),
            pl.BlockSpec((9 * C0, C1), const),
            pl.BlockSpec((1, C1), const),
            pl.BlockSpec((C1, 9 * C2), const),
            pl.BlockSpec((1, C2), const),
            pl.BlockSpec((C2, 9 * C3), const),
            pl.BlockSpec((1, C3), const),
            pl.BlockSpec((16 * C3, FC_H), const),
            pl.BlockSpec((1, FC_H), const),
            pl.BlockSpec((FC_H, N_CLS), const),
            pl.BlockSpec((1, N_CLS), const),
        ],
        out_specs=pl.BlockSpec((1, 1, N_CLS), lambda n: (n, 0, 0)),
        scratch_shapes=[
            pltpu.VMEM((H2 + 4, W2, C1), jnp.float32),          # padded conv2 input
            pltpu.VMEM(((H2 + 4) * W2, 9 * C2), jnp.float32),   # conv2 tap-matmul result
            pltpu.VMEM((H3 + 4, W3, C2), jnp.float32),          # padded conv3 input
            pltpu.VMEM(((H3 + 4) * W3, 9 * C3), jnp.float32),   # conv3 tap-matmul result
            pltpu.VMEM((1, 16 * C3), jnp.float32),              # flattened features
        ],
        compiler_params=pltpu.CompilerParams(dimension_semantics=("parallel",)),
    )(slab1, w1, b1, w2, b2, w3, b3, wf1, bf1, wf2, bf2)
    return out.reshape(N, N_CLS)


# ------------------------- reference (pure JAX) -------------------------

def cnn_l2_reference(x_nchw, params):
    x = x_nchw
    for wn, bn in (("w_c1", "b_c1"), ("w_c2", "b_c2"), ("w_c3", "b_c3")):
        w, b = params[wn], params[bn]
        x = lax.conv_general_dilated(
            x, w, window_strides=(1, 1), padding="SAME",
            dimension_numbers=("NCHW", "HWIO", "NCHW"))
        x = x + b[None, :, None, None]
        x = jnp.maximum(x, 0.0)
        x = lax.reduce_window(x, -jnp.inf, lax.max,
                              (1, 1, 2, 2), (1, 1, 2, 2), "VALID")
    x = x.reshape(x.shape[0], -1)
    h = jnp.maximum(x @ params["w_fc1"] + params["b_fc1"], 0.0)
    return h @ params["w_fc2"] + params["b_fc2"]


# ------------------------- deterministic params -------------------------

def init_params(key):
    ks = jax.random.split(key, 10)

    def conv(k, cin, cout):  # HWIO
        return jax.random.normal(k, (3, 3, cin, cout), jnp.float32) * (2.0 / (9 * cin)) ** 0.5

    def lin(k, fin, fout):   # (in, out)
        return jax.random.normal(k, (fin, fout), jnp.float32) * (2.0 / fin) ** 0.5

    return {
        "w_c1": conv(ks[0], 3, 16),
        "b_c1": jax.random.normal(ks[1], (16,), jnp.float32) * 0.01,
        "w_c2": conv(ks[2], 16, 32),
        "b_c2": jax.random.normal(ks[3], (32,), jnp.float32) * 0.01,
        "w_c3": conv(ks[4], 32, 64),
        "b_c3": jax.random.normal(ks[5], (64,), jnp.float32) * 0.01,
        "w_fc1": lin(ks[6], 64 * 4 * 4, 500),
        "b_fc1": jax.random.normal(ks[7], (500,), jnp.float32) * 0.01,
        "w_fc2": lin(ks[8], 500, 10),
        "b_fc2": jax.random.normal(ks[9], (10,), jnp.float32) * 0.01,
    }


if __name__ == "__main__":
    key = jax.random.PRNGKey(0)
    kx, kp = jax.random.split(key)
    # CIFAR-10 shaped input (32x32x3 is required by fc1 = 64*4*4), batch=2.
    x = jax.random.normal(kx, (2, 3, 32, 32), jnp.float32)
    params = init_params(kp)

    out = jax.block_until_ready(cnn_l2_forward(x, params))
    assert out.shape == (2, 10), out.shape

    ref = jax.block_until_ready(cnn_l2_reference(x, params))
    assert jnp.allclose(out, ref, rtol=2e-2, atol=2e-2), (out, ref)

    print("KERNEL_OK")
</pallas_src>

<mosaic_0001>
module attributes {stable_mosaic.version = 11 : i64} {
  func.func @cnn_l2_kernel(%arg0: i32, %arg1: memref<1x1024x27xf32, #tpu.memory_space<vmem>>, %arg2: memref<27x16xf32, #tpu.memory_space<vmem>>, %arg3: memref<1x16xf32, #tpu.memory_space<vmem>>, %arg4: memref<16x288xf32, #tpu.memory_space<vmem>>, %arg5: memref<1x32xf32, #tpu.memory_space<vmem>>, %arg6: memref<32x576xf32, #tpu.memory_space<vmem>>, %arg7: memref<1x64xf32, #tpu.memory_space<vmem>>, %arg8: memref<1024x512xf32, #tpu.memory_space<vmem>>, %arg9: memref<1x512xf32, #tpu.memory_space<vmem>>, %arg10: memref<512x10xf32, #tpu.memory_space<vmem>>, %arg11: memref<1x10xf32, #tpu.memory_space<vmem>>, %arg12: memref<1x1x10xf32, #tpu.memory_space<vmem>>, %arg13: memref<20x16x16xf32, #tpu.memory_space<vmem>>, %arg14: memref<320x288xf32, #tpu.memory_space<vmem>>, %arg15: memref<12x8x32xf32, #tpu.memory_space<vmem>>, %arg16: memref<96x576xf32, #tpu.memory_space<vmem>>, %arg17: memref<1x1024xf32, #tpu.memory_space<vmem>>) attributes {dimension_semantics = [#tpu.dimension_semantics<parallel>], iteration_bounds = array<i64: 2>, scalar_prefetch = 0 : i64, scratch_operands = 5 : i64, tpu.core_type = #tpu.core_type<tc>, window_params = [{transform_indices = @transform_0, window_bounds = array<i64: 1, 1024, 27>}, {pipeline_mode = #tpu.pipeline_mode<synchronous>, transform_indices = @transform_1, window_bounds = array<i64: 27, 16>}, {pipeline_mode = #tpu.pipeline_mode<synchronous>, transform_indices = @transform_2, window_bounds = array<i64: 1, 16>}, {pipeline_mode = #tpu.pipeline_mode<synchronous>, transform_indices = @transform_3, window_bounds = array<i64: 16, 288>}, {pipeline_mode = #tpu.pipeline_mode<synchronous>, transform_indices = @transform_4, window_bounds = array<i64: 1, 32>}, {pipeline_mode = #tpu.pipeline_mode<synchronous>, transform_indices = @transform_5, window_bounds = array<i64: 32, 576>}, {pipeline_mode = #tpu.pipeline_mode<synchronous>, transform_indices = @transform_6, window_bounds = array<i64: 1, 64>}, {pipeline_mode = #tpu.pipeline_mode<synchronous>, transform_indices = @transform_7, window_bounds = array<i64: 1024, 512>}, {pipeline_mode = #tpu.pipeline_mode<synchronous>, transform_indices = @transform_8, window_bounds = array<i64: 1, 512>}, {pipeline_mode = #tpu.pipeline_mode<synchronous>, transform_indices = @transform_9, window_bounds = array<i64: 512, 10>}, {pipeline_mode = #tpu.pipeline_mode<synchronous>, transform_indices = @transform_10, window_bounds = array<i64: 1, 10>}, {transform_indices = @transform_11, window_bounds = array<i64: 1, 1, 10>}]} {
    %cst = arith.constant 0.000000e+00 : f32
    %0 = vector.broadcast %cst : f32 to vector<20x16x16xf32>
    %c0 = arith.constant 0 : index
    %c0_0 = arith.constant 0 : index
    %c0_1 = arith.constant 0 : index
    %1 = vector.load %arg13[%c0, %c0_0, %c0_1] : memref<20x16x16xf32, #tpu.memory_space<vmem>>, vector<20x16x16xf32>
    tpu.vector_store %arg13[%c0, %c0_0, %c0_1], %0 {strides = array<i32>} : memref<20x16x16xf32, #tpu.memory_space<vmem>>, vector<20x16x16xf32>,
    %cst_2 = arith.constant 0.000000e+00 : f32
    %2 = vector.broadcast %cst_2 : f32 to vector<12x8x32xf32>
    %c0_3 = arith.constant 0 : index
    %c0_4 = arith.constant 0 : index
    %c0_5 = arith.constant 0 : index
    %3 = vector.load %arg15[%c0_3, %c0_4, %c0_5] : memref<12x8x32xf32, #tpu.memory_space<vmem>>, vector<12x8x32xf32>
    tpu.vector_store %arg15[%c0_3, %c0_4, %c0_5], %2 {strides = array<i32>} : memref<12x8x32xf32, #tpu.memory_space<vmem>>, vector<12x8x32xf32>,
    %c0_i32 = arith.constant 0 : i32
    %c8_i32 = arith.constant 8 : i32
    %4 = arith.addi %c0_i32, %c8_i32 : i32
    %c1_i32 = arith.constant 1 : i32
    scf.for %arg18 = %c0_i32 to %4 step %c1_i32  : i32 {
      %c128_i32 = arith.constant 128 : i32
      %171 = arith.muli %arg18, %c128_i32 : i32
      %172 = tpu.assume_multiple %171, 128 : i32
      %c0_110 = arith.constant 0 : index
      %173 = arith.index_cast %172 : i32 to index
      %c0_111 = arith.constant 0 : index
      %174 = vector.load %arg1[%c0_110, %173, %c0_111] : memref<1x1024x27xf32, #tpu.memory_space<vmem>>, vector<1x128x27xf32>
      %175 = vector.shape_cast %174 : vector<1x128x27xf32> to vector<128x27xf32>
      %c0_112 = arith.constant 0 : index
      %c0_113 = arith.constant 0 : index
      %176 = vector.load %arg2[%c0_112, %c0_113] : memref<27x16xf32, #tpu.memory_space<vmem>>, vector<27x16xf32>
      %cst_114 = arith.constant dense<0.000000e+00> : vector<128x16xf32>
      %177 = tpu.matmul %175, %176, %cst_114 {dimension_numbers = #tpu.dot_dimension_numbers<[1], [0], [0], [1], [0, 0, 1, 1], [], []>} : vector<128x27xf32>, vector<27x16xf32>, vector<128x16xf32> -> vector<128x16xf32>
      %c0_115 = arith.constant 0 : index
      %c0_116 = arith.constant 0 : index
      %178 = vector.load %arg3[%c0_115, %c0_116] : memref<1x16xf32, #tpu.memory_space<vmem>>, vector<1x16xf32>
      %179 = vector.broadcast %178 : vector<1x16xf32> to vector<128x16xf32>
      %180 = arith.addf %177, %179 : vector<128x16xf32>
      %cst_117 = arith.constant 0.000000e+00 : f32
      %181 = vector.broadcast %cst_117 : f32 to vector<128x16xf32>
      %182 = arith.maximumf %180, %181 : vector<128x16xf32>
      %183 = vector.shape_cast %182 : vector<128x16xf32> to vector<2x2x16x2x16xf32>
      %cst_118 = arith.constant dense<0xFF800000> : vector<2x2x16x16xf32>
      %184 = vector.multi_reduction <maximumf>, %183, %cst_118 [3] : vector<2x2x16x2x16xf32> to vector<2x2x16x16xf32>
      %cst_119 = arith.constant dense<0xFF800000> : vector<2x16x16xf32>
      %185 = vector.multi_reduction <maximumf>, %184, %cst_119 [1] : vector<2x2x16x16xf32> to vector<2x16x16xf32>
      %c2_i32 = arith.constant 2 : i32
      %186 = arith.muli %arg18, %c2_i32 : i32
      %c2_i32_120 = arith.constant 2 : i32
      %187 = arith.addi %c2_i32_120, %186 : i32
      %188 = arith.index_cast %187 : i32 to index
      %c0_121 = arith.constant 0 : index
      %c0_122 = arith.constant 0 : index
      %189 = vector.load %arg13[%188, %c0_121, %c0_122] : memref<20x16x16xf32, #tpu.memory_space<vmem>>, vector<2x16x16xf32>
      tpu.vector_store %arg13[%188, %c0_121, %c0_122], %185 {strides = array<i32>} : memref<20x16x16xf32, #tpu.memory_space<vmem>>, vector<2x16x16xf32>,
    }
    %c8_i32_6 = arith.constant 8 : i32
    %c0_7 = arith.constant 0 : index
    %c0_8 = arith.constant 0 : index
    %c0_9 = arith.constant 0 : index
    %5 = vector.load %arg13[%c0_7, %c0_8, %c0_9] : memref<20x16x16xf32, #tpu.memory_space<vmem>>, vector<20x16x16xf32>
    %6 = vector.shape_cast %5 : vector<20x16x16xf32> to vector<320x16xf32>
    %c0_10 = arith.constant 0 : index
    %c0_11 = arith.constant 0 : index
    %7 = vector.load %arg4[%c0_10, %c0_11] : memref<16x288xf32, #tpu.memory_space<vmem>>, vector<16x288xf32>
    %cst_12 = arith.constant dense<0.000000e+00> : vector<320x288xf32>
    %8 = tpu.matmul %6, %7, %cst_12 {dimension_numbers = #tpu.dot_dimension_numbers<[1], [0], [0], [1], [0, 0, 1, 1], [], []>} : vector<320x16xf32>, vector<16x288xf32>, vector<320x288xf32> -> vector<320x288xf32>
    %c0_13 = arith.constant 0 : index
    %c0_14 = arith.constant 0 : index
    %9 = vector.load %arg14[%c0_13, %c0_14] : memref<320x288xf32, #tpu.memory_space<vmem>>, vector<320x288xf32>
    tpu.vector_store %arg14[%c0_13, %c0_14], %8 {strides = array<i32>} : memref<320x288xf32, #tpu.memory_space<vmem>>, vector<320x288xf32>,
    %10 = tpu.iota {dimensions = array<i32: 0>} : vector<256x32xi32>
    %c15_i32 = arith.constant 15 : i32
    %11 = vector.broadcast %c15_i32 : i32 to vector<256x32xi32>
    %12 = arith.andi %10, %11 : vector<256x32xi32>
    %cst_15 = arith.constant 0.000000e+00 : f32
    %13 = vector.broadcast %cst_15 : f32 to vector<256x32xf32>
    %c15 = arith.constant 15 : index
    %c0_16 = arith.constant 0 : index
    %14 = vector.load %arg14[%c15, %c0_16] : memref<320x288xf32, #tpu.memory_space<vmem>>, vector<256x32xf32>
    %c1_i32_17 = arith.constant 1 : i32
    %15 = vector.broadcast %c1_i32_17 : i32 to vector<256x32xi32>
    %16 = arith.cmpi sge, %12, %15 : vector<256x32xi32>
    %cst_18 = arith.constant 0.000000e+00 : f32
    %17 = vector.broadcast %cst_18 : f32 to vector<256x32xf32>
    %18 = arith.select %16, %14, %17 : vector<256x32xi1>, vector<256x32xf32>
    %19 = arith.addf %13, %18 : vector<256x32xf32>
    %c16 = arith.constant 16 : index
    %c32 = arith.constant 32 : index
    %20 = vector.load %arg14[%c16, %c32] : memref<320x288xf32, #tpu.memory_space<vmem>>, vector<256x32xf32>
    %21 = arith.addf %19, %20 : vector<256x32xf32>
    %c17 = arith.constant 17 : index
    %c64 = arith.constant 64 : index
    %22 = vector.load %arg14[%c17, %c64] : memref<320x288xf32, #tpu.memory_space<vmem>>, vector<256x32xf32>
    %c14_i32 = arith.constant 14 : i32
    %23 = vector.broadcast %c14_i32 : i32 to vector<256x32xi32>
    %24 = arith.cmpi sle, %12, %23 : vector<256x32xi32>
    %cst_19 = arith.constant 0.000000e+00 : f32
    %25 = vector.broadcast %cst_19 : f32 to vector<256x32xf32>
    %26 = arith.select %24, %22, %25 : vector<256x32xi1>, vector<256x32xf32>
    %27 = arith.addf %21, %26 : vector<256x32xf32>
    %c31 = arith.constant 31 : index
    %c96 = arith.constant 96 : index
    %28 = vector.load %arg14[%c31, %c96] : memref<320x288xf32, #tpu.memory_space<vmem>>, vector<256x32xf32>
    %c1_i32_20 = arith.constant 1 : i32
    %29 = vector.broadcast %c1_i32_20 : i32 to vector<256x32xi32>
    %30 = arith.cmpi sge, %12, %29 : vector<256x32xi32>
    %cst_21 = arith.constant 0.000000e+00 : f32
    %31 = vector.broadcast %cst_21 : f32 to vector<256x32xf32>
    %32 = arith.select %30, %28, %31 : vector<256x32xi1>, vector<256x32xf32>
    %33 = arith.addf %27, %32 : vector<256x32xf32>
    %c32_22 = arith.constant 32 : index
    %c128 = arith.constant 128 : index
    %34 = vector.load %arg14[%c32_22, %c128] : memref<320x288xf32, #tpu.memory_space<vmem>>, vector<256x32xf32>
    %35 = arith.addf %33, %34 : vector<256x32xf32>
    %c33 = arith.constant 33 : index
    %c160 = arith.constant 160 : index
    %36 = vector.load %arg14[%c33, %c160] : memref<320x288xf32, #tpu.memory_space<vmem>>, vector<256x32xf32>
    %c14_i32_23 = arith.constant 14 : i32
    %37 = vector.broadcast %c14_i32_23 : i32 to vector<256x32xi32>
    %38 = arith.cmpi sle, %12, %37 : vector<256x32xi32>
    %cst_24 = arith.constant 0.000000e+00 : f32
    %39 = vector.broadcast %cst_24 : f32 to vector<256x32xf32>
    %40 = arith.select %38, %36, %39 : vector<256x32xi1>, vector<256x32xf32>
    %41 = arith.addf %35, %40 : vector<256x32xf32>
    %c47 = arith.constant 47 : index
    %c192 = arith.constant 192 : index
    %42 = vector.load %arg14[%c47, %c192] : memref<320x288xf32, #tpu.memory_space<vmem>>, vector<256x32xf32>
    %c1_i32_25 = arith.constant 1 : i32
    %43 = vector.broadcast %c1_i32_25 : i32 to vector<256x32xi32>
    %44 = arith.cmpi sge, %12, %43 : vector<256x32xi32>
    %cst_26 = arith.constant 0.000000e+00 : f32
    %45 = vector.broadcast %cst_26 : f32 to vector<256x32xf32>
    %46 = arith.select %44, %42, %45 : vector<256x32xi1>, vector<256x32xf32>
    %47 = arith.addf %41, %46 : vector<256x32xf32>
    %c48 = arith.constant 48 : index
    %c224 = arith.constant 224 : index
    %48 = vector.load %arg14[%c48, %c224] : memref<320x288xf32, #tpu.memory_space<vmem>>, vector<256x32xf32>
    %49 = arith.addf %47, %48 : vector<256x32xf32>
    %c49 = arith.constant 49 : index
    %c256 = arith.constant 256 : index
    %50 = vector.load %arg14[%c49, %c256] : memref<320x288xf32, #tpu.memory_space<vmem>>, vector<256x32xf32>
    %c14_i32_27 = arith.constant 14 : i32
    %51 = vector.broadcast %c14_i32_27 : i32 to vector<256x32xi32>
    %52 = arith.cmpi sle, %12, %51 : vector<256x32xi32>
    %cst_28 = arith.constant 0.000000e+00 : f32
    %53 = vector.broadcast %cst_28 : f32 to vector<256x32xf32>
    %54 = arith.select %52, %50, %53 : vector<256x32xi1>, vector<256x32xf32>
    %55 = arith.addf %49, %54 : vector<256x32xf32>
    %c0_29 = arith.constant 0 : index
    %c0_30 = arith.constant 0 : index
    %56 = vector.load %arg5[%c0_29, %c0_30] : memref<1x32xf32, #tpu.memory_space<vmem>>, vector<1x32xf32>
    %57 = vector.broadcast %56 : vector<1x32xf32> to vector<256x32xf32>
    %58 = arith.addf %55, %57 : vector<256x32xf32>
    %cst_31 = arith.constant 0.000000e+00 : f32
    %59 = vector.broadcast %cst_31 : f32 to vector<256x32xf32>
    %60 = arith.maximumf %58, %59 : vector<256x32xf32>
    %61 = vector.shape_cast %60 : vector<256x32xf32> to vector<8x2x8x2x32xf32>
    %cst_32 = arith.constant dense<0xFF800000> : vector<8x2x8x32xf32>
    %62 = vector.multi_reduction <maximumf>, %61, %cst_32 [3] : vector<8x2x8x2x32xf32> to vector<8x2x8x32xf32>
    %cst_33 = arith.constant dense<0xFF800000> : vector<8x8x32xf32>
    %63 = vector.multi_reduction <maximumf>, %62, %cst_33 [1] : vector<8x2x8x32xf32> to vector<8x8x32xf32>
    %c2 = arith.constant 2 : index
    %c0_34 = arith.constant 0 : index
    %c0_35 = arith.constant 0 : index
    %64 = vector.load %arg15[%c2, %c0_34, %c0_35] : memref<12x8x32xf32, #tpu.memory_space<vmem>>, vector<8x8x32xf32>
    tpu.vector_store %arg15[%c2, %c0_34, %c0_35], %63 {strides = array<i32>} : memref<12x8x32xf32, #tpu.memory_space<vmem>>, vector<8x8x32xf32>,
    %c0_36 = arith.constant 0 : index
    %c0_37 = arith.constant 0 : index
    %c0_38 = arith.constant 0 : index
    %65 = vector.load %arg15[%c0_36, %c0_37, %c0_38] : memref<12x8x32xf32, #tpu.memory_space<vmem>>, vector<12x8x32xf32>
    %66 = vector.shape_cast %65 : vector<12x8x32xf32> to vector<96x32xf32>
    %c0_39 = arith.constant 0 : index
    %c0_40 = arith.constant 0 : index
    %67 = vector.load %arg6[%c0_39, %c0_40] : memref<32x576xf32, #tpu.memory_space<vmem>>, vector<32x576xf32>
    %cst_41 = arith.constant dense<0.000000e+00> : vector<96x576xf32>
    %68 = tpu.matmul %66, %67, %cst_41 {dimension_numbers = #tpu.dot_dimension_numbers<[1], [0], [0], [1], [0, 0, 1, 1], [], []>} : vector<96x32xf32>, vector<32x576xf32>, vector<96x576xf32> -> vector<96x576xf32>
    %c0_42 = arith.constant 0 : index
    %c0_43 = arith.constant 0 : index
    %69 = vector.load %arg16[%c0_42, %c0_43] : memref<96x576xf32, #tpu.memory_space<vmem>>, vector<96x576xf32>
    tpu.vector_store %arg16[%c0_42, %c0_43], %68 {strides = array<i32>} : memref<96x576xf32, #tpu.memory_space<vmem>>, vector<96x576xf32>,
    %70 = tpu.iota {dimensions = array<i32: 0>} : vector<64x64xi32>
    %c7_i32 = arith.constant 7 : i32
    %71 = vector.broadcast %c7_i32 : i32 to vector<64x64xi32>
    %72 = arith.andi %70, %71 : vector<64x64xi32>
    %cst_44 = arith.constant 0.000000e+00 : f32
    %73 = vector.broadcast %cst_44 : f32 to vector<64x64xf32>
    %c7 = arith.constant 7 : index
    %c0_45 = arith.constant 0 : index
    %74 = vector.load %arg16[%c7, %c0_45] : memref<96x576xf32, #tpu.memory_space<vmem>>, vector<64x64xf32>
    %c1_i32_46 = arith.constant 1 : i32
    %75 = vector.broadcast %c1_i32_46 : i32 to vector<64x64xi32>
    %76 = arith.cmpi sge, %72, %75 : vector<64x64xi32>
    %cst_47 = arith.constant 0.000000e+00 : f32
    %77 = vector.broadcast %cst_47 : f32 to vector<64x64xf32>
    %78 = arith.select %76, %74, %77 : vector<64x64xi1>, vector<64x64xf32>
    %79 = arith.addf %73, %78 : vector<64x64xf32>
    %c8 = arith.constant 8 : index
    %c64_48 = arith.constant 64 : index
    %80 = vector.load %arg16[%c8, %c64_48] : memref<96x576xf32, #tpu.memory_space<vmem>>, vector<64x64xf32>
    %81 = arith.addf %79, %80 : vector<64x64xf32>
    %c9 = arith.constant 9 : index
    %c128_49 = arith.constant 128 : index
    %82 = vector.load %arg16[%c9, %c128_49] : memref<96x576xf32, #tpu.memory_space<vmem>>, vector<64x64xf32>
    %c6_i32 = arith.constant 6 : i32
    %83 = vector.broadcast %c6_i32 : i32 to vector<64x64xi32>
    %84 = arith.cmpi sle, %72, %83 : vector<64x64xi32>
    %cst_50 = arith.constant 0.000000e+00 : f32
    %85 = vector.broadcast %cst_50 : f32 to vector<64x64xf32>
    %86 = arith.select %84, %82, %85 : vector<64x64xi1>, vector<64x64xf32>
    %87 = arith.addf %81, %86 : vector<64x64xf32>
    %c15_51 = arith.constant 15 : index
    %c192_52 = arith.constant 192 : index
    %88 = vector.load %arg16[%c15_51, %c192_52] : memref<96x576xf32, #tpu.memory_space<vmem>>, vector<64x64xf32>
    %c1_i32_53 = arith.constant 1 : i32
    %89 = vector.broadcast %c1_i32_53 : i32 to vector<64x64xi32>
    %90 = arith.cmpi sge, %72, %89 : vector<64x64xi32>
    %cst_54 = arith.constant 0.000000e+00 : f32
    %91 = vector.broadcast %cst_54 : f32 to vector<64x64xf32>
    %92 = arith.select %90, %88, %91 : vector<64x64xi1>, vector<64x64xf32>
    %93 = arith.addf %87, %92 : vector<64x64xf32>
    %c16_55 = arith.constant 16 : index
    %c256_56 = arith.constant 256 : index
    %94 = vector.load %arg16[%c16_55, %c256_56] : memref<96x576xf32, #tpu.memory_space<vmem>>, vector<64x64xf32>
    %95 = arith.addf %93, %94 : vector<64x64xf32>
    %c17_57 = arith.constant 17 : index
    %c320 = arith.constant 320 : index
    %96 = vector.load %arg16[%c17_57, %c320] : memref<96x576xf32, #tpu.memory_space<vmem>>, vector<64x64xf32>
    %c6_i32_58 = arith.constant 6 : i32
    %97 = vector.broadcast %c6_i32_58 : i32 to vector<64x64xi32>
    %98 = arith.cmpi sle, %72, %97 : vector<64x64xi32>
    %cst_59 = arith.constant 0.000000e+00 : f32
    %99 = vector.broadcast %cst_59 : f32 to vector<64x64xf32>
    %100 = arith.select %98, %96, %99 : vector<64x64xi1>, vector<64x64xf32>
    %101 = arith.addf %95, %100 : vector<64x64xf32>
    %c23 = arith.constant 23 : index
    %c384 = arith.constant 384 : index
    %102 = vector.load %arg16[%c23, %c384] : memref<96x576xf32, #tpu.memory_space<vmem>>, vector<64x64xf32>
    %c1_i32_60 = arith.constant 1 : i32
    %103 = vector.broadcast %c1_i32_60 : i32 to vector<64x64xi32>
    %104 = arith.cmpi sge, %72, %103 : vector<64x64xi32>
    %cst_61 = arith.constant 0.000000e+00 : f32
    %105 = vector.broadcast %cst_61 : f32 to vector<64x64xf32>
    %106 = arith.select %104, %102, %105 : vector<64x64xi1>, vector<64x64xf32>
    %107 = arith.addf %101, %106 : vector<64x64xf32>
    %c24 = arith.constant 24 : index
    %c448 = arith.constant 448 : index
    %108 = vector.load %arg16[%c24, %c448] : memref<96x576xf32, #tpu.memory_space<vmem>>, vector<64x64xf32>
    %109 = arith.addf %107, %108 : vector<64x64xf32>
    %c25 = arith.constant 25 : index
    %c512 = arith.constant 512 : index
    %110 = vector.load %arg16[%c25, %c512] : memref<96x576xf32, #tpu.memory_space<vmem>>, vector<64x64xf32>
    %c6_i32_62 = arith.constant 6 : i32
    %111 = vector.broadcast %c6_i32_62 : i32 to vector<64x64xi32>
    %112 = arith.cmpi sle, %72, %111 : vector<64x64xi32>
    %cst_63 = arith.constant 0.000000e+00 : f32
    %113 = vector.broadcast %cst_63 : f32 to vector<64x64xf32>
    %114 = arith.select %112, %110, %113 : vector<64x64xi1>, vector<64x64xf32>
    %115 = arith.addf %109, %114 : vector<64x64xf32>
    %c0_64 = arith.constant 0 : index
    %c0_65 = arith.constant 0 : index
    %116 = vector.load %arg7[%c0_64, %c0_65] : memref<1x64xf32, #tpu.memory_space<vmem>>, vector<1x64xf32>
    %117 = vector.broadcast %116 : vector<1x64xf32> to vector<64x64xf32>
    %118 = arith.addf %115, %117 : vector<64x64xf32>
    %cst_66 = arith.constant 0.000000e+00 : f32
    %119 = vector.broadcast %cst_66 : f32 to vector<64x64xf32>
    %120 = arith.maximumf %118, %119 : vector<64x64xf32>
    %121 = vector.shape_cast %120 : vector<64x64xf32> to vector<4x2x4x2x64xf32>
    %cst_67 = arith.constant dense<0xFF800000> : vector<4x2x4x64xf32>
    %122 = vector.multi_reduction <maximumf>, %121, %cst_67 [3] : vector<4x2x4x2x64xf32> to vector<4x2x4x64xf32>
    %cst_68 = arith.constant dense<0xFF800000> : vector<4x4x64xf32>
    %123 = vector.multi_reduction <maximumf>, %122, %cst_68 [1] : vector<4x2x4x64xf32> to vector<4x4x64xf32>
    %124 = vector.shape_cast %123 : vector<4x4x64xf32> to vector<16x64xf32>
    %125 = vector.extract_strided_slice %124 {offsets = [0, 0], sizes = [1, 64], strides = [1, 1]} : vector<16x64xf32> to vector<1x64xf32>
    %c0_69 = arith.constant 0 : index
    %c0_70 = arith.constant 0 : index
    %126 = vector.load %arg17[%c0_69, %c0_70] : memref<1x1024xf32, #tpu.memory_space<vmem>>, vector<1x64xf32>
    tpu.vector_store %arg17[%c0_69, %c0_70], %125 {strides = array<i32>} : memref<1x1024xf32, #tpu.memory_space<vmem>>, vector<1x64xf32>,
    %127 = vector.extract_strided_slice %124 {offsets = [1, 0], sizes = [1, 64], strides = [1, 1]} : vector<16x64xf32> to vector<1x64xf32>
    %c0_71 = arith.constant 0 : index
    %c64_72 = arith.constant 64 : index
    %128 = vector.load %arg17[%c0_71, %c64_72] : memref<1x1024xf32, #tpu.memory_space<vmem>>, vector<1x64xf32>
    tpu.vector_store %arg17[%c0_71, %c64_72], %127 {strides = array<i32>} : memref<1x1024xf32, #tpu.memory_space<vmem>>, vector<1x64xf32>,
    %129 = vector.extract_strided_slice %124 {offsets = [2, 0], sizes = [1, 64], strides = [1, 1]} : vector<16x64xf32> to vector<1x64xf32>
    %c0_73 = arith.constant 0 : index
    %c128_74 = arith.constant 128 : index
    %130 = vector.load %arg17[%c0_73, %c128_74] : memref<1x1024xf32, #tpu.memory_space<vmem>>, vector<1x64xf32>
    tpu.vector_store %arg17[%c0_73, %c128_74], %129 {strides = array<i32>} : memref<1x1024xf32, #tpu.memory_space<vmem>>, vector<1x64xf32>,
    %131 = vector.extract_strided_slice %124 {offsets = [3, 0], sizes = [1, 64], strides = [1, 1]} : vector<16x64xf32> to vector<1x64xf32>
    %c0_75 = arith.constant 0 : index
    %c192_76 = arith.constant 192 : index
    %132 = vector.load %arg17[%c0_75, %c192_76] : memref<1x1024xf32, #tpu.memory_space<vmem>>, vector<1x64xf32>
    tpu.vector_store %arg17[%c0_75, %c192_76], %131 {strides = array<i32>} : memref<1x1024xf32, #tpu.memory_space<vmem>>, vector<1x64xf32>,
    %133 = vector.extract_strided_slice %124 {offsets = [4, 0], sizes = [1, 64], strides = [1, 1]} : vector<16x64xf32> to vector<1x64xf32>
    %c0_77 = arith.constant 0 : index
    %c256_78 = arith.constant 256 : index
    %134 = vector.load %arg17[%c0_77, %c256_78] : memref<1x1024xf32, #tpu.memory_space<vmem>>, vector<1x64xf32>
    tpu.vector_store %arg17[%c0_77, %c256_78], %133 {strides = array<i32>} : memref<1x1024xf32, #tpu.memory_space<vmem>>, vector<1x64xf32>,
    %135 = vector.extract_strided_slice %124 {offsets = [5, 0], sizes = [1, 64], strides = [1, 1]} : vector<16x64xf32> to vector<1x64xf32>
    %c0_79 = arith.constant 0 : index
    %c320_80 = arith.constant 320 : index
    %136 = vector.load %arg17[%c0_79, %c320_80] : memref<1x1024xf32, #tpu.memory_space<vmem>>, vector<1x64xf32>
    tpu.vector_store %arg17[%c0_79, %c320_80], %135 {strides = array<i32>} : memref<1x1024xf32, #tpu.memory_space<vmem>>, vector<1x64xf32>,
    %137 = vector.extract_strided_slice %124 {offsets = [6, 0], sizes = [1, 64], strides = [1, 1]} : vector<16x64xf32> to vector<1x64xf32>
    %c0_81 = arith.constant 0 : index
    %c384_82 = arith.constant 384 : index
    %138 = vector.load %arg17[%c0_81, %c384_82] : memref<1x1024xf32, #tpu.memory_space<vmem>>, vector<1x64xf32>
    tpu.vector_store %arg17[%c0_81, %c384_82], %137 {strides = array<i32>} : memref<1x1024xf32, #tpu.memory_space<vmem>>, vector<1x64xf32>,
    %139 = vector.extract_strided_slice %124 {offsets = [7, 0], sizes = [1, 64], strides = [1, 1]} : vector<16x64xf32> to vector<1x64xf32>
    %c0_83 = arith.constant 0 : index
    %c448_84 = arith.constant 448 : index
    %140 = vector.load %arg17[%c0_83, %c448_84] : memref<1x1024xf32, #tpu.memory_space<vmem>>, vector<1x64xf32>
    tpu.vector_store %arg17[%c0_83, %c448_84], %139 {strides = array<i32>} : memref<1x1024xf32, #tpu.memory_space<vmem>>, vector<1x64xf32>,
    %141 = vector.extract_strided_slice %124 {offsets = [8, 0], sizes = [1, 64], strides = [1, 1]} : vector<16x64xf32> to vector<1x64xf32>
    %c0_85 = arith.constant 0 : index
    %c512_86 = arith.constant 512 : index
    %142 = vector.load %arg17[%c0_85, %c512_86] : memref<1x1024xf32, #tpu.memory_space<vmem>>, vector<1x64xf32>
    tpu.vector_store %arg17[%c0_85, %c512_86], %141 {strides = array<i32>} : memref<1x1024xf32, #tpu.memory_space<vmem>>, vector<1x64xf32>,
    %143 = vector.extract_strided_slice %124 {offsets = [9, 0], sizes = [1, 64], strides = [1, 1]} : vector<16x64xf32> to vector<1x64xf32>
    %c0_87 = arith.constant 0 : index
    %c576 = arith.constant 576 : index
    %144 = vector.load %arg17[%c0_87, %c576] : memref<1x1024xf32, #tpu.memory_space<vmem>>, vector<1x64xf32>
    tpu.vector_store %arg17[%c0_87, %c576], %143 {strides = array<i32>} : memref<1x1024xf32, #tpu.memory_space<vmem>>, vector<1x64xf32>,
    %145 = vector.extract_strided_slice %124 {offsets = [10, 0], sizes = [1, 64], strides = [1, 1]} : vector<16x64xf32> to vector<1x64xf32>
    %c0_88 = arith.constant 0 : index
    %c640 = arith.constant 640 : index
    %146 = vector.load %arg17[%c0_88, %c640] : memref<1x1024xf32, #tpu.memory_space<vmem>>, vector<1x64xf32>
    tpu.vector_store %arg17[%c0_88, %c640], %145 {strides = array<i32>} : memref<1x1024xf32, #tpu.memory_space<vmem>>, vector<1x64xf32>,
    %147 = vector.extract_strided_slice %124 {offsets = [11, 0], sizes = [1, 64], strides = [1, 1]} : vector<16x64xf32> to vector<1x64xf32>
    %c0_89 = arith.constant 0 : index
    %c704 = arith.constant 704 : index
    %148 = vector.load %arg17[%c0_89, %c704] : memref<1x1024xf32, #tpu.memory_space<vmem>>, vector<1x64xf32>
    tpu.vector_store %arg17[%c0_89, %c704], %147 {strides = array<i32>} : memref<1x1024xf32, #tpu.memory_space<vmem>>, vector<1x64xf32>,
    %149 = vector.extract_strided_slice %124 {offsets = [12, 0], sizes = [1, 64], strides = [1, 1]} : vector<16x64xf32> to vector<1x64xf32>
    %c0_90 = arith.constant 0 : index
    %c768 = arith.constant 768 : index
    %150 = vector.load %arg17[%c0_90, %c768] : memref<1x1024xf32, #tpu.memory_space<vmem>>, vector<1x64xf32>
    tpu.vector_store %arg17[%c0_90, %c768], %149 {strides = array<i32>} : memref<1x1024xf32, #tpu.memory_space<vmem>>, vector<1x64xf32>,
    %151 = vector.extract_strided_slice %124 {offsets = [13, 0], sizes = [1, 64], strides = [1, 1]} : vector<16x64xf32> to vector<1x64xf32>
    %c0_91 = arith.constant 0 : index
    %c832 = arith.constant 832 : index
    %152 = vector.load %arg17[%c0_91, %c832] : memref<1x1024xf32, #tpu.memory_space<vmem>>, vector<1x64xf32>
    tpu.vector_store %arg17[%c0_91, %c832], %151 {strides = array<i32>} : memref<1x1024xf32, #tpu.memory_space<vmem>>, vector<1x64xf32>,
    %153 = vector.extract_strided_slice %124 {offsets = [14, 0], sizes = [1, 64], strides = [1, 1]} : vector<16x64xf32> to vector<1x64xf32>
    %c0_92 = arith.constant 0 : index
    %c896 = arith.constant 896 : index
    %154 = vector.load %arg17[%c0_92, %c896] : memref<1x1024xf32, #tpu.memory_space<vmem>>, vector<1x64xf32>
    tpu.vector_store %arg17[%c0_92, %c896], %153 {strides = array<i32>} : memref<1x1024xf32, #tpu.memory_space<vmem>>, vector<1x64xf32>,
    %155 = vector.extract_strided_slice %124 {offsets = [15, 0], sizes = [1, 64], strides = [1, 1]} : vector<16x64xf32> to vector<1x64xf32>
    %c0_93 = arith.constant 0 : index
    %c960 = arith.constant 960 : index
    %156 = vector.load %arg17[%c0_93, %c960] : memref<1x1024xf32, #tpu.memory_space<vmem>>, vector<1x64xf32>
    tpu.vector_store %arg17[%c0_93, %c960], %155 {strides = array<i32>} : memref<1x1024xf32, #tpu.memory_space<vmem>>, vector<1x64xf32>,
    %c0_94 = arith.constant 0 : index
    %c0_95 = arith.constant 0 : index
    %157 = vector.load %arg17[%c0_94, %c0_95] : memref<1x1024xf32, #tpu.memory_space<vmem>>, vector<1x1024xf32>
    %c0_96 = arith.constant 0 : index
    %c0_97 = arith.constant 0 : index
    %158 = vector.load %arg8[%c0_96, %c0_97] : memref<1024x512xf32, #tpu.memory_space<vmem>>, vector<1024x512xf32>
    %cst_98 = arith.constant dense<0.000000e+00> : vector<1x512xf32>
    %159 = tpu.matmul %157, %158, %cst_98 {dimension_numbers = #tpu.dot_dimension_numbers<[1], [0], [0], [1], [0, 0, 1, 1], [], []>} : vector<1x1024xf32>, vector<1024x512xf32>, vector<1x512xf32> -> vector<1x512xf32>
    %c0_99 = arith.constant 0 : index
    %c0_100 = arith.constant 0 : index
    %160 = vector.load %arg9[%c0_99, %c0_100] : memref<1x512xf32, #tpu.memory_space<vmem>>, vector<1x512xf32>
    %161 = arith.addf %159, %160 : vector<1x512xf32>
    %cst_101 = arith.constant 0.000000e+00 : f32
    %162 = vector.broadcast %cst_101 : f32 to vector<1x512xf32>
    %163 = arith.maximumf %161, %162 : vector<1x512xf32>
    %c0_102 = arith.constant 0 : index
    %c0_103 = arith.constant 0 : index
    %164 = vector.load %arg10[%c0_102, %c0_103] : memref<512x10xf32, #tpu.memory_space<vmem>>, vector<512x10xf32>
    %cst_104 = arith.constant dense<0.000000e+00> : vector<1x10xf32>
    %165 = tpu.matmul %163, %164, %cst_104 {dimension_numbers = #tpu.dot_dimension_numbers<[1], [0], [0], [1], [0, 0, 1, 1], [], []>} : vector<1x512xf32>, vector<512x10xf32>, vector<1x10xf32> -> vector<1x10xf32>
    %c0_105 = arith.constant 0 : index
    %c0_106 = arith.constant 0 : index
    %166 = vector.load %arg11[%c0_105, %c0_106] : memref<1x10xf32, #tpu.memory_space<vmem>>, vector<1x10xf32>
    %167 = arith.addf %165, %166 : vector<1x10xf32>
    %c0_107 = arith.constant 0 : index
    %c0_108 = arith.constant 0 : index
    %c0_109 = arith.constant 0 : index
    %168 = vector.load %arg12[%c0_107, %c0_108, %c0_109] : memref<1x1x10xf32, #tpu.memory_space<vmem>>, vector<1x1x10xf32>
    %169 = vector.shape_cast %168 : vector<1x1x10xf32> to vector<1x10xf32>
    %170 = vector.shape_cast %167 : vector<1x10xf32> to vector<1x1x10xf32>
    tpu.vector_store %arg12[%c0_107, %c0_108, %c0_109], %170 {strides = array<i32>} : memref<1x1x10xf32, #tpu.memory_space<vmem>>, vector<1x1x10xf32>,
    return
  }
  func.func @transform_0(%arg0: i32) -> (i32, i32, i32) {
    %c0_i32 = arith.constant 0 : i32
    %c0_i32_0 = arith.constant 0 : i32
    %c0_i32_1 = arith.constant 0 : i32
    return %arg0, %c0_i32, %c0_i32_0 : i32, i32, i32
  }
  func.func @transform_1(%arg0: i32) -> (i32, i32) {
    %c0_i32 = arith.constant 0 : i32
    %c0_i32_0 = arith.constant 0 : i32
    %c0_i32_1 = arith.constant 0 : i32
    return %c0_i32, %c0_i32_0 : i32, i32
  }
  func.func @transform_2(%arg0: i32) -> (i32, i32) {
    %c0_i32 = arith.constant 0 : i32
    %c0_i32_0 = arith.constant 0 : i32
    %c0_i32_1 = arith.constant 0 : i32
    return %c0_i32, %c0_i32_0 : i32, i32
  }
  func.func @transform_3(%arg0: i32) -> (i32, i32) {
    %c0_i32 = arith.constant 0 : i32
    %c0_i32_0 = arith.constant 0 : i32
    %c0_i32_1 = arith.constant 0 : i32
    return %c0_i32, %c0_i32_0 : i32, i32
  }
  func.func @transform_4(%arg0: i32) -> (i32, i32) {
    %c0_i32 = arith.constant 0 : i32
    %c0_i32_0 = arith.constant 0 : i32
    %c0_i32_1 = arith.constant 0 : i32
    return %c0_i32, %c0_i32_0 : i32, i32
  }
  func.func @transform_5(%arg0: i32) -> (i32, i32) {
    %c0_i32 = arith.constant 0 : i32
    %c0_i32_0 = arith.constant 0 : i32
    %c0_i32_1 = arith.constant 0 : i32
    return %c0_i32, %c0_i32_0 : i32, i32
  }
  func.func @transform_6(%arg0: i32) -> (i32, i32) {
    %c0_i32 = arith.constant 0 : i32
    %c0_i32_0 = arith.constant 0 : i32
    %c0_i32_1 = arith.constant 0 : i32
    return %c0_i32, %c0_i32_0 : i32, i32
  }
  func.func @transform_7(%arg0: i32) -> (i32, i32) {
    %c0_i32 = arith.constant 0 : i32
    %c0_i32_0 = arith.constant 0 : i32
    %c0_i32_1 = arith.constant 0 : i32
    return %c0_i32, %c0_i32_0 : i32, i32
  }
  func.func @transform_8(%arg0: i32) -> (i32, i32) {
    %c0_i32 = arith.constant 0 : i32
    %c0_i32_0 = arith.constant 0 : i32
    %c0_i32_1 = arith.constant 0 : i32
    return %c0_i32, %c0_i32_0 : i32, i32
  }
  func.func @transform_9(%arg0: i32) -> (i32, i32) {
    %c0_i32 = arith.constant 0 : i32
    %c0_i32_0 = arith.constant 0 : i32
    %c0_i32_1 = arith.constant 0 : i32
    return %c0_i32, %c0_i32_0 : i32, i32
  }
  func.func @transform_10(%arg0: i32) -> (i32, i32) {
    %c0_i32 = arith.constant 0 : i32
    %c0_i32_0 = arith.constant 0 : i32
    %c0_i32_1 = arith.constant 0 : i32
    return %c0_i32, %c0_i32_0 : i32, i32
  }
  func.func @transform_11(%arg0: i32) -> (i32, i32, i32) {
    %c0_i32 = arith.constant 0 : i32
    %c0_i32_0 = arith.constant 0 : i32
    %c0_i32_1 = arith.constant 0 : i32
    return %arg0, %c0_i32, %c0_i32_0 : i32, i32, i32
  }
}

</mosaic_0001>

<bundles_post_ra>
// kernel: cnn_l2_forward.1
= control target key start
LH: loop header
LB: loop body
LE: loop exit
PB: predicated region body
PF: predicated region fallthrough
CT: control target
= control target key end

     0   :  { %s14906_s0 = inlined_call_operand.vmem [shape: f32[2,1024,27], index: 0, kind: input, shape index: {}]   ;;  %s14907_s1 = inlined_call_operand.vmem [shape: f32[27,16], index: 1, kind: input, shape index: {}]   ;;  %s14908_s2 = inlined_call_operand.vmem [shape: f32[1,16], index: 2, kind: input, shape index: {}]   ;;  %s14909_s3 = inlined_call_operand.vmem [shape: f32[16,288], index: 3, kind: input, shape index: {}]   ;;  %s14910_s4 = inlined_call_operand.vmem [shape: f32[1,32], index: 4, kind: input, shape index: {}]   ;;  %s14911_s5 = inlined_call_operand.vmem [shape: f32[32,576], index: 5, kind: input, shape index: {}]   ;;  %s14912_s6 = inlined_call_operand.vmem [shape: f32[1,64], index: 6, kind: input, shape index: {}]   ;;  %s14913_s7 = inlined_call_operand.vmem [shape: f32[1024,512], index: 7, kind: input, shape index: {}]   ;;  %s14914_s8 = inlined_call_operand.vmem [shape: f32[1,512], index: 8, kind: input, shape index: {}]   ;;  %s14915_s9 = inlined_call_operand.vmem [shape: f32[512,10], index: 9, kind: input, shape index: {}]   ;;  %s14916_s10 = inlined_call_operand.vmem [shape: f32[1,10], index: 10, kind: input, shape index: {}]   ;;  %s14917_s11 = inlined_call_operand.hbm [shape: f32[2,1,10], index: 11, kind: output, shape index: {}]  }
   0x1   :  { %15034 = sst [smem:[#allocation34_spill]] %s14906_s0 }
   0x2   :  { %16 = vsyncpa [#allocation8], 0 }
   0x3   :  { %18 = vsyncpa [#allocation8 + $0x1], 0  ;;  %s8512_s17 = smov 0   ;;  %s8514_s18 = smov 0  }
   0x4   :  { %s8516_s19 = smov 0   ;;  %s8518_s20 = smov 0  }
   0x5 LB: > { %s8533_s21 = sadd.s32 4294967295, %s8442_s20   ;;  %s8046_s22 = sadd.s32 4294967294, %s8442_s20   ;;  %s8442_s20 = sphi %s8518_s20, %s15379_s20   ;;  %s8438_s19 = sphi %s8516_s19, %s15378_s19   ;;  %s8434_s18 = sphi %s8514_s18, %s15377_s18   ;;  %s8430_s17 = sphi %s8512_s17, %s15376_s17  }
   0x6   : > { %s8537_s23 = sadd.s32 1, %s8442_s20   ;;  %s267_s24 = sadd.s32 1, %s8438_s19 }
   0x7   : > { %s264_s25 = ssub.s32 %s8442_s20, %s8537_s23  ;;  %p277_p0 = scmp.ne.s32.totalorder %s8438_s19, %s8434_s18 }
   0x8   : > { %p265_p1 = scmp.eq.s32.totalorder %s264_s25, 0  ;;  %p278_p2 = scmp.eq.s32.totalorder %s8533_s21, 1 }
   0x9   : > { %p283_p3 = scmp.ne.s32.totalorder %s8434_s18, %s8430_s17  ;;  %p284_p4 = scmp.eq.s32.totalorder %s8046_s22, 1 }
   0xa   : > { %s8548_s26 = scalar_select %p265_p1, %s8438_s19, %s267_s24  }
   0xb   : > { %p8550_p5 = por %p278_p2, %p277_p0  ;;  %p8554_p6 = por %p284_p4, %p283_p3 }
   0xc   : > { %p8049_p7 = scmp.ge.s32.totalorder %s8442_s20, 1  ;;  %p340_p8 = scmp.lt.s32.totalorder %s8442_s20, 3 }
   0xe   : > { %p341_p9 = pnand %p8049_p7, %p340_p8 }
  0x10   : > { %344 = sbr.rel (%p341_p9) target bundleno = 2445 (0x98d), region = 64 }
  0x15   : > { %s14918_s29 = sand.u32 1, %s8434_s18   ;;  %p379_p10 = scmp.lt.s32.totalorder %s8533_s21, 1  ;;  %vm384_vm0 = vcmask 130048   ;;  %v8448_v0 = vmov 0.0   ;;  %vm425_vm1 = vcmask 261120  }
  0x16   : > { %385 = vst.msk [vmem:[#allocation2] sm:$0xff] %vm384_vm0, %v8448_v0  ;;  %s15037_s0 = sld [smem:[#allocation34_spill]]  ;;  %s8622_s16 = scalar_lea.vmem [#allocation7], %s14918_s29 }
  0x17   : > { %s380_s30 = scalar_select %p379_p10, %s8533_s21, 1  ;;  %386 = vst.msk [vmem:[#allocation2 + $0x8] sm:$0xff] %vm384_vm0, %v8448_v0 }
  0x18   : > { %387 = vst.msk [vmem:[#allocation2 + $0x10] sm:$0xff] %vm384_vm0, %v8448_v0  ;;  %s8624_s22 = smov 0  }
  0x19   : > { %s8258_s12 = sshll.u32 %s380_s30, 10  ;;  %388 = vst.msk [vmem:[#allocation2 + $0x18] sm:$0xff] %vm384_vm0, %v8448_v0 }
  0x1a   : > { %389 = vst.msk [vmem:[#allocation2 + $0x20] sm:$0xff] %vm384_vm0, %v8448_v0 }
  0x1b   : > { %390 = vst.msk [vmem:[#allocation2 + $0x28] sm:$0xff] %vm384_vm0, %v8448_v0 }
  0x1c   : > { %s8570_s15 = scalar_lea.vmem %s15037_s0, %s8258_s12  ;;  %391 = vst.msk [vmem:[#allocation2 + $0x30] sm:$0xff] %vm384_vm0, %v8448_v0 }
  0x1d   : > { %392 = vst.msk [vmem:[#allocation2 + $0x38] sm:$0xff] %vm384_vm0, %v8448_v0 }
  0x1e   : > { %393 = vst.msk [vmem:[#allocation2 + $0x40] sm:$0xff] %vm384_vm0, %v8448_v0 }
  0x1f   : > { %394 = vst.msk [vmem:[#allocation2 + $0x48] sm:$0xff] %vm384_vm0, %v8448_v0 }
  0x20   : > { %395 = vst.msk [vmem:[#allocation2 + $0x50] sm:$0xff] %vm384_vm0, %v8448_v0 }
  0x21   : > { %396 = vst.msk [vmem:[#allocation2 + $0x58] sm:$0xff] %vm384_vm0, %v8448_v0 }
  0x22   : > { %397 = vst.msk [vmem:[#allocation2 + $0x60] sm:$0xff] %vm384_vm0, %v8448_v0 }
  0x23   : > { %398 = vst.msk [vmem:[#allocation2 + $0x68] sm:$0xff] %vm384_vm0, %v8448_v0 }
  0x24   : > { %399 = vst.msk [vmem:[#allocation2 + $0x70] sm:$0xff] %vm384_vm0, %v8448_v0 }
  0x25   : > { %400 = vst.msk [vmem:[#allocation2 + $0x78] sm:$0xff] %vm384_vm0, %v8448_v0 }
  0x26   : > { %401 = vst.msk [vmem:[#allocation2 + $0x80] sm:$0xff] %vm384_vm0, %v8448_v0 }
  0x27   : > { %402 = vst.msk [vmem:[#allocation2 + $0x88] sm:$0xff] %vm384_vm0, %v8448_v0 }
  0x28   : > { %403 = vst.msk [vmem:[#allocation2 + $0x90] sm:$0xff] %vm384_vm0, %v8448_v0 }
  0x29   : > { %404 = vst.msk [vmem:[#allocation2 + $0x98] sm:$0xff] %vm384_vm0, %v8448_v0 }
  0x2a   : > { %405 = vst.msk [vmem:[#allocation2 + $0xa0] sm:$0xff] %vm384_vm0, %v8448_v0 }
  0x2b   : > { %406 = vst.msk [vmem:[#allocation2 + $0xa8] sm:$0xff] %vm384_vm0, %v8448_v0 }
  0x2c   : > { %407 = vst.msk [vmem:[#allocation2 + $0xb0] sm:$0xff] %vm384_vm0, %v8448_v0 }
  0x2d   : > { %408 = vst.msk [vmem:[#allocation2 + $0xb8] sm:$0xff] %vm384_vm0, %v8448_v0 }
  0x2e   : > { %409 = vst.msk [vmem:[#allocation2 + $0xc0] sm:$0xff] %vm384_vm0, %v8448_v0 }
  0x2f   : > { %410 = vst.msk [vmem:[#allocation2 + $0xc8] sm:$0xff] %vm384_vm0, %v8448_v0 }
  0x30   : > { %411 = vst.msk [vmem:[#allocation2 + $0xd0] sm:$0xff] %vm384_vm0, %v8448_v0 }
  0x31   : > { %412 = vst.msk [vmem:[#allocation2 + $0xd8] sm:$0xff] %vm384_vm0, %v8448_v0 }
  0x32   : > { %413 = vst.msk [vmem:[#allocation2 + $0xe0] sm:$0xff] %vm384_vm0, %v8448_v0 }
  0x33   : > { %414 = vst.msk [vmem:[#allocation2 + $0xe8] sm:$0xff] %vm384_vm0, %v8448_v0 }
  0x34   : > { %415 = vst.msk [vmem:[#allocation2 + $0xf0] sm:$0xff] %vm384_vm0, %v8448_v0 }
  0x35   : > { %416 = vst.msk [vmem:[#allocation2 + $0xf8] sm:$0xff] %vm384_vm0, %v8448_v0 }
  0x36   : > { %417 = vst.msk [vmem:[#allocation2 + $0x100] sm:$0xff] %vm384_vm0, %v8448_v0 }
  0x37   : > { %418 = vst.msk [vmem:[#allocation2 + $0x108] sm:$0xff] %vm384_vm0, %v8448_v0 }
  0x38   : > { %419 = vst.msk [vmem:[#allocation2 + $0x110] sm:$0xff] %vm384_vm0, %v8448_v0 }
  0x39   : > { %420 = vst.msk [vmem:[#allocation2 + $0x118] sm:$0xff] %vm384_vm0, %v8448_v0 }
  0x3a   : > { %421 = vst.msk [vmem:[#allocation2 + $0x120] sm:$0xff] %vm384_vm0, %v8448_v0 }
  0x3b   : > { %422 = vst.msk [vmem:[#allocation2 + $0x128] sm:$0xff] %vm384_vm0, %v8448_v0 }
  0x3c   : > { %423 = vst.msk [vmem:[#allocation2 + $0x130] sm:$0xff] %vm384_vm0, %v8448_v0 }
  0x3d   : > { %424 = vst.msk [vmem:[#allocation2 + $0x138] sm:$0xff] %vm384_vm0, %v8448_v0 }
  0x3e   : > { %426 = vst.msk [vmem:[#allocation4] sm:$0xff] %vm425_vm1, %v8448_v0 }
  0x3f   : > { %427 = vst.msk [vmem:[#allocation4 + $0x8] sm:$0xff] %vm425_vm1, %v8448_v0 }
  0x40   : > { %428 = vst.msk [vmem:[#allocation4 + $0x10] sm:$0xff] %vm425_vm1, %v8448_v0 }
  0x41   : > { %429 = vst.msk [vmem:[#allocation4 + $0x18] sm:$0xff] %vm425_vm1, %v8448_v0 }
  0x42   : > { %430 = vst.msk [vmem:[#allocation4 + $0x20] sm:$0xff] %vm425_vm1, %v8448_v0 }
  0x43   : > { %431 = vst.msk [vmem:[#allocation4 + $0x28] sm:$0xff] %vm425_vm1, %v8448_v0 }
  0x44   : > { %432 = vst.msk [vmem:[#allocation4 + $0x30] sm:$0xff] %vm425_vm1, %v8448_v0 }
  0x45   : > { %433 = vst.msk [vmem:[#allocation4 + $0x38] sm:$0xff] %vm425_vm1, %v8448_v0 }
  0x46   : > { %434 = vst.msk [vmem:[#allocation4 + $0x40] sm:$0xff] %vm425_vm1, %v8448_v0 }
  0x47   : > { %435 = vst.msk [vmem:[#allocation4 + $0x48] sm:$0xff] %vm425_vm1, %v8448_v0 }
  0x48   : > { %436 = vst.msk [vmem:[#allocation4 + $0x50] sm:$0xff] %vm425_vm1, %v8448_v0 }
  0x49   : > { %437 = vst.msk [vmem:[#allocation4 + $0x58] sm:$0xff] %vm425_vm1, %v8448_v0 }
  0x4a LB: >> { %v465_v1 = vld [vmem:[%s14907_s1 + $0x18] sm:$0x7]  ;;  %vm519_vm2 = vcmask 1042432   ;;  %v464_v2 = vld [vmem:[%s14907_s1 + $0x10] sm:$0xff]  ;;  %v463_v3 = vld [vmem:[%s14907_s1 + $0x8] sm:$0xff]  ;;  %s8052_s29 = sshll.u32 %s8446_s22, 7  ;;  %s8446_s22 = sphi %s8624_s22, %s443_s22  }
  0x4b   : >> { %8053 = vmatpush.msk.msra.mxu0 %vm519_vm2, %v465_v1  ;;  %8260 = vmatpush.msk.msra.mxu1 %vm519_vm2, %v465_v1  ;;  %s8640_s0 = scalar_lea.vmem %s8570_s15, %s8052_s29  ;;  %v462_v4 = vld [vmem:[%s14907_s1] sm:$0xff]  ;;  %vm470_vm3 = vcmask 220160   ;;  %vm716_vm4 = vcmask 123904   ;;  %vm1295_vm5 = vcmask 1041409   ;;  %vm1297_vm6 = vcmask 1042434  }
  0x4c   : >> { %8261 = vmatpush.msk.msra.mxu2 %vm519_vm2, %v465_v1  ;;  %8262 = vmatpush.msk.msra.mxu3 %vm519_vm2, %v465_v1  ;;  %v446_v5 = vld [vmem:[%s8640_s0] sm:$0xff]  ;;  %v447_v9 = vld [vmem:[%s8640_s0 + $0x8] sm:$0xff]  ;;  %v448_v13 = vld [vmem:[%s8640_s0 + $0x10] sm:$0xff]  ;;  %vm14957_vm7 = vcmask 1043459   ;;  %vm14937_vm8 = vcmask 1044484   ;;  %vm14936_vm9 = vcmask 1045509  }
  0x4d   : >> { %536 = vmatpush.msra.mxu0 %v464_v2  ;;  %8263 = vmatpush.msra.mxu1 %v464_v2  ;;  %v450_v6 = vld [vmem:[%s8640_s0 + $0x20] sm:$0xff]  ;;  %v451_v10 = vld [vmem:[%s8640_s0 + $0x28] sm:$0xff]  ;;  %v452_v14 = vld [vmem:[%s8640_s0 + $0x30] sm:$0xff]  ;;  %vm14935_vm10 = vcmask 1046534   ;;  %vm14934_vm11 = vcmask 1047559  }
  0x4e   : >> { %8264 = vmatpush.msra.mxu2 %v464_v2  ;;  %8265 = vmatpush.msra.mxu3 %v464_v2  ;;  %v454_v7 = vld [vmem:[%s8640_s0 + $0x40] sm:$0xff]  ;;  %v455_v11 = vld [vmem:[%s8640_s0 + $0x48] sm:$0xff]  ;;  %v456_v15 = vld [vmem:[%s8640_s0 + $0x50] sm:$0xff] }
  0x4f   : >> { %537 = vmatpush.msra.mxu0 %v463_v3  ;;  %8266 = vmatpush.msra.mxu1 %v463_v3  ;;  %v458_v8 = vld [vmem:[%s8640_s0 + $0x60] sm:$0xff]  ;;  %v459_v12 = vld [vmem:[%s8640_s0 + $0x68] sm:$0xff]  ;;  %v460_v16 = vld [vmem:[%s8640_s0 + $0x70] sm:$0xff] }
  0x50   : >> { %8267 = vmatpush.msra.mxu2 %v463_v3  ;;  %8268 = vmatpush.msra.mxu3 %v463_v3  ;;  %v449_v17 = vld [vmem:[%s8640_s0 + $0x18] sm:$0xff]  ;;  %v8680_v21 = vld [vmem:[%s14908_s2] ss:$0 sm:$0xff] }
  0x51   : >> { %538 = vmatpush.msra.mxu0 %v462_v4  ;;  %8269 = vmatpush.msra.mxu1 %v462_v4  ;;  %v453_v18 = vld [vmem:[%s8640_s0 + $0x38] sm:$0xff] }
  0x52   : >> { %8270 = vmatpush.msra.mxu2 %v462_v4  ;;  %8271 = vmatpush.msra.mxu3 %v462_v4  ;;  %v457_v19 = vld [vmem:[%s8640_s0 + $0x58] sm:$0xff] }
  0x53   : >> { %8054 = vmatmul.msk.f32.vlgmr.msra.gmra.mxu0 %vm470_vm3, %v446_v5  ;;  %8058 = vmatmul.msk.f32.vlgmr.msra.gmra.mxu1 %vm470_vm3, %v450_v6  ;;  %v461_v20 = vld [vmem:[%s8640_s0 + $0x78] sm:$0xff]  ;;  %s8259_s0 = sshll.u32 %s8446_s22, 5  ;;  %s443_s22 = sadd.s32 1, %s8446_s22  }
  0x54   : >> { %8062 = vmatmul.msk.f32.vlgmr.msra.gmra.mxu2 %vm470_vm3, %v454_v7  ;;  %8066 = vmatmul.msk.f32.vlgmr.msra.gmra.mxu3 %vm470_vm3, %v458_v8  ;;  %s8794_s12 = scalar_lea.vmem [#allocation2], %s8259_s0  ;;  %p440_p11 = scmp.ge.s32.totalorder %s443_s22, 8  }
  0x55   : > { %s8449_s29 = smov (%p440_p11), 96   ;;  %vm2528_vm12 = vcmask (%p440_p11), 1046528   ;;  %s8450_s30 = smov (%p440_p11), 64   ;;  %vm2200_vm13 = vcmask (%p440_p11), 1040384  }
  0x56   : > { %s8451_s0 = smov (%p440_p11), 32   ;;  %s7976_s13 = scalar_lea.hbm (%p440_p11), %s14917_s11, %s8533_s21 }
  0x57   : > { %s7978_s14 = sshll.u32 (%p440_p11), %s8622_s16, 4  ;;  %s7980_s24 = sshll.u32 (%p440_p11), %s7976_s13, 4  ;;  %s7979_s14 = int_to_ptr.vmem [resolvable:$true] %s7978_s14  ;;  %s7981_s24 = int_to_ptr.hbm [resolvable:$true] %s7980_s24 }
  0x58   : > { %s15375_s25 = sand.u32 (%p440_p11), 1, %s8434_s18  }
  0x5b   : >> { %8055 = vmatmul.msk.f32.gmra.mxu0 %vm470_vm3, %v447_v9  ;;  %8059 = vmatmul.msk.f32.gmra.mxu1 %vm470_vm3, %v451_v10 }
  0x5c   : >> { %8063 = vmatmul.msk.f32.gmra.mxu2 %vm470_vm3, %v455_v11  ;;  %8067 = vmatmul.msk.f32.gmra.mxu3 %vm470_vm3, %v459_v12 }
  0x63   : >> { %8056 = vmatmul.msk.f32.gmra.mxu0 %vm470_vm3, %v448_v13  ;;  %8060 = vmatmul.msk.f32.gmra.mxu1 %vm470_vm3, %v452_v14 }
  0x64   : >> { %8064 = vmatmul.msk.f32.gmra.mxu2 %vm470_vm3, %v456_v15  ;;  %8068 = vmatmul.msk.f32.gmra.mxu3 %vm470_vm3, %v460_v16 }
  0x6b   : >> { %8057 = vmatmul.msk.f32.gmra.mxu0 %vm470_vm3, %v449_v17  ;;  %8061 = vmatmul.msk.f32.gmra.mxu1 %vm470_vm3, %v453_v18 }
  0x6c   : >> { %8065 = vmatmul.msk.f32.gmra.mxu2 %vm470_vm3, %v457_v19  ;;  %8069 = vmatmul.msk.f32.gmra.mxu3 %vm470_vm3, %v461_v20 }
  0xd0   : >> { %v540_v22 = vpop.f32.mrf.mxu0  ;;  %v552_v23 = vpop.f32.mrf.mxu1 }
  0xd1   : >> { %v541_v24 = vadd.f32 %v8680_v21, %v540_v22  ;;  %v553_v25 = vadd.f32 %v8680_v21, %v552_v23 }
  0xd3   : >> { %v588_v26 = vmax.f32 %v541_v24, 0.0  ;;  %v592_v27 = vmax.f32 %v553_v25, 0.0 }
  0xd5   : >> { %v620_v28 = vrot.slane %v588_v26, 2  ;;  %v621_v29 = vrot.slane %v588_v26, 4  ;;  %v622_v30 = vrot.slane %v588_v26, 6  ;;  %v717_v31 = vsel %vm716_vm4, %v588_v26, -inf }
  0xd6   : >> { %v718_v32 = vrot.slane %v717_v31, 4  ;;  %v632_v33 = vrot.slane %v592_v27, 2  ;;  %v633_v34 = vrot.slane %v592_v27, 4  ;;  %v634_v35 = vrot.slane %v592_v27, 6 }
  0xd7   : >> { %v724_v36 = vsel %vm716_vm4, %v620_v28, -inf  ;;  %v731_v37 = vsel %vm716_vm4, %v621_v29, -inf  ;;  %v738_v38 = vsel %vm716_vm4, %v622_v30, -inf  ;;  %v829_v39 = vsel %vm716_vm4, %v592_v27, -inf  ;;  %v564_v16 = vpop.f32.mrf.mxu2  ;;  %v576_v25 = vpop.f32.mrf.mxu3 }
  0xd8   : >> { %v719_v40 = vmax.f32 %v717_v31, %v718_v32  ;;  %v725_v41 = vrot.slane %v724_v36, 4  ;;  %v732_v42 = vrot.slane %v731_v37, 4  ;;  %v739_v43 = vrot.slane %v738_v38, 4 }
  0xd9   : >> { %v830_v44 = vrot.slane %v829_v39, 4  ;;  %v836_v45 = vsel %vm716_vm4, %v632_v33, -inf  ;;  %v843_v46 = vsel %vm716_vm4, %v633_v34, -inf  ;;  %v850_v47 = vsel %vm716_vm4, %v634_v35, -inf  ;;  %v543_v33 = vpop.f32.mrf.mxu0 }
  0xda   : >> { %v720_v48 = vrot.slane %v719_v40, 2  ;;  %v726_v49 = vmax.f32 %v724_v36, %v725_v41  ;;  %v733_v50 = vmax.f32 %v731_v37, %v732_v42  ;;  %v740_v51 = vmax.f32 %v738_v38, %v739_v43  ;;  %v555_v41 = vpop.f32.mrf.mxu1 }
  0xdb   : >> { %v831_v52 = vmax.f32 %v829_v39, %v830_v44  ;;  %v837_v53 = vrot.slane %v836_v45, 4  ;;  %v844_v54 = vrot.slane %v843_v46, 4  ;;  %v851_v55 = vrot.slane %v850_v47, 4 }
  0xdc   : >> { %v721_v56 = vmax.f32 %v719_v40, %v720_v48  ;;  %v727_v57 = vrot.slane %v726_v49, 2  ;;  %v734_v58 = vrot.slane %v733_v50, 2  ;;  %v741_v59 = vrot.slane %v740_v51, 2 }
  0xdd   : >> { %v832_v60 = vrot.slane %v831_v52, 2  ;;  %v838_v61 = vmax.f32 %v836_v45, %v837_v53  ;;  %v845_v62 = vmax.f32 %v843_v46, %v844_v54  ;;  %v852_v63 = vmax.f32 %v850_v47, %v851_v55 }
  0xde   : >> { %v722_v0 = vrot.slane %v721_v56, 1  ;;  %v728_v1 = vmax.f32 %v726_v49, %v727_v57  ;;  %v735_v2 = vmax.f32 %v733_v50, %v734_v58  ;;  %v742_v3 = vmax.f32 %v740_v51, %v741_v59 }
  0xdf   : >> { %v833_v4 = vmax.f32 %v831_v52, %v832_v60  ;;  %v839_v5 = vrot.slane %v838_v61, 2  ;;  %v846_v6 = vrot.slane %v845_v62, 2  ;;  %v853_v7 = vrot.slane %v852_v63, 2 }
  0xe0   : >> { %v723_v8 = vmax.f32 %v721_v56, %v722_v0  ;;  %v729_v9 = vrot.slane %v728_v1, 1  ;;  %v736_v10 = vrot.slane %v735_v2, 1  ;;  %v743_v11 = vrot.slane %v742_v3, 1 }
  0xe1   : >> { %v834_v12 = vrot.slane %v833_v4, 1  ;;  %v840_v13 = vmax.f32 %v838_v61, %v839_v5  ;;  %v847_v14 = vmax.f32 %v845_v62, %v846_v6  ;;  %v854_v15 = vmax.f32 %v852_v63, %v853_v7 }
  0xe2   : >> { %v730_v17 = vmax.f32 %v728_v1, %v729_v9  ;;  %v737_v18 = vmax.f32 %v735_v2, %v736_v10  ;;  %v744_v19 = vmax.f32 %v742_v3, %v743_v11  ;;  %v1165_v26 = vsel %vm384_vm0, %v723_v8, -inf }
  0xe3   : >> { %v835_v20 = vmax.f32 %v833_v4, %v834_v12  ;;  %v841_v22 = vrot.slane %v840_v13, 1  ;;  %v848_v23 = vrot.slane %v847_v14, 1  ;;  %v855_v24 = vrot.slane %v854_v15, 1 }
  0xe4   : >> { %v1168_v27 = vsel %vm384_vm0, %v730_v17, -inf  ;;  %v565_v28 = vadd.f32 %v8680_v21, %v564_v16  ;;  %v8697_v34 = vsel %vm384_vm0, %v737_v18, -inf  ;;  %v577_v36 = vadd.f32 %v8680_v21, %v576_v25 }
  0xe5   : >> { %v842_v29 = vmax.f32 %v840_v13, %v841_v22  ;;  %v849_v30 = vmax.f32 %v847_v14, %v848_v23  ;;  %v856_v31 = vmax.f32 %v854_v15, %v855_v24  ;;  %v1166_v32 = vsel %vm384_vm0, %v835_v20, -inf }
  0xe6   : >> { %v596_v35 = vmax.f32 %v565_v28, 0.0  ;;  %v8701_v37 = vsel %vm384_vm0, %v744_v19, -inf  ;;  %v1167_v38 = vmax.f32 %v1165_v26, %v1166_v32  ;;  %v544_v45 = vadd.f32 %v8680_v21, %v543_v33 }
  0xe7   : >> { %v1169_v39 = vsel %vm384_vm0, %v842_v29, -inf  ;;  %v8705_v40 = vsel %vm384_vm0, %v849_v30, -inf  ;;  %v8708_v43 = vsel %vm384_vm0, %v856_v31, -inf  ;;  %v600_v49 = vmax.f32 %v577_v36, 0.0 }
  0xe8   : >> { %v1170_v42 = vmax.f32 %v1168_v27, %v1169_v39  ;;  %v644_v44 = vrot.slane %v596_v35, 2  ;;  %v645_v46 = vrot.slane %v596_v35, 4  ;;  %v646_v47 = vrot.slane %v596_v35, 6 }
  0xe9   : >> { %v941_v48 = vsel %vm716_vm4, %v596_v35, -inf  ;;  %v1173_v50 = vmax.f32 %v8697_v34, %v8705_v40  ;;  %v8716_v53 = vadd.f32 %v8680_v21, %v555_v41  ;;  %v8723_v61 = vmax.f32 %v544_v45, 0.0 }
  0xea   : >> { %v942_v51 = vrot.slane %v941_v48, 4  ;;  %v948_v52 = vsel %vm716_vm4, %v644_v44, -inf  ;;  %v8719_v54 = vsel %vm1295_vm5, %v1170_v42, %v1167_v38  ;;  %v955_v56 = vsel %vm716_vm4, %v645_v46, -inf }
  0xeb   : >> { %v949_v55 = vrot.slane %v948_v52, 4  ;;  %v962_v57 = vsel %vm716_vm4, %v646_v47, -inf  ;;  %v956_v59 = vrot.slane %v955_v56, 4  ;;  %v656_v63 = vrot.slane %v600_v49, 2 }
  0xec   : >> { %v943_v58 = vmax.f32 %v941_v48, %v942_v51  ;;  %v963_v60 = vrot.slane %v962_v57, 4  ;;  %v657_v0 = vrot.slane %v600_v49, 4  ;;  %v658_v1 = vrot.slane %v600_v49, 6 }
  0xed   : >> { %v950_v62 = vmax.f32 %v948_v52, %v949_v55  ;;  %v957_v3 = vmax.f32 %v955_v56, %v956_v59  ;;  %v1053_v5 = vsel %vm716_vm4, %v600_v49, -inf  ;;  %v1060_v8 = vsel %vm716_vm4, %v656_v63, -inf }
  0xee   : >> { %v944_v2 = vrot.slane %v943_v58, 2  ;;  %v964_v4 = vmax.f32 %v962_v57, %v963_v60  ;;  %v1054_v7 = vrot.slane %v1053_v5, 4  ;;  %v1067_v9 = vsel %vm716_vm4, %v657_v0, -inf }
  0xef   : >> { %v951_v6 = vrot.slane %v950_v62, 2  ;;  %v958_v11 = vrot.slane %v957_v3, 2  ;;  %v1061_v13 = vrot.slane %v1060_v8, 4  ;;  %v1068_v16 = vrot.slane %v1067_v9, 4 }
  0xf0   : >> { %v945_v10 = vmax.f32 %v943_v58, %v944_v2  ;;  %v965_v12 = vrot.slane %v964_v4, 2  ;;  %v1055_v15 = vmax.f32 %v1053_v5, %v1054_v7  ;;  %v1074_v17 = vsel %vm716_vm4, %v658_v1, -inf }
  0xf1   : >> { %v952_v14 = vmax.f32 %v950_v62, %v951_v6  ;;  %v959_v19 = vmax.f32 %v957_v3, %v958_v11  ;;  %v1062_v22 = vmax.f32 %v1060_v8, %v1061_v13  ;;  %v1069_v25 = vmax.f32 %v1067_v9, %v1068_v16 }
  0xf2   : >> { %v946_v18 = vrot.slane %v945_v10, 1  ;;  %v966_v20 = vmax.f32 %v964_v4, %v965_v12  ;;  %v1056_v24 = vrot.slane %v1055_v15, 2  ;;  %v1075_v26 = vrot.slane %v1074_v17, 4 }
  0xf3   : >> { %v953_v23 = vrot.slane %v952_v14, 1  ;;  %v960_v28 = vrot.slane %v959_v19, 1  ;;  %v1063_v30 = vrot.slane %v1062_v22, 2  ;;  %v1070_v33 = vrot.slane %v1069_v25, 2 }
  0xf4   : >> { %v947_v27 = vmax.f32 %v945_v10, %v946_v18  ;;  %v967_v29 = vrot.slane %v966_v20, 1  ;;  %v1057_v32 = vmax.f32 %v1055_v15, %v1056_v24  ;;  %v1076_v35 = vmax.f32 %v1074_v17, %v1075_v26 }
  0xf5   : >> { %v954_v31 = vmax.f32 %v952_v14, %v953_v23  ;;  %v961_v36 = vmax.f32 %v959_v19, %v960_v28  ;;  %v1064_v41 = vmax.f32 %v1062_v22, %v1063_v30  ;;  %v1071_v45 = vmax.f32 %v1069_v25, %v1070_v33 }
  0xf6   : >> { %v968_v38 = vmax.f32 %v966_v20, %v967_v29  ;;  %v1213_v39 = vsel %vm384_vm0, %v947_v27, -inf  ;;  %v1058_v44 = vrot.slane %v1057_v32, 1  ;;  %v1077_v46 = vrot.slane %v1076_v35, 2 }
  0xf7   : >> { %v1216_v42 = vsel %vm384_vm0, %v954_v31, -inf  ;;  %v1219_v47 = vsel %vm384_vm0, %v961_v36, -inf  ;;  %v1065_v49 = vrot.slane %v1064_v41, 1  ;;  %v623_v51 = vrot.slane %v8723_v61, 2 }
  0xf8   : >> { %v8733_v48 = vsel %vm384_vm0, %v968_v38, -inf  ;;  %v1059_v52 = vmax.f32 %v1057_v32, %v1058_v44  ;;  %v1072_v55 = vrot.slane %v1071_v45, 1  ;;  %v1078_v56 = vmax.f32 %v1076_v35, %v1077_v46 }
  0xf9   : >> { %v624_v57 = vrot.slane %v8723_v61, 4  ;;  %v1066_v58 = vmax.f32 %v1064_v41, %v1065_v49  ;;  %v625_v59 = vrot.slane %v8723_v61, 6  ;;  %v745_v60 = vsel %vm716_vm4, %v8723_v61, -inf }
  0xfa   : >> { %v752_v62 = vsel %vm716_vm4, %v623_v51, -inf  ;;  %v1073_v63 = vmax.f32 %v1071_v45, %v1072_v55  ;;  %v1079_v0 = vrot.slane %v1078_v56, 1  ;;  %v1214_v1 = vsel %vm384_vm0, %v1059_v52, -inf  ;;  %v567_v52 = vpop.f32.mrf.mxu2 }
  0xfb   : >> { %v746_v2 = vrot.slane %v745_v60, 4  ;;  %v1215_v3 = vmax.f32 %v1213_v39, %v1214_v1  ;;  %v1217_v4 = vsel %vm384_vm0, %v1066_v58, -inf  ;;  %v753_v5 = vrot.slane %v752_v62, 4 }
  0xfc   : >> { %v759_v6 = vsel %vm716_vm4, %v624_v57, -inf  ;;  %v1080_v7 = vmax.f32 %v1078_v56, %v1079_v0  ;;  %v1218_v8 = vmax.f32 %v1216_v42, %v1217_v4  ;;  %v1220_v9 = vsel %vm384_vm0, %v1073_v63, -inf }
  0xfd   : >> { %v747_v10 = vmax.f32 %v745_v60, %v746_v2  ;;  %v1221_v11 = vmax.f32 %v1219_v47, %v1220_v9  ;;  %v754_v61 = vmax.f32 %v752_v62, %v753_v5  ;;  %v760_v12 = vrot.slane %v759_v6, 4  ;;  %v546_v60 = vpop.f32.mrf.mxu0  ;;  %v558_v2 = vpop.f32.mrf.mxu1 }
  0xfe   : >> { %v766_v13 = vsel %vm716_vm4, %v625_v59, -inf  ;;  %v1223_v14 = vsel %vm384_vm0, %v1080_v7, -inf  ;;  %v1316_v15 = vsel %vm1295_vm5, %v1218_v8, %v1215_v3  ;;  %v1176_v18 = vmax.f32 %v8701_v37, %v8708_v43  ;;  %v579_v59 = vpop.f32.mrf.mxu3 }
  0xff   : >> { %v748_v16 = vrot.slane %v747_v10, 2  ;;  %v767_v17 = vrot.slane %v766_v13, 4  ;;  %v755_v19 = vrot.slane %v754_v61, 2  ;;  %v761_v20 = vmax.f32 %v759_v6, %v760_v12 }
 0x100   : >> { %v1298_v22 = vsel %vm1297_vm6, %v1173_v50, %v8719_v54  ;;  %v593_v25 = vmax.f32 %v8716_v53, 0.0  ;;  %v1224_v26 = vmax.f32 %v8733_v48, %v1223_v14  ;;  %v1317_v27 = vsel %vm1297_vm6, %v1221_v11, %v1316_v15 }
 0x101   : >> { %v749_v23 = vmax.f32 %v747_v10, %v748_v16  ;;  %v768_v24 = vmax.f32 %v766_v13, %v767_v17  ;;  %v756_v28 = vmax.f32 %v754_v61, %v755_v19  ;;  %v762_v29 = vrot.slane %v761_v20, 2 }
 0x102   : >> { %v635_v30 = vrot.slane %v593_v25, 2  ;;  %v636_v31 = vrot.slane %v593_v25, 4  ;;  %v637_v35 = vrot.slane %v593_v25, 6  ;;  %v857_v34 = vsel %vm716_vm4, %v593_v25, -inf }
 0x103   : >> { %v750_v37 = vrot.slane %v749_v23, 1  ;;  %v769_v43 = vrot.slane %v768_v24, 2  ;;  %v757_v32 = vrot.slane %v756_v28, 1  ;;  %v763_v33 = vmax.f32 %v761_v20, %v762_v29 }
 0x104   : >> { %v858_v54 = vrot.slane %v857_v34, 4  ;;  %v864_v53 = vsel %vm716_vm4, %v635_v30, -inf  ;;  %v871_v41 = vsel %vm716_vm4, %v636_v31, -inf  ;;  %v8762_v42 = vsel %vm14957_vm7, %v1176_v18, %v1298_v22 }
 0x105   : >> { %v751_v40 = vmax.f32 %v749_v23, %v750_v37  ;;  %v770_v50 = vmax.f32 %v768_v24, %v769_v43  ;;  %v758_v36 = vmax.f32 %v756_v28, %v757_v32  ;;  %v764_v38 = vrot.slane %v763_v33, 1 }
 0x106   : >> { %v865_v39 = vrot.slane %v864_v53, 4  ;;  %v859_v45 = vmax.f32 %v857_v34, %v858_v54  ;;  %v872_v46 = vrot.slane %v871_v41, 4  ;;  %v8765_v47 = vsel %vm14957_vm7, %v1224_v26, %v1317_v27 }
 0x107   : >> { %v771_v44 = vrot.slane %v770_v50, 1  ;;  %v765_v48 = vmax.f32 %v763_v33, %v764_v38  ;;  %v878_v51 = vsel %vm716_vm4, %v637_v35, -inf  ;;  %v1177_v62 = vsel %vm384_vm0, %v751_v40, -inf }
 0x108   : >> { %v866_v49 = vmax.f32 %v864_v53, %v865_v39  ;;  %v860_v56 = vrot.slane %v859_v45, 2  ;;  %v873_v57 = vmax.f32 %v871_v41, %v872_v46  ;;  %v879_v58 = vrot.slane %v878_v51, 4 }
 0x109   : >> { %v772_v55 = vmax.f32 %v770_v50, %v771_v44  ;;  %v1180_v63 = vsel %vm384_vm0, %v758_v36, -inf  ;;  %v1183_v0 = vsel %vm384_vm0, %v765_v48, -inf  ;;  %v568_v8 = vadd.f32 %v8680_v21, %v567_v52 }
 0x10a   : >> { %v867_v1 = vrot.slane %v866_v49, 2  ;;  %v861_v4 = vmax.f32 %v859_v45, %v860_v56  ;;  %v874_v5 = vrot.slane %v873_v57, 2  ;;  %v880_v6 = vmax.f32 %v878_v51, %v879_v58 }
 0x10b   : >> { %v1186_v3 = vsel %vm384_vm0, %v772_v55, -inf  ;;  %v580_v9 = vadd.f32 %v8680_v21, %v579_v59  ;;  %v547_v10 = vadd.f32 %v8680_v21, %v546_v60  ;;  %v559_v13 = vadd.f32 %v8680_v21, %v558_v2 }
 0x10c   : >> { %v868_v7 = vmax.f32 %v866_v49, %v867_v1  ;;  %v862_v11 = vrot.slane %v861_v4, 1  ;;  %v875_v61 = vmax.f32 %v873_v57, %v874_v5  ;;  %v881_v12 = vrot.slane %v880_v6, 2 }
 0x10d   : >> { %v597_v15 = vmax.f32 %v568_v8, 0.0  ;;  %v601_v16 = vmax.f32 %v580_v9, 0.0  ;;  %v8776_v17 = vmax.f32 %v547_v10, 0.0  ;;  %v8778_v22 = vmax.f32 %v559_v13, 0.0 }
 0x10e   : >> { %v869_v14 = vrot.slane %v868_v7, 1  ;;  %v863_v18 = vmax.f32 %v861_v4, %v862_v11  ;;  %v876_v19 = vrot.slane %v875_v61, 1  ;;  %v882_v20 = vmax.f32 %v880_v6, %v881_v12 }
 0x10f   : >> { %v647_v24 = vrot.slane %v597_v15, 2  ;;  %v648_v25 = vrot.slane %v597_v15, 4  ;;  %v649_v26 = vrot.slane %v597_v15, 6  ;;  %v969_v37 = vsel %vm716_vm4, %v597_v15, -inf }
 0x110   : >> { %v870_v23 = vmax.f32 %v868_v7, %v869_v14  ;;  %v877_v27 = vmax.f32 %v875_v61, %v876_v19  ;;  %v883_v28 = vrot.slane %v882_v20, 1  ;;  %v1178_v29 = vsel %vm384_vm0, %v863_v18, -inf }
 0x111   : >> { %v1179_v43 = vmax.f32 %v1177_v62, %v1178_v29  ;;  %v970_v31 = vrot.slane %v969_v37, 4  ;;  %v976_v32 = vsel %vm716_vm4, %v647_v24, -inf  ;;  %v983_v36 = vsel %vm716_vm4, %v648_v25, -inf }
 0x112   : >> { %v1181_v30 = vsel %vm384_vm0, %v870_v23, -inf  ;;  %v884_v33 = vmax.f32 %v882_v20, %v883_v28  ;;  %v1184_v34 = vsel %vm384_vm0, %v877_v27, -inf  ;;  %v977_v40 = vrot.slane %v976_v32, 4 }
 0x113   : >> { %v1182_v35 = vmax.f32 %v1180_v63, %v1181_v30  ;;  %v1185_v50 = vmax.f32 %v1183_v0, %v1184_v34  ;;  %v1302_v54 = vsel %vm14937_vm8, %v1179_v43, %v8762_v42  ;;  %v971_v53 = vmax.f32 %v969_v37, %v970_v31 }
 0x114   : >> { %v1187_v38 = vsel %vm384_vm0, %v884_v33, -inf  ;;  %v978_v41 = vmax.f32 %v976_v32, %v977_v40  ;;  %v984_v44 = vrot.slane %v983_v36, 4  ;;  %v990_v49 = vsel %vm716_vm4, %v649_v26, -inf }
 0x115   : >> { %v1304_v39 = vsel %vm14936_vm9, %v1182_v35, %v1302_v54  ;;  %v1188_v45 = vmax.f32 %v1186_v3, %v1187_v38  ;;  %v972_v48 = vrot.slane %v971_v53, 2  ;;  %v991_v55 = vrot.slane %v990_v49, 4 }
 0x116   : >> { %v1306_v46 = vsel %vm14935_vm10, %v1185_v50, %v1304_v39  ;;  %v979_v51 = vrot.slane %v978_v41, 2  ;;  %v985_v52 = vmax.f32 %v983_v36, %v984_v44  ;;  %v659_v56 = vrot.slane %v601_v16, 2 }
 0x117   : >> { %v1308_v42 = vsel %vm14934_vm11, %v1188_v45, %v1306_v46  ;;  %v973_v57 = vmax.f32 %v971_v53, %v972_v48  ;;  %v660_v58 = vrot.slane %v601_v16, 4  ;;  %v661_v59 = vrot.slane %v601_v16, 6 }
 0x118   : >> { %8072 = vst.msk [vmem:[%s8794_s12 + $0x20] sm:$0xff] %vm384_vm0, %v1308_v42  ;;  %v980_v60 = vmax.f32 %v978_v41, %v979_v51  ;;  %v986_v62 = vrot.slane %v985_v52, 2  ;;  %v992_v63 = vmax.f32 %v990_v49, %v991_v55  ;;  %v1081_v0 = vsel %vm716_vm4, %v601_v16, -inf }
 0x119   : >> { %v974_v1 = vrot.slane %v973_v57, 1  ;;  %v1082_v2 = vrot.slane %v1081_v0, 4  ;;  %v1088_v3 = vsel %vm716_vm4, %v659_v56, -inf  ;;  %v1095_v4 = vsel %vm716_vm4, %v660_v58, -inf }
 0x11a   : >> { %v981_v5 = vrot.slane %v980_v60, 1  ;;  %v987_v6 = vmax.f32 %v985_v52, %v986_v62  ;;  %v993_v7 = vrot.slane %v992_v63, 2  ;;  %v1089_v8 = vrot.slane %v1088_v3, 4 }
 0x11b   : >> { %v975_v9 = vmax.f32 %v973_v57, %v974_v1  ;;  %v1083_v10 = vmax.f32 %v1081_v0, %v1082_v2  ;;  %v1096_v11 = vrot.slane %v1095_v4, 4  ;;  %v1102_v61 = vsel %vm716_vm4, %v661_v59, -inf }
 0x11c   : >> { %v982_v12 = vmax.f32 %v980_v60, %v981_v5  ;;  %v988_v13 = vrot.slane %v987_v6, 1  ;;  %v994_v14 = vmax.f32 %v992_v63, %v993_v7  ;;  %v1090_v15 = vmax.f32 %v1088_v3, %v1089_v8 }
 0x11d   : >> { %v1225_v16 = vsel %vm384_vm0, %v975_v9, -inf  ;;  %v1084_v18 = vrot.slane %v1083_v10, 2  ;;  %v1097_v19 = vmax.f32 %v1095_v4, %v1096_v11  ;;  %v1103_v20 = vrot.slane %v1102_v61, 4 }
 0x11e   : >> { %v989_v23 = vmax.f32 %v987_v6, %v988_v13  ;;  %v995_v24 = vrot.slane %v994_v14, 1  ;;  %v1228_v25 = vsel %vm384_vm0, %v982_v12, -inf  ;;  %v1091_v26 = vrot.slane %v1090_v15, 2 }
 0x11f   : >> { %v1085_v27 = vmax.f32 %v1083_v10, %v1084_v18  ;;  %v1098_v28 = vrot.slane %v1097_v19, 2  ;;  %v1104_v29 = vmax.f32 %v1102_v61, %v1103_v20  ;;  %v626_v37 = vrot.slane %v8776_v17, 2 }
 0x120   : >> { %v996_v43 = vmax.f32 %v994_v14, %v995_v24  ;;  %v1231_v30 = vsel %vm384_vm0, %v989_v23, -inf  ;;  %v1092_v31 = vmax.f32 %v1090_v15, %v1091_v26  ;;  %v627_v32 = vrot.slane %v8776_v17, 4  ;;  %v570_v23 = vpop.f32.mrf.mxu2 }
 0x121   : >> { %v1086_v33 = vrot.slane %v1085_v27, 1  ;;  %v1099_v35 = vmax.f32 %v1097_v19, %v1098_v28  ;;  %v1105_v34 = vrot.slane %v1104_v29, 2  ;;  %v628_v40 = vrot.slane %v8776_v17, 6 }
 0x122   : >> { %v1234_v50 = vsel %vm384_vm0, %v996_v43, -inf  ;;  %v1093_v54 = vrot.slane %v1092_v31, 1  ;;  %v773_v53 = vsel %vm716_vm4, %v8776_v17, -inf  ;;  %v780_v36 = vsel %vm716_vm4, %v626_v37, -inf }
 0x123   : >> { %v1087_v38 = vmax.f32 %v1085_v27, %v1086_v33  ;;  %v1100_v39 = vrot.slane %v1099_v35, 1  ;;  %v1106_v41 = vmax.f32 %v1104_v29, %v1105_v34  ;;  %v774_v44 = vrot.slane %v773_v53, 4 }
 0x124   : >> { %v1094_v45 = vmax.f32 %v1092_v31, %v1093_v54  ;;  %v781_v46 = vrot.slane %v780_v36, 4  ;;  %v787_v48 = vsel %vm716_vm4, %v627_v32, -inf  ;;  %v794_v49 = vsel %vm716_vm4, %v628_v40, -inf }
 0x125   : >> { %v1101_v51 = vmax.f32 %v1099_v35, %v1100_v39  ;;  %v1107_v52 = vrot.slane %v1106_v41, 1  ;;  %v1226_v55 = vsel %vm384_vm0, %v1087_v38, -inf  ;;  %v775_v56 = vmax.f32 %v773_v53, %v774_v44  ;;  %v582_v35 = vpop.f32.mrf.mxu3 }
 0x126   : >> { %v1227_v42 = vmax.f32 %v1225_v16, %v1226_v55  ;;  %v1229_v17 = vsel %vm384_vm0, %v1094_v45, -inf  ;;  %v782_v57 = vmax.f32 %v780_v36, %v781_v46  ;;  %v788_v58 = vrot.slane %v787_v48, 4 }
 0x127   : >> { %v1108_v59 = vmax.f32 %v1106_v41, %v1107_v52  ;;  %v1230_v60 = vmax.f32 %v1228_v25, %v1229_v17  ;;  %v1232_v62 = vsel %vm384_vm0, %v1101_v51, -inf  ;;  %v776_v63 = vrot.slane %v775_v56, 2 }
 0x128   : >> { %v1233_v0 = vmax.f32 %v1231_v30, %v1232_v62  ;;  %v1319_v1 = vsel %vm14937_vm8, %v1227_v42, %v8765_v47  ;;  %v783_v2 = vrot.slane %v782_v57, 2  ;;  %v789_v3 = vmax.f32 %v787_v48, %v788_v58 }
 0x129   : >> { %v1235_v4 = vsel %vm384_vm0, %v1108_v59, -inf  ;;  %v1320_v5 = vsel %vm14936_vm9, %v1230_v60, %v1319_v1  ;;  %v795_v6 = vrot.slane %v794_v49, 4  ;;  %v777_v9 = vmax.f32 %v775_v56, %v776_v63 }
 0x12a   : >> { %v1236_v7 = vmax.f32 %v1234_v50, %v1235_v4  ;;  %v1321_v8 = vsel %vm14935_vm10, %v1233_v0, %v1320_v5  ;;  %v784_v10 = vmax.f32 %v782_v57, %v783_v2  ;;  %v638_v11 = vrot.slane %v8778_v22, 2 }
 0x12b   : >> { %v639_v61 = vrot.slane %v8778_v22, 4  ;;  %v790_v47 = vrot.slane %v789_v3, 2  ;;  %v796_v13 = vmax.f32 %v794_v49, %v795_v6  ;;  %v640_v14 = vrot.slane %v8778_v22, 6 }
 0x12c   : >> { %v1322_v12 = vsel %vm14934_vm11, %v1236_v7, %v1321_v8  ;;  %v885_v15 = vsel %vm716_vm4, %v8778_v22, -inf  ;;  %v892_v16 = vsel %vm716_vm4, %v638_v11, -inf  ;;  %v778_v18 = vrot.slane %v777_v9, 1 }
 0x12d   : >> { %8074 = vst.msk [vmem:[%s8794_s12 + $0x30] sm:$0xff] %vm384_vm0, %v1322_v12  ;;  %v886_v19 = vrot.slane %v885_v15, 4  ;;  %v893_v20 = vrot.slane %v892_v16, 4  ;;  %v785_v24 = vrot.slane %v784_v10, 1  ;;  %v899_v25 = vsel %vm716_vm4, %v639_v61, -inf  ;;  %v549_v61 = vpop.f32.mrf.mxu0 }
 0x12e   : >> { %v906_v26 = vsel %vm716_vm4, %v640_v14, -inf  ;;  %v791_v27 = vmax.f32 %v789_v3, %v790_v47  ;;  %v797_v28 = vrot.slane %v796_v13, 2  ;;  %v900_v43 = vrot.slane %v899_v25, 4 }
 0x12f   : >> { %v887_v29 = vmax.f32 %v885_v15, %v886_v19  ;;  %v894_v37 = vmax.f32 %v892_v16, %v893_v20  ;;  %v907_v30 = vrot.slane %v906_v26, 4  ;;  %v571_v31 = vadd.f32 %v8680_v21, %v570_v23 }
 0x130   : >> { %v779_v22 = vmax.f32 %v777_v9, %v778_v18  ;;  %v786_v34 = vmax.f32 %v784_v10, %v785_v24  ;;  %v901_v40 = vmax.f32 %v899_v25, %v900_v43  ;;  %v792_v53 = vrot.slane %v791_v27, 1 }
 0x131   : >> { %v888_v32 = vrot.slane %v887_v29, 2  ;;  %v895_v33 = vrot.slane %v894_v37, 2  ;;  %v908_v50 = vmax.f32 %v906_v26, %v907_v30  ;;  %v598_v54 = vmax.f32 %v571_v31, 0.0 }
 0x132   : >> { %v798_v36 = vmax.f32 %v796_v13, %v797_v28  ;;  %v902_v41 = vrot.slane %v901_v40, 2  ;;  %v583_v46 = vadd.f32 %v8680_v21, %v582_v35  ;;  %v793_v57 = vmax.f32 %v791_v27, %v792_v53 }
 0x133   : >> { %v889_v38 = vmax.f32 %v887_v29, %v888_v32  ;;  %v896_v39 = vmax.f32 %v894_v37, %v895_v33  ;;  %v909_v44 = vrot.slane %v908_v50, 2  ;;  %v650_v45 = vrot.slane %v598_v54, 2 }
 0x134   : >> { %v651_v51 = vrot.slane %v598_v54, 4  ;;  %v652_v52 = vrot.slane %v598_v54, 6  ;;  %v903_v55 = vmax.f32 %v901_v40, %v902_v41  ;;  %v997_v42 = vsel %vm716_vm4, %v598_v54, -inf }
 0x135   : >> { %v890_v48 = vrot.slane %v889_v38, 1  ;;  %v897_v49 = vrot.slane %v896_v39, 1  ;;  %v910_v56 = vmax.f32 %v908_v50, %v909_v44  ;;  %v1004_v17 = vsel %vm716_vm4, %v650_v45, -inf }
 0x136   : >> { %v998_v59 = vrot.slane %v997_v42, 4  ;;  %v1005_v60 = vrot.slane %v1004_v17, 4  ;;  %v904_v63 = vrot.slane %v903_v55, 1  ;;  %v1011_v0 = vsel %vm716_vm4, %v651_v51, -inf }
 0x137   : >> { %v898_v58 = vmax.f32 %v896_v39, %v897_v49  ;;  %v891_v62 = vmax.f32 %v889_v38, %v890_v48  ;;  %v1018_v1 = vsel %vm716_vm4, %v652_v52, -inf  ;;  %v799_v2 = vrot.slane %v798_v36, 1 }
 0x138   : >> { %v999_v3 = vmax.f32 %v997_v42, %v998_v59  ;;  %v602_v4 = vmax.f32 %v583_v46, 0.0  ;;  %v1192_v5 = vsel %vm384_vm0, %v786_v34, -inf  ;;  %v905_v6 = vmax.f32 %v903_v55, %v904_v63 }
 0x139   : >> { %v911_v7 = vrot.slane %v910_v56, 1  ;;  %v1193_v8 = vsel %vm384_vm0, %v898_v58, -inf  ;;  %v1006_v9 = vmax.f32 %v1004_v17, %v1005_v60  ;;  %v1012_v10 = vrot.slane %v1011_v0, 4 }
 0x13a   : >> { %v1019_v11 = vrot.slane %v1018_v1, 4  ;;  %v1189_v12 = vsel %vm384_vm0, %v779_v22, -inf  ;;  %v1195_v47 = vsel %vm384_vm0, %v793_v57, -inf  ;;  %v1190_v13 = vsel %vm384_vm0, %v891_v62, -inf }
 0x13b   : >> { %v1000_v14 = vrot.slane %v999_v3, 2  ;;  %v800_v15 = vmax.f32 %v798_v36, %v799_v2  ;;  %v1194_v16 = vmax.f32 %v1192_v5, %v1193_v8  ;;  %v1196_v18 = vsel %vm384_vm0, %v905_v6, -inf }
 0x13c   : >> { %v662_v19 = vrot.slane %v602_v4, 2  ;;  %v912_v20 = vmax.f32 %v910_v56, %v911_v7  ;;  %v1013_v23 = vmax.f32 %v1011_v0, %v1012_v10  ;;  %v663_v24 = vrot.slane %v602_v4, 4 }
 0x13d   : >> { %v550_v25 = vadd.f32 %v8680_v21, %v549_v61  ;;  %v1191_v26 = vmax.f32 %v1189_v12, %v1190_v13  ;;  %v1007_v27 = vrot.slane %v1006_v9, 2  ;;  %v1020_v28 = vmax.f32 %v1018_v1, %v1019_v11  ;;  %v561_v1 = vpop.f32.mrf.mxu1 }
 0x13e   : >> { %v1109_v29 = vsel %vm716_vm4, %v602_v4, -inf  ;;  %v1197_v37 = vmax.f32 %v1195_v47, %v1196_v18  ;;  %v1001_v43 = vmax.f32 %v999_v3, %v1000_v14  ;;  %v1014_v30 = vrot.slane %v1013_v23, 2 }
 0x13f   : >> { %v1110_v31 = vrot.slane %v1109_v29, 4  ;;  %v1309_v22 = vsel %vm1295_vm5, %v1194_v16, %v1191_v26  ;;  %v664_v32 = vrot.slane %v602_v4, 6  ;;  %v1116_v33 = vsel %vm716_vm4, %v662_v19, -inf }
 0x140   : >> { %v1123_v35 = vsel %vm716_vm4, %v663_v24, -inf  ;;  %v1198_v34 = vsel %vm384_vm0, %v800_v15, -inf  ;;  %v1117_v50 = vrot.slane %v1116_v33, 4  ;;  %v1199_v54 = vsel %vm384_vm0, %v912_v20, -inf }
 0x141   : >> { %v1111_v40 = vmax.f32 %v1109_v29, %v1110_v31  ;;  %v1008_v53 = vmax.f32 %v1006_v9, %v1007_v27  ;;  %v1021_v36 = vrot.slane %v1020_v28, 2  ;;  %v1124_v38 = vrot.slane %v1123_v35, 4 }
 0x142   : >> { %v1310_v39 = vsel %vm1297_vm6, %v1197_v37, %v1309_v22  ;;  %v1002_v41 = vrot.slane %v1001_v43, 1  ;;  %v1015_v44 = vmax.f32 %v1013_v23, %v1014_v30  ;;  %v1118_v46 = vmax.f32 %v1116_v33, %v1117_v50 }
 0x143   : >> { %v1112_v45 = vrot.slane %v1111_v40, 2  ;;  %v1130_v48 = vsel %vm716_vm4, %v664_v32, -inf  ;;  %v591_v49 = vmax.f32 %v550_v25, 0.0  ;;  %v1200_v51 = vmax.f32 %v1198_v34, %v1199_v54 }
 0x144   : >> { %v1125_v52 = vmax.f32 %v1123_v35, %v1124_v38  ;;  %v1009_v55 = vrot.slane %v1008_v53, 1  ;;  %v1022_v56 = vmax.f32 %v1020_v28, %v1021_v36  ;;  %v1003_v58 = vmax.f32 %v1001_v43, %v1002_v41 }
 0x145   : >> { %v629_v42 = vrot.slane %v591_v49, 2  ;;  %v630_v17 = vrot.slane %v591_v49, 4  ;;  %v8855_v57 = vsel %vm14957_vm7, %v1200_v51, %v1310_v39  ;;  %v1131_v59 = vrot.slane %v1130_v48, 4 }
 0x146   : >> { %v1016_v60 = vrot.slane %v1015_v44, 1  ;;  %v1113_v62 = vmax.f32 %v1111_v40, %v1112_v45  ;;  %v1119_v63 = vrot.slane %v1118_v46, 2  ;;  %v801_v0 = vsel %vm716_vm4, %v591_v49, -inf }
 0x147   : >> { %v1126_v2 = vrot.slane %v1125_v52, 2  ;;  %v631_v3 = vrot.slane %v591_v49, 6  ;;  %v802_v4 = vrot.slane %v801_v0, 4  ;;  %v808_v5 = vsel %vm716_vm4, %v629_v42, -inf }
 0x148   : >> { %v1010_v6 = vmax.f32 %v1008_v53, %v1009_v55  ;;  %v1023_v7 = vrot.slane %v1022_v56, 1  ;;  %v809_v8 = vrot.slane %v808_v5, 4  ;;  %v815_v9 = vsel %vm716_vm4, %v630_v17, -inf  ;;  %v573_v55 = vpop.f32.mrf.mxu2 }
 0x149   : >> { %v1132_v10 = vmax.f32 %v1130_v48, %v1131_v59  ;;  %v803_v11 = vmax.f32 %v801_v0, %v802_v4  ;;  %v816_v61 = vrot.slane %v815_v9, 4  ;;  %v562_v12 = vadd.f32 %v8680_v21, %v561_v1 }
 0x14a   : >> { %v1017_v47 = vmax.f32 %v1015_v44, %v1016_v60  ;;  %v1114_v13 = vrot.slane %v1113_v62, 1  ;;  %v1120_v14 = vmax.f32 %v1118_v46, %v1119_v63  ;;  %v810_v15 = vmax.f32 %v808_v5, %v809_v8 }
 0x14b   : >> { %v8861_v16 = vmax.f32 %v1125_v52, %v1126_v2  ;;  %v804_v18 = vrot.slane %v803_v11, 2  ;;  %v817_v19 = vmax.f32 %v815_v9, %v816_v61  ;;  %v822_v20 = vsel %vm716_vm4, %v631_v3, -inf  ;;  %v8326_v3 = vld [vmem:[%s14908_s2] ss:$0 sm:$0xff] }
 0x14c   : >> { %v8864_v23 = vmax.f32 %v1022_v56, %v1023_v7  ;;  %v8867_v24 = vsel %vm384_vm0, %v1003_v58, -inf  ;;  %v8870_v25 = vsel %vm384_vm0, %v1010_v6, -inf  ;;  %v811_v26 = vrot.slane %v810_v15, 2  ;;  %v585_v56 = vpop.f32.mrf.mxu3 }
 0x14d   : >> { %v1133_v21 = vrot.slane %v1132_v10, 2  ;;  %v805_v27 = vmax.f32 %v803_v11, %v804_v18  ;;  %v818_v28 = vrot.slane %v817_v19, 2  ;;  %v823_v29 = vrot.slane %v822_v20, 4 }
 0x14e   : >> { %v8873_v37 = vsel %vm384_vm0, %v1017_v47, -inf  ;;  %v1121_v43 = vrot.slane %v1120_v14, 1  ;;  %v812_v30 = vmax.f32 %v810_v15, %v811_v26  ;;  %v595_v31 = vmax.f32 %v562_v12, 0.0 }
 0x14f   : >> { %v1115_v22 = vmax.f32 %v1113_v62, %v1114_v13  ;;  %v1128_v32 = vrot.slane %v8861_v16, 1  ;;  %v806_v33 = vrot.slane %v805_v27, 1  ;;  %v819_v35 = vmax.f32 %v817_v19, %v818_v28 }
 0x150   : >> { %v813_v34 = vrot.slane %v812_v30, 1  ;;  %v824_v40 = vmax.f32 %v822_v20, %v823_v29  ;;  %v641_v50 = vrot.slane %v595_v31, 2  ;;  %v642_v54 = vrot.slane %v595_v31, 4 }
 0x151   : >> { %v8876_v53 = vmax.f32 %v1132_v10, %v1133_v21  ;;  %v807_v36 = vmax.f32 %v805_v27, %v806_v33  ;;  %v820_v38 = vrot.slane %v819_v35, 1  ;;  %v643_v39 = vrot.slane %v595_v31, 6 }
 0x152   : >> { %v8878_v41 = vmax.f32 %v1120_v14, %v1121_v43  ;;  %v825_v44 = vrot.slane %v824_v40, 2  ;;  %v913_v45 = vsel %vm716_vm4, %v595_v31, -inf  ;;  %v920_v46 = vsel %vm716_vm4, %v641_v50, -inf }
 0x153   : >> { %v8883_v48 = vsel %vm384_vm0, %v1115_v22, -inf  ;;  %v814_v49 = vmax.f32 %v812_v30, %v813_v34  ;;  %v914_v51 = vrot.slane %v913_v45, 4  ;;  %v921_v52 = vrot.slane %v920_v46, 4 }
 0x154   : >> { %v821_v42 = vmax.f32 %v819_v35, %v820_v38  ;;  %v826_v17 = vmax.f32 %v824_v40, %v825_v44  ;;  %v927_v58 = vsel %vm716_vm4, %v642_v54, -inf  ;;  %v934_v59 = vsel %vm716_vm4, %v643_v39, -inf }
 0x155   : >> { %v1201_v60 = vsel %vm384_vm0, %v807_v36, -inf  ;;  %v915_v62 = vmax.f32 %v913_v45, %v914_v51  ;;  %v922_v63 = vmax.f32 %v920_v46, %v921_v52  ;;  %v928_v0 = vrot.slane %v927_v58, 4 }
 0x156   : >> { %v827_v1 = vrot.slane %v826_v17, 1  ;;  %v935_v2 = vrot.slane %v934_v59, 4  ;;  %v574_v4 = vadd.f32 %v8326_v3, %v573_v55  ;;  %v586_v5 = vadd.f32 %v8326_v3, %v585_v56 }
 0x157   : >> { %v1204_v6 = vsel %vm384_vm0, %v814_v49, -inf  ;;  %v916_v7 = vrot.slane %v915_v62, 2  ;;  %v923_v8 = vrot.slane %v922_v63, 2  ;;  %v929_v9 = vmax.f32 %v927_v58, %v928_v0 }
 0x158   : >> { %v828_v10 = vmax.f32 %v826_v17, %v827_v1  ;;  %v1207_v11 = vsel %vm384_vm0, %v821_v42, -inf  ;;  %v936_v61 = vmax.f32 %v934_v59, %v935_v2  ;;  %v599_v12 = vmax.f32 %v574_v4, 0.0 }
 0x159   : >> { %v917_v47 = vmax.f32 %v915_v62, %v916_v7  ;;  %v924_v13 = vmax.f32 %v922_v63, %v923_v8  ;;  %v930_v14 = vrot.slane %v929_v9, 2  ;;  %v8893_v15 = vmax.f32 %v586_v5, 0.0 }
 0x15a   : >> { %v1210_v18 = vsel %vm384_vm0, %v828_v10, -inf  ;;  %v937_v19 = vrot.slane %v936_v61, 2  ;;  %v653_v20 = vrot.slane %v599_v12, 2  ;;  %v654_v26 = vrot.slane %v599_v12, 4 }
 0x15b   : >> { %v918_v21 = vrot.slane %v917_v47, 1  ;;  %v925_v27 = vrot.slane %v924_v13, 1  ;;  %v931_v28 = vmax.f32 %v929_v9, %v930_v14  ;;  %v655_v29 = vrot.slane %v599_v12, 6 }
 0x15c   : >> { %v938_v43 = vmax.f32 %v936_v61, %v937_v19  ;;  %v1025_v30 = vsel %vm716_vm4, %v599_v12, -inf  ;;  %v1032_v31 = vsel %vm716_vm4, %v653_v20, -inf  ;;  %v1039_v22 = vsel %vm716_vm4, %v654_v26, -inf }
 0x15d   : >> { %v919_v33 = vmax.f32 %v917_v47, %v918_v21  ;;  %v926_v35 = vmax.f32 %v924_v13, %v925_v27  ;;  %v932_v34 = vrot.slane %v931_v28, 1  ;;  %v1026_v40 = vrot.slane %v1025_v30, 4 }
 0x15e   : >> { %v939_v50 = vrot.slane %v938_v43, 1  ;;  %v1033_v54 = vrot.slane %v1032_v31, 4  ;;  %v1040_v36 = vrot.slane %v1039_v22, 4  ;;  %v1046_v38 = vsel %vm716_vm4, %v655_v29, -inf }
 0x15f   : >> { %v933_v39 = vmax.f32 %v931_v28, %v932_v34  ;;  %v1202_v44 = vsel %vm384_vm0, %v919_v33, -inf  ;;  %v1205_v45 = vsel %vm384_vm0, %v926_v35, -inf  ;;  %v1027_v46 = vmax.f32 %v1025_v30, %v1026_v40 }
 0x160   : >> { %v940_v49 = vmax.f32 %v938_v43, %v939_v50  ;;  %v1203_v51 = vmax.f32 %v1201_v60, %v1202_v44  ;;  %v1206_v52 = vmax.f32 %v1204_v6, %v1205_v45  ;;  %v1034_v55 = vmax.f32 %v1032_v31, %v1033_v54 }
 0x161   : >> { %v1208_v56 = vsel %vm384_vm0, %v933_v39, -inf  ;;  %v1028_v42 = vrot.slane %v1027_v46, 2  ;;  %v1041_v17 = vmax.f32 %v1039_v22, %v1040_v36  ;;  %v1047_v58 = vrot.slane %v1046_v38, 4 }
 0x162   : >> { %v1209_v59 = vmax.f32 %v1207_v11, %v1208_v56  ;;  %v1211_v62 = vsel %vm384_vm0, %v940_v49, -inf  ;;  %v1312_v63 = vsel %vm14937_vm8, %v1203_v51, %v8855_v57  ;;  %v1035_v0 = vrot.slane %v1034_v55, 2 }
 0x163   : >> { %v1129_v1 = vmax.f32 %v8861_v16, %v1128_v32  ;;  %v1212_v60 = vmax.f32 %v1210_v18, %v1211_v62  ;;  %v1313_v2 = vsel %vm14936_vm9, %v1206_v52, %v1312_v63  ;;  %v1042_v3 = vrot.slane %v1041_v17, 2 }
 0x164   : >> { %v1314_v4 = vsel %vm14935_vm10, %v1209_v59, %v1313_v2  ;;  %v1029_v5 = vmax.f32 %v1027_v46, %v1028_v42  ;;  %v1048_v6 = vmax.f32 %v1046_v38, %v1047_v58  ;;  %v665_v7 = vrot.slane %v8893_v15, 2 }
 0x165   : >> { %v1135_v8 = vrot.slane %v8876_v53, 1  ;;  %v1241_v57 = vsel %vm384_vm0, %v8878_v41, -inf  ;;  %v1315_v9 = vsel %vm14934_vm11, %v1212_v60, %v1314_v4  ;;  %v666_v10 = vrot.slane %v8893_v15, 4 }
 0x166   : >> { %8073 = vst.msk [vmem:[%s8794_s12 + $0x28] sm:$0xff] %vm384_vm0, %v1315_v9  ;;  %v1036_v16 = vmax.f32 %v1034_v55, %v1035_v0  ;;  %v1049_v32 = vrot.slane %v1048_v6, 2  ;;  %v667_v11 = vrot.slane %v8893_v15, 6  ;;  %v1137_v61 = vsel %vm716_vm4, %v8893_v15, -inf }
 0x167   : >> { %v1239_v12 = vmax.f32 %v8867_v24, %v8883_v48  ;;  %v1043_v47 = vmax.f32 %v1041_v17, %v1042_v3  ;;  %v1138_v13 = vrot.slane %v1137_v61, 4  ;;  %v1144_v41 = vsel %vm716_vm4, %v665_v7, -inf }
 0x168   : >> { %v1242_v14 = vmax.f32 %v8870_v25, %v1241_v57  ;;  %v1030_v18 = vrot.slane %v1029_v5, 1  ;;  %v1145_v19 = vrot.slane %v1144_v41, 4  ;;  %v1151_v20 = vsel %vm716_vm4, %v666_v10, -inf }
 0x169   : >> { %v1244_v26 = vsel %vm384_vm0, %v1129_v1, -inf  ;;  %v1050_v21 = vmax.f32 %v1048_v6, %v1049_v32  ;;  %v1139_v27 = vmax.f32 %v1137_v61, %v1138_v13  ;;  %v1152_v28 = vrot.slane %v1151_v20, 4 }
 0x16a   : >> { %v1136_v15 = vmax.f32 %v8876_v53, %v1135_v8  ;;  %v1037_v29 = vrot.slane %v1036_v16, 1  ;;  %v1146_v43 = vmax.f32 %v1144_v41, %v1145_v19  ;;  %v1158_v24 = vsel %vm716_vm4, %v667_v11, -inf }
 0x16b   : >> { %v1044_v48 = vrot.slane %v1043_v47, 1  ;;  %v1140_v30 = vrot.slane %v1139_v27, 2  ;;  %v1153_v31 = vmax.f32 %v1151_v20, %v1152_v28  ;;  %v1159_v22 = vrot.slane %v1158_v24, 4 }
 0x16c   : >> { %v1245_v25 = vmax.f32 %v8873_v37, %v1244_v26  ;;  %v1323_v33 = vsel %vm1295_vm5, %v1242_v14, %v1239_v12  ;;  %v1031_v35 = vmax.f32 %v1029_v5, %v1030_v18  ;;  %v1147_v34 = vrot.slane %v1146_v43, 2  ;;  %v1383_v12 = vld [vmem:[%s14909_s3 + $0x18] sm:$0xff] (%p440_p11)  ;;  %v1384_v14 = vld [vmem:[%s14909_s3 + $0x20] sm:$0xff] (%p440_p11)  ;;  %v1381_v18 = vld [vmem:[%s14909_s3 + $0x8] sm:$0xff] (%p440_p11) }
 0x16d   : >> { %v1051_v40 = vrot.slane %v1050_v21, 1  ;;  %v1141_v50 = vmax.f32 %v1139_v27, %v1140_v30  ;;  %v1154_v54 = vrot.slane %v1153_v31, 2  ;;  %v1160_v36 = vmax.f32 %v1158_v24, %v1159_v22  ;;  %1520 = vmatpush.msra.mxu0 (%p440_p11), %v1383_v12  ;;  %8272 = vmatpush.msra.mxu1 (%p440_p11), %v1383_v12  ;;  %v1385_v24 = vld [vmem:[%s14909_s3 + $0x28] sm:$0xff] (%p440_p11)  ;;  %v1382_v22 = vld [vmem:[%s14909_s3 + $0x10] sm:$0xff] (%p440_p11) }
 0x16e   : >> { %v1246_v53 = vsel %vm384_vm0, %v8864_v23, -inf  ;;  %v1247_v38 = vsel %vm384_vm0, %v1136_v15, -inf  ;;  %v1038_v39 = vmax.f32 %v1036_v16, %v1037_v29  ;;  %v1148_v44 = vmax.f32 %v1146_v43, %v1147_v34  ;;  %1794 = vmatpush.msra.mxu2 (%p440_p11), %v1385_v24 }
 0x16f   : >> { %v1045_v45 = vmax.f32 %v1043_v47, %v1044_v48  ;;  %v1142_v46 = vrot.slane %v1141_v50, 1  ;;  %v1155_v49 = vmax.f32 %v1153_v31, %v1154_v54  ;;  %v1161_v51 = vrot.slane %v1160_v36, 2  ;;  %v1380_v47 = vld [vmem:[%s14909_s3] sm:$0xff] (%p440_p11) }
 0x170   : >> { %v1324_v37 = vsel %vm1297_vm6, %v1245_v25, %v1323_v33  ;;  %v1249_v52 = vsel %vm384_vm0, %v1031_v35, -inf  ;;  %v1149_v55 = vrot.slane %v1148_v44, 1  ;;  %v1052_v56 = vmax.f32 %v1050_v21, %v1051_v40  ;;  %1521 = vmatpush.msra.mxu0 (%p440_p11), %v1380_v47  ;;  %8273 = vmatpush.msra.mxu1 (%p440_p11), %v1380_v47 }
 0x171   : >> { %v1143_v42 = vmax.f32 %v1141_v50, %v1142_v46  ;;  %v1156_v17 = vrot.slane %v1155_v49, 1  ;;  %v1162_v58 = vmax.f32 %v1160_v36, %v1161_v51  ;;  %v1248_v59 = vmax.f32 %v1246_v53, %v1247_v38  ;;  %1795 = vmatpush.msra.mxu2 (%p440_p11), %v1382_v22 }
 0x172   : >> { %v1252_v23 = vsel %vm384_vm0, %v1038_v39, -inf  ;;  %v1150_v62 = vmax.f32 %v1148_v44, %v1149_v55  ;;  %v1255_v63 = vsel %vm384_vm0, %v1045_v45, -inf  ;;  %v1258_v5 = vsel %vm384_vm0, %v1052_v56, -inf  ;;  %1657 = vmatpush.msrb.mxu1 (%p440_p11), %v1384_v14 }
 0x173   : >> { %v1157_v0 = vmax.f32 %v1155_v49, %v1156_v17  ;;  %v1163_v1 = vrot.slane %v1162_v58, 1  ;;  %v1250_v60 = vsel %vm384_vm0, %v1143_v42, -inf  ;;  %v1325_v2 = vsel %vm14957_vm7, %v1248_v59, %v1324_v37 }
 0x174   : >> { %v1251_v3 = vmax.f32 %v1249_v52, %v1250_v60  ;;  %v1253_v4 = vsel %vm384_vm0, %v1150_v62, -inf  ;;  %1658 = vmatpush.msrb.mxu1 (%p440_p11), %v1381_v18 }
 0x175   : >> { %v1164_v6 = vmax.f32 %v1162_v58, %v1163_v1  ;;  %v1254_v7 = vmax.f32 %v1252_v23, %v1253_v4  ;;  %v1256_v8 = vsel %vm384_vm0, %v1157_v0, -inf }
 0x176   : >> { %v1257_v57 = vmax.f32 %v1255_v63, %v1256_v8  ;;  %v1326_v9 = vsel %vm14937_vm8, %v1251_v3, %v1325_v2  ;;  %vm4132_vm8 = vcmask (%p440_p11), 254976  }
 0x177   : >> { %v1259_v10 = vsel %vm384_vm0, %v1164_v6, -inf  ;;  %v1327_v16 = vsel %vm14936_vm9, %v1254_v7, %v1326_v9  ;;  %442 = sbr.rel (!%p440_p11) target bundleno = 74 (0x4a), region = 109 }
 0x178   : >> { %v1260_v32 = vmax.f32 %v1258_v5, %v1259_v10  ;;  %v1328_v11 = vsel %vm14935_vm10, %v1257_v57, %v1327_v16 }
 0x17a   : >> { %v1329_v61 = vsel %vm14934_vm11, %v1260_v32, %v1328_v11 }
 0x17b   : >> { %8075 = vst.msk [vmem:[%s8794_s12 + $0x38] sm:$0xff] %vm384_vm0, %v1329_v61  ;;  %s8390_s12 = sshra.s32 (%p440_p11), %s7981_s24, 4  ;;  %s8391_s12 = int_to_ptr.hbm [resolvable:$true] %s8390_s12 }
 0x17c   : > { %s8392_s15 = scalar_lea.hbm %s8391_s12, 1  ;;  %p8397_p1 = scmp.lt.s32.totalorder %s8391_s12, %s14917_s11 }
 0x17d   : > { %p8393_p12 = scmp.ne.s32.totalorder %s8391_s12, %s8392_s15 }
 0x17f   : > { %p8394_p13 = pnand %p8393_p12, %p8550_p5 }
 0x181   : > { %p8395_p0 = pneg %p8394_p13 }
 0x182   : > { %v1340_v13 = vld [vmem:[#allocation2] sm:$0xff]  ;;  %v1378_v41 = vld [vmem:[#allocation2 + $0x130] sm:$0xff]  ;;  %v1341_v19 = vld [vmem:[#allocation2 + $0x8] sm:$0xff] }
 0x183   : > { %8076 = vmatmul.msk.f32.vlgmr.msra.gmra.mxu0 %vm384_vm0, %v1340_v13  ;;  %8114 = vmatmul.msk.f32.vlgmr.msra.gmra.mxu1 %vm384_vm0, %v1378_v41  ;;  %v1379_v20 = vld [vmem:[#allocation2 + $0x138] sm:$0xff]  ;;  %v1342_v26 = vld [vmem:[#allocation2 + $0x10] sm:$0xff]  ;;  %v1344_v27 = vld [vmem:[#allocation2 + $0x20] sm:$0xff] }
 0x184   : > { %v1343_v21 = vld [vmem:[#allocation2 + $0x18] sm:$0xff]  ;;  %v1345_v28 = vld [vmem:[#allocation2 + $0x28] sm:$0xff]  ;;  %v1346_v15 = vld [vmem:[#allocation2 + $0x30] sm:$0xff]  ;;  %8156 = vmatmul.msk.f32.vlgmr.msra.gmra.mxu2 %vm384_vm0, %v1340_v13 }
 0x185   : > { %v1347_v29 = vld [vmem:[#allocation2 + $0x38] sm:$0xff]  ;;  %v1348_v43 = vld [vmem:[#allocation2 + $0x40] sm:$0xff]  ;;  %v8987_v48 = vld [vmem:[#allocation2 + $0x48] sm:$0xff] }
 0x186   : > { %v8992_v30 = vld [vmem:[#allocation2 + $0x50] sm:$0xff]  ;;  %v8997_v31 = vld [vmem:[#allocation2 + $0x58] sm:$0xff]  ;;  %v9007_v25 = vld [vmem:[#allocation2 + $0x60] sm:$0xff] }
 0x187   : > { %v9017_v33 = vld [vmem:[#allocation2 + $0x68] sm:$0xff]  ;;  %v9024_v35 = vld [vmem:[#allocation2 + $0x70] sm:$0xff]  ;;  %v9034_v36 = vld [vmem:[#allocation2 + $0x78] sm:$0xff] }
 0x188   : > { %v9059_v17 = vld [vmem:[#allocation2 + $0x80] sm:$0xff]  ;;  %v9071_v0 = vld [vmem:[#allocation2 + $0x88] sm:$0xff]  ;;  %v9091_v8 = vld [vmem:[#allocation2 + $0x90] sm:$0xff] }
 0x18b   : > { %8077 = vmatmul.msk.f32.gmra.mxu0 %vm384_vm0, %v1341_v19  ;;  %8115 = vmatmul.msk.f32.gmra.mxu1 %vm384_vm0, %v1379_v20 }
 0x18c   : > { %8157 = vmatmul.msk.f32.gmra.mxu2 %vm384_vm0, %v1341_v19 }
 0x193   : > { %8078 = vmatmul.msk.f32.gmra.mxu0 %vm384_vm0, %v1342_v26  ;;  %8116 = vmatmul.msk.f32.vlgmr.msrb.gmra.mxu1 %vm384_vm0, %v1340_v13 }
 0x194   : > { %8158 = vmatmul.msk.f32.gmra.mxu2 %vm384_vm0, %v1342_v26 }
 0x19b   : > { %8079 = vmatmul.msk.f32.gmra.mxu0 %vm384_vm0, %v1343_v21  ;;  %8117 = vmatmul.msk.f32.gmra.mxu1 %vm384_vm0, %v1341_v19 }
 0x19c   : > { %8159 = vmatmul.msk.f32.gmra.mxu2 %vm384_vm0, %v1343_v21 }
 0x1a3   : > { %8080 = vmatmul.msk.f32.gmra.mxu0 %vm384_vm0, %v1344_v27  ;;  %8118 = vmatmul.msk.f32.gmra.mxu1 %vm384_vm0, %v1342_v26 }
 0x1a4   : > { %8160 = vmatmul.msk.f32.gmra.mxu2 %vm384_vm0, %v1344_v27 }
 0x1ab   : > { %8081 = vmatmul.msk.f32.gmra.mxu0 %vm384_vm0, %v1345_v28  ;;  %8119 = vmatmul.msk.f32.gmra.mxu1 %vm384_vm0, %v1343_v21 }
 0x1ac   : > { %8161 = vmatmul.msk.f32.gmra.mxu2 %vm384_vm0, %v1345_v28 }
 0x1b3   : > { %8082 = vmatmul.msk.f32.gmra.mxu0 %vm384_vm0, %v1346_v15  ;;  %8120 = vmatmul.msk.f32.gmra.mxu1 %vm384_vm0, %v1344_v27  ;;  %v9133_v27 = vld [vmem:[#allocation2 + $0x98] sm:$0xff] }
 0x1b4   : > { %8162 = vmatmul.msk.f32.gmra.mxu2 %vm384_vm0, %v1346_v15 }
 0x1bb   : > { %8083 = vmatmul.msk.f32.gmra.mxu0 %vm384_vm0, %v1347_v29  ;;  %8121 = vmatmul.msk.f32.gmra.mxu1 %vm384_vm0, %v1345_v28 }
 0x1bc   : > { %8163 = vmatmul.msk.f32.gmra.mxu2 %vm384_vm0, %v1347_v29 }
 0x1c3   : > { %8084 = vmatmul.msk.f32.gmra.mxu0 %vm384_vm0, %v1348_v43  ;;  %8122 = vmatmul.msk.f32.gmra.mxu1 %vm384_vm0, %v1346_v15 }
 0x1c4   : > { %8164 = vmatmul.msk.f32.gmra.mxu2 %vm384_vm0, %v1348_v43 }
 0x1cb   : > { %8123 = vmatmul.msk.f32.gmra.mxu1 %vm384_vm0, %v1347_v29  ;;  %8085 = vmatmul.msk.f32.gmra.mxu0 %vm384_vm0, %v8987_v48 }
 0x1cc   : > { %8165 = vmatmul.msk.f32.gmra.mxu2 %vm384_vm0, %v8987_v48 }
 0x1d3   : > { %8124 = vmatmul.msk.f32.gmra.mxu1 %vm384_vm0, %v1348_v43  ;;  %8086 = vmatmul.msk.f32.gmra.mxu0 %vm384_vm0, %v8992_v30 }
 0x1d4   : > { %8166 = vmatmul.msk.f32.gmra.mxu2 %vm384_vm0, %v8992_v30 }
 0x1db   : > { %8125 = vmatmul.msk.f32.gmra.mxu1 %vm384_vm0, %v8987_v48  ;;  %8087 = vmatmul.msk.f32.gmra.mxu0 %vm384_vm0, %v8997_v31 }
 0x1dc   : > { %8167 = vmatmul.msk.f32.gmra.mxu2 %vm384_vm0, %v8997_v31 }
 0x1e3   : > { %8126 = vmatmul.msk.f32.gmra.mxu1 %vm384_vm0, %v8992_v30  ;;  %8088 = vmatmul.msk.f32.gmra.mxu0 %vm384_vm0, %v9007_v25 }
 0x1e4   : > { %8168 = vmatmul.msk.f32.gmra.mxu2 %vm384_vm0, %v9007_v25 }
 0x1eb   : > { %8127 = vmatmul.msk.f32.gmra.mxu1 %vm384_vm0, %v8997_v31  ;;  %8089 = vmatmul.msk.f32.gmra.mxu0 %vm384_vm0, %v9017_v33 }
 0x1ec   : > { %8169 = vmatmul.msk.f32.gmra.mxu2 %vm384_vm0, %v9017_v33 }
 0x1f3   : > { %8128 = vmatmul.msk.f32.gmra.mxu1 %vm384_vm0, %v9007_v25  ;;  %8090 = vmatmul.msk.f32.gmra.mxu0 %vm384_vm0, %v9024_v35 }
 0x1f4   : > { %8170 = vmatmul.msk.f32.gmra.mxu2 %vm384_vm0, %v9024_v35 }
 0x1fb   : > { %8129 = vmatmul.msk.f32.gmra.mxu1 %vm384_vm0, %v9017_v33  ;;  %8091 = vmatmul.msk.f32.gmra.mxu0 %vm384_vm0, %v9034_v36 }
 0x1fc   : > { %8171 = vmatmul.msk.f32.gmra.mxu2 %vm384_vm0, %v9034_v36 }
 0x200   : > { %v1523_v34 = vpop.f32.mrf.mxu0  ;;  %v1637_v40 = vpop.f32.mrf.mxu1 }
 0x203   : > { %8130 = vmatmul.msk.f32.gmra.mxu1 %vm384_vm0, %v9024_v35  ;;  %8092 = vmatmul.msk.f32.gmra.mxu0 %vm384_vm0, %v9059_v17  ;;  %v9163_v35 = vld [vmem:[#allocation2 + $0xa0] sm:$0xff] }
 0x204   : > { %8172 = vmatmul.msk.f32.gmra.mxu2 %vm384_vm0, %v9059_v17 }
 0x208   : > { %v1526_v50 = vpop.f32.mrf.mxu0  ;;  %v1640_v54 = vpop.f32.mrf.mxu1 }
 0x209   : > { %1920 = vst [vmem:[#allocation3 + $0x18] sm:$0xff] %v1526_v50 }
 0x20b   : > { %8131 = vmatmul.msk.f32.gmra.mxu1 %vm384_vm0, %v9034_v36  ;;  %8093 = vmatmul.msk.f32.gmra.mxu0 %vm384_vm0, %v9071_v0  ;;  %v9186_v36 = vld [vmem:[#allocation2 + $0xa8] sm:$0xff] }
 0x20c   : > { %8173 = vmatmul.msk.f32.gmra.mxu2 %vm384_vm0, %v9071_v0 }
 0x210   : > { %v9041_v53 = vpop.f32.mrf.mxu0  ;;  %v1660_v38 = vpop.f32.mrf.mxu1 }
 0x211   : > { %1923 = vst [vmem:[#allocation3 + $0x30] sm:$0xff] %v9041_v53  ;;  %2364 = vrot.lane.b32.xlu0 %v9041_v53, %s8449_s29 }
 0x213   : > { %8132 = vmatmul.msk.f32.gmra.mxu1 %vm384_vm0, %v9059_v17  ;;  %8094 = vmatmul.msk.f32.gmra.mxu0 %vm384_vm0, %v9091_v8 }
 0x214   : > { %8174 = vmatmul.msk.f32.gmra.mxu2 %vm384_vm0, %v9091_v8 }
 0x218   : > { %v9047_v39 = vpop.f32.mrf.mxu0  ;;  %v1663_v44 = vpop.f32.mrf.mxu1  ;;  %v2492_v45 = vld [vmem:[#allocation3 + $0x30] sm:$0xfe] }
 0x219   : > { %1926 = vst [vmem:[#allocation3 + $0x48] sm:$0xff] %v9047_v39  ;;  %2366 = vrot.lane.b32.xlu0 %v9047_v39, %s8449_s29  ;;  %v2530_v46 = vrot.slane %v9047_v39, 1  ;;  %v2529_v49 = vrot.slane %v2492_v45, 1 }
 0x21b   : > { %v2531_v51 = vsel %vm2528_vm12, %v2529_v49, %v2530_v46  ;;  %8133 = vmatmul.msk.f32.gmra.mxu1 %vm384_vm0, %v9071_v0  ;;  %8095 = vmatmul.msk.f32.gmra.mxu0 %vm384_vm0, %v9133_v27 }
 0x21c   : > { %2594 = vrot.lane.b32.xlu1 %v2531_v51, %s8450_s30  ;;  %8175 = vmatmul.msk.f32.gmra.mxu2 %vm384_vm0, %v9133_v27 }
 0x220   : > { %v1535_v37 = vpop.f32.mrf.mxu0  ;;  %v1666_v52 = vpop.f32.mrf.mxu1  ;;  %v2754_v55 = vld [vmem:[#allocation3 + $0x48] sm:$0x80] }
 0x221   : > { %2368 = vrot.lane.b32.xlu0 %v1535_v37, %s8449_s29  ;;  %v9057_v56 = vrot.slane %v1535_v37, 7  ;;  %v2760_v42 = vrot.slane %v2754_v55, 7  ;;  %v2532_v59 = vrot.slane %v1535_v37, 1  ;;  %v9212_v55 = vld [vmem:[#allocation2 + $0xb0] sm:$0xff] }
 0x223   : > { %v2761_v58 = vsel %vm2200_vm13, %v2760_v42, %v9057_v56  ;;  %v2533_v1 = vsel %vm2528_vm12, %v2530_v46, %v2532_v59  ;;  %8134 = vmatmul.msk.f32.gmra.mxu1 %vm384_vm0, %v9091_v8  ;;  %8096 = vmatmul.msk.f32.gmra.mxu0 %vm384_vm0, %v9163_v35  ;;  %v1797_v46 = vpop.f32.mrf.mxu2 }
 0x224   : > { %2768 = vrot.lane.b32.xlu2 %v2761_v58, %s8451_s0  ;;  %8176 = vmatmul.msk.f32.gmra.mxu2 %vm384_vm0, %v9163_v35 }
 0x228   : > { %v1538_v23 = vpop.f32.mrf.mxu0  ;;  %v1669_v62 = vpop.f32.mrf.mxu1 }
 0x229   : > { %2370 = vrot.lane.b32.xlu1 %v1538_v23, %s8449_s29  ;;  %v2208_v63 = vrot.slane %v1538_v23, 7  ;;  %v2534_v2 = vrot.slane %v1538_v23, 1  ;;  %v9231_v62 = vld [vmem:[#allocation2 + $0xb8] sm:$0xff] }
 0x22b   : > { %v9080_v60 = vsel %vm2200_vm13, %v9057_v56, %v2208_v63  ;;  %v2535_v5 = vsel %vm2528_vm12, %v2532_v59, %v2534_v2  ;;  %8135 = vmatmul.msk.f32.gmra.mxu1 %vm384_vm0, %v9133_v27  ;;  %8097 = vmatmul.msk.f32.gmra.mxu0 %vm384_vm0, %v9186_v36  ;;  %v1800_v17 = vpop.f32.mrf.mxu2 }
 0x22c   : > { %2596 = vrot.lane.b32.xlu2 %v2533_v1, %s8450_s30  ;;  %2770 = vrot.lane.b32.xlu0 %v9080_v60, %s8451_s0 }
 0x22d   : > { %8177 = vmatmul.msk.f32.gmra.mxu2 %vm384_vm0, %v9186_v36 }
 0x230   : > { %v1541_v3 = vpop.f32.mrf.mxu0  ;;  %v9087_v4 = vpop.f32.mrf.mxu1 }
 0x231   : > { %2598 = vrot.lane.b32.xlu1 %v2535_v5, %s8450_s30  ;;  %v2536_v6 = vrot.slane %v1541_v3, 1  ;;  %v2210_v7 = vrot.slane %v1541_v3, 7  ;;  %1930 = vst [vmem:[#allocation3 + $0x68] sm:$0xff] %v9087_v4  ;;  %v9251_v5 = vld [vmem:[#allocation2 + $0xc0] sm:$0xff] }
 0x233   : > { %v2537_v57 = vsel %vm2528_vm12, %v2534_v2, %v2536_v6  ;;  %v9100_v9 = vsel %vm2200_vm13, %v2208_v63, %v2210_v7  ;;  %8136 = vmatmul.msk.f32.gmra.mxu1 %vm384_vm0, %v9163_v35  ;;  %8098 = vmatmul.msk.f32.gmra.mxu0 %vm384_vm0, %v9212_v55  ;;  %v1803_v1 = vpop.f32.mrf.mxu2 }
 0x234   : > { %2600 = vrot.lane.b32.xlu0 %v2537_v57, %s8450_s30  ;;  %2772 = vrot.lane.b32.xlu2 %v9100_v9, %s8451_s0 }
 0x235   : > { %8178 = vmatmul.msk.f32.gmra.mxu2 %vm384_vm0, %v9212_v55 }
 0x238   : > { %v1544_v10 = vpop.f32.mrf.mxu0  ;;  %v9107_v16 = vpop.f32.mrf.mxu1  ;;  %v2992_v32 = vld [vmem:[#allocation3 + $0x68] sm:$0xfe] }
 0x239   : > { %2372 = vrot.lane.b32.xlu1 %v1541_v3, %s8449_s29  ;;  %v3028_v11 = vrot.slane %v9107_v16, 1  ;;  %1933 = vst [vmem:[#allocation3 + $0x80] sm:$0xff] %v9107_v16  ;;  %v3027_v61 = vrot.slane %v2992_v32, 1  ;;  %v2212_v47 = vrot.slane %v1544_v10, 7  ;;  %v2538_v13 = vrot.slane %v1544_v10, 1 }
 0x23b   : > { %v3029_v12 = vsel %vm2528_vm12, %v3027_v61, %v3028_v11  ;;  %v9122_v18 = vsel %vm2200_vm13, %v2210_v7, %v2212_v47  ;;  %v2539_v21 = vsel %vm2528_vm12, %v2536_v6, %v2538_v13  ;;  %8137 = vmatmul.msk.f32.gmra.mxu1 %vm384_vm0, %v9186_v36  ;;  %8099 = vmatmul.msk.f32.gmra.mxu0 %vm384_vm0, %v9231_v62  ;;  %v1806_v57 = vpop.f32.mrf.mxu2 }
 0x23c   : > { %2374 = vrot.lane.b32.xlu0 %v1544_v10, %s8449_s29  ;;  %3092 = vrot.lane.b32.xlu2 %v3029_v12, %s8449_s29  ;;  %v9275_v12 = vld [vmem:[#allocation2 + $0xc8] sm:$0xff]  ;;  %v14919_v57 = vlaneseq }
 0x23d   : > { %8179 = vmatmul.msk.f32.gmra.mxu2 %vm384_vm0, %v9231_v62 }
 0x240   : > { %v9117_v41 = vpop.f32.mrf.mxu0  ;;  %v9119_v14 = vpop.f32.mrf.mxu1  ;;  %v3252_v19 = vld [vmem:[#allocation3 + $0x80] sm:$0x80] }
 0x241   : > { %2774 = vrot.lane.b32.xlu1 %v9122_v18, %s8451_s0  ;;  %v3258_v20 = vrot.slane %v3252_v19, 7  ;;  %v3259_v26 = vrot.slane %v9119_v14, 7  ;;  %v3030_v29 = vrot.slane %v9119_v14, 1  ;;  %v2214_v31 = vrot.slane %v9117_v41, 7 }
 0x242   : > { %v2540_v40 = vrot.slane %v9117_v41, 1 }
 0x243   : > { %v3260_v28 = vsel %vm2200_vm13, %v3258_v20, %v3259_v26  ;;  %v3031_v25 = vsel %vm2528_vm12, %v3028_v11, %v3030_v29  ;;  %v9175_v50 = vsel %vm2200_vm13, %v2212_v47, %v2214_v31  ;;  %8138 = vmatmul.msk.f32.gmra.mxu1 %vm384_vm0, %v9212_v55  ;;  %8100 = vmatmul.msk.f32.gmra.mxu0 %vm384_vm0, %v9251_v5  ;;  %v1809_v19 = vpop.f32.mrf.mxu2  ;;  %v9348_v55 = vld [vmem:[#allocation2 + $0xe0] sm:$0xff] }
 0x244   : > { %2602 = vrot.lane.b32.xlu0 %v2539_v21, %s8450_s30  ;;  %2376 = vrot.lane.b32.xlu2 %v9117_v41, %s8449_s29  ;;  %v2541_v54 = vsel %vm2528_vm12, %v2538_v13, %v2540_v40 }
 0x245   : > { %8180 = vmatmul.msk.f32.gmra.mxu2 %vm384_vm0, %v9251_v5 }
 0x248   : > { %v9140_v15 = vpop.f32.mrf.mxu1  ;;  %v9145_v24 = vpop.f32.mrf.mxu0 }
 0x249   : > { %3323 = vrot.lane.b32.xlu1 %v3260_v28, %s8450_s30  ;;  %v3032_v43 = vrot.slane %v9140_v15, 1  ;;  %v3261_v30 = vrot.slane %v9140_v15, 7  ;;  %v2216_v49 = vrot.slane %v9145_v24, 7  ;;  %v2542_v42 = vrot.slane %v9145_v24, 1 }
 0x24b   : > { %v3033_v48 = vsel %vm2528_vm12, %v3030_v29, %v3032_v43  ;;  %v3262_v34 = vsel %vm2200_vm13, %v3259_v26, %v3261_v30  ;;  %v2543_v58 = vsel %vm2528_vm12, %v2540_v40, %v2542_v42  ;;  %8139 = vmatmul.msk.f32.gmra.mxu1 %vm384_vm0, %v9231_v62  ;;  %v9246_v2 = vsel %vm2200_vm13, %v2214_v31, %v2216_v49  ;;  %v9297_v29 = vld [vmem:[#allocation2 + $0xd0] sm:$0xff]  ;;  %v9323_v40 = vld [vmem:[#allocation2 + $0xd8] sm:$0xff]  ;;  %v9379_v62 = vld [vmem:[#allocation2 + $0xe8] sm:$0xff] }
 0x24c   : > { %3096 = vrot.lane.b32.xlu0 %v3033_v48, %s8449_s29  ;;  %3485 = vrot.lane.b32.xlu2 %v9119_v14, %s8451_s0  ;;  %15039 = vst [vmem:[#allocation11_spill] sm:$0xff] %v9246_v2 }
 0x24d   : > { %8101 = vmatmul.msk.f32.gmra.mxu0 %vm384_vm0, %v9275_v12  ;;  %8181 = vmatmul.msk.f32.gmra.mxu2 %vm384_vm0, %v9275_v12 }
 0x250   : > { %v9157_v22 = vpop.f32.mrf.mxu1  ;;  %v9161_v33 = vpop.f32.mrf.mxu0 }
 0x251   : > { %15038 = vst [vmem:[#allocation10_spill] sm:$0xff] %v9157_v22  ;;  %3094 = vrot.lane.b32.xlu1 %v3031_v25, %s8449_s29  ;;  %v2218_v45 = vrot.slane %v9161_v33, 7  ;;  %v3263_v59 = vrot.slane %v9157_v22, 7  ;;  %v3034_v3 = vrot.slane %v9157_v22, 1  ;;  %v2544_v32 = vrot.slane %v9161_v33, 1  ;;  %v1812_v25 = vpop.f32.mrf.mxu2 }
 0x252   : > { %v2202_v25 = vrot.slane %v9041_v53, 7 }
 0x253   : > { %v9207_v37 = vsel %vm2200_vm13, %v2216_v49, %v2218_v45  ;;  %v3264_v63 = vsel %vm2200_vm13, %v3261_v30, %v3263_v59  ;;  %8140 = vmatmul.msk.f32.gmra.mxu1 %vm384_vm0, %v9251_v5  ;;  %v3035_v7 = vsel %vm2528_vm12, %v3032_v43, %v3034_v3  ;;  %v2545_v13 = vsel %vm2528_vm12, %v2542_v42, %v2544_v32 }
 0x254   : > { %3325 = vrot.lane.b32.xlu0 %v3262_v34, %s8450_s30  ;;  %2776 = vrot.lane.b32.xlu2 %v9175_v50, %s8451_s0 }
 0x255   : > { %8102 = vmatmul.msk.f32.gmra.mxu0 %vm384_vm0, %v9297_v29  ;;  %8182 = vmatmul.msk.f32.gmra.mxu2 %vm384_vm0, %v9297_v29 }
 0x258   : > { %v9180_v38 = vpop.f32.mrf.mxu1  ;;  %v9184_v44 = vpop.f32.mrf.mxu0 }
 0x259   : > { %2604 = vrot.lane.b32.xlu1 %v2541_v54, %s8450_s30  ;;  %1945 = vst [vmem:[#allocation3 + $0xe0] sm:$0xff] %v9180_v38  ;;  %v3265_v8 = vrot.slane %v9180_v38, 7  ;;  %v3036_v10 = vrot.slane %v9180_v38, 1  ;;  %v2546_v21 = vrot.slane %v9184_v44, 1  ;;  %v2220_v27 = vrot.slane %v9184_v44, 7 }
 0x25b   : > { %v3266_v11 = vsel %vm2200_vm13, %v3263_v59, %v3265_v8  ;;  %8141 = vmatmul.msk.f32.gmra.mxu1 %vm384_vm0, %v9275_v12  ;;  %v3037_v47 = vsel %vm2528_vm12, %v3034_v3, %v3036_v10  ;;  %v9312_v48 = vsel %vm2200_vm13, %v2218_v45, %v2220_v27  ;;  %v1815_v45 = vpop.f32.mrf.mxu2 }
 0x25c   : > { %3489 = vrot.lane.b32.xlu0 %v9157_v22, %s8451_s0  ;;  %3487 = vrot.lane.b32.xlu2 %v9140_v15, %s8451_s0  ;;  %15040 = vst [vmem:[#allocation12_spill] sm:$0xff] %v9312_v48 }
 0x25d   : > { %8103 = vmatmul.msk.f32.gmra.mxu0 %vm384_vm0, %v9323_v40  ;;  %1937 = vst.msk [vmem:[#allocation3 + $0xa0] sm:$0xff] %vm425_vm1, %v1815_v45  ;;  %8183 = vmatmul.msk.f32.gmra.mxu2 %vm384_vm0, %v9323_v40 }
 0x260   : > { %v9200_v51 = vpop.f32.mrf.mxu1  ;;  %v9210_v52 = vpop.f32.mrf.mxu0 }
 0x261   : > { %2378 = vrot.lane.b32.xlu1 %v9145_v24, %s8449_s29  ;;  %1948 = vst [vmem:[#allocation3 + $0xf8] sm:$0xff] %v9200_v51  ;;  %v3267_v41 = vrot.slane %v9200_v51, 7  ;;  %v2547_v24 = vsel %vm2528_vm12, %v2544_v32, %v2546_v21  ;;  %v3038_v30 = vrot.slane %v9200_v51, 1  ;;  %v2548_v54 = vrot.slane %v9210_v52, 1 }
 0x262   : > { %v2222_v46 = vrot.slane %v9210_v52, 7 }
 0x263   : > { %v3268_v28 = vsel %vm2200_vm13, %v3265_v8, %v3267_v41  ;;  %8142 = vmatmul.msk.f32.gmra.mxu1 %vm384_vm0, %v9297_v29  ;;  %v3039_v35 = vsel %vm2528_vm12, %v3036_v10, %v3038_v30  ;;  %v2549_v49 = vsel %vm2528_vm12, %v2546_v21, %v2548_v54  ;;  %v1818_v1 = vpop.f32.mrf.mxu2 }
 0x264   : > { %2780 = vrot.lane.b32.xlu0 %v9207_v37, %s8451_s0  ;;  %2380 = vrot.lane.b32.xlu2 %v9161_v33, %s8449_s29  ;;  %v9365_v17 = vsel %vm2200_vm13, %v2220_v27, %v2222_v46  ;;  %1940 = vst.msk [vmem:[#allocation3 + $0xb8] sm:$0xff] %vm425_vm1, %v1818_v1  ;;  %v9417_v27 = vld [vmem:[#allocation2 + $0xf0] sm:$0xff] }
 0x265   : > { %8104 = vmatmul.msk.f32.gmra.mxu0 %vm384_vm0, %v9348_v55  ;;  %15041 = vst [vmem:[#allocation13_spill] sm:$0xff] %v9365_v17  ;;  %8184 = vmatmul.msk.f32.gmra.mxu2 %vm384_vm0, %v9348_v55 }
 0x268   : > { %v9227_v23 = vpop.f32.mrf.mxu1  ;;  %v9243_v0 = vpop.f32.mrf.mxu0 }
 0x269   : > { %2606 = vrot.lane.b32.xlu1 %v2543_v58, %s8450_s30  ;;  %1951 = vst [vmem:[#allocation3 + $0x110] sm:$0xff] %v9227_v23  ;;  %v3269_v36 = vrot.slane %v9227_v23, 7 }
 0x26b   : > { %8143 = vmatmul.msk.f32.gmra.mxu1 %vm384_vm0, %v9323_v40  ;;  %v3270_v42 = vsel %vm2200_vm13, %v3267_v41, %v3269_v36  ;;  %v9408_v41 = vshrl.u32 %v14919_v57, 7 }
 0x26c   : > { %3491 = vrot.lane.b32.xlu0 %v9180_v38, %s8451_s0  ;;  %3327 = vrot.lane.b32.xlu2 %v3264_v63, %s8450_s30 }
 0x26d   : > { %8105 = vmatmul.msk.f32.gmra.mxu0 %vm384_vm0, %v9379_v62  ;;  %v2070_v12 = vand.u32 15, %v9408_v41  ;;  %v9543_v22 = vadd.s32 24, %v9408_v41  ;;  %8185 = vmatmul.msk.f32.gmra.mxu2 %vm384_vm0, %v9379_v62 }
 0x26f   : > { %vm9442_vm14 = vcmp.ge.s32.totalorder %v2070_v12, 1  ;;  %15059 = vst [vmem:[#allocation22_spill] sm:$0xff] %v9543_v22 }
 0x270   : > { %v9253_v6 = vpop.f32.mrf.mxu1  ;;  %v9272_v61 = vpop.f32.mrf.mxu0 }
 0x271   : > { %2778 = vrot.lane.b32.xlu1 %v9246_v2, %s8451_s0  ;;  %1954 = vst [vmem:[#allocation3 + $0x128] sm:$0xff] %v9253_v6  ;;  %v14921_v32 = vrot.slane %v9272_v61, 7  ;;  %v3042_v57 = vrot.slane %v9253_v6, 1  ;;  %v2552_v2 = vrot.slane %v9272_v61, 1 }
 0x273   : > { %8144 = vmatmul.msk.f32.gmra.mxu1 %vm384_vm0, %v9348_v55  ;;  %v15064_v55 = vmov 0 }
 0x274   : > { %2382 = vrot.lane.b32.xlu0 %v9184_v44, %s8449_s29  ;;  %3098 = vrot.lane.b32.xlu2 %v3035_v7, %s8449_s29  ;;  %v14923_v7 = vrot.slane %v9227_v23, 1 }
 0x275   : > { %8106 = vmatmul.msk.f32.gmra.mxu0 %vm384_vm0, %v9417_v27  ;;  %8186 = vmatmul.msk.f32.gmra.mxu2 %vm384_vm0, %v9417_v27 }
 0x276   : > { %v3041_v5 = vsel %vm2528_vm12, %v3038_v30, %v14923_v7  ;;  %v9493_v7 = vadd.s32 48, %v9408_v41 }
 0x278   : > { %v9290_v26 = vpop.f32.mrf.mxu1  ;;  %v9320_v34 = vpop.f32.mrf.mxu0  ;;  %15051 = vst [vmem:[#allocation21_spill] sm:$0xff] %v9493_v7 }
 0x279   : > { %3329 = vrot.lane.b32.xlu1 %v3266_v11, %s8450_s30  ;;  %1957 = vst [vmem:[#allocation3 + $0x140] sm:$0xff] %v9290_v26 }
 0x27b   : > { %8145 = vmatmul.msk.f32.gmra.mxu1 %vm384_vm0, %v9379_v62  ;;  %v9652_v62 = vadd.s32 40, %v9408_v41 }
 0x27c   : > { %3100 = vrot.lane.b32.xlu0 %v3037_v47, %s8449_s29  ;;  %2608 = vrot.lane.b32.xlu2 %v2545_v13, %s8450_s30  ;;  %v1821_v47 = vpop.f32.mrf.mxu2  ;;  %v2224_v13 = vrot.slane %v9243_v0, 7 }
 0x27d   : > { %1943 = vst.msk [vmem:[#allocation3 + $0xd0] sm:$0xff] %vm425_vm1, %v1821_v47 }
 0x27e   : > { %v9288_v20 = vpop.permute.xlu2 %2768  ;;  %v9415_v21 = vsel %vm2200_vm13, %v2224_v13, %v14921_v32  ;;  %v9485_v32 = vadd.s32 8, %v9408_v41  ;;  %15077 = vst [vmem:[#allocation27_spill] sm:$0xff] %v9652_v62 }
 0x27f   : > { %15042 = vst [vmem:[#allocation14_spill] sm:$0xff] %v9415_v21 }
 0x280   : > { %v9338_v38 = vpop.f32.mrf.mxu1  ;;  %v9399_v11 = vpop.f32.mrf.mxu0  ;;  %15050 = vst [vmem:[#allocation20_spill] sm:$0xff] %v9485_v32 }
 0x281   : > { %3331 = vrot.lane.b32.xlu1 %v3268_v28, %s8450_s30  ;;  %1960 = vst [vmem:[#allocation3 + $0x158] sm:$0xff] %v9338_v38  ;;  %v2102_v28 = vld [vmem:[#allocation3 + $0x18] sm:$0x80] }
 0x283   : > { %v9303_v43 = vpop.permute.xlu0 %2364  ;;  %8146 = vmatmul.msk.f32.gmra.mxu1 %vm384_vm0, %v9417_v27 }
 0x284   : > { %2610 = vrot.lane.b32.xlu0 %v2547_v24, %s8450_s30  ;;  %2782 = vrot.lane.b32.xlu2 %v9312_v48, %s8451_s0  ;;  %v14922_v24 = vrot.slane %v9243_v0, 1  ;;  %v1824_v1 = vpop.f32.mrf.mxu2 }
 0x285   : > { %1946 = vst.msk [vmem:[#allocation3 + $0xe8] sm:$0xff] %vm425_vm1, %v1824_v1  ;;  %v9474_v1 = vadd.s32 32, %v9408_v41 }
 0x286   : > { %v9317_v31 = vpop.permute.xlu2 %2596 }
 0x287   : > { %15048 = vst [vmem:[#allocation18_spill] sm:$0xff] %v9474_v1 }
 0x288   : > { %v9371_v59 = vpop.f32.mrf.mxu1 }
 0x289   : > { %3102 = vrot.lane.b32.xlu1 %v3039_v35, %s8449_s29  ;;  %1963 = vst [vmem:[#allocation3 + $0x170] sm:$0xff] %v9371_v59  ;;  %v2201_v35 = vrot.slane %v2102_v28, 7  ;;  %v9456_v28 = vld [vmem:[#allocation2 + $0xf8] sm:$0xff] }
 0x28a   : > { %15045 = vst [vmem:[#allocation15_spill] sm:$0xff] %v9456_v28  ;;  %8107 = vmatmul.msk.f32.gmra.mxu0 %vm384_vm0, %v9456_v28 }
 0x28b   : > { %v9331_v33 = vpop.permute.xlu0 %2366  ;;  %v2203_v53 = vsel %vm2200_vm13, %v2201_v35, %v2202_v25  ;;  %v9464_v35 = vadd.s32 16, %v9408_v41  ;;  %8147 = vmatmul.msk.f32.gmra.mxu1 %vm384_vm0, %v9456_v28 }
 0x28c   : > { %2384 = vrot.lane.b32.xlu0 %v9210_v52, %s8449_s29  ;;  %3493 = vrot.lane.b32.xlu2 %v9200_v51, %s8451_s0  ;;  %v2298_v12 = vsel %vm9442_vm14, %v2203_v53, 0.0  ;;  %v9481_v53 = vsel %vm2200_vm13, %v2222_v46, %v2224_v13  ;;  %v2074_v52 = vand.u32 15, %v9474_v1  ;;  %v2071_v1 = vand.u32 15, %v9485_v32 }
 0x28d   : > { %15046 = vst [vmem:[#allocation16_spill] sm:$0xff] %v9464_v35 }
 0x28e   : > { %v9340_v44 = vpop.permute.xlu2 %2772  ;;  %v9354_v51 = vpop.permute.xlu1 %2594  ;;  %15049 = vst [vmem:[#allocation19_spill] sm:$0xff] %v9481_v53  ;;  %vm9521_vm2 = vcmp.ge.s32.totalorder %v2074_v52, 1  ;;  %vm9534_vm3 = vcmp.le.s32.totalorder %v2071_v1, 14 }
 0x291   : > { %2612 = vrot.lane.b32.xlu1 %v2549_v49, %s8450_s30  ;;  %v2551_v49 = vsel %vm2528_vm12, %v2548_v54, %v14922_v24 }
 0x293   : > { %v9369_v58 = vpop.permute.xlu0 %2368 }
 0x294   : > { %3333 = vrot.lane.b32.xlu0 %v3270_v42, %s8450_s30  ;;  %2784 = vrot.lane.b32.xlu2 %v9365_v17, %s8451_s0  ;;  %v3271_v42 = vrot.slane %v9253_v6, 7 }
 0x296   : > { %v9373_v63 = vpop.permute.xlu2 %3092  ;;  %v3272_v54 = vsel %vm2200_vm13, %v3269_v36, %v3271_v42  ;;  %v2460_v36 = vadd.f32 %v9303_v43, %v2298_v12  ;;  %v2072_v43 = vand.u32 15, %v9464_v35  ;;  %v2204_v12 = vrot.slane %v9047_v39, 7 }
 0x297   : > { %v3273_v39 = vrot.slane %v9290_v26, 7 }
 0x298   : > { %v2722_v24 = vadd.f32 %v9354_v51, %v2460_v36  ;;  %v15052_v51 = vrot.slane %v9227_v23, 1  ;;  %v2046_v36 = vadd.s32 64, %v9408_v41  ;;  %vm9512_vm15 = vcmp.ge.s32.totalorder %v2072_v43, 1 }
 0x299   : > { %2386 = vrot.lane.b32.xlu1 %v9243_v0, %s8449_s29  ;;  %v2050_v43 = vadd.s32 96, %v9408_v41 }
 0x29a   : > { %v3043_v13 = vsel %vm2528_vm12, %v15052_v51, %v3042_v57  ;;  %v2205_v51 = vsel %vm2200_vm13, %v2202_v25, %v2204_v12  ;;  %v3274_v25 = vsel %vm2200_vm13, %v3271_v42, %v3273_v39  ;;  %v2078_v28 = vand.u32 15, %v2046_v36 }
 0x29b   : > { %v9385_v3 = vpop.permute.xlu1 %2370 }
 0x29c   : > { %3497 = vrot.lane.b32.xlu0 %v9253_v6, %s8451_s0  ;;  %3495 = vrot.lane.b32.xlu2 %v9227_v23, %s8451_s0  ;;  %v2864_v6 = vsel %vm9442_vm14, %v9288_v20, 0.0  ;;  %v2048_v23 = vadd.s32 80, %v9408_v41  ;;  %vm9569_vm11 = vcmp.ge.s32.totalorder %v2078_v28, 1 }
 0x29d   : > { %v2896_v35 = vadd.f32 %v2864_v6, %v2722_v24  ;;  %v3613_v24 = vld [vmem:[#allocation3 + $0xa0] sm:$0xfe]  ;;  %v9527_v6 = vld [vmem:[#allocation3 + $0xb8] sm:$0xff]  ;;  %v15065_v55 = vsel %vm9569_vm11, 4294967295, %v15064_v55 }
 0x29e   : > { %v9394_v8 = vpop.permute.xlu0 %2770  ;;  %v9396_v10 = vpop.permute.xlu2 %2376  ;;  %v2080_v42 = vand.u32 15, %v2048_v23  ;;  %v2691_v23 = vsel %vm9534_vm3, %v9317_v31, 0.0  ;;  %15066 = vst [vmem:[#allocation23_spill] sm:$0xff] %v15065_v55  ;;  %v2082_v31 = vand.u32 15, %v2050_v43  ;;  %v9588_v43 = vld [vmem:[%s14910_s4] ss:$0 sm:$0xff] }
 0x2a0   : > { %vm9612_vm10 = vcmp.ge.s32.totalorder %v2082_v31, 1 }
 0x2a1   : > { %3104 = vrot.lane.b32.xlu1 %v3041_v5, %s8449_s29  ;;  %v2073_v5 = vand.u32 15, %v9543_v22 }
 0x2a3   : > { %v9410_v19 = vpop.permute.xlu1 %2598  ;;  %vm9619_vm9 = vcmp.le.s32.totalorder %v2073_v5, 14 }
 0x2a4   : > { %2788 = vrot.lane.b32.xlu0 %v9415_v21, %s8451_s0  ;;  %2388 = vrot.lane.b32.xlu2 %v9272_v61, %s8449_s29 }
 0x2a6   : > { %v9430_v30 = vpop.permute.xlu0 %2600  ;;  %v9434_v45 = vpop.permute.xlu2 %3485 }
 0x2a9   : > { %2614 = vrot.lane.b32.xlu1 %v2551_v49, %s8450_s30  ;;  %v9468_v49 = vpop.f32.mrf.mxu0 }
 0x2aa   : > { %15047 = vst [vmem:[#allocation17_spill] sm:$0xff] %v9468_v49  ;;  %v2960_v49 = vadd.f32 %v2896_v35, %v9087_v4  ;;  %v15062_v35 = vrot.slane %v9290_v26, 1 }
 0x2ab   : > { %v9447_v47 = vpop.permute.xlu1 %2372 }
 0x2ac   : > { %3499 = vrot.lane.b32.xlu0 %v9290_v26, %s8451_s0  ;;  %3335 = vrot.lane.b32.xlu2 %v3272_v54, %s8450_s30  ;;  %v3220_v36 = vadd.f32 %v9373_v63, %v2960_v49  ;;  %v15063_v63 = vrot.slane %v9243_v0, 1 }
 0x2ae   : > { %v9466_v29 = vpop.permute.xlu0 %2374  ;;  %v9476_v54 = vpop.permute.xlu2 %2776  ;;  %v2553_v49 = vsel %vm2528_vm12, %v15063_v63, %v2552_v2  ;;  %v9951_v63 = vld [vmem:[#allocation2 + $0x128] sm:$0xff] }
 0x2af   : > { %v9704_v40 = vadd.f32 %v9466_v29, %v9122_v18 }
 0x2b1   : > { %2786 = vrot.lane.b32.xlu1 %v9481_v53, %s8451_s0  ;;  %v2076_v53 = vand.u32 15, %v9493_v7  ;;  %v2461_v7 = vadd.f32 %v9331_v33, %v2205_v51  ;;  %v3045_v51 = vsel %vm2528_vm12, %v3042_v57, %v15062_v35 }
 0x2b3   : > { %v9496_v46 = vpop.permute.xlu1 %2774  ;;  %vm9549_vm4 = vcmp.ge.s32.totalorder %v2076_v53, 1  ;;  %v3275_v53 = vrot.slane %v9338_v38, 7 }
 0x2b4   : > { %2390 = vrot.lane.b32.xlu0 %v9320_v34, %s8449_s29  ;;  %3106 = vrot.lane.b32.xlu2 %v3043_v13, %s8449_s29  ;;  %v2207_v13 = vsel %vm2200_vm13, %v2204_v12, %v9057_v56  ;;  %v3679_v56 = vrot.slane %v3613_v24, 1  ;;  %v3680_v12 = vrot.slane %v9527_v6, 1  ;;  %v2723_v6 = vadd.f32 %v2691_v23, %v2461_v7 }
 0x2b5   : > { %v2300_v1 = vsel %vm9512_vm15, %v2207_v13, 0.0  ;;  %v2228_v13 = vrot.slane %v9320_v34, 7 }
 0x2b6   : > { %v9516_v20 = vpop.permute.xlu0 %2602  ;;  %v9525_v32 = vpop.permute.xlu2 %3487  ;;  %v3681_v0 = vsel %vm2528_vm12, %v3679_v56, %v3680_v12  ;;  %v2462_v7 = vadd.f32 %v9369_v58, %v2300_v1  ;;  %v2897_v28 = vadd.f32 %v9394_v8, %v2723_v6  ;;  %v2302_v58 = vsel %vm9521_vm2, %v9100_v9, 0.0 }
 0x2b7   : > { %v2306_v8 = vsel %vm9569_vm11, %v9207_v37, 0.0  ;;  %v2866_v9 = vsel %vm9512_vm15, %v9340_v44, 0.0  ;;  %v15075_v44 = vrot.slane %v9272_v61, 7  ;;  %v2693_v61 = vsel %vm9619_vm9, %v9430_v30, 0.0 }
 0x2b8   : > { %v2724_v1 = vadd.f32 %v9410_v19, %v2462_v7  ;;  %v15078_v30 = vrot.slane %v9290_v26, 1 }
 0x2b9   : > { %3337 = vrot.lane.b32.xlu1 %v3274_v25, %s8450_s30  ;;  %v9635_v5 = vsel %vm2200_vm13, %v15075_v44, %v2228_v13 }
 0x2ba   : > { %15076 = vst [vmem:[#allocation26_spill] sm:$0xff] %v9635_v5  ;;  %v2898_v7 = vadd.f32 %v2866_v9, %v2724_v1 }
 0x2bb   : > { %v3324_v4 = vpop.permute.xlu1 %3323 }
 0x2bc   : > { %v3419_v24 = vsel %vm9442_vm14, %v3324_v4, 0.0  ;;  %3108 = vrot.lane.b32.xlu0 %v3045_v51, %s8449_s29  ;;  %2616 = vrot.lane.b32.xlu2 %v2553_v49, %s8450_s30  ;;  %vm9578_vm14 = vcmp.ge.s32.totalorder %v2080_v42, 1  ;;  %v15067_v4 = vmov 0  ;;  %v9593_v51 = vld [vmem:[#allocation3 + $0xd0] sm:$0xff]  ;;  %v2304_v42 = vsel %vm9549_vm4, %v9175_v50, 0.0 }
 0x2bd   : > { %v3451_v57 = vadd.f32 %v3419_v24, %v3220_v36  ;;  %v15068_v4 = vsel %vm9578_vm14, 4294967295, %v15067_v4  ;;  %v2554_v36 = vrot.slane %v9320_v34, 1  ;;  %v15070_v24 = vmov 0 }
 0x2be   : > { %v9576_v25 = vpop.permute.xlu0 %3096  ;;  %15069 = vst [vmem:[#allocation24_spill] sm:$0xff] %v15068_v4  ;;  %v9591_v56 = vpop.permute.xlu2 %2380  ;;  %v15071_v24 = vsel %vm9612_vm10, 4294967295, %v15070_v24  ;;  %v3682_v19 = vrot.slane %v9593_v51, 1  ;;  %v2961_v49 = vadd.f32 %v2897_v28, %v9107_v16  ;;  %v2962_v44 = vadd.f32 %v2898_v7, %v9119_v14 }
 0x2bf   : > { %v3581_v35 = vadd.f32 %v9434_v45, %v3451_v57  ;;  %v3276_v45 = vsel %vm2200_vm13, %v3273_v39, %v3275_v53  ;;  %15072 = vst [vmem:[#allocation25_spill] sm:$0xff] %v15071_v24  ;;  %v3046_v39 = vrot.slane %v9338_v38, 1  ;;  %v2555_v31 = vsel %vm2528_vm12, %v2552_v2, %v2554_v36 }
 0x2c0   : > { %v3683_v1 = vsel %vm2528_vm12, %v3680_v12, %v3682_v19  ;;  %v9674_v12 = vld [vmem:[#allocation3 + $0xe8] sm:$0xff]  ;;  %v3222_v52 = vadd.f32 %v9576_v25, %v2962_v44  ;;  %v15080_v25 = vmov 0 }
 0x2c1   : > { %v3808_v23 = vadd.f32 %v3681_v0, %v3581_v35  ;;  %3339 = vrot.lane.b32.xlu1 %v3276_v45, %s8450_s30  ;;  %v2052_v0 = vadd.s32 112, %v9408_v41  ;;  %v2463_v35 = vadd.f32 %v9385_v3, %v9080_v60  ;;  %v2464_v45 = vadd.f32 %v9447_v47, %v2302_v58 }
 0x2c2   : > { %v3047_v9 = vsel %vm2528_vm12, %v15078_v30, %v3046_v39  ;;  %v2230_v3 = vrot.slane %v9399_v11, 7  ;;  %v2556_v47 = vrot.slane %v9399_v11, 1  ;;  %v2075_v30 = vand.u32 15, %v9652_v62 }
 0x2c3   : > { %v3844_v6 = vadd.f32 %v9588_v43, %v3808_v23  ;;  %v3095_v57 = vpop.permute.xlu1 %3094  ;;  %v2725_v26 = vadd.f32 %v2693_v61, %v2463_v35  ;;  %v2726_v58 = vadd.f32 %v9516_v20, %v2464_v45  ;;  %v14941_v20 = vrot.slane %v9674_v12, 1 }
 0x2c4   : > { %v3189_v16 = vsel %vm9534_vm3, %v3095_v57, 0.0  ;;  %2618 = vrot.lane.b32.xlu0 %v2555_v31, %s8450_s30  ;;  %2790 = vrot.lane.b32.xlu2 %v9635_v5, %s8451_s0  ;;  %v9668_v57 = vadd.f32 %v9396_v10, %v2304_v42  ;;  %v2084_v42 = vand.u32 15, %v2052_v0  ;;  %v14940_v0 = vrot.slane %v9371_v59, 7 }
 0x2c5   : > { %v3221_v28 = vadd.f32 %v3189_v16, %v2961_v49  ;;  %v9665_v49 = vld [vmem:[#allocation2 + $0x100] sm:$0xff]  ;;  %v9670_v31 = vmax.f32 %v3844_v6, 0.0  ;;  %v2868_v6 = vsel %vm9521_vm2, %v9476_v54, 0.0  ;;  %v3777_v16 = vsel %vm9534_vm3, %v3683_v1, 0.0 }
 0x2c6   : > { %v3326_v23 = vpop.permute.xlu0 %3325  ;;  %v3328_v60 = vpop.permute.xlu2 %3327  ;;  %8108 = vmatmul.msk.f32.gmra.mxu0 %vm384_vm0, %v9665_v49  ;;  %8148 = vmatmul.msk.f32.gmra.mxu1 %vm384_vm0, %v9665_v49  ;;  %v2899_v54 = vadd.f32 %v9496_v46, %v2725_v26  ;;  %v2900_v45 = vadd.f32 %v2868_v6, %v2726_v58  ;;  %v3278_v26 = vsel %vm2200_vm13, %v3275_v53, %v14940_v0  ;;  %v9743_v58 = vld [vmem:[#allocation2 + $0x108] sm:$0xff]  ;;  %vm9818_vm3 = vcmp.le.s32.totalorder %v2075_v30, 14 }
 0x2c7   : > { %v3452_v10 = vadd.f32 %v3326_v23, %v3221_v28  ;;  %v3421_v61 = vsel %vm9512_vm15, %v3328_v60, 0.0  ;;  %v14938_v28 = vrot.slane %v9371_v59, 1  ;;  %v3940_v14 = vrot.slane %v9670_v31, 2  ;;  %v9708_v46 = vpop.f32.mrf.mxu0  ;;  %v9736_v60 = vpop.f32.mrf.mxu1 }
 0x2c8   : > { %vm9717_vm15 = vcmp.ge.s32.totalorder %v2084_v42, 1  ;;  %v3941_v18 = vrot.slane %v9670_v31, 4  ;;  %v4133_v27 = vsel %vm4132_vm8, %v9670_v31, -inf  ;;  %v3453_v1 = vadd.f32 %v3421_v61, %v3222_v52  ;;  %1966 = vst [vmem:[#allocation3 + $0x188] sm:$0xff] %v9736_v60  ;;  %v1827_v53 = vpop.f32.mrf.mxu2 }
 0x2c9   : > { %3110 = vrot.lane.b32.xlu1 %v3047_v9, %s8449_s29  ;;  %v3582_v7 = vadd.f32 %v9525_v32, %v3452_v10  ;;  %v9715_v32 = vsel %vm2200_vm13, %v2228_v13, %v2230_v3  ;;  %v15081_v25 = vsel %vm9717_vm15, 4294967295, %v15080_v25  ;;  %v3685_v13 = vsel %vm2528_vm12, %v3682_v19, %v14941_v20  ;;  %1949 = vst.msk [vmem:[#allocation3 + $0x100] sm:$0xff] %vm425_vm1, %v1827_v53 }
 0x2ca   : > { %15079 = vst [vmem:[#allocation28_spill] sm:$0xff] %v9715_v32  ;;  %v2557_v9 = vsel %vm2528_vm12, %v2554_v36, %v2556_v47  ;;  %v9750_v51 = vsel %vm2528_vm12, %v3046_v39, %v14938_v28  ;;  %v9753_v34 = vadd.f32 %v2899_v54, %v9140_v15  ;;  %v4140_v36 = vsel %vm4132_vm8, %v3940_v14, -inf  ;;  %v15083_v15 = vld [vmem:[#allocation10_spill] sm:$0xff] }
 0x2cb   : > { %v9698_v35 = vpop.permute.xlu1 %2604  ;;  %15082 = vst [vmem:[#allocation29_spill] sm:$0xff] %v15081_v25  ;;  %v3809_v29 = vadd.f32 %v3777_v16, %v3582_v7  ;;  %v4134_v39 = vrot.slane %v4133_v27, 4  ;;  %v9765_v6 = vadd.f32 %v2900_v45, %v15083_v15  ;;  %v4147_v16 = vsel %vm4132_vm8, %v3941_v18, -inf  ;;  %v9798_v15 = vld [vmem:[#allocation2 + $0x110] sm:$0xff] }
 0x2cc   : > { %2392 = vrot.lane.b32.xlu0 %v9399_v11, %s8449_s29  ;;  %3501 = vrot.lane.b32.xlu2 %v9338_v38, %s8451_s0  ;;  %v3942_v38 = vrot.slane %v9670_v31, 6  ;;  %v15084_v31 = vld [vmem:[#allocation17_spill] sm:$0xff]  ;;  %v4141_v52 = vrot.slane %v4140_v36, 4  ;;  %v9780_v7 = vadd.f32 %v9591_v56, %v2306_v8  ;;  %v9783_v45 = vadd.s32 56, %v9408_v41 }
 0x2cd   : > { %v3845_v19 = vadd.f32 %v9588_v43, %v3809_v29  ;;  %v14939_v14 = vrot.slane %v15084_v31, 1  ;;  %v14943_v29 = vrot.slane %v15084_v31, 7  ;;  %v4148_v37 = vrot.slane %v4147_v16, 4 }
 0x2ce   : > { %v3490_v23 = vpop.permute.xlu0 %3489  ;;  %v9757_v42 = vpop.permute.xlu2 %3098  ;;  %8109 = vmatmul.msk.f32.gmra.mxu0 %vm384_vm0, %v9743_v58  ;;  %8149 = vmatmul.msk.f32.gmra.mxu1 %vm384_vm0, %v9743_v58  ;;  %15085 = vst [vmem:[#allocation10_spill] sm:$0xff] %v9780_v7  ;;  %v4154_v56 = vsel %vm4132_vm8, %v3942_v38, -inf }
 0x2cf   : > { %v3583_v10 = vadd.f32 %v3490_v23, %v3453_v1  ;;  %v3877_v61 = vmax.f32 %v3845_v19, 0.0  ;;  %15086 = vst [vmem:[#allocation17_spill] sm:$0xff] %v9783_v45  ;;  %v15087_v19 = vld [vmem:[#allocation15_spill] sm:$0xff]  ;;  %v9796_v53 = vpop.f32.mrf.mxu0 }
 0x2d0   : > { %8187 = vmatmul.msk.f32.gmra.mxu2 %vm384_vm0, %v15087_v19 }
 0x2d1   : > { %v3810_v54 = vadd.f32 %v3685_v13, %v3583_v10  ;;  %2620 = vrot.lane.b32.xlu1 %v2557_v9, %s8450_s30  ;;  %v3943_v18 = vrot.slane %v3877_v61, 2  ;;  %v3944_v1 = vrot.slane %v3877_v61, 4  ;;  %v3945_v13 = vrot.slane %v3877_v61, 6 }
 0x2d2   : > { %v4161_v23 = vsel %vm4132_vm8, %v3877_v61, -inf  ;;  %v9791_v10 = vmax.f32 %v4133_v27, %v4134_v39  ;;  %v9810_v27 = vsel %vm2528_vm12, %v2556_v47, %v14939_v14  ;;  %v9837_v14 = vadd.s32 128, %v9408_v41 }
 0x2d3   : > { %v9787_v9 = vpop.permute.xlu1 %2378  ;;  %v3846_v8 = vadd.f32 %v9588_v43, %v3810_v54  ;;  %v4168_v61 = vsel %vm4132_vm8, %v3943_v18, -inf  ;;  %v4175_v44 = vsel %vm4132_vm8, %v3944_v1, -inf  ;;  %v4182_v2 = vsel %vm4132_vm8, %v3945_v13, -inf  ;;  %v9814_v18 = vpop.f32.mrf.mxu1 }
 0x2d4   : > { %3341 = vrot.lane.b32.xlu0 %v3278_v26, %s8450_s30  ;;  %2792 = vrot.lane.b32.xlu2 %v9715_v32, %s8451_s0  ;;  %v4142_v26 = vmax.f32 %v4140_v36, %v4141_v52  ;;  %v4162_v38 = vrot.slane %v4161_v23, 4  ;;  %v4169_v39 = vrot.slane %v4168_v61, 4  ;;  %v4176_v54 = vrot.slane %v4175_v44, 4  ;;  %1969 = vst [vmem:[#allocation3 + $0x1a0] sm:$0xff] %v9814_v18 }
 0x2d5   : > { %v4155_v1 = vrot.slane %v4154_v56, 4  ;;  %v3878_v50 = vmax.f32 %v3846_v8, 0.0  ;;  %v9833_v36 = vsel %vm2200_vm13, %v2230_v3, %v14943_v29  ;;  %v4136_v30 = vrot.slane %v9791_v10, 2  ;;  %15091 = vst [vmem:[#allocation30_spill] sm:$0xff] %v9837_v14 }
 0x2d6   : > { %v9812_v19 = vpop.permute.xlu0 %2780  ;;  %v9823_v47 = vpop.permute.xlu2 %2608  ;;  %8110 = vmatmul.msk.f32.gmra.mxu0 %vm384_vm0, %v9798_v15  ;;  %15090 = vst [vmem:[#allocation15_spill] sm:$0xff] %v9833_v36  ;;  %v4149_v52 = vmax.f32 %v4147_v16, %v4148_v37  ;;  %v4183_v8 = vrot.slane %v4182_v2, 4  ;;  %8150 = vmatmul.msk.f32.gmra.mxu1 %vm384_vm0, %v9798_v15  ;;  %v4143_v11 = vrot.slane %v4142_v26, 2  ;;  %v4163_v3 = vmax.f32 %v4161_v23, %v4162_v38 }
 0x2d7   : > { %v3946_v0 = vrot.slane %v3878_v50, 2  ;;  %v3947_v20 = vrot.slane %v3878_v50, 4  ;;  %v3948_v28 = vrot.slane %v3878_v50, 6  ;;  %v4189_v62 = vsel %vm4132_vm8, %v3878_v50, -inf }
 0x2d8   : > { %v4170_v29 = vmax.f32 %v4168_v61, %v4169_v39  ;;  %v4177_v22 = vmax.f32 %v4175_v44, %v4176_v54  ;;  %v4190_v16 = vrot.slane %v4189_v62, 4  ;;  %8188 = vmatmul.msk.f32.gmra.mxu2 %vm384_vm0, %v9665_v49  ;;  %v4150_v50 = vrot.slane %v4149_v52, 2 }
 0x2d9   : > { %2394 = vrot.lane.b32.xlu1 %v15084_v31, %s8449_s29  ;;  %v4196_v37 = vsel %vm4132_vm8, %v3946_v0, -inf  ;;  %v4203_v32 = vsel %vm4132_vm8, %v3947_v20, -inf  ;;  %v4210_v25 = vsel %vm4132_vm8, %v3948_v28, -inf  ;;  %v4156_v21 = vmax.f32 %v4154_v56, %v4155_v1  ;;  %v9858_v56 = vld [vmem:[#allocation2 + $0x118] sm:$0xff] }
 0x2da   : > { %v4184_v24 = vmax.f32 %v4182_v2, %v4183_v8  ;;  %v4191_v23 = vmax.f32 %v4189_v62, %v4190_v16  ;;  %v4197_v61 = vrot.slane %v4196_v37, 4  ;;  %v4204_v0 = vrot.slane %v4203_v32, 4 }
 0x2db   : > { %v9847_v5 = vpop.permute.xlu1 %2606  ;;  %v4211_v38 = vrot.slane %v4210_v25, 4  ;;  %v4144_v20 = vmax.f32 %v4142_v26, %v4143_v11  ;;  %v4164_v28 = vrot.slane %v4163_v3, 2  ;;  %v4171_v39 = vrot.slane %v4170_v29, 2 }
 0x2dc   : > { %3505 = vrot.lane.b32.xlu0 %v9736_v60, %s8451_s0  ;;  %3503 = vrot.lane.b32.xlu2 %v9371_v59, %s8451_s0  ;;  %v4178_v54 = vrot.slane %v4177_v22, 2  ;;  %v4192_v2 = vrot.slane %v4191_v23, 2  ;;  %v4198_v1 = vmax.f32 %v4196_v37, %v4197_v61  ;;  %v4205_v8 = vmax.f32 %v4203_v32, %v4204_v0  ;;  %v1830_v32 = vpop.f32.mrf.mxu2 }
 0x2dd   : > { %v4212_v17 = vmax.f32 %v4210_v25, %v4211_v38  ;;  %v4137_v62 = vmax.f32 %v9791_v10, %v4136_v30  ;;  %v4151_v16 = vmax.f32 %v4149_v52, %v4150_v50  ;;  %v4157_v26 = vrot.slane %v4156_v21, 2  ;;  %1952 = vst.msk [vmem:[#allocation3 + $0x118] sm:$0xff] %vm425_vm1, %v1830_v32  ;;  %v9918_v32 = vpop.f32.mrf.mxu1 }
 0x2de   : > { %v9856_v49 = vpop.permute.xlu0 %3491  ;;  %v9860_v44 = vpop.permute.xlu2 %2782  ;;  %8111 = vmatmul.msk.f32.gmra.mxu0 %vm384_vm0, %v9858_v56  ;;  %v4185_v11 = vrot.slane %v4184_v24, 2  ;;  %8151 = vmatmul.msk.f32.gmra.mxu1 %vm384_vm0, %v9858_v56  ;;  %v4193_v4 = vmax.f32 %v4191_v23, %v4192_v2  ;;  %v4199_v55 = vrot.slane %v4198_v1, 2  ;;  %v4206_v7 = vrot.slane %v4205_v8, 2  ;;  %1972 = vst [vmem:[#allocation3 + $0x1b8] sm:$0xff] %v9918_v32 }
 0x2df   : > { %v4213_v14 = vrot.slane %v4212_v17, 2  ;;  %v4145_v25 = vrot.slane %v4144_v20, 1  ;;  %v4165_v37 = vmax.f32 %v4163_v3, %v4164_v28  ;;  %v2695_v10 = vsel %vm9818_vm3, %v9698_v35, 0.0 }
 0x2e0   : > { %v15092_v30 = vrot.slane %v9708_v46, 7  ;;  %v15093_v52 = vrot.slane %v15084_v31, 7  ;;  %v4172_v23 = vmax.f32 %v4170_v29, %v4171_v39  ;;  %v4179_v61 = vmax.f32 %v4177_v22, %v4178_v54  ;;  %8189 = vmatmul.msk.f32.gmra.mxu2 %vm384_vm0, %v9743_v58  ;;  %v9898_v54 = vld [vmem:[#allocation2 + $0x120] sm:$0xff] }
 0x2e1   : > { %3112 = vrot.lane.b32.xlu1 %v9750_v51, %s8449_s29  ;;  %v4200_v0 = vmax.f32 %v4198_v1, %v4199_v55  ;;  %v4207_v51 = vmax.f32 %v4205_v8, %v4206_v7  ;;  %v4138_v3 = vrot.slane %v4137_v62, 1  ;;  %v4186_v35 = vmax.f32 %v4184_v24, %v4185_v11 }
 0x2e2   : > { %v9877_v50 = vsel %vm2200_vm13, %v15093_v52, %v15092_v30  ;;  %v4194_v28 = vrot.slane %v4193_v4, 1  ;;  %v4214_v2 = vmax.f32 %v4212_v17, %v4213_v14  ;;  %v9886_v30 = vld [vmem:[#allocation3 + $0x100] sm:$0xff]  ;;  %v9888_v52 = vpop.f32.mrf.mxu0  ;;  %v4152_v29 = vrot.slane %v4151_v16, 1 }
 0x2e3   : > { %15094 = vst [vmem:[#allocation31_spill] sm:$0xff] %v9877_v50  ;;  %v9880_v38 = vpop.permute.xlu1 %2778  ;;  %v4158_v22 = vmax.f32 %v4156_v21, %v4157_v26  ;;  %v4201_v55 = vrot.slane %v4200_v0, 1  ;;  %v4208_v7 = vrot.slane %v4207_v51, 1  ;;  %v4166_v39 = vrot.slane %v4165_v37, 1 }
 0x2e4   : > { %2796 = vrot.lane.b32.xlu0 %v9877_v50, %s8451_s0  ;;  %15095 = vst [vmem:[#allocation32_spill] sm:$0xff] %v9888_v52  ;;  %2396 = vrot.lane.b32.xlu2 %v9708_v46, %s8449_s29  ;;  %v4146_v58 = vmax.f32 %v4144_v20, %v4145_v25  ;;  %v3191_v17 = vsel %vm9619_vm9, %v9757_v42, 0.0  ;;  %v4173_v1 = vrot.slane %v4172_v23, 1  ;;  %v4180_v8 = vrot.slane %v4179_v61, 1 }
 0x2e5   : > { %v4202_v21 = vmax.f32 %v4200_v0, %v4201_v55  ;;  %v15097_v26 = vand.u32 15, %v9783_v45  ;;  %v4187_v42 = vrot.slane %v4186_v35, 1  ;;  %v9912_v25 = vadd.f32 %v2695_v10, %v9704_v40 }
 0x2e6   : > { %v9896_v14 = vpop.permute.xlu0 %2382  ;;  %v9906_v20 = vpop.permute.xlu2 %3493  ;;  %8112 = vmatmul.msk.f32.gmra.mxu0 %vm384_vm0, %v9898_v54  ;;  %v4195_v24 = vmax.f32 %v4193_v4, %v4194_v28  ;;  %v4215_v50 = vrot.slane %v4214_v2, 1  ;;  %8152 = vmatmul.msk.f32.gmra.mxu1 %vm384_vm0, %v9898_v54  ;;  %v4159_v0 = vrot.slane %v4158_v22, 1  ;;  %v4139_v55 = vmax.f32 %v4137_v62, %v4138_v3 }
 0x2e7   : > { %15096 = vst [vmem:[#allocation33_spill] sm:$0xff] %v9896_v14  ;;  %vm9902_vm7 = vcmp.le.s32.totalorder %v15097_v26, 14  ;;  %v4153_v26 = vmax.f32 %v4151_v16, %v4152_v29  ;;  %v4209_v45 = vmax.f32 %v4207_v51, %v4208_v7  ;;  %v4167_v14 = vmax.f32 %v4165_v37, %v4166_v39 }
 0x2e8   : > { %v5032_v52 = vsel %vm425_vm1, %v4146_v58, -inf  ;;  %v5033_v40 = vsel %vm425_vm1, %v4202_v21, -inf  ;;  %v3223_v4 = vadd.f32 %v3191_v17, %v9753_v34  ;;  %v4174_v10 = vmax.f32 %v4172_v23, %v4173_v1  ;;  %8190 = vmatmul.msk.f32.gmra.mxu2 %vm384_vm0, %v9798_v15 }
 0x2e9   : > { %2622 = vrot.lane.b32.xlu1 %v9810_v27, %s8450_s30  ;;  %v4181_v28 = vmax.f32 %v4179_v61, %v4180_v8  ;;  %v15100_v62 = vrot.slane %v9886_v30, 1  ;;  %v15101_v16 = vrot.slane %v9674_v12, 1  ;;  %v3279_v3 = vrot.slane %v9736_v60, 7 }
 0x2ea   : > { %v4188_v37 = vmax.f32 %v4186_v35, %v4187_v42  ;;  %v4216_v29 = vmax.f32 %v4214_v2, %v4215_v50  ;;  %v5030_v34 = vsel %vm425_vm1, %v4195_v24, -inf  ;;  %v9935_v23 = vpop.f32.mrf.mxu0  ;;  %v5034_v61 = vmax.f32 %v5032_v52, %v5033_v40 }
 0x2eb   : > { %v3687_v51 = vsel %vm2528_vm12, %v15101_v16, %v15100_v62  ;;  %v3330_v27 = vpop.permute.xlu1 %3329  ;;  %v5036_v12 = vsel %vm425_vm1, %v4209_v45, -inf  ;;  %v15102_v15 = vrot.slane %v9371_v59, 7  ;;  %v4160_v35 = vmax.f32 %v4158_v22, %v4159_v0  ;;  %v9949_v45 = vld [vmem:[#allocation3 + $0x118] sm:$0xff]  ;;  %v9987_v16 = vpop.f32.mrf.mxu1 }
 0x2ec   : > { %v3454_v7 = vadd.f32 %v3330_v27, %v3223_v4  ;;  %3507 = vrot.lane.b32.xlu0 %v9814_v18, %s8451_s0  ;;  %v3779_v39 = vsel %vm9619_vm9, %v3687_v51, 0.0  ;;  %v5029_v2 = vsel %vm425_vm1, %v4139_v55, -inf  ;;  %v5035_v58 = vsel %vm425_vm1, %v4153_v26, -inf  ;;  %v15103_v4 = vld [vmem:[#allocation11_spill] sm:$0xff]  ;;  %1975 = vst [vmem:[#allocation3 + $0x1d0] sm:$0xff] %v9987_v16 }
 0x2ed   : > { %v3280_v50 = vsel %vm2200_vm13, %v15102_v15, %v3279_v3  ;;  %v9954_v24 = vsel %vm425_vm1, %v4167_v14, -inf  ;;  %v9957_v1 = vsel %vm425_vm1, %v4174_v10, -inf  ;;  %v9960_v22 = vsel %vm425_vm1, %v4181_v28, -inf  ;;  %v5396_v14 = vld [vmem:[%s14911_s5 + $0x98] sm:$0xff]  ;;  %v5387_v51 = vld [vmem:[%s14911_s5 + $0x50] sm:$0xff] }
 0x2ee   : > { %v3584_v17 = vadd.f32 %v9856_v49, %v3454_v7  ;;  %3343 = vrot.lane.b32.xlu2 %v3280_v50, %s8450_s30  ;;  %v3101_v52 = vpop.permute.xlu0 %3100  ;;  %v5031_v8 = vmax.f32 %v5029_v2, %v5030_v34  ;;  %v9962_v21 = vpop.permute.xlu2 %2784  ;;  %8113 = vmatmul.msk.f32.gmra.mxu0 %vm384_vm0, %v9951_v63  ;;  %v5392_v49 = vld [vmem:[%s14911_s5 + $0x78] sm:$0xff]  ;;  %v9973_v42 = vsel %vm425_vm1, %v4188_v37, -inf  ;;  %v5037_v0 = vmax.f32 %v5035_v58, %v5036_v12  ;;  %v5391_v27 = vld [vmem:[%s14911_s5 + $0x70] sm:$0xff]  ;;  %v5386_v12 = vld [vmem:[%s14911_s5 + $0x48] sm:$0xff] }
 0x2ef   : > { %v9976_v55 = vsel %vm425_vm1, %v4216_v29, -inf  ;;  %5445 = vmatpush.msra.mxu3 %v5392_v49  ;;  %5657 = vmatpush.msrb.mxu0 %v5396_v14  ;;  %v9981_v10 = vadd.f32 %v9787_v9, %v15103_v4  ;;  %v14965_v28 = vrot.slane %v9949_v45, 1  ;;  %v3050_v62 = vrot.slane %v9736_v60, 1  ;;  %v1833_v7 = vpop.f32.mrf.mxu2 }
 0x2f0   : > { %v3811_v26 = vadd.f32 %v3779_v39, %v3584_v17  ;;  %v5286_v40 = vsel %vm1295_vm5, %v5034_v61, %v5031_v8  ;;  %8153 = vmatmul.msk.f32.gmra.mxu1 %vm384_vm0, %v9951_v63  ;;  %v5038_v9 = vsel %vm425_vm1, %v4160_v35, -inf  ;;  %v2697_v37 = vsel %vm9902_vm7, %v9823_v47, 0.0  ;;  %v5382_v61 = vld [vmem:[%s14911_s5 + $0x28] sm:$0xff]  ;;  %1955 = vst.msk [vmem:[#allocation3 + $0x130] sm:$0xff] %vm425_vm1, %v1833_v7  ;;  %v5377_v35 = vld [vmem:[%s14911_s5] sm:$0xff]  ;;  %8191 = vmatmul.msk.f32.gmra.mxu2 %vm384_vm0, %v9858_v56 }
 0x2f1   : > { %2794 = vrot.lane.b32.xlu1 %v9833_v36, %s8451_s0  ;;  %v10003_v29 = vadd.f32 %v9847_v5, %v9668_v57  ;;  %5446 = vmatpush.msra.mxu3 %v5387_v51  ;;  %v5040_v39 = vmax.f32 %v5038_v9, %v9976_v55  ;;  %v10019_v57 = vadd.f32 %v9880_v38, %v9912_v25  ;;  %v5381_v25 = vld [vmem:[%s14911_s5 + $0x20] sm:$0xff]  ;;  %v15104_v56 = vrot.slane %v9886_v30, 1 }
 0x2f2   : > { %v3847_v34 = vadd.f32 %v9588_v43, %v3811_v26  ;;  %5658 = vmatpush.msrb.mxu0 %v5391_v27  ;;  %v3224_v15 = vadd.f32 %v3101_v52, %v9765_v6  ;;  %v5288_v2 = vsel %vm1297_vm6, %v5037_v0, %v5286_v40  ;;  %v3281_v6 = vrot.slane %v9814_v18, 7  ;;  %v10034_v38 = vpop.f32.mrf.mxu0  ;;  %v5365_v52 = vld [vmem:[#allocation4] sm:$0xff] }
 0x2f3   : > { %v3332_v50 = vpop.permute.xlu1 %3331  ;;  %5447 = vmatpush.msra.mxu3 %v5382_v61  ;;  %v3689_v48 = vsel %vm2528_vm12, %v15104_v56, %v14965_v28  ;;  %v15105_v49 = vrot.slane %v9371_v59, 1  ;;  %v3052_v0 = vrot.slane %v9814_v18, 1  ;;  %v14964_v59 = vrot.slane %v9796_v53, 1 }
 0x2f4   : > { %v3879_v58 = vmax.f32 %v3847_v34, 0.0  ;;  %v3423_v17 = vsel %vm9521_vm2, %v3332_v50, 0.0  ;;  %2398 = vrot.lane.b32.xlu0 %v9796_v53, %s8449_s29  ;;  %5659 = vmatpush.msrb.mxu0 %v5386_v12  ;;  %v14963_v34 = vrot.slane %v9918_v32, 7  ;;  %vm15106_vm9 = vcmask 1043459  }
 0x2f5   : > { %v3455_v8 = vadd.f32 %v3423_v17, %v3224_v15  ;;  %v3051_v14 = vsel %vm2528_vm12, %v15105_v49, %v3050_v62  ;;  %5448 = vmatpush.msra.mxu3 %v5377_v35  ;;  %v3282_v15 = vsel %vm2200_vm13, %v3279_v3, %v3281_v6  ;;  %v10068_v17 = vld [vmem:[#allocation2 + $0x130] sm:$0xff]  ;;  %v3053_v3 = vsel %vm2528_vm12, %v3050_v62, %v3052_v0 }
 0x2f6   : > { %v3949_v55 = vrot.slane %v3879_v58, 2  ;;  %v3950_v26 = vrot.slane %v3879_v58, 4  ;;  %v3951_v40 = vrot.slane %v3879_v58, 6  ;;  %v4217_v4 = vsel %vm4132_vm8, %v3879_v58, -inf  ;;  %3114 = vrot.lane.b32.xlu2 %v3051_v14, %s8449_s29  ;;  %v10052_v30 = vpop.permute.xlu0 %2610  ;;  %v10056_v9 = vpop.permute.xlu2 %3495  ;;  %5660 = vmatpush.msrb.mxu0 %v5381_v25 }
 0x2f7   : > { %v4218_v51 = vrot.slane %v4217_v4, 4  ;;  %v3585_v27 = vadd.f32 %v9906_v20, %v3455_v8  ;;  %8196 = vmatmul.msk.f32.vlgmr.msra.gmra.mxu3 %vm425_vm1, %v5365_v52  ;;  %8244 = vmatmul.msk.f32.vlgmr.msrb.gmra.mxu0 %vm425_vm1, %v5365_v52  ;;  %v10073_v25 = vsel %vm15106_vm9, %v5040_v39, %v5288_v2  ;;  %v14962_v8 = vrot.slane %v9796_v53, 7 }
 0x2f8   : > { %v4224_v7 = vsel %vm4132_vm8, %v3949_v55, -inf  ;;  %v4231_v61 = vsel %vm4132_vm8, %v3950_v26, -inf  ;;  %v4238_v12 = vsel %vm4132_vm8, %v3951_v40, -inf  ;;  %8154 = vmatmul.msk.f32.gmra.mxu1 %vm384_vm0, %v10068_v17  ;;  %8192 = vmatmul.msk.f32.gmra.mxu2 %vm384_vm0, %v9898_v54  ;;  %v15107_v2 = vrot.slane %v9708_v46, 1 }
 0x2f9   : > { %v4219_v20 = vmax.f32 %v4217_v4, %v4218_v51  ;;  %v4225_v50 = vrot.slane %v4224_v7, 4  ;;  %v4232_v35 = vrot.slane %v4231_v61, 4  ;;  %v4239_v58 = vrot.slane %v4238_v12, 4  ;;  %3345 = vrot.lane.b32.xlu1 %v3282_v15, %s8450_s30 }
 0x2fa   : > { %v3812_v56 = vadd.f32 %v3689_v48, %v3585_v27  ;;  %v15108_v48 = vrot.slane %v15084_v31, 1  ;;  %v3284_v60 = vsel %vm2200_vm13, %v3281_v6, %v14963_v34  ;;  %v15109_v62 = vmov %v15107_v2  ;;  %v10100_v4 = vpop.f32.mrf.mxu0 }
 0x2fb   : > { %v4220_v52 = vrot.slane %v4219_v20, 2  ;;  %v4226_v49 = vmax.f32 %v4224_v7, %v4225_v50  ;;  %v4233_v14 = vmax.f32 %v4231_v61, %v4232_v35  ;;  %v4240_v55 = vmax.f32 %v4238_v12, %v4239_v58  ;;  %v10081_v26 = vpop.permute.xlu1 %3102  ;;  %v5366_v35 = vld [vmem:[#allocation4 + $0x8] sm:$0xff] }
 0x2fc   : > { %v3848_v39 = vadd.f32 %v9588_v43, %v3812_v56  ;;  %v2561_v40 = vsel %vm2528_vm12, %v15108_v48, %v15107_v2  ;;  %3116 = vrot.lane.b32.xlu0 %v3053_v3, %s8449_s29  ;;  %v2563_v54 = vsel %vm2528_vm12, %v15109_v62, %v14964_v59  ;;  %v3193_v12 = vsel %vm9818_vm3, %v10081_v26, 0.0 }
 0x2fd   : > { %v4221_v51 = vmax.f32 %v4219_v20, %v4220_v52  ;;  %v4227_v27 = vrot.slane %v4226_v49, 2  ;;  %v4234_v7 = vrot.slane %v4233_v14, 2  ;;  %v4241_v31 = vrot.slane %v4240_v55, 2 }
 0x2fe   : > { %v3880_v61 = vmax.f32 %v3848_v39, 0.0  ;;  %2624 = vrot.lane.b32.xlu2 %v2561_v40, %s8450_s30  ;;  %v10106_v6 = vpop.permute.xlu0 %2384  ;;  %v15110_v15 = vrot.slane %v9708_v46, 7  ;;  %v3054_v20 = vrot.slane %v9918_v32, 1  ;;  %v10116_v39 = vpop.permute.xlu2 %2388  ;;  %vm15112_vm2 = vcmask 1044484  }
 0x2ff   : > { %v4222_v58 = vrot.slane %v4221_v51, 1  ;;  %v4228_v56 = vmax.f32 %v4226_v49, %v4227_v27  ;;  %v4235_v3 = vmax.f32 %v4233_v14, %v4234_v7  ;;  %v4242_v52 = vmax.f32 %v4240_v55, %v4241_v31  ;;  %8197 = vmatmul.msk.f32.gmra.mxu3 %vm425_vm1, %v5366_v35  ;;  %8245 = vmatmul.msk.f32.gmra.mxu0 %vm425_vm1, %v5366_v35  ;;  %v10122_v49 = vld [vmem:[#allocation3 + $0x130] sm:$0xff]  ;;  %v10124_v14 = vld [vmem:[#allocation2 + $0x138] sm:$0xff] }
 0x300   : > { %v10113_v50 = vsel %vm2200_vm13, %v15110_v15, %v14962_v8  ;;  %v3952_v2 = vrot.slane %v3880_v61, 2  ;;  %v3953_v48 = vrot.slane %v3880_v61, 4  ;;  %v3954_v40 = vrot.slane %v3880_v61, 6  ;;  %8155 = vmatmul.msk.f32.gmra.mxu1 %vm384_vm0, %v10124_v14 }
 0x301   : > { %15111 = vst [vmem:[#allocation11_spill] sm:$0xff] %v10113_v50  ;;  %v4245_v62 = vsel %vm4132_vm8, %v3880_v61, -inf  ;;  %v4223_v46 = vmax.f32 %v4221_v51, %v4222_v58  ;;  %v4229_v15 = vrot.slane %v4228_v56, 1  ;;  %v4236_v8 = vrot.slane %v4235_v3, 1  ;;  %3347 = vrot.lane.b32.xlu1 %v3284_v60, %s8450_s30  ;;  %v1836_v51 = vpop.f32.mrf.mxu2  ;;  %8193 = vmatmul.msk.f32.gmra.mxu2 %vm384_vm0, %v9951_v63 }
 0x302   : > { %v4243_v34 = vrot.slane %v4242_v52, 1  ;;  %v4246_v55 = vrot.slane %v4245_v62, 4  ;;  %v4252_v27 = vsel %vm4132_vm8, %v3952_v2, -inf  ;;  %v4259_v7 = vsel %vm4132_vm8, %v3953_v48, -inf  ;;  %1958 = vst.msk [vmem:[#allocation3 + $0x148] sm:$0xff] %vm425_vm1, %v1836_v51 }
 0x303   : > { %v4266_v31 = vsel %vm4132_vm8, %v3954_v40, -inf  ;;  %v4230_v61 = vmax.f32 %v4228_v56, %v4229_v15  ;;  %v4237_v35 = vmax.f32 %v4235_v3, %v4236_v8  ;;  %v5042_v60 = vsel %vm425_vm1, %v4223_v46, -inf  ;;  %v10132_v59 = vpop.permute.xlu1 %2612  ;;  %v10140_v56 = vpop.f32.mrf.mxu0 }
 0x304   : > { %v4244_v58 = vmax.f32 %v4242_v52, %v4243_v34  ;;  %v5043_v5 = vmax.f32 %v9954_v24, %v5042_v60  ;;  %v4253_v2 = vrot.slane %v4252_v27, 4  ;;  %v4260_v28 = vrot.slane %v4259_v7, 4  ;;  %2626 = vrot.lane.b32.xlu0 %v2563_v54, %s8450_s30  ;;  %v10151_v15 = vpop.f32.mrf.mxu1 }
 0x305   : > { %v3690_v48 = vrot.slane %v10122_v49, 1  ;;  %v5045_v34 = vsel %vm425_vm1, %v4230_v61, -inf  ;;  %v5048_v8 = vsel %vm425_vm1, %v4237_v35, -inf  ;;  %v4267_v52 = vrot.slane %v4266_v31, 4  ;;  %v8331_v61 = vld [vmem:[#allocation3 + $0xe0] sm:$0xff]  ;;  %1978 = vst [vmem:[#allocation3 + $0x1e8] sm:$0xff] %v10151_v15 }
 0x306   : > { %v5051_v3 = vsel %vm425_vm1, %v4244_v58, -inf  ;;  %v5046_v40 = vmax.f32 %v9957_v1, %v5045_v34  ;;  %v5049_v63 = vmax.f32 %v9960_v22, %v5048_v8  ;;  %v5292_v24 = vsel %vm15112_vm2, %v5043_v5, %v10073_v25  ;;  %2798 = vrot.lane.b32.xlu2 %v10113_v50, %s8451_s0  ;;  %v3334_v54 = vpop.permute.xlu0 %3333  ;;  %v10160_v35 = vpop.permute.xlu2 %3335  ;;  %v15120_v34 = vld [vmem:[#allocation32_spill] sm:$0xff] }
 0x307   : > { %v4247_v46 = vmax.f32 %v4245_v62, %v4246_v55  ;;  %v2729_v51 = vadd.f32 %v2697_v37, %v9981_v10  ;;  %v2965_v1 = vadd.f32 %v8331_v61, %v10019_v57  ;;  %v2047_v22 = vadd.s32 72, %v9408_v41 }
 0x308   : > { %v3055_v5 = vsel %vm2528_vm12, %v3052_v0, %v3054_v20  ;;  %v5052_v25 = vmax.f32 %v9973_v42, %v5051_v3  ;;  %vm15113_vm9 = vcmask 1045509   ;;  %v4254_v10 = vmax.f32 %v4252_v27, %v4253_v2 }
 0x309   : > { %v5294_v47 = vsel %vm15113_vm9, %v5046_v40, %v5292_v24  ;;  %v4261_v37 = vmax.f32 %v4259_v7, %v4260_v28  ;;  %vm15114_vm2 = vcmask 1046534   ;;  %v4268_v62 = vmax.f32 %v4266_v31, %v4267_v52  ;;  %3118 = vrot.lane.b32.xlu1 %v3055_v5, %s8449_s29  ;;  %v15118_v31 = vld [vmem:[#allocation30_spill] sm:$0xff]  ;;  %v15122_v40 = vld [vmem:[#allocation12_spill] sm:$0xff] }
 0x30a   : > { %v5296_v57 = vsel %vm15114_vm2, %v5049_v63, %v5294_v47  ;;  %v3225_v55 = vadd.f32 %v3193_v12, %v2965_v1  ;;  %v15115_v18 = vrot.slane %v9949_v45, 1  ;;  %v15116_v42 = vsel %vm9549_vm4, %v9812_v19, 0.0  ;;  %v15119_v45 = vld [vmem:[#allocation10_spill] sm:$0xff]  ;;  %v15123_v63 = vld [vmem:[#allocation33_spill] sm:$0xff] }
 0x30b   : > { %v2902_v28 = vadd.f32 %v15116_v42, %v10003_v29  ;;  %vm15117_vm9 = vcmask 1047559   ;;  %v4248_v7 = vrot.slane %v4247_v46, 2  ;;  %v2086_v26 = vand.u32 15, %v15118_v31  ;;  %v10192_v2 = vpop.permute.xlu1 %2386  ;;  %v8332_v47 = vld [vmem:[#allocation3 + $0x110] sm:$0xff] }
 0x30c   : > { %v3691_v0 = vsel %vm2528_vm12, %v15115_v18, %v3690_v48  ;;  %v5298_v27 = vsel %vm15117_vm9, %v5052_v25, %v5296_v57  ;;  %v2903_v12 = vadd.f32 %v9860_v44, %v2729_v51  ;;  %v2730_v58 = vadd.f32 %v10052_v30, %v15119_v45  ;;  %2400 = vrot.lane.b32.xlu0 %v15120_v34, %s8449_s29  ;;  %v10199_v44 = vpop.f32.mrf.mxu0 }
 0x30d   : > { %5357 = vst.msk [vmem:[#allocation4 + $0x10] sm:$0xff] %vm425_vm1, %v5298_v27  ;;  %v3456_v60 = vadd.f32 %v3334_v54, %v3225_v55  ;;  %v2564_v8 = vrot.slane %v15120_v34, 1  ;;  %v4255_v3 = vrot.slane %v4254_v10, 2  ;;  %v4262_v19 = vrot.slane %v4261_v37, 2 }
 0x30e   : > { %v2079_v29 = vand.u32 15, %v2047_v22  ;;  %v3781_v52 = vsel %vm9818_vm3, %v3691_v0, 0.0  ;;  %15121 = vst [vmem:[#allocation30_spill] sm:$0xff] %v10199_v44  ;;  %v2469_v24 = vadd.f32 %v15123_v63, %v15122_v40  ;;  %v4269_v30 = vrot.slane %v4268_v62, 2  ;;  %3509 = vrot.lane.b32.xlu2 %v9918_v32, %s8451_s0  ;;  %v10211_v5 = vpop.permute.xlu0 %3497  ;;  %v10216_v18 = vpop.permute.xlu2 %3106 }
 0x30f   : > { %v3586_v54 = vadd.f32 %v10056_v9, %v3456_v60  ;;  %v14969_v51 = vrot.slane %v9987_v16, 7  ;;  %v2872_v1 = vsel %vm9569_vm11, %v9962_v21, 0.0  ;;  %v4249_v22 = vmax.f32 %v4247_v46, %v4248_v7  ;;  %v10262_v63 = vpop.f32.mrf.mxu1 }
 0x310   : > { %v2238_v13 = vrot.slane %v15120_v34, 7  ;;  %v14966_v25 = vrot.slane %v9987_v16, 1  ;;  %v10214_v57 = vadd.f32 %v8332_v47, %v2903_v12  ;;  %v2904_v9 = vadd.f32 %v2872_v1, %v2730_v58  ;;  %v10233_v58 = vld [vmem:[#allocation3 + $0x148] sm:$0xff]  ;;  %1981 = vst [vmem:[#allocation3 + $0x200] sm:$0xff] %v10262_v63 }
 0x311   : > { %v3813_v55 = vadd.f32 %v3781_v52, %v3586_v54  ;;  %vm10218_vm3 = vcmp.ge.s32.totalorder %v2086_v26, 1  ;;  %v15125_v0 = vmov 0  ;;  %v4256_v21 = vmax.f32 %v4254_v10, %v4255_v3  ;;  %v8333_v26 = vld [vmem:[#allocation3 + $0xf8] sm:$0xff] }
 0x312   : > { %v15126_v0 = vsel %vm10218_vm3, 4294967295, %v15125_v0  ;;  %v4263_v46 = vmax.f32 %v4261_v37, %v4262_v19  ;;  %vm10222_vm2 = vcmp.le.s32.totalorder %v2079_v29, 14  ;;  %v15130_v27 = vrot.slane %v9796_v53, 1 }
 0x313   : > { %15127 = vst [vmem:[#allocation10_spill] sm:$0xff] %v15126_v0  ;;  %v4270_v31 = vmax.f32 %v4268_v62, %v4269_v30  ;;  %v3849_v12 = vadd.f32 %v9588_v43, %v3813_v55  ;;  %v2966_v45 = vadd.f32 %v8333_v26, %v2902_v28  ;;  %v15131_v10 = vrot.slane %v9918_v32, 7  ;;  %v8334_v32 = vld [vmem:[#allocation3 + $0x128] sm:$0xff] }
 0x314   : > { %v2565_v7 = vsel %vm2528_vm12, %v15130_v27, %v2564_v8  ;;  %v4250_v60 = vrot.slane %v4249_v22, 1  ;;  %v5367_v3 = vld [vmem:[#allocation4 + $0x10] sm:$0xff]  ;;  %v15132_v62 = vrot.slane %v9796_v53, 7  ;;  %v10252_v28 = vsel %vm2528_vm12, %v3054_v20, %v14966_v25  ;;  %v3105_v53 = vpop.permute.xlu1 %3104  ;;  %v1839_v27 = vpop.f32.mrf.mxu2  ;;  %8194 = vmatmul.msk.f32.gmra.mxu2 %vm384_vm0, %v10068_v17 }
 0x315   : > { %2628 = vrot.lane.b32.xlu1 %v2565_v7, %s8450_s30  ;;  %v3286_v37 = vsel %vm2200_vm13, %v15131_v10, %v14969_v51  ;;  %v2699_v52 = vsel %vm10222_vm2, %v10132_v59, 0.0  ;;  %v3881_v40 = vmax.f32 %v3849_v12, 0.0  ;;  %8198 = vmatmul.msk.f32.gmra.mxu3 %vm425_vm1, %v5367_v3  ;;  %v10264_v30 = vadd.f32 %v8334_v32, %v2904_v9  ;;  %v10272_v59 = vpop.f32.mrf.mxu0  ;;  %v15137_v9 = vld [vmem:[#allocation13_spill] sm:$0xff]  ;;  %1961 = vst.msk [vmem:[#allocation3 + $0x160] sm:$0xff] %vm425_vm1, %v1839_v27 }
 0x316   : > { %v10245_v43 = vsel %vm2200_vm13, %v15132_v62, %v2238_v13  ;;  %8246 = vmatmul.msk.f32.gmra.mxu0 %vm425_vm1, %v5367_v3  ;;  %v10267_v20 = vadd.s32 144, %v9408_v41  ;;  %v4257_v54 = vrot.slane %v4256_v21, 1  ;;  %v4264_v1 = vrot.slane %v4263_v46, 1  ;;  %3349 = vrot.lane.b32.xlu0 %v3286_v37, %s8450_s30  ;;  %15135 = vst [vmem:[#allocation12_spill] sm:$0xff] %v10272_v59 }
 0x317   : > { %15133 = vst [vmem:[#allocation32_spill] sm:$0xff] %v10245_v43  ;;  %v14968_v47 = vrot.slane %v10233_v58, 1  ;;  %v3226_v55 = vadd.f32 %v3105_v53, %v2966_v45  ;;  %v4271_v7 = vrot.slane %v4270_v31, 1  ;;  %v15138_v26 = vsel %vm9578_vm14, %v15137_v9, 0.0  ;;  %v15140_v53 = vld [vmem:[#allocation14_spill] sm:$0xff]  ;;  %2800 = vrot.lane.b32.xlu2 %v10245_v43, %s8451_s0 }
 0x318   : > { %v10279_v10 = vadd.f32 %v10106_v6, %v15138_v26  ;;  %v3955_v3 = vrot.slane %v3881_v40, 2  ;;  %v3425_v45 = vsel %vm9549_vm4, %v10160_v35, 0.0  ;;  %v4251_v37 = vmax.f32 %v4249_v22, %v4250_v60  ;;  %v10296_v26 = vpop.permute.xlu0 %2788  ;;  %v15142_v22 = vld [vmem:[#allocation19_spill] sm:$0xff] }
 0x319   : > { %v15141_v32 = vsel %vm9612_vm10, %v15140_v53, 0.0  ;;  %v3457_v9 = vadd.f32 %v3425_v45, %v3226_v55  ;;  %v2049_v6 = vadd.s32 88, %v9408_v41  ;;  %v10299_v33 = vadd.f32 %v2699_v52, %v2469_v24 }
 0x31a   : > { %v10291_v29 = vadd.f32 %v10116_v39, %v15141_v32  ;;  %v3956_v17 = vrot.slane %v3881_v40, 4  ;;  %v4273_v35 = vsel %vm4132_vm8, %v3881_v40, -inf  ;;  %v10304_v60 = vadd.f32 %v10192_v2, %v15142_v22  ;;  %v10306_v39 = vpop.permute.xlu2 %2616 }
 0x31b   : > { %v4258_v55 = vmax.f32 %v4256_v21, %v4257_v54  ;;  %v4265_v45 = vmax.f32 %v4263_v46, %v4264_v1  ;;  %v3693_v53 = vsel %vm2528_vm12, %v3690_v48, %v14968_v47  ;;  %v2240_v24 = vrot.slane %v9935_v23, 7 }
 0x31c   : > { %v4272_v52 = vmax.f32 %v4270_v31, %v4271_v7  ;;  %v3957_v27 = vrot.slane %v3881_v40, 6  ;;  %v4280_v32 = vsel %vm4132_vm8, %v3955_v3, -inf  ;;  %v3587_v25 = vadd.f32 %v10211_v5, %v3457_v9  ;;  %v10326_v54 = vpop.permute.xlu1 %2614  ;;  %v1842_v34 = vpop.f32.mrf.mxu2  ;;  %8195 = vmatmul.msk.f32.gmra.mxu2 %vm384_vm0, %v10124_v14 }
 0x31d   : > { %2402 = vrot.lane.b32.xlu1 %v9935_v23, %s8449_s29  ;;  %v10319_v2 = vsel %vm425_vm1, %v4251_v37, -inf  ;;  %v4274_v21 = vrot.slane %v4273_v35, 4  ;;  %v3195_v49 = vsel %vm9902_vm7, %v10216_v18, 0.0  ;;  %v2081_v48 = vand.u32 15, %v2049_v6  ;;  %v1604_v37 = vpop.f32.mrf.mxu0  ;;  %v10348_v6 = vld [vmem:[%s14910_s4] ss:$0 sm:$0xff] }
 0x31e   : > { %v4287_v46 = vsel %vm4132_vm8, %v3956_v17, -inf  ;;  %v3814_v31 = vadd.f32 %v3693_v53, %v3587_v25  ;;  %v2566_v40 = vrot.slane %v9935_v23, 1  ;;  %v14967_v5 = vrot.slane %v10034_v38, 7  ;;  %3513 = vrot.lane.b32.xlu0 %v10151_v15, %s8451_s0  ;;  %1998 = vst [vmem:[#allocation3 + $0x288] sm:$0xff] %v1604_v37 }
 0x31f   : > { %v10330_v1 = vsel %vm425_vm1, %v4258_v55, -inf  ;;  %v10333_v7 = vsel %vm425_vm1, %v4265_v45, -inf  ;;  %v4281_v3 = vrot.slane %v4280_v32, 4  ;;  %v14970_v18 = vrot.slane %v10034_v38, 1  ;;  %3511 = vrot.lane.b32.xlu2 %v9987_v16, %s8451_s0  ;;  %1964 = vst.msk [vmem:[#allocation3 + $0x178] sm:$0xff] %vm425_vm1, %v1842_v34 }
 0x320   : > { %v10339_v25 = vsel %vm425_vm1, %v4272_v52, -inf  ;;  %v4294_v23 = vsel %vm4132_vm8, %v3957_v27, -inf  ;;  %v10343_v9 = vadd.f32 %v3195_v49, %v10214_v57  ;;  %v3850_v17 = vadd.f32 %v10348_v6, %v3814_v31  ;;  %v10357_v53 = vpop.permute.xlu0 %3499 }
 0x321   : > { %v4275_v22 = vmax.f32 %v4273_v35, %v4274_v21  ;;  %v4288_v55 = vrot.slane %v4287_v46, 4  ;;  %vm10351_vm4 = vcmp.le.s32.totalorder %v2081_v48, 14  ;;  %v15143_v45 = vmov 0 }
 0x322   : > { %v15144_v45 = vsel %vm10351_vm4, 4294967295, %v15143_v45  ;;  %v3882_v52 = vmax.f32 %v3850_v17, 0.0  ;;  %v10360_v27 = vpop.permute.xlu2 %2790  ;;  %v10365_v49 = vsel %vm2200_vm13, %v2240_v24, %v14967_v5  ;;  %v2567_v35 = vsel %vm2528_vm12, %v2564_v8, %v2566_v40 }
 0x323   : > { %15145 = vst [vmem:[#allocation33_spill] sm:$0xff] %v15144_v45  ;;  %v10373_v21 = vsel %vm2200_vm13, %v2238_v13, %v2240_v24  ;;  %v4282_v48 = vmax.f32 %v4280_v32, %v4281_v3  ;;  %v4295_v31 = vrot.slane %v4294_v23, 4  ;;  %v10379_v17 = vsel %vm2528_vm12, %v2566_v40, %v14970_v18  ;;  %v10402_v18 = vld [vmem:[#allocation3 + $0x160] sm:$0xff] }
 0x324   : > { %15146 = vst [vmem:[#allocation23_spill] sm:$0xff] %v10365_v49  ;;  %v3958_v5 = vrot.slane %v3882_v52, 2  ;;  %v3959_v47 = vrot.slane %v3882_v52, 4  ;;  %v3960_v51 = vrot.slane %v3882_v52, 6  ;;  %v4301_v57 = vsel %vm4132_vm8, %v3882_v52, -inf }
 0x325   : > { %15147 = vst [vmem:[#allocation24_spill] sm:$0xff] %v10373_v21  ;;  %3120 = vrot.lane.b32.xlu1 %v10252_v28, %s8449_s29  ;;  %v4276_v8 = vrot.slane %v4275_v22, 2  ;;  %v4289_v13 = vmax.f32 %v4287_v46, %v4288_v55  ;;  %v2701_v24 = vsel %vm10351_vm4, %v10306_v39, 0.0  ;;  %v15148_v32 = vrot.slane %v10151_v15, 7  ;;  %v10400_v55 = vpop.permute.xlu1 %2786 }
 0x326   : > { %v15149_v40 = vrot.slane %v9987_v16, 7  ;;  %v4302_v28 = vrot.slane %v4301_v57, 4  ;;  %v4308_v52 = vsel %vm4132_vm8, %v3958_v5, -inf  ;;  %v4315_v14 = vsel %vm4132_vm8, %v3959_v47, -inf  ;;  %2804 = vrot.lane.b32.xlu0 %v10365_v49, %s8451_s0 }
 0x327   : > { %v4322_v46 = vsel %vm4132_vm8, %v3960_v51, -inf  ;;  %v4283_v39 = vrot.slane %v4282_v48, 2  ;;  %v4296_v37 = vmax.f32 %v4294_v23, %v4295_v31  ;;  %v4309_v50 = vrot.slane %v4308_v52, 4  ;;  %2404 = vrot.lane.b32.xlu2 %v10034_v38, %s8449_s29 }
 0x328   : > { %v10394_v3 = vsel %vm2200_vm13, %v15149_v40, %v15148_v32  ;;  %v10406_v32 = vpop.f32.mrf.mxu0  ;;  %v15151_v34 = vrot.slane %v10151_v15, 1  ;;  %v15152_v5 = vrot.slane %v9987_v16, 1  ;;  %v4303_v51 = vmax.f32 %v4301_v57, %v4302_v28  ;;  %v10422_v44 = vpop.permute.xlu0 %2390 }
 0x329   : > { %15150 = vst [vmem:[#allocation13_spill] sm:$0xff] %v10406_v32  ;;  %v4316_v40 = vrot.slane %v4315_v14, 4  ;;  %v4323_v36 = vrot.slane %v4322_v46, 4  ;;  %v4277_v31 = vmax.f32 %v4275_v22, %v4276_v8  ;;  %v4310_v59 = vmax.f32 %v4308_v52, %v4309_v50  ;;  %v10429_v52 = vpop.f32.mrf.mxu1 }
 0x32a   : > { %v10413_v47 = vsel %vm2528_vm12, %v15152_v5, %v15151_v34  ;;  %2001 = vst [vmem:[#allocation3 + $0x2a0] sm:$0xff] %v10406_v32  ;;  %v10418_v45 = vadd.f32 %v2701_v24, %v10304_v60  ;;  %v4290_v34 = vrot.slane %v4289_v13, 2  ;;  %v4304_v57 = vrot.slane %v4303_v51, 2  ;;  %v10425_v19 = vpop.permute.xlu2 %3501 }
 0x32b   : > { %v4317_v28 = vmax.f32 %v4315_v14, %v4316_v40  ;;  %v4324_v5 = vmax.f32 %v4322_v46, %v4323_v36  ;;  %v4284_v32 = vmax.f32 %v4282_v48, %v4283_v39  ;;  %v4297_v23 = vrot.slane %v4296_v37, 2  ;;  %1984 = vst [vmem:[#allocation3 + $0x218] sm:$0xff] %v10429_v52 }
 0x32c   : > { %v4311_v22 = vrot.slane %v4310_v59, 2  ;;  %v4305_v60 = vmax.f32 %v4303_v51, %v4304_v57  ;;  %v4278_v0 = vrot.slane %v4277_v31, 1  ;;  %v10434_v36 = vadd.f32 %v10326_v54, %v10279_v10 }
 0x32d   : > { %v4318_v8 = vrot.slane %v4317_v28, 2  ;;  %v4325_v24 = vrot.slane %v4324_v5, 2  ;;  %2630 = vrot.lane.b32.xlu1 %v2567_v35, %s8450_s30  ;;  %v15153_v48 = vrot.slane %v10402_v18, 1  ;;  %v15154_v14 = vrot.slane %v10233_v58, 1  ;;  %v3338_v57 = vpop.permute.xlu1 %3337 }
 0x32e   : > { %v4312_v49 = vmax.f32 %v4310_v59, %v4311_v22  ;;  %v4291_v39 = vmax.f32 %v4289_v13, %v4290_v34  ;;  %v4306_v35 = vrot.slane %v4305_v60, 1  ;;  %v4285_v16 = vrot.slane %v4284_v32, 1  ;;  %3515 = vrot.lane.b32.xlu0 %v10262_v63, %s8451_s0 }
 0x32f   : > { %v3695_v46 = vsel %vm2528_vm12, %v15154_v14, %v15153_v48  ;;  %v4319_v51 = vmax.f32 %v4317_v28, %v4318_v8  ;;  %v4326_v40 = vmax.f32 %v4324_v5, %v4325_v24  ;;  %v4298_v50 = vmax.f32 %v4296_v37, %v4297_v23  ;;  %3351 = vrot.lane.b32.xlu2 %v10394_v3, %s8450_s30 }
 0x330   : > { %v4313_v59 = vrot.slane %v4312_v49, 1  ;;  %v3458_v22 = vadd.f32 %v3338_v57, %v10343_v9  ;;  %v1610_v10 = vpop.f32.mrf.mxu0  ;;  %v4307_v54 = vmax.f32 %v4305_v60, %v4306_v35  ;;  %v3783_v48 = vsel %vm9902_vm7, %v3695_v46, 0.0  ;;  %v3109_v37 = vpop.permute.xlu0 %3108 }
 0x331   : > { %v4320_v58 = vrot.slane %v4319_v51, 1  ;;  %v4327_v43 = vrot.slane %v4326_v40, 1  ;;  %2004 = vst [vmem:[#allocation3 + $0x2b8] sm:$0xff] %v1610_v10  ;;  %v4279_v13 = vmax.f32 %v4277_v31, %v4278_v0  ;;  %v15155_v9 = vrot.slane %v10262_v63, 7  ;;  %v10460_v31 = vld [vmem:[#allocation3 + $0x178] sm:$0xff] }
 0x332   : > { %v4314_v34 = vmax.f32 %v4312_v49, %v4313_v59  ;;  %v3588_v28 = vadd.f32 %v10357_v53, %v3458_v22  ;;  %v15156_v23 = vrot.slane %v10151_v15, 7  ;;  %v4292_v60 = vrot.slane %v4291_v39, 1  ;;  %v10456_v14 = vpop.permute.xlu2 %2792  ;;  %v1845_v22 = vpop.f32.mrf.mxu2 }
 0x333   : > { %v4321_v8 = vmax.f32 %v4319_v51, %v4320_v58  ;;  %v4328_v24 = vmax.f32 %v4326_v40, %v4327_v43  ;;  %v5054_v11 = vsel %vm425_vm1, %v4307_v54, -inf  ;;  %v4299_v0 = vrot.slane %v4298_v50, 1  ;;  %v10467_v43 = vpop.f32.mrf.mxu1  ;;  %1967 = vst.msk [vmem:[#allocation3 + $0x190] sm:$0xff] %vm425_vm1, %v1845_v22 }
 0x334   : > { %v3290_v5 = vsel %vm2200_vm13, %v15156_v23, %v15155_v9  ;;  %v5055_v53 = vmax.f32 %v10319_v2, %v5054_v11  ;;  %v5057_v49 = vsel %vm425_vm1, %v4314_v34, -inf  ;;  %v3815_v3 = vadd.f32 %v3783_v48, %v3588_v28  ;;  %1987 = vst [vmem:[#allocation3 + $0x230] sm:$0xff] %v10467_v43 }
 0x335   : > { %v4286_v46 = vmax.f32 %v4284_v32, %v4285_v16  ;;  %v5058_v35 = vmax.f32 %v10330_v1, %v5057_v49  ;;  %v5060_v57 = vsel %vm425_vm1, %v4321_v8, -inf  ;;  %v5063_v51 = vsel %vm425_vm1, %v4328_v24, -inf  ;;  %2802 = vrot.lane.b32.xlu1 %v10373_v21, %s8451_s0  ;;  %v3340_v48 = vpop.permute.xlu1 %3339 }
 0x336   : > { %v5061_v40 = vmax.f32 %v10333_v7, %v5060_v57  ;;  %v5064_v2 = vmax.f32 %v10339_v25, %v5063_v51  ;;  %v3851_v59 = vadd.f32 %v10348_v6, %v3815_v3  ;;  %v15157_v32 = vrot.slane %v10262_v63, 1  ;;  %2406 = vrot.lane.b32.xlu0 %v10100_v4, %s8449_s29 }
 0x337   : > { %v15158_v1 = vrot.slane %v10151_v15, 1  ;;  %v4293_v10 = vmax.f32 %v4291_v39, %v4292_v60  ;;  %v5299_v54 = vsel %vm1295_vm5, %v5058_v35, %v5055_v53  ;;  %v3228_v58 = vadd.f32 %v3109_v37, %v10264_v30  ;;  %3122 = vrot.lane.b32.xlu2 %v10413_v47, %s8449_s29 }
 0x338   : > { %v3696_v7 = vrot.slane %v10460_v31, 1  ;;  %v10482_v25 = vmax.f32 %v4298_v50, %v4299_v0  ;;  %v3883_v34 = vmax.f32 %v3851_v59, 0.0  ;;  %v5300_v28 = vsel %vm1297_vm6, %v5061_v40, %v5299_v54  ;;  %v10489_v39 = vpop.f32.mrf.mxu0  ;;  %v10504_v24 = vpop.permute.xlu0 %2618 }
 0x339   : > { %v3061_v16 = vsel %vm2528_vm12, %v15158_v1, %v15157_v32  ;;  %v3427_v15 = vsel %vm9569_vm11, %v3340_v48, 0.0  ;;  %15159 = vst [vmem:[#allocation25_spill] sm:$0xff] %v10489_v39  ;;  %v10492_v30 = vsel %vm425_vm1, %v4279_v13, -inf  ;;  %v10495_v37 = vsel %vm425_vm1, %v4286_v46, -inf }
 0x33a   : > { %vm15160_vm0 = vcmask 1043459   ;;  %v3459_v9 = vadd.f32 %v3427_v15, %v3228_v58  ;;  %2007 = vst [vmem:[#allocation3 + $0x2d0] sm:$0xff] %v10489_v39  ;;  %v3961_v23 = vrot.slane %v3883_v34, 2  ;;  %v3962_v61 = vrot.slane %v3883_v34, 4  ;;  %v10513_v3 = vpop.permute.xlu2 %3503 }
 0x33b   : > { %v10498_v50 = vsel %vm15160_vm0, %v5064_v2, %v5300_v28  ;;  %v3963_v60 = vrot.slane %v3883_v34, 6  ;;  %v4329_v8 = vsel %vm4132_vm8, %v3883_v34, -inf  ;;  %v15161_v11 = vrot.slane %v10402_v18, 1 }
 0x33c   : > { %v4330_v13 = vrot.slane %v4329_v8, 4  ;;  %v3589_v53 = vadd.f32 %v10425_v19, %v3459_v9  ;;  %v14984_v49 = vrot.slane %v10100_v4, 7  ;;  %v4336_v46 = vsel %vm4132_vm8, %v3961_v23, -inf }
 0x33d   : > { %v3697_v0 = vsel %vm2528_vm12, %v15161_v11, %v3696_v7  ;;  %v4343_v35 = vsel %vm4132_vm8, %v3962_v61, -inf  ;;  %v4350_v47 = vsel %vm4132_vm8, %v3963_v60, -inf  ;;  %v14986_v57 = vrot.slane %v10100_v4, 1  ;;  %3353 = vrot.lane.b32.xlu1 %v3290_v5, %s8450_s30  ;;  %v10528_v34 = vpop.permute.xlu1 %3110 }
 0x33e   : > { %v4331_v51 = vmax.f32 %v4329_v8, %v4330_v13  ;;  %v4337_v40 = vrot.slane %v4336_v46, 4  ;;  %v4344_v2 = vrot.slane %v4343_v35, 4  ;;  %v4351_v18 = vrot.slane %v4350_v47, 4  ;;  %3124 = vrot.lane.b32.xlu0 %v3061_v16, %s8449_s29 }
 0x33f   : > { %v10521_v19 = vsel %vm425_vm1, %v4293_v10, -inf  ;;  %v10525_v59 = vadd.f32 %v10400_v55, %v10299_v33  ;;  %v3816_v32 = vadd.f32 %v3697_v0, %v3589_v53  ;;  %v14985_v1 = vrot.slane %v10429_v52, 7  ;;  %2632 = vrot.lane.b32.xlu2 %v10379_v17, %s8450_s30 }
 0x340   : > { %v4332_v22 = vrot.slane %v4331_v51, 2  ;;  %v4338_v54 = vmax.f32 %v4336_v46, %v4337_v40  ;;  %v4345_v58 = vmax.f32 %v4343_v35, %v4344_v2  ;;  %v4352_v48 = vmax.f32 %v4350_v47, %v4351_v18  ;;  %v10552_v13 = vpop.permute.xlu0 %2392 }
 0x341   : > { %v3852_v28 = vadd.f32 %v10348_v6, %v3816_v32  ;;  %v15162_v5 = vrot.slane %v10034_v38, 1  ;;  %v15163_v55 = vrot.slane %v10034_v38, 7  ;;  %v10545_v15 = vadd.s32 160, %v9408_v41 }
 0x342   : > { %v4333_v9 = vmax.f32 %v4331_v51, %v4332_v22  ;;  %v4339_v23 = vrot.slane %v4338_v54, 2  ;;  %v4346_v61 = vrot.slane %v4345_v58, 2  ;;  %v4353_v16 = vrot.slane %v4352_v48, 2  ;;  %v10560_v51 = vpop.permute.xlu2 %2396 }
 0x343   : > { %v2571_v33 = vsel %vm2528_vm12, %v15162_v5, %v14986_v57  ;;  %v10542_v10 = vsel %vm2200_vm13, %v15163_v55, %v14984_v49  ;;  %v3884_v60 = vmax.f32 %v3852_v28, 0.0  ;;  %v3197_v8 = vsel %vm10222_vm2, %v10528_v34, 0.0  ;;  %v10564_v55 = vld [vmem:[#allocation3 + $0x190] sm:$0xff]  ;;  %v1848_v57 = vpop.f32.mrf.mxu2 }
 0x344   : > { %15164 = vst [vmem:[#allocation14_spill] sm:$0xff] %v10542_v10  ;;  %v15165_v38 = vrot.slane %v10262_v63, 7  ;;  %v3062_v0 = vrot.slane %v10429_v52, 1  ;;  %v4334_v53 = vrot.slane %v4333_v9, 1  ;;  %v4340_v46 = vmax.f32 %v4338_v54, %v4339_v23 }
 0x345   : > { %v4347_v35 = vmax.f32 %v4345_v58, %v4346_v61  ;;  %v4354_v47 = vmax.f32 %v4352_v48, %v4353_v16  ;;  %v3964_v40 = vrot.slane %v3884_v60, 2  ;;  %v3965_v2 = vrot.slane %v3884_v60, 4  ;;  %1970 = vst.msk [vmem:[#allocation3 + $0x1a8] sm:$0xff] %vm425_vm1, %v1848_v57 }
 0x346   : > { %v3292_v11 = vsel %vm2200_vm13, %v15165_v38, %v14985_v1  ;;  %v3966_v18 = vrot.slane %v3884_v60, 6  ;;  %v4357_v17 = vsel %vm4132_vm8, %v3884_v60, -inf  ;;  %v4335_v32 = vmax.f32 %v4333_v9, %v4334_v53  ;;  %v10570_v9 = vpop.permute.xlu1 %2620  ;;  %2634 = vrot.lane.b32.xlu0 %v2571_v33, %s8450_s30 }
 0x347   : > { %v4341_v22 = vrot.slane %v4340_v46, 1  ;;  %v4348_v28 = vrot.slane %v4347_v35, 1  ;;  %v4355_v5 = vrot.slane %v4354_v47, 1  ;;  %3355 = vrot.lane.b32.xlu1 %v3292_v11, %s8450_s30  ;;  %v4358_v38 = vrot.slane %v4357_v17, 4  ;;  %2806 = vrot.lane.b32.xlu2 %v10542_v10, %s8451_s0 }
 0x348   : > { %v4364_v54 = vsel %vm4132_vm8, %v3964_v40, -inf  ;;  %v4371_v58 = vsel %vm4132_vm8, %v3965_v2, -inf  ;;  %v4378_v48 = vsel %vm4132_vm8, %v3966_v18, -inf  ;;  %v5066_v60 = vsel %vm425_vm1, %v4335_v32, -inf  ;;  %v1616_v40 = vpop.f32.mrf.mxu0 }
 0x349   : > { %v4342_v23 = vmax.f32 %v4340_v46, %v4341_v22  ;;  %v4349_v61 = vmax.f32 %v4347_v35, %v4348_v28  ;;  %v4356_v16 = vmax.f32 %v4354_v47, %v4355_v5  ;;  %v5067_v53 = vmax.f32 %v10492_v30, %v5066_v60  ;;  %2010 = vst [vmem:[#allocation3 + $0x2e8] sm:$0xff] %v1616_v40  ;;  %v3342_v22 = vpop.permute.xlu0 %3341  ;;  %v8336_v5 = vld [vmem:[#allocation3 + $0x140] sm:$0xff] }
 0x34a   : > { %v4365_v49 = vrot.slane %v4364_v54, 4  ;;  %v4372_v11 = vrot.slane %v4371_v58, 4  ;;  %v3698_v1 = vrot.slane %v10564_v55, 1  ;;  %v4379_v47 = vrot.slane %v4378_v48, 4 }
 0x34b   : > { %v5069_v2 = vsel %vm425_vm1, %v4342_v23, -inf  ;;  %v5072_v46 = vsel %vm425_vm1, %v4349_v61, -inf  ;;  %v5075_v35 = vsel %vm425_vm1, %v4356_v16, -inf  ;;  %vm15166_vm7 = vcmask 1044484  }
 0x34c   : > { %v5070_v18 = vmax.f32 %v10495_v37, %v5069_v2  ;;  %v5073_v30 = vmax.f32 %v10521_v19, %v5072_v46  ;;  %v5302_v32 = vsel %vm15166_vm7, %v5067_v53, %v10498_v50  ;;  %v4359_v33 = vmax.f32 %v4357_v17, %v4358_v38  ;;  %v10588_v37 = vpop.f32.mrf.mxu1  ;;  %v10591_v38 = vpop.permute.xlu2 %3343 }
 0x34d   : > { %v5074_v28 = vsel %vm425_vm1, %v10482_v25, -inf  ;;  %v2969_v23 = vadd.f32 %v8336_v5, %v10525_v59  ;;  %v4366_v61 = vmax.f32 %v4364_v54, %v4365_v49  ;;  %v4373_v16 = vmax.f32 %v4371_v58, %v4372_v11  ;;  %1990 = vst [vmem:[#allocation3 + $0x248] sm:$0xff] %v10588_v37 }
 0x34e   : > { %v5076_v19 = vmax.f32 %v5074_v28, %v5075_v35  ;;  %vm15167_vm11 = vcmask 1045509   ;;  %v4380_v17 = vmax.f32 %v4378_v48, %v4379_v47  ;;  %v15168_v60 = vrot.slane %v10262_v63, 1  ;;  %v10619_v53 = vpop.permute.xlu1 %2394  ;;  %2408 = vrot.lane.b32.xlu0 %v10140_v56, %s8449_s29  ;;  %v15171_v35 = vld [vmem:[#allocation26_spill] sm:$0xff] }
 0x34f   : > { %v5303_v50 = vsel %vm15167_vm11, %v5070_v18, %v5302_v32  ;;  %v2907_v49 = vadd.f32 %v10360_v27, %v10418_v45  ;;  %vm15169_vm9 = vcmask 1046534   ;;  %v3229_v59 = vadd.f32 %v3197_v8, %v2969_v23  ;;  %3517 = vrot.lane.b32.xlu2 %v10429_v52, %s8451_s0 }
 0x350   : > { %v3063_v25 = vsel %vm2528_vm12, %v15168_v60, %v3062_v0  ;;  %v5304_v57 = vsel %vm15169_vm9, %v5073_v30, %v5303_v50  ;;  %v3699_v63 = vsel %vm2528_vm12, %v3696_v7, %v3698_v1  ;;  %vm15170_vm0 = vcmask 1047559   ;;  %v1619_v2 = vpop.f32.mrf.mxu0  ;;  %v8338_v60 = vld [vmem:[#allocation3 + $0x158] sm:$0xff] }
 0x351   : > { %3126 = vrot.lane.b32.xlu1 %v3063_v25, %s8449_s29  ;;  %v5305_v54 = vsel %vm15170_vm0, %v5076_v19, %v5304_v57  ;;  %v4360_v58 = vrot.slane %v4359_v33, 2  ;;  %v2051_v45 = vadd.s32 104, %v9408_v41  ;;  %v2090_v27 = vand.u32 15, %v10545_v15  ;;  %2013 = vst [vmem:[#allocation3 + $0x300] sm:$0xff] %v1619_v2  ;;  %v10644_v28 = vpop.permute.xlu0 %3505 }
 0x352   : > { %v2874_v34 = vsel %vm9578_vm14, %v10296_v26, 0.0  ;;  %5358 = vst.msk [vmem:[#allocation4 + $0x18] sm:$0xff] %vm425_vm1, %v5305_v54  ;;  %v4367_v8 = vrot.slane %v4366_v61, 2  ;;  %v4374_v48 = vrot.slane %v4373_v16, 2  ;;  %v3460_v31 = vadd.f32 %v3342_v22, %v3229_v59  ;;  %v8337_v26 = vld [vmem:[#allocation3 + $0x170] sm:$0xff] }
 0x353   : > { %v2906_v7 = vadd.f32 %v2874_v34, %v10434_v36  ;;  %v4381_v11 = vrot.slane %v4380_v17, 2  ;;  %v3785_v40 = vsel %vm10222_vm2, %v3699_v63, 0.0  ;;  %v2572_v15 = vrot.slane %v10140_v56, 1  ;;  %v15180_v59 = vld [vmem:[#allocation23_spill] sm:$0xff] }
 0x354   : > { %v10627_v46 = vadd.f32 %v8337_v26, %v2907_v49  ;;  %v10631_v47 = vadd.f32 %v10422_v44, %v15171_v35  ;;  %v3590_v18 = vadd.f32 %v10513_v3, %v3460_v31  ;;  %v15172_v36 = vand.u32 15, %v10267_v20  ;;  %v10652_v50 = vpop.permute.xlu2 %3114  ;;  %v15179_v49 = vld [vmem:[#allocation32_spill] sm:$0xff] }
 0x355   : > { %v15173_v42 = vmov 0  ;;  %v4361_v30 = vmax.f32 %v4359_v33, %v4360_v58  ;;  %v2734_v32 = vadd.f32 %v10504_v24, %v10291_v29  ;;  %v2083_v22 = vand.u32 15, %v2051_v45 }
 0x356   : > { %vm10636_vm7 = vcmp.ge.s32.totalorder %v15172_v36, 1  ;;  %vm10646_vm2 = vcmp.ge.s32.totalorder %v2090_v27, 1  ;;  %v4368_v3 = vmax.f32 %v4366_v61, %v4367_v8  ;;  %v4375_v20 = vmax.f32 %v4373_v16, %v4374_v48  ;;  %v3113_v31 = vpop.permute.xlu1 %3112  ;;  %v1851_v36 = vpop.f32.mrf.mxu2 }
 0x357   : > { %v15174_v42 = vsel %vm10636_vm7, 4294967295, %v15173_v42  ;;  %v3817_v5 = vadd.f32 %v3785_v40, %v3590_v18  ;;  %v14991_v23 = vrot.slane %v10467_v43, 7  ;;  %v4382_v19 = vmax.f32 %v4380_v17, %v4381_v11  ;;  %v10664_v17 = vld [vmem:[#allocation3 + $0x1a8] sm:$0xff]  ;;  %v10688_v40 = vpop.f32.mrf.mxu1  ;;  %1973 = vst.msk [vmem:[#allocation3 + $0x1c0] sm:$0xff] %vm425_vm1, %v1851_v36 }
 0x358   : > { %15175 = vst [vmem:[#allocation19_spill] sm:$0xff] %v15174_v42  ;;  %v2246_v33 = vrot.slane %v10140_v56, 7  ;;  %v15178_v29 = vrot.slane %v10100_v4, 1  ;;  %v2970_v25 = vadd.f32 %v8338_v60, %v2906_v7  ;;  %v2876_v61 = vsel %vm9612_vm10, %v10456_v14, 0.0  ;;  %v1622_v18 = vpop.f32.mrf.mxu0 }
 0x359   : > { %v3853_v16 = vadd.f32 %v10348_v6, %v3817_v5  ;;  %v4362_v54 = vrot.slane %v4361_v30, 1  ;;  %v10672_v58 = vadd.f32 %v2876_v61, %v2734_v32  ;;  %vm10674_vm11 = vcmp.le.s32.totalorder %v2083_v22, 14  ;;  %v5368_v27 = vld [vmem:[#allocation4 + $0x18] sm:$0xff]  ;;  %1993 = vst [vmem:[#allocation3 + $0x260] sm:$0xff] %v10688_v40 }
 0x35a   : > { %v2573_v24 = vsel %vm2528_vm12, %v15178_v29, %v2572_v15  ;;  %v3429_v14 = vsel %vm9578_vm14, %v10591_v38, 0.0  ;;  %v4369_v34 = vrot.slane %v4368_v3, 1  ;;  %v4376_v8 = vrot.slane %v4375_v20, 1  ;;  %8199 = vmatmul.msk.f32.gmra.mxu3 %vm425_vm1, %v5368_v27  ;;  %8247 = vmatmul.msk.f32.gmra.mxu0 %vm425_vm1, %v5368_v27  ;;  %2016 = vst [vmem:[#allocation3 + $0x318] sm:$0xff] %v1622_v18 }
 0x35b   : > { %2636 = vrot.lane.b32.xlu1 %v2573_v24, %s8450_s30  ;;  %v3885_v48 = vmax.f32 %v3853_v16, 0.0  ;;  %v15183_v7 = vrot.slane %v10429_v52, 7  ;;  %v4383_v2 = vrot.slane %v4382_v19, 1  ;;  %v14988_v12 = vrot.slane %v10664_v17, 1 }
 0x35c   : > { %v3230_v38 = vadd.f32 %v3113_v31, %v2970_v25  ;;  %v15184_v26 = vrot.slane %v10100_v4, 7  ;;  %v4363_v24 = vmax.f32 %v4361_v30, %v4362_v54  ;;  %v15187_v25 = vld [vmem:[#allocation28_spill] sm:$0xff]  ;;  %v10710_v31 = vpop.permute.xlu0 %2796  ;;  %v2703_v30 = vsel %vm10674_vm11, %v10570_v9, 0.0  ;;  %v10731_v36 = vpop.permute.xlu2 %2624 }
 0x35d   : > { %v3294_v11 = vsel %vm2200_vm13, %v15183_v7, %v14991_v23  ;;  %v3967_v32 = vrot.slane %v3885_v48, 2  ;;  %v3968_v22 = vrot.slane %v3885_v48, 4  ;;  %v3969_v5 = vrot.slane %v3885_v48, 6 }
 0x35e   : > { %3357 = vrot.lane.b32.xlu0 %v3294_v11, %s8450_s30  ;;  %v10697_v35 = vsel %vm2200_vm13, %v15184_v26, %v2246_v33  ;;  %v4385_v29 = vsel %vm4132_vm8, %v3885_v48, -inf  ;;  %v15188_v61 = vsel %vm9717_vm15, %v15187_v25, 0.0  ;;  %v3461_v27 = vadd.f32 %v3429_v14, %v3230_v38  ;;  %v15190_v14 = vld [vmem:[#allocation31_spill] sm:$0xff] }
 0x35f   : > { %15185 = vst [vmem:[#allocation26_spill] sm:$0xff] %v10697_v35  ;;  %v10706_v4 = vadd.f32 %v10552_v13, %v15188_v61  ;;  %v4386_v16 = vrot.slane %v4385_v29, 4  ;;  %2808 = vrot.lane.b32.xlu2 %v10697_v35, %s8451_s0  ;;  %v4392_v54 = vsel %vm4132_vm8, %v3967_v32, -inf  ;;  %v4399_v48 = vsel %vm4132_vm8, %v3968_v22, -inf  ;;  %v15192_v61 = vld [vmem:[#allocation30_spill] sm:$0xff] }
 0x360   : > { %v4406_v13 = vsel %vm4132_vm8, %v3969_v5, -inf  ;;  %v15191_v11 = vsel %vm10218_vm3, %v15190_v14, 0.0  ;;  %v4393_v26 = vrot.slane %v4392_v54, 4  ;;  %v4400_v18 = vrot.slane %v4399_v48, 4 }
 0x361   : > { %v10724_v38 = vadd.f32 %v10560_v51, %v15191_v11  ;;  %v3701_v9 = vsel %vm2528_vm12, %v3698_v1, %v14988_v12  ;;  %v4370_v32 = vmax.f32 %v4368_v3, %v4369_v34  ;;  %v4377_v22 = vmax.f32 %v4375_v20, %v4376_v8 }
 0x362   : > { %v4384_v5 = vmax.f32 %v4382_v19, %v4383_v2  ;;  %v3591_v25 = vadd.f32 %v10644_v28, %v3461_v27  ;;  %v10737_v51 = vsel %vm425_vm1, %v4363_v24, -inf  ;;  %v10740_v14 = vadd.f32 %v2703_v30, %v10631_v47  ;;  %v2623_v19 = vpop.permute.xlu1 %2622  ;;  %v1625_v2 = vpop.f32.mrf.mxu0 }
 0x363   : > { %2410 = vrot.lane.b32.xlu1 %v15192_v61, %s8449_s29  ;;  %v4387_v11 = vmax.f32 %v4385_v29, %v4386_v16  ;;  %v4407_v55 = vrot.slane %v4406_v13, 4  ;;  %v3199_v63 = vsel %vm10351_vm4, %v10652_v50, 0.0  ;;  %v2053_v20 = vadd.s32 120, %v9408_v41  ;;  %v15194_v29 = vld [vmem:[#allocation12_spill] sm:$0xff]  ;;  %2019 = vst [vmem:[#allocation3 + $0x330] sm:$0xff] %v1625_v2 }
 0x364   : > { %v3818_v3 = vadd.f32 %v3701_v9, %v3591_v25  ;;  %v2248_v28 = vrot.slane %v15192_v61, 7  ;;  %v4394_v34 = vmax.f32 %v4392_v54, %v4393_v26  ;;  %v4401_v8 = vmax.f32 %v4399_v48, %v4400_v18  ;;  %v10767_v9 = vpop.permute.xlu0 %3507  ;;  %v8339_v25 = vld [vmem:[#allocation3 + $0x188] sm:$0xff] }
 0x365   : > { %v14989_v47 = vrot.slane %v10467_v43, 1  ;;  %v14987_v24 = vrot.slane %v15194_v29, 7  ;;  %v10752_v16 = vsel %vm425_vm1, %v4370_v32, -inf  ;;  %v10755_v50 = vsel %vm425_vm1, %v4377_v22, -inf }
 0x366   : > { %3521 = vrot.lane.b32.xlu0 %v10588_v37, %s8451_s0  ;;  %v10758_v27 = vsel %vm425_vm1, %v4384_v5, -inf  ;;  %v3854_v30 = vadd.f32 %v10348_v6, %v3818_v3  ;;  %v4388_v54 = vrot.slane %v4387_v11, 2  ;;  %v4408_v48 = vmax.f32 %v4406_v13, %v4407_v55  ;;  %v10773_v55 = vpop.permute.xlu2 %2798 }
 0x367   : > { %v10762_v26 = vadd.f32 %v3199_v63, %v10627_v46  ;;  %v14990_v18 = vrot.slane %v15192_v61, 1  ;;  %3519 = vrot.lane.b32.xlu2 %v10467_v43, %s8451_s0  ;;  %v2085_v22 = vand.u32 15, %v2053_v20  ;;  %v10771_v3 = vadd.f32 %v8339_v25, %v10672_v58  ;;  %15195 = vst [vmem:[#allocation32_spill] sm:$0xff] %v10773_v55  ;;  %v10847_v55 = vpop.f32.mrf.mxu1 }
 0x368   : > { %v3886_v32 = vmax.f32 %v3854_v30, 0.0  ;;  %v4395_v2 = vrot.slane %v4394_v34, 2  ;;  %v4402_v13 = vrot.slane %v4401_v8, 2  ;;  %v3065_v46 = vsel %vm2528_vm12, %v3062_v0, %v14989_v47  ;;  %v10806_v47 = vld [vmem:[#allocation3 + $0x1c0] sm:$0xff]  ;;  %1996 = vst [vmem:[#allocation3 + $0x278] sm:$0xff] %v10847_v55 }
 0x369   : > { %v10783_v63 = vsel %vm2200_vm13, %v2248_v28, %v14987_v24  ;;  %v4389_v25 = vmax.f32 %v4387_v11, %v4388_v54  ;;  %v4409_v5 = vrot.slane %v4408_v48, 2  ;;  %v2575_v52 = vsel %vm2528_vm12, %v2572_v15, %v14990_v18 }
 0x36a   : > { %15196 = vst [vmem:[#allocation23_spill] sm:$0xff] %v10783_v63  ;;  %v3970_v20 = vrot.slane %v3886_v32, 2  ;;  %v3971_v30 = vrot.slane %v3886_v32, 4  ;;  %v3972_v57 = vrot.slane %v3886_v32, 6  ;;  %v4413_v58 = vsel %vm4132_vm8, %v3886_v32, -inf  ;;  %v10804_v54 = vpop.permute.xlu1 %2794 }
 0x36b   : > { %3128 = vrot.lane.b32.xlu1 %v3065_v46, %s8449_s29  ;;  %v10795_v0 = vsel %vm2200_vm13, %v2246_v33, %v2248_v28  ;;  %v4414_v24 = vrot.slane %v4413_v58, 4  ;;  %vm10800_vm14 = vcmp.le.s32.totalorder %v2085_v22, 14  ;;  %v4396_v15 = vmax.f32 %v4394_v34, %v4395_v2  ;;  %v1628_v33 = vpop.f32.mrf.mxu0 }
 0x36c   : > { %15197 = vst [vmem:[#allocation29_spill] sm:$0xff] %v10795_v0  ;;  %v4420_v12 = vsel %vm4132_vm8, %v3970_v20, -inf  ;;  %v4427_v32 = vsel %vm4132_vm8, %v3971_v30, -inf  ;;  %v4434_v46 = vsel %vm4132_vm8, %v3972_v57, -inf  ;;  %v4403_v56 = vmax.f32 %v4401_v8, %v4402_v13  ;;  %v10817_v34 = vpop.permute.xlu0 %2398 }
 0x36d   : > { %v4421_v18 = vrot.slane %v4420_v12, 4  ;;  %v4415_v20 = vmax.f32 %v4413_v58, %v4414_v24  ;;  %v4428_v30 = vrot.slane %v4427_v32, 4  ;;  %v4435_v57 = vrot.slane %v4434_v46, 4  ;;  %2022 = vst [vmem:[#allocation3 + $0x348] sm:$0xff] %v1628_v33 }
 0x36e   : > { %2812 = vrot.lane.b32.xlu0 %v10783_v63, %s8451_s0  ;;  %v4410_v23 = vmax.f32 %v4408_v48, %v4409_v5  ;;  %v10813_v10 = vadd.f32 %v2623_v19, %v10706_v4  ;;  %15201 = vst [vmem:[#allocation10_spill] sm:$0xff] %v10817_v34  ;;  %v4390_v2 = vrot.slane %v4389_v25, 1  ;;  %v4397_v28 = vrot.slane %v4396_v15, 1  ;;  %v10820_v22 = vpop.permute.xlu2 %3509 }
 0x36f   : > { %v4422_v21 = vmax.f32 %v4420_v12, %v4421_v18  ;;  %2412 = vrot.lane.b32.xlu2 %v15194_v29, %s8449_s29  ;;  %v4416_v13 = vrot.slane %v4415_v20, 2  ;;  %v4429_v24 = vmax.f32 %v4427_v32, %v4428_v30  ;;  %v4436_v58 = vmax.f32 %v4434_v46, %v4435_v57 }
 0x370   : > { %15200 = vst [vmem:[#allocation28_spill] sm:$0xff] %v10813_v10  ;;  %v4404_v33 = vrot.slane %v4403_v56, 1  ;;  %v15202_v12 = vrot.slane %v10588_v37, 7  ;;  %v15203_v4 = vrot.slane %v10467_v43, 7  ;;  %v15204_v8 = vrot.slane %v10588_v37, 1 }
 0x371   : > { %v4423_v63 = vrot.slane %v4422_v21, 2  ;;  %v4417_v48 = vmax.f32 %v4415_v20, %v4416_v13  ;;  %v4430_v18 = vrot.slane %v4429_v24, 2  ;;  %v4437_v5 = vrot.slane %v4436_v58, 2 }
 0x372   : > { %v3296_v19 = vsel %vm2200_vm13, %v15203_v4, %v15202_v12  ;;  %v15205_v32 = vrot.slane %v10467_v43, 1  ;;  %v4411_v30 = vrot.slane %v4410_v23, 1  ;;  %v15206_v35 = vrot.slane %v10806_v47, 1 }
 0x373   : > { %2638 = vrot.lane.b32.xlu1 %v2575_v52, %s8450_s30  ;;  %v4424_v57 = vmax.f32 %v4422_v21, %v4423_v63  ;;  %v15207_v34 = vrot.slane %v10664_v17, 1  ;;  %v15208_v20 = vrot.slane %v15194_v29, 1  ;;  %v15209_v13 = vrot.slane %v15192_v61, 1  ;;  %v1631_v61 = vpop.f32.mrf.mxu0 }
 0x374   : > { %v10833_v46 = vsel %vm2528_vm12, %v15205_v32, %v15204_v8  ;;  %v4391_v4 = vmax.f32 %v4389_v25, %v4390_v2  ;;  %v4418_v43 = vrot.slane %v4417_v48, 1  ;;  %v4431_v39 = vmax.f32 %v4429_v24, %v4430_v18  ;;  %v3346_v32 = vpop.permute.xlu1 %3345 }
 0x375   : > { %v3703_v12 = vsel %vm2528_vm12, %v15207_v34, %v15206_v35  ;;  %v10845_v52 = vsel %vm2528_vm12, %v15209_v13, %v15208_v20  ;;  %v4438_v8 = vmax.f32 %v4436_v58, %v4437_v5  ;;  %v4398_v21 = vmax.f32 %v4396_v15, %v4397_v28  ;;  %v1854_v35 = vpop.f32.mrf.mxu2  ;;  %v3117_v58 = vpop.permute.xlu0 %3116 }
 0x376   : > { %v4405_v63 = vmax.f32 %v4403_v56, %v4404_v33  ;;  %v4425_v10 = vrot.slane %v4424_v57, 1  ;;  %v3462_v17 = vadd.f32 %v3346_v32, %v10762_v26  ;;  %3523 = vrot.lane.b32.xlu0 %v10688_v40, %s8451_s0  ;;  %v4419_v34 = vmax.f32 %v4417_v48, %v4418_v43  ;;  %1976 = vst.msk [vmem:[#allocation3 + $0x1d8] sm:$0xff] %vm425_vm1, %v1854_v35  ;;  %v10892_v35 = vpop.f32.mrf.mxu1 }
 0x377   : > { %v4432_v25 = vrot.slane %v4431_v39, 1  ;;  %v4439_v2 = vrot.slane %v4438_v8, 1  ;;  %v3787_v24 = vsel %vm10351_vm4, %v3703_v12, 0.0  ;;  %v10856_v15 = vmax.f32 %v4410_v23, %v4411_v30  ;;  %3359 = vrot.lane.b32.xlu2 %v3296_v19, %s8450_s30  ;;  %1999 = vst [vmem:[#allocation3 + $0x290] sm:$0xff] %v10892_v35 }
 0x378   : > { %v4426_v56 = vmax.f32 %v4424_v57, %v4425_v10  ;;  %v2705_v26 = vsel %vm10800_vm14, %v10731_v36, 0.0  ;;  %v3592_v28 = vadd.f32 %v10767_v9, %v3462_v17  ;;  %v5078_v18 = vsel %vm425_vm1, %v4419_v34, -inf  ;;  %v2801_v57 = vpop.permute.xlu2 %2800 }
 0x379   : > { %v4433_v33 = vmax.f32 %v4431_v39, %v4432_v25  ;;  %v4440_v48 = vmax.f32 %v4438_v8, %v4439_v2  ;;  %v15006_v1 = vrot.slane %v10688_v40, 1  ;;  %v10866_v5 = vsel %vm425_vm1, %v4391_v4, -inf }
 0x37a   : > { %v5079_v10 = vmax.f32 %v10737_v51, %v5078_v18  ;;  %v5081_v23 = vsel %vm425_vm1, %v4426_v56, -inf  ;;  %v3819_v30 = vadd.f32 %v3787_v24, %v3592_v28  ;;  %v3297_v12 = vrot.slane %v10688_v40, 7 }
 0x37b   : > { %v5082_v9 = vmax.f32 %v10752_v16, %v5081_v23  ;;  %v5084_v19 = vsel %vm425_vm1, %v4433_v33, -inf  ;;  %v5087_v39 = vsel %vm425_vm1, %v4440_v48, -inf  ;;  %2810 = vrot.lane.b32.xlu1 %v10795_v0, %s8451_s0  ;;  %v10877_v20 = vsel %vm425_vm1, %v4398_v21, -inf  ;;  %v1634_v34 = vpop.f32.mrf.mxu0 }
 0x37c   : > { %v5085_v51 = vmax.f32 %v10755_v50, %v5084_v19  ;;  %v5088_v13 = vmax.f32 %v10758_v27, %v5087_v39  ;;  %v3855_v4 = vadd.f32 %v10348_v6, %v3819_v30  ;;  %v10883_v16 = vsel %vm425_vm1, %v4405_v63, -inf  ;;  %v3348_v32 = vpop.permute.xlu1 %3347 }
 0x37d   : > { %v5306_v43 = vsel %vm1295_vm5, %v5082_v9, %v5079_v10  ;;  %v3232_v8 = vadd.f32 %v3117_v58, %v10771_v3  ;;  %v15210_v17 = vrot.slane %v10588_v37, 1  ;;  %v2909_v50 = vadd.f32 %v10804_v54, %v10740_v14  ;;  %v10897_v61 = vld [vmem:[#allocation3 + $0x1d8] sm:$0xff]  ;;  %v1857_v25 = vpop.f32.mrf.mxu2  ;;  %v2627_v48 = vpop.permute.xlu0 %2626 }
 0x37e   : > { %v3887_v27 = vmax.f32 %v3855_v4, 0.0  ;;  %v5307_v63 = vsel %vm1297_vm6, %v5085_v51, %v5306_v43  ;;  %v3431_v3 = vsel %vm9612_vm10, %v3348_v32, 0.0  ;;  %vm15211_vm4 = vcmask 1043459   ;;  %1979 = vst.msk [vmem:[#allocation3 + $0x1f0] sm:$0xff] %vm425_vm1, %v1857_v25  ;;  %v10940_v34 = vpop.f32.mrf.mxu1  ;;  %v10942_v25 = vld [vmem:[#allocation3 + $0x288] sm:$0xff] }
 0x37f   : > { %v3069_v21 = vsel %vm2528_vm12, %v15210_v17, %v15006_v1  ;;  %v10904_v2 = vsel %vm15211_vm4, %v5088_v13, %v5307_v63  ;;  %v3704_v24 = vrot.slane %v10897_v61, 1  ;;  %v3463_v14 = vadd.f32 %v3431_v3, %v3232_v8  ;;  %3130 = vrot.lane.b32.xlu2 %v10833_v46, %s8449_s29  ;;  %v5450_v17 = vpop.f32.mrf.mxu3  ;;  %2002 = vst [vmem:[#allocation3 + $0x2a8] sm:$0xff] %v10940_v34 }
 0x380   : > { %3132 = vrot.lane.b32.xlu0 %v3069_v21, %s8449_s29  ;;  %v15212_v54 = vrot.slane %v10588_v37, 7  ;;  %v3973_v62 = vrot.slane %v3887_v27, 2  ;;  %v3974_v28 = vrot.slane %v3887_v27, 4  ;;  %v3975_v58 = vrot.slane %v3887_v27, 6  ;;  %v10928_v51 = vpop.permute.xlu2 %3511  ;;  %5698 = vst [vmem:[#allocation5] sm:$0xff] %v5450_v17 }
 0x381   : > { %v4441_v33 = vsel %vm4132_vm8, %v3887_v27, -inf  ;;  %v15213_v10 = vrot.slane %v10806_v47, 1  ;;  %v3593_v23 = vadd.f32 %v10820_v22, %v3463_v14  ;;  %v2738_v30 = vadd.f32 %v2627_v48, %v10724_v38  ;;  %v8340_v14 = vld [vmem:[#allocation3 + $0x1a0] sm:$0xff] }
 0x382   : > { %v3298_v56 = vsel %vm2200_vm13, %v15212_v54, %v3297_v12  ;;  %v4442_v18 = vrot.slane %v4441_v33, 4  ;;  %v4448_v9 = vsel %vm4132_vm8, %v3973_v62, -inf  ;;  %v4455_v19 = vsel %vm4132_vm8, %v3974_v28, -inf }
 0x383   : > { %v3705_v37 = vsel %vm2528_vm12, %v15213_v10, %v3704_v24  ;;  %v4462_v46 = vsel %vm4132_vm8, %v3975_v58, -inf  ;;  %v2880_v39 = vsel %vm10218_vm3, %v2801_v57, 0.0  ;;  %v4449_v4 = vrot.slane %v4448_v9, 4  ;;  %3361 = vrot.lane.b32.xlu1 %v3298_v56, %s8450_s30  ;;  %v15214_v56 = vld [vmem:[#allocation13_spill] sm:$0xff]  ;;  %v5662_v62 = vpop.f32.mrf.mxu0 }
 0x384   : > { %v4443_v13 = vmax.f32 %v4441_v33, %v4442_v18  ;;  %v4456_v47 = vrot.slane %v4455_v19, 4  ;;  %v4463_v43 = vrot.slane %v4462_v46, 4  ;;  %v10933_v38 = vsel %vm425_vm1, %v10856_v15, -inf  ;;  %v10938_v3 = vpop.permute.xlu1 %3118 }
 0x385   : > { %v3820_v22 = vadd.f32 %v3705_v37, %v3593_v23  ;;  %v10935_v8 = vadd.f32 %v2880_v39, %v2738_v30  ;;  %v15004_v32 = vrot.slane %v10847_v55, 7  ;;  %v4450_v57 = vmax.f32 %v4448_v9, %v4449_v4 }
 0x386   : > { %v4444_v21 = vrot.slane %v4443_v13, 2  ;;  %v4457_v27 = vmax.f32 %v4455_v19, %v4456_v47  ;;  %v4464_v63 = vmax.f32 %v4462_v46, %v4463_v43  ;;  %v10945_v54 = vadd.f32 %v8340_v14, %v2909_v50 }
 0x387   : > { %v3856_v15 = vadd.f32 %v10348_v6, %v3820_v22  ;;  %vm5702_vm10 = vcmask 523264   ;;  %v10951_v28 = vadd.s32 176, %v9408_v41  ;;  %v4451_v33 = vrot.slane %v4450_v57, 2  ;;  %2640 = vrot.lane.b32.xlu2 %v10845_v52, %s8450_s30  ;;  %v2401_v6 = vpop.permute.xlu0 %2400 }
 0x388   : > { %2416 = vrot.lane.b32.xlu0 %v15214_v56, %s8449_s29  ;;  %v4445_v58 = vmax.f32 %v4443_v13, %v4444_v21  ;;  %v4458_v48 = vrot.slane %v4457_v27, 2  ;;  %v4465_v18 = vrot.slane %v4464_v63, 2  ;;  %v3300_v50 = vsel %vm2200_vm13, %v3297_v12, %v15004_v32  ;;  %v2405_v47 = vpop.permute.xlu2 %2404 }
 0x389   : > { %v3888_v10 = vmax.f32 %v3856_v15, 0.0  ;;  %v2252_v37 = vrot.slane %v10942_v25, 7  ;;  %v15003_v23 = vrot.slane %v10942_v25, 1  ;;  %v4452_v9 = vmax.f32 %v4450_v57, %v4451_v33 }
 0x38a   : > { %v4446_v30 = vrot.slane %v4445_v58, 1  ;;  %v4459_v19 = vmax.f32 %v4457_v27, %v4458_v48  ;;  %v4466_v46 = vmax.f32 %v4464_v63, %v4465_v18  ;;  %v10966_v14 = vadd.s32 136, %v9408_v41  ;;  %v10976_v48 = vld [vmem:[#allocation3 + $0x1f0] sm:$0xff] }
 0x38b   : > { %v3976_v39 = vrot.slane %v3888_v10, 2  ;;  %v3977_v13 = vrot.slane %v3888_v10, 4  ;;  %v3978_v4 = vrot.slane %v3888_v10, 6  ;;  %v4469_v52 = vsel %vm4132_vm8, %v3888_v10, -inf  ;;  %3363 = vrot.lane.b32.xlu1 %v3300_v50, %s8450_s30 }
 0x38c   : > { %v4447_v43 = vmax.f32 %v4445_v58, %v4446_v30  ;;  %v4453_v22 = vrot.slane %v4452_v9, 1  ;;  %v4460_v17 = vrot.slane %v4459_v19, 1  ;;  %v4467_v21 = vrot.slane %v4466_v46, 1  ;;  %v10974_v33 = vpop.permute.xlu1 %2628 }
 0x38d   : > { %v4470_v12 = vrot.slane %v4469_v52, 4  ;;  %v4476_v15 = vsel %vm4132_vm8, %v3976_v39, -inf  ;;  %v15215_v57 = vrot.slane %v15194_v29, 1  ;;  %v4483_v10 = vsel %vm4132_vm8, %v3977_v13, -inf }
 0x38e   : > { %v4454_v63 = vmax.f32 %v4452_v9, %v4453_v22  ;;  %v4461_v56 = vmax.f32 %v4459_v19, %v4460_v17  ;;  %v4468_v62 = vmax.f32 %v4466_v46, %v4467_v21  ;;  %v5090_v58 = vsel %vm425_vm1, %v4447_v43, -inf  ;;  %v1860_v43 = vpop.f32.mrf.mxu2  ;;  %v5665_v21 = vpop.f32.mrf.mxu0 }
 0x38f   : > { %v2579_v27 = vsel %vm2528_vm12, %v15215_v57, %v15003_v23  ;;  %v5091_v18 = vmax.f32 %v10866_v5, %v5090_v58  ;;  %v4490_v50 = vsel %vm4132_vm8, %v3978_v4, -inf  ;;  %v15216_v30 = vrot.slane %v15194_v29, 7  ;;  %v3350_v17 = vpop.permute.xlu0 %3349  ;;  %1982 = vst.msk [vmem:[#allocation3 + $0x208] sm:$0xff] %vm425_vm1, %v1860_v43  ;;  %v15225_v43 = vld [vmem:[#allocation28_spill] sm:$0xff] }
 0x390   : > { %2642 = vrot.lane.b32.xlu0 %v2579_v27, %s8450_s30  ;;  %v5093_v19 = vsel %vm425_vm1, %v4454_v63, -inf  ;;  %v5096_v46 = vsel %vm425_vm1, %v4461_v56, -inf  ;;  %v5099_v39 = vsel %vm425_vm1, %v4468_v62, -inf  ;;  %v4477_v5 = vrot.slane %v4476_v15, 4  ;;  %v11016_v58 = vpop.permute.xlu2 %3351 }
 0x391   : > { %v10986_v9 = vsel %vm2200_vm13, %v15216_v30, %v2252_v37  ;;  %v5094_v13 = vmax.f32 %v10877_v20, %v5093_v19  ;;  %v5097_v4 = vmax.f32 %v10883_v16, %v5096_v46  ;;  %vm15218_vm9 = vcmask 1044484   ;;  %v11027_v19 = vld [vmem:[#allocation3 + $0x2a0] sm:$0xff] }
 0x392   : > { %15217 = vst [vmem:[#allocation31_spill] sm:$0xff] %v10986_v9  ;;  %v5309_v29 = vsel %vm15218_vm9, %v5091_v18, %v10904_v2  ;;  %2814 = vrot.lane.b32.xlu2 %v10986_v9, %s8451_s0  ;;  %v3706_v22 = vrot.slane %v10976_v48, 1  ;;  %v4471_v57 = vmax.f32 %v4469_v52, %v4470_v12  ;;  %v4484_v27 = vrot.slane %v4483_v10, 4 }
 0x393   : > { %v4491_v63 = vrot.slane %v4490_v50, 4  ;;  %v3201_v56 = vsel %vm10674_vm11, %v10938_v3, 0.0  ;;  %v5100_v20 = vmax.f32 %v10933_v38, %v5099_v39  ;;  %vm15219_vm0 = vcmask 1045509   ;;  %v5453_v3 = vpop.f32.mrf.mxu3  ;;  %v15222_v38 = vld [vmem:[#allocation15_spill] sm:$0xff] }
 0x394   : > { %v5310_v16 = vsel %vm15219_vm0, %v5094_v13, %v5309_v29  ;;  %v15220_v2 = vsel %vm10636_vm7, %v15179_v49, 0.0  ;;  %v15221_v52 = vsel %vm10646_vm2, %v15180_v59, 0.0  ;;  %v2475_v18 = vadd.f32 %v10619_v53, %v15222_v38  ;;  %5704 = vst [vmem:[#allocation5 + $0x28] sm:$0xff] %v5453_v3  ;;  %v15231_v38 = vld [vmem:[#allocation11_spill] sm:$0xff] }
 0x395   : > { %v11008_v62 = vadd.f32 %v2401_v6, %v15220_v2  ;;  %v11014_v12 = vadd.f32 %v2405_v47, %v15221_v52  ;;  %v2878_v49 = vsel %vm9717_vm15, %v10710_v31, 0.0  ;;  %vm15223_vm4 = vcmask 1046534  }
 0x396   : > { %v5311_v6 = vsel %vm15223_vm4, %v5097_v4, %v5310_v16  ;;  %v4478_v30 = vmax.f32 %v4476_v15, %v4477_v5  ;;  %vm15224_vm9 = vcmask 1047559   ;;  %v3233_v47 = vadd.f32 %v3201_v56, %v10945_v54  ;;  %v11041_v5 = vpop.permute.xlu1 %2402  ;;  %v15226_v56 = vld [vmem:[#allocation32_spill] sm:$0xff]  ;;  %v15230_v16 = vld [vmem:[#allocation25_spill] sm:$0xff]  ;;  %v5668_v3 = vpop.f32.mrf.mxu0 }
 0x397   : > { %v5312_v59 = vsel %vm15224_vm9, %v5100_v20, %v5311_v6  ;;  %v15000_v46 = vrot.slane %v11027_v19, 7  ;;  %v3707_v53 = vsel %vm2528_vm12, %v3704_v24, %v3706_v22  ;;  %v2737_v31 = vadd.f32 %v2705_v26, %v2475_v18  ;;  %v15232_v18 = vld [vmem:[#allocation10_spill] sm:$0xff] }
 0x398   : > { %5359 = vst.msk [vmem:[#allocation4 + $0x20] sm:$0xff] %vm425_vm1, %v5312_v59  ;;  %v4472_v15 = vrot.slane %v4471_v57, 2  ;;  %v4485_v39 = vmax.f32 %v4483_v10, %v4484_v27  ;;  %v2087_v54 = vand.u32 15, %v10966_v14  ;;  %v2910_v13 = vadd.f32 %v2878_v49, %v15225_v43  ;;  %v11080_v52 = vpop.permute.xlu2 %3122  ;;  %v8343_v59 = vld [vmem:[#allocation3 + $0x1b8] sm:$0xff] }
 0x399   : > { %v4492_v4 = vmax.f32 %v4490_v50, %v4491_v63  ;;  %v3464_v29 = vadd.f32 %v3350_v17, %v3233_v47  ;;  %v2092_v61 = vand.u32 15, %v10951_v28  ;;  %v4479_v24 = vrot.slane %v4478_v30, 2  ;;  %v11060_v28 = vpop.permute.xlu0 %3513 }
 0x39a   : > { %v3789_v21 = vsel %vm10674_vm11, %v3707_v53, 0.0  ;;  %v15007_v36 = vrot.slane %v10847_v55, 1  ;;  %v3072_v26 = vrot.slane %v10892_v35, 1  ;;  %v11050_v10 = vadd.f32 %v15226_v56, %v2737_v31 }
 0x39b   : > { %v3594_v14 = vadd.f32 %v10928_v51, %v3464_v29  ;;  %v11058_v50 = vsel %vm2200_vm13, %v2252_v37, %v15000_v46  ;;  %v11062_v45 = vmax.f32 %v4471_v57, %v4472_v15  ;;  %v4486_v17 = vrot.slane %v4485_v39, 2  ;;  %v11076_v57 = vld [vmem:[#allocation3 + $0x2b8] sm:$0xff]  ;;  %v11105_v29 = vld [vmem:[#allocation3 + $0x208] sm:$0xff] }
 0x39c   : > { %15227 = vst [vmem:[#allocation30_spill] sm:$0xff] %v11058_v50  ;;  %vm11064_vm11 = vcmp.le.s32.totalorder %v2087_v54, 14  ;;  %v3073_v51 = vsel %vm2528_vm12, %v15007_v36, %v3072_v26  ;;  %2816 = vrot.lane.b32.xlu2 %v11058_v50, %s8451_s0  ;;  %v4493_v37 = vrot.slane %v4492_v4, 2  ;;  %v15002_v20 = vrot.slane %v11076_v57, 7  ;;  %v11095_v54 = vld [vmem:[%s14910_s4] ss:$0 sm:$0xff] }
 0x39d   : > { %v3821_v63 = vadd.f32 %v3789_v21, %v3594_v14  ;;  %3136 = vrot.lane.b32.xlu1 %v3073_v51, %s8449_s29  ;;  %v14999_v2 = vrot.slane %v15230_v16, 7  ;;  %v2477_v49 = vadd.f32 %v15232_v18, %v15231_v38  ;;  %v4480_v6 = vmax.f32 %v4478_v30, %v4479_v24 }
 0x39e   : > { %v2974_v47 = vadd.f32 %v8343_v59, %v2910_v13  ;;  %vm11084_vm0 = vcmp.ge.s32.totalorder %v2092_v61, 1  ;;  %v15011_v31 = vrot.slane %v11027_v19, 1  ;;  %v2707_v15 = vsel %vm11064_vm11, %v10974_v33, 0.0  ;;  %v3121_v24 = vpop.permute.xlu1 %3120 }
 0x39f   : > { %v3857_v43 = vadd.f32 %v11095_v54, %v3821_v63  ;;  %v11103_v30 = vsel %vm2200_vm13, %v15002_v20, %v14999_v2  ;;  %v5369_v13 = vld [vmem:[#allocation4 + $0x20] sm:$0xff]  ;;  %v4487_v61 = vmax.f32 %v4485_v39, %v4486_v17  ;;  %v15008_v33 = vrot.slane %v11076_v57, 1  ;;  %v11115_v39 = vpop.f32.mrf.mxu1  ;;  %v1863_v17 = vpop.f32.mrf.mxu2 }
 0x3a0   : > { %15235 = vst [vmem:[#allocation33_spill] sm:$0xff] %v11103_v30  ;;  %2820 = vrot.lane.b32.xlu0 %v11103_v30, %s8451_s0  ;;  %8200 = vmatmul.msk.f32.gmra.mxu3 %vm425_vm1, %v5369_v13  ;;  %v15005_v21 = vrot.slane %v10892_v35, 7  ;;  %v15001_v56 = vrot.slane %v10940_v34, 7  ;;  %v4474_v14 = vrot.slane %v11062_v45, 1  ;;  %v4494_v51 = vmax.f32 %v4492_v4, %v4493_v37 }
 0x3a1   : > { %v3889_v63 = vmax.f32 %v3857_v43, 0.0  ;;  %8248 = vmatmul.msk.f32.gmra.mxu0 %vm425_vm1, %v5369_v13  ;;  %v3234_v3 = vadd.f32 %v3121_v24, %v2974_v47  ;;  %v4481_v38 = vrot.slane %v4480_v6, 1  ;;  %v3433_v18 = vsel %vm9717_vm15, %v11016_v58, 0.0  ;;  %2005 = vst [vmem:[#allocation3 + $0x2c0] sm:$0xff] %v11115_v39  ;;  %v5456_v24 = vpop.f32.mrf.mxu3  ;;  %v2805_v2 = vpop.permute.xlu0 %2804 }
 0x3a2   : > { %v15009_v59 = vrot.slane %v11105_v29, 1  ;;  %v3304_v4 = vsel %vm2200_vm13, %v15005_v21, %v15001_v56  ;;  %1985 = vst.msk [vmem:[#allocation3 + $0x220] sm:$0xff] %vm425_vm1, %v1863_v17  ;;  %v4488_v60 = vrot.slane %v4487_v61, 1  ;;  %v2583_v46 = vsel %vm2528_vm12, %v15011_v31, %v15008_v33  ;;  %v11139_v17 = vpop.permute.xlu2 %2632 }
 0x3a3   : > { %v3979_v37 = vrot.slane %v3889_v63, 2  ;;  %v3980_v47 = vrot.slane %v3889_v63, 4  ;;  %v3981_v43 = vrot.slane %v3889_v63, 6  ;;  %v4497_v13 = vsel %vm4132_vm8, %v3889_v63, -inf  ;;  %5709 = vst [vmem:[#allocation5 + $0x50] sm:$0xff] %v5456_v24 }
 0x3a4   : > { %v4498_v58 = vrot.slane %v4497_v13, 4  ;;  %v3465_v56 = vadd.f32 %v3433_v18, %v3234_v3  ;;  %3367 = vrot.lane.b32.xlu2 %v3304_v4, %s8450_s30  ;;  %v4495_v20 = vrot.slane %v4494_v51, 1  ;;  %v4475_v21 = vmax.f32 %v11062_v45, %v4474_v14  ;;  %v8345_v18 = vld [vmem:[#allocation3 + $0x1d0] sm:$0xff] }
 0x3a5   : > { %v4504_v23 = vsel %vm4132_vm8, %v3979_v37, -inf  ;;  %v4511_v63 = vsel %vm4132_vm8, %v3980_v47, -inf  ;;  %v4518_v32 = vsel %vm4132_vm8, %v3981_v43, -inf  ;;  %2646 = vrot.lane.b32.xlu1 %v2583_v46, %s8450_s30  ;;  %v3709_v3 = vsel %vm2528_vm12, %v3706_v22, %v15009_v59  ;;  %v15236_v46 = vld [vmem:[#allocation26_spill] sm:$0xff] }
 0x3a6   : > { %v4505_v1 = vrot.slane %v4504_v23, 4  ;;  %v4512_v36 = vrot.slane %v4511_v63, 4  ;;  %v2975_v4 = vadd.f32 %v8345_v18, %v11050_v10  ;;  %v3595_v37 = vadd.f32 %v11060_v28, %v3465_v56  ;;  %v2631_v48 = vpop.permute.xlu1 %2630 }
 0x3a7   : > { %v15010_v47 = vrot.slane %v10940_v34, 1  ;;  %v4482_v45 = vmax.f32 %v4480_v6, %v4481_v38  ;;  %v11153_v14 = vadd.f32 %v2707_v15, %v2477_v49  ;;  %v4499_v24 = vmax.f32 %v4497_v13, %v4498_v58  ;;  %v11158_v56 = vpop.f32.mrf.mxu1 }
 0x3a8   : > { %v4519_v33 = vrot.slane %v4518_v32, 4  ;;  %2414 = vrot.lane.b32.xlu0 %v10942_v25, %s8449_s29  ;;  %v4489_v22 = vmax.f32 %v4487_v61, %v4488_v60  ;;  %v4496_v59 = vmax.f32 %v4494_v51, %v4495_v20  ;;  %v3822_v10 = vadd.f32 %v3709_v3, %v3595_v37  ;;  %2008 = vst [vmem:[#allocation3 + $0x2d8] sm:$0xff] %v11158_v56 }
 0x3a9   : > { %v2740_v28 = vadd.f32 %v2631_v48, %v11008_v62  ;;  %v11161_v18 = vsel %vm425_vm1, %v4475_v21, -inf  ;;  %v4506_v43 = vmax.f32 %v4504_v23, %v4505_v1  ;;  %v4513_v6 = vmax.f32 %v4511_v63, %v4512_v36  ;;  %v11177_v23 = vpop.permute.xlu0 %3515 }
 0x3aa   : > { %v2882_v49 = vsel %vm10636_vm7, %v2805_v2, 0.0  ;;  %v3203_v15 = vsel %vm10800_vm14, %v11080_v52, 0.0  ;;  %v3858_v20 = vadd.f32 %v11095_v54, %v3822_v10  ;;  %v3075_v1 = vsel %vm2528_vm12, %v3072_v26, %v15010_v47  ;;  %v11206_v10 = vld [vmem:[#allocation3 + $0x220] sm:$0xff] }
 0x3ab   : > { %v11170_v61 = vadd.f32 %v2882_v49, %v2740_v28  ;;  %v4500_v62 = vrot.slane %v4499_v24, 2  ;;  %v4520_v36 = vmax.f32 %v4518_v32, %v4519_v33  ;;  %v11180_v2 = vadd.s32 152, %v9408_v41  ;;  %v11198_v33 = vpop.permute.xlu2 %2806 }
 0x3ac   : > { %v15237_v21 = vrot.slane %v10847_v55, 1  ;;  %v15238_v52 = vrot.slane %v10688_v40, 1  ;;  %3138 = vrot.lane.b32.xlu2 %v3075_v1, %s8449_s29  ;;  %v11189_v38 = vsel %vm425_vm1, %v4482_v45, -inf  ;;  %v11192_v26 = vsel %vm425_vm1, %v4489_v22, -inf  ;;  %15239 = vst [vmem:[#allocation12_spill] sm:$0xff] %v11198_v33 }
 0x3ad   : > { %v11195_v13 = vsel %vm425_vm1, %v4496_v59, -inf  ;;  %v3890_v32 = vmax.f32 %v3858_v20, 0.0  ;;  %v4507_v60 = vrot.slane %v4506_v43, 2  ;;  %v4514_v40 = vrot.slane %v4513_v6, 2 }
 0x3ae   : > { %v3071_v51 = vsel %vm2528_vm12, %v15238_v52, %v15237_v21  ;;  %v3235_v58 = vadd.f32 %v3203_v15, %v2975_v4  ;;  %v15240_v63 = vrot.slane %v10892_v35, 7  ;;  %v15241_v3 = vrot.slane %v10847_v55, 7  ;;  %v2803_v4 = vpop.permute.xlu1 %2802  ;;  %v11211_v15 = vld [vmem:[#allocation3 + $0x2d0] sm:$0xff] }
 0x3af   : > { %3134 = vrot.lane.b32.xlu1 %v3071_v51, %s8449_s29  ;;  %v3982_v45 = vrot.slane %v3890_v32, 2  ;;  %v3983_v48 = vrot.slane %v3890_v32, 4  ;;  %v3984_v22 = vrot.slane %v3890_v32, 6  ;;  %v4525_v59 = vsel %vm4132_vm8, %v3890_v32, -inf }
 0x3b0   : > { %v3302_v37 = vsel %vm2200_vm13, %v15241_v3, %v15240_v63  ;;  %v4501_v28 = vmax.f32 %v4499_v24, %v4500_v62  ;;  %v4521_v49 = vrot.slane %v4520_v36, 2  ;;  %3529 = vrot.lane.b32.xlu0 %v10940_v34, %s8451_s0  ;;  %v4526_v21 = vrot.slane %v4525_v59, 4 }
 0x3b1   : > { %v4532_v52 = vsel %vm4132_vm8, %v3982_v45, -inf  ;;  %v4539_v51 = vsel %vm4132_vm8, %v3983_v48, -inf  ;;  %v4546_v32 = vsel %vm4132_vm8, %v3984_v22, -inf  ;;  %v4508_v63 = vmax.f32 %v4506_v43, %v4507_v60  ;;  %v11218_v30 = vpop.permute.xlu0 %2406 }
 0x3b2   : > { %v4515_v24 = vmax.f32 %v4513_v6, %v4514_v40  ;;  %v4533_v62 = vrot.slane %v4532_v52, 4  ;;  %v15017_v3 = vrot.slane %v11206_v10, 1  ;;  %v4527_v20 = vmax.f32 %v4525_v59, %v4526_v21  ;;  %v8347_v21 = vld [vmem:[#allocation3 + $0x1e8] sm:$0xff] }
 0x3b3   : > { %v4540_v47 = vrot.slane %v4539_v51, 4  ;;  %v4547_v31 = vrot.slane %v4546_v32, 4  ;;  %v15242_v9 = vrot.slane %v11027_v19, 1  ;;  %v15243_v1 = vrot.slane %v10942_v25, 1  ;;  %v11232_v22 = vpop.permute.xlu2 %3517 }
 0x3b4   : > { %v4502_v0 = vrot.slane %v4501_v28, 1  ;;  %v4522_v48 = vmax.f32 %v4520_v36, %v4521_v49  ;;  %v4534_v50 = vmax.f32 %v4532_v52, %v4533_v62  ;;  %v11226_v43 = vadd.f32 %v2803_v4, %v11153_v14  ;;  %3525 = vrot.lane.b32.xlu2 %v10847_v55, %s8451_s0 }
 0x3b5   : > { %v2581_v45 = vsel %vm2528_vm12, %v15243_v1, %v15242_v9  ;;  %v4528_v6 = vrot.slane %v4527_v20, 2  ;;  %v4541_v60 = vmax.f32 %v4539_v51, %v4540_v47  ;;  %v4548_v40 = vmax.f32 %v4546_v32, %v4547_v31 }
 0x3b6   : > { %v15244_v25 = vrot.slane %v11211_v15, 1  ;;  %v15245_v9 = vrot.slane %v11076_v57, 1  ;;  %v4509_v59 = vrot.slane %v4508_v63, 1  ;;  %v4516_v14 = vrot.slane %v4515_v24, 1 }
 0x3b7   : > { %2418 = vrot.lane.b32.xlu1 %v11076_v57, %s8449_s29  ;;  %v4535_v49 = vrot.slane %v4534_v50, 2  ;;  %v15246_v55 = vrot.slane %v11105_v29, 1  ;;  %v4529_v47 = vmax.f32 %v4527_v20, %v4528_v6  ;;  %v4542_v4 = vrot.slane %v4541_v60, 2 }
 0x3b8   : > { %v2585_v36 = vsel %vm2528_vm12, %v15245_v9, %v15244_v25  ;;  %v4549_v1 = vrot.slane %v4548_v40, 2  ;;  %v2976_v52 = vadd.f32 %v8347_v21, %v10935_v8  ;;  %v4503_v51 = vmax.f32 %v4501_v28, %v4502_v0  ;;  %3365 = vrot.lane.b32.xlu0 %v3302_v37, %s8450_s30  ;;  %v3354_v25 = vpop.permute.xlu1 %3353  ;;  %v11246_v9 = vpop.f32.mrf.mxu1 }
 0x3b9   : > { %v3711_v31 = vsel %vm2528_vm12, %v15246_v55, %v15017_v3  ;;  %v4523_v32 = vrot.slane %v4522_v48, 1  ;;  %v4536_v62 = vmax.f32 %v4534_v50, %v4535_v49  ;;  %v15247_v42 = vrot.slane %v11076_v57, 7  ;;  %2011 = vst [vmem:[#allocation3 + $0x2f0] sm:$0xff] %v11246_v9  ;;  %v1866_v0 = vpop.f32.mrf.mxu2  ;;  %v3125_v21 = vpop.permute.xlu0 %3124 }
 0x3ba   : > { %v15248_v29 = vrot.slane %v11027_v19, 7  ;;  %v4530_v20 = vrot.slane %v4529_v47, 1  ;;  %v4543_v6 = vmax.f32 %v4541_v60, %v4542_v4  ;;  %v4550_v3 = vmax.f32 %v4548_v40, %v4549_v1  ;;  %1988 = vst.msk [vmem:[#allocation3 + $0x238] sm:$0xff] %vm425_vm1, %v1866_v0 }
 0x3bb   : > { %v3466_v33 = vadd.f32 %v3354_v25, %v3235_v58  ;;  %v4510_v8 = vmax.f32 %v4508_v63, %v4509_v59  ;;  %v4517_v50 = vmax.f32 %v4515_v24, %v4516_v14  ;;  %v4537_v37 = vrot.slane %v4536_v62, 1 }
 0x3bc   : > { %v11253_v55 = vsel %vm2200_vm13, %v15248_v29, %v15247_v42  ;;  %v3791_v28 = vsel %vm10800_vm14, %v3711_v31, 0.0  ;;  %v4531_v57 = vmax.f32 %v4529_v47, %v4530_v20  ;;  %v4544_v19 = vrot.slane %v4543_v6, 1  ;;  %2648 = vrot.lane.b32.xlu2 %v2585_v36, %s8450_s30  ;;  %v11269_v31 = vld [vmem:[#allocation3 + $0x300] sm:$0xff] }
 0x3bd   : > { %15249 = vst [vmem:[#allocation13_spill] sm:$0xff] %v11253_v55  ;;  %v4551_v49 = vrot.slane %v4550_v3, 1  ;;  %v3596_v42 = vadd.f32 %v11177_v23, %v3466_v33  ;;  %v11260_v60 = vmax.f32 %v4522_v48, %v4523_v32  ;;  %v11263_v58 = vsel %vm425_vm1, %v4503_v51, -inf  ;;  %v2809_v23 = vpop.permute.xlu2 %2808 }
 0x3be   : > { %v4538_v40 = vmax.f32 %v4536_v62, %v4537_v37  ;;  %v3305_v63 = vrot.slane %v11115_v39, 7  ;;  %v4545_v11 = vmax.f32 %v4543_v6, %v4544_v19  ;;  %v5102_v59 = vsel %vm425_vm1, %v4531_v57, -inf }
 0x3bf   : > { %v4552_v24 = vmax.f32 %v4550_v3, %v4551_v49  ;;  %2644 = vrot.lane.b32.xlu1 %v2581_v45, %s8450_s30  ;;  %v3823_v14 = vadd.f32 %v3791_v28, %v3596_v42  ;;  %v11272_v33 = vsel %vm425_vm1, %v4510_v8, -inf  ;;  %v11275_v48 = vsel %vm425_vm1, %v4517_v50, -inf }
 0x3c0   : > { %v5103_v36 = vmax.f32 %v11161_v18, %v5102_v59  ;;  %v5105_v47 = vsel %vm425_vm1, %v4538_v40, -inf  ;;  %v5108_v4 = vsel %vm425_vm1, %v4545_v11, -inf  ;;  %2424 = vrot.lane.b32.xlu0 %v11269_v31, %s8449_s29  ;;  %v3236_v62 = vadd.f32 %v3125_v21, %v2976_v52  ;;  %v3356_v25 = vpop.permute.xlu1 %3355  ;;  %v11292_v29 = vpop.f32.mrf.mxu1 }
 0x3c1   : > { %v5106_v3 = vmax.f32 %v11189_v38, %v5105_v47  ;;  %v5111_v45 = vsel %vm425_vm1, %v4552_v24, -inf  ;;  %v3859_v1 = vadd.f32 %v11095_v54, %v3823_v14  ;;  %v5109_v51 = vmax.f32 %v11192_v26, %v5108_v4  ;;  %v11295_v0 = vld [vmem:[#allocation3 + $0x238] sm:$0xff]  ;;  %2014 = vst [vmem:[#allocation3 + $0x308] sm:$0xff] %v11292_v29  ;;  %v1869_v52 = vpop.f32.mrf.mxu2  ;;  %v2635_v42 = vpop.permute.xlu0 %2634  ;;  %v11318_v14 = vld [vmem:[#allocation3 + $0x2e8] sm:$0xff] }
 0x3c2   : > { %v5112_v32 = vmax.f32 %v11195_v13, %v5111_v45  ;;  %v15250_v18 = vrot.slane %v10940_v34, 7  ;;  %v3435_v26 = vsel %vm10218_vm3, %v3356_v25, 0.0  ;;  %v3076_v13 = vrot.slane %v11115_v39, 1  ;;  %1991 = vst.msk [vmem:[#allocation3 + $0x250] sm:$0xff] %vm425_vm1, %v1869_v52 }
 0x3c3   : > { %v5313_v20 = vsel %vm1295_vm5, %v5106_v3, %v5103_v36  ;;  %v3891_v6 = vmax.f32 %v3859_v1, 0.0  ;;  %v2884_v50 = vsel %vm10646_vm2, %v2809_v23, 0.0  ;;  %v3712_v37 = vrot.slane %v11295_v0, 1  ;;  %v11436_v0 = vld [vmem:[#allocation3 + $0x330] sm:$0xff] }
 0x3c4   : > { %v3306_v38 = vsel %vm2200_vm13, %v15250_v18, %v3305_v63  ;;  %v5314_v8 = vsel %vm1297_vm6, %v5109_v51, %v5313_v20  ;;  %v3467_v28 = vadd.f32 %v3435_v26, %v3236_v62  ;;  %vm15251_vm15 = vcmask 1043459   ;;  %2420 = vrot.lane.b32.xlu2 %v11211_v15, %s8449_s29 }
 0x3c5   : > { %v3985_v57 = vrot.slane %v3891_v6, 2  ;;  %v3986_v19 = vrot.slane %v3891_v6, 4  ;;  %v3987_v49 = vrot.slane %v3891_v6, 6  ;;  %v4553_v7 = vsel %vm4132_vm8, %v3891_v6, -inf }
 0x3c6   : > { %v4554_v21 = vrot.slane %v4553_v7, 4  ;;  %v11308_v40 = vsel %vm15251_vm15, %v5112_v32, %v5314_v8  ;;  %v15252_v11 = vrot.slane %v11206_v10, 1  ;;  %v3597_v59 = vadd.f32 %v11232_v22, %v3467_v28  ;;  %v11325_v10 = vpop.permute.xlu2 %3519  ;;  %v15254_v8 = vld [vmem:[#allocation14_spill] sm:$0xff] }
 0x3c7   : > { %v4560_v23 = vsel %vm4132_vm8, %v3985_v57, -inf  ;;  %v4567_v36 = vsel %vm4132_vm8, %v3986_v19, -inf  ;;  %v4574_v47 = vsel %vm4132_vm8, %v3987_v49, -inf  ;;  %3369 = vrot.lane.b32.xlu1 %v3306_v38, %s8450_s30  ;;  %v2742_v3 = vadd.f32 %v2635_v42, %v11014_v12  ;;  %v8348_v42 = vld [vmem:[#allocation3 + $0x200] sm:$0xff] }
 0x3c8   : > { %v3713_v24 = vsel %vm2528_vm12, %v15252_v11, %v3712_v37  ;;  %v4555_v4 = vmax.f32 %v4553_v7, %v4554_v21  ;;  %v4561_v45 = vrot.slane %v4560_v23, 4  ;;  %v4568_v22 = vrot.slane %v4567_v36, 4  ;;  %v11336_v26 = vpop.permute.xlu1 %3126 }
 0x3c9   : > { %v4575_v1 = vrot.slane %v4574_v47, 4  ;;  %v3824_v51 = vadd.f32 %v3713_v24, %v3597_v59  ;;  %v15253_v32 = vrot.slane %v10940_v34, 1  ;;  %v11332_v18 = vadd.f32 %v2884_v50, %v2742_v3 }
 0x3ca   : > { %v2260_v25 = vrot.slane %v11318_v14, 7  ;;  %v4556_v38 = vrot.slane %v4555_v4, 2  ;;  %v4562_v20 = vmax.f32 %v4560_v23, %v4561_v45  ;;  %v4569_v12 = vmax.f32 %v4567_v36, %v4568_v22 }
 0x3cb   : > { %v3077_v62 = vsel %vm2528_vm12, %v15253_v32, %v3076_v13  ;;  %v4576_v6 = vmax.f32 %v4574_v47, %v4575_v1  ;;  %v11340_v52 = vsel %vm425_vm1, %v11260_v60, -inf  ;;  %v11344_v34 = vadd.f32 %v11218_v30, %v15254_v8  ;;  %v2409_v30 = vpop.permute.xlu0 %2408 }
 0x3cc   : > { %3140 = vrot.lane.b32.xlu0 %v3077_v62, %s8449_s29  ;;  %v3860_v50 = vadd.f32 %v11095_v54, %v3824_v51  ;;  %v2059_v28 = vadd.s32 168, %v9408_v41  ;;  %v4557_v57 = vmax.f32 %v4555_v4, %v4556_v38  ;;  %v4563_v19 = vrot.slane %v4562_v20, 2 }
 0x3cd   : > { %v4570_v49 = vrot.slane %v4569_v12, 2  ;;  %v4577_v7 = vrot.slane %v4576_v6, 2  ;;  %v2977_v21 = vadd.f32 %v8348_v42, %v11226_v43  ;;  %v15255_v60 = vrot.slane %v15230_v16, 7 }
 0x3ce   : > { %v3892_v11 = vmax.f32 %v3860_v50, 0.0  ;;  %v3078_v59 = vrot.slane %v11158_v56, 1  ;;  %v4558_v23 = vrot.slane %v4557_v57, 1  ;;  %v4564_v36 = vmax.f32 %v4562_v20, %v4563_v19  ;;  %v11361_v45 = vpop.permute.xlu2 %2412 }
 0x3cf   : > { %v11354_v24 = vsel %vm2200_vm13, %v15255_v60, %v2260_v25  ;;  %v4571_v47 = vmax.f32 %v4569_v12, %v4570_v49  ;;  %v4578_v3 = vmax.f32 %v4576_v6, %v4577_v7  ;;  %2818 = vrot.lane.b32.xlu1 %v11253_v55, %s8451_s0  ;;  %v3080_v16 = vrot.slane %v11246_v9, 1 }
 0x3d0   : > { %15256 = vst [vmem:[#allocation15_spill] sm:$0xff] %v11354_v24  ;;  %2822 = vrot.lane.b32.xlu2 %v11354_v24, %s8451_s0  ;;  %v3988_v4 = vrot.slane %v3892_v11, 2  ;;  %v3989_v43 = vrot.slane %v3892_v11, 4  ;;  %v2091_v22 = vand.u32 15, %v2059_v28  ;;  %v4559_v1 = vmax.f32 %v4557_v57, %v4558_v23  ;;  %v2637_v28 = vpop.permute.xlu1 %2636  ;;  %v11372_v57 = vld [vmem:[#allocation3 + $0x250] sm:$0xff] }
 0x3d1   : > { %v4565_v51 = vrot.slane %v4564_v36, 1  ;;  %v4572_v32 = vrot.slane %v4571_v47, 1  ;;  %v4579_v62 = vrot.slane %v4578_v3, 1  ;;  %v3990_v38 = vrot.slane %v3892_v11, 6 }
 0x3d2   : > { %v4581_v20 = vsel %vm4132_vm8, %v3892_v11, -inf  ;;  %v3205_v12 = vsel %vm11064_vm11, %v11336_v26, 0.0  ;;  %v15023_v6 = vrot.slane %v11318_v14, 1  ;;  %v5114_v49 = vsel %vm425_vm1, %v4559_v1, -inf }
 0x3d3   : > { %v4566_v8 = vmax.f32 %v4564_v36, %v4565_v51  ;;  %v4573_v50 = vmax.f32 %v4571_v47, %v4572_v32  ;;  %v4580_v19 = vmax.f32 %v4578_v3, %v4579_v62  ;;  %v5115_v7 = vmax.f32 %v11263_v58, %v5114_v49  ;;  %v1872_v3 = vpop.f32.mrf.mxu2 }
 0x3d4   : > { %3531 = vrot.lane.b32.xlu0 %v11115_v39, %s8451_s0  ;;  %v4588_v42 = vsel %vm4132_vm8, %v3988_v4, -inf  ;;  %v4595_v11 = vsel %vm4132_vm8, %v3989_v43, -inf  ;;  %vm11377_vm3 = vcmp.le.s32.totalorder %v2091_v22, 14  ;;  %v4582_v47 = vrot.slane %v4581_v20, 4  ;;  %v3358_v22 = vpop.permute.xlu0 %3357  ;;  %1994 = vst.msk [vmem:[#allocation3 + $0x268] sm:$0xff] %vm425_vm1, %v1872_v3  ;;  %v11434_v3 = vld [vmem:[#allocation3 + $0x318] sm:$0xff] }
 0x3d5   : > { %v5117_v60 = vsel %vm425_vm1, %v4566_v8, -inf  ;;  %v5120_v23 = vsel %vm425_vm1, %v4573_v50, -inf  ;;  %v5123_v36 = vsel %vm425_vm1, %v4580_v19, -inf  ;;  %vm15259_vm14 = vcmask 1044484  }
 0x3d6   : > { %v5118_v1 = vmax.f32 %v11272_v33, %v5117_v60  ;;  %v5121_v58 = vmax.f32 %v11275_v48, %v5120_v23  ;;  %v5316_v4 = vsel %vm15259_vm14, %v5115_v7, %v11308_v40  ;;  %v3714_v43 = vrot.slane %v11372_v57, 1  ;;  %v11409_v19 = vpop.permute.xlu2 %3359 }
 0x3d7   : > { %v4589_v51 = vrot.slane %v4588_v42, 4  ;;  %v4596_v32 = vrot.slane %v4595_v11, 4  ;;  %v4602_v62 = vsel %vm4132_vm8, %v3990_v38, -inf  ;;  %v3081_v33 = vsel %vm2528_vm12, %v3078_v59, %v3080_v16 }
 0x3d8   : > { %3527 = vrot.lane.b32.xlu2 %v10892_v35, %s8451_s0  ;;  %v5124_v48 = vmax.f32 %v11340_v52, %v5123_v36  ;;  %vm15260_vm4 = vcmask 1045509   ;;  %v15261_v8 = vsel %vm11084_vm0, %v15236_v46, 0.0  ;;  %3144 = vrot.lane.b32.xlu1 %v3081_v33, %s8449_s29  ;;  %v2711_v38 = vsel %vm11377_vm3, %v2637_v28, 0.0 }
 0x3d9   : > { %v5317_v40 = vsel %vm15260_vm4, %v5118_v1, %v5316_v4  ;;  %v11404_v50 = vadd.f32 %v2409_v30, %v15261_v8  ;;  %vm15262_vm9 = vcmask 1046534   ;;  %v4583_v35 = vmax.f32 %v4581_v20, %v4582_v47 }
 0x3da   : > { %v5318_v49 = vsel %vm15262_vm9, %v5121_v58, %v5317_v40  ;;  %v3237_v7 = vadd.f32 %v3205_v12, %v2977_v21  ;;  %v15263_v52 = vrot.slane %v11211_v15, 1  ;;  %vm15264_vm15 = vcmask 1047559   ;;  %v11428_v15 = vpop.permute.xlu1 %2410  ;;  %v5671_v40 = vpop.f32.mrf.mxu0 }
 0x3db   : > { %v5319_v46 = vsel %vm15264_vm15, %v5124_v48, %v5318_v49  ;;  %v4603_v30 = vrot.slane %v4602_v62, 4  ;;  %v11419_v23 = vadd.f32 %v2711_v38, %v11344_v34  ;;  %v3715_v28 = vsel %vm2528_vm12, %v3712_v37, %v3714_v43  ;;  %5718 = vst.msk [vmem:[#allocation5 + $0x98] sm:$0xff] %vm5702_vm10, %v5671_v40  ;;  %v15268_v38 = vld [vmem:[#allocation24_spill] sm:$0xff]  ;;  %v11484_v40 = vpop.f32.mrf.mxu1 }
 0x3dc   : > { %v2587_v60 = vsel %vm2528_vm12, %v15263_v52, %v15023_v6  ;;  %5360 = vst.msk [vmem:[#allocation4 + $0x28] sm:$0xff] %vm425_vm1, %v5319_v46  ;;  %v4590_v21 = vmax.f32 %v4588_v42, %v4589_v51  ;;  %v4597_v20 = vmax.f32 %v4595_v11, %v4596_v32  ;;  %v3468_v12 = vadd.f32 %v3358_v22, %v3237_v7  ;;  %v11445_v4 = vpop.permute.xlu0 %3521  ;;  %v11477_v46 = vld [vmem:[#allocation3 + $0x268] sm:$0xff] }
 0x3dd   : > { %2650 = vrot.lane.b32.xlu0 %v2587_v60, %s8450_s30  ;;  %v15026_v36 = vrot.slane %v11158_v56, 7  ;;  %v2062_v34 = vadd.s32 192, %v9408_v41  ;;  %v3793_v47 = vsel %vm11064_vm11, %v3715_v28, 0.0  ;;  %v15265_v37 = vand.u32 15, %v11180_v2  ;;  %2017 = vst [vmem:[#allocation3 + $0x320] sm:$0xff] %v11484_v40 }
 0x3de   : > { %v4584_v1 = vrot.slane %v4583_v35, 2  ;;  %v4604_v11 = vmax.f32 %v4602_v62, %v4603_v30  ;;  %v3598_v58 = vadd.f32 %v11325_v10, %v3468_v12  ;;  %v4591_v22 = vrot.slane %v4590_v21, 2  ;;  %v11457_v48 = vpop.permute.xlu2 %3130  ;;  %v8349_v12 = vld [vmem:[#allocation3 + $0x218] sm:$0xff] }
 0x3df   : > { %vm11440_vm14 = vcmp.le.s32.totalorder %v15265_v37, 14  ;;  %v3308_v27 = vsel %vm2200_vm13, %v3305_v63, %v15026_v36  ;;  %v15027_v51 = vrot.slane %v11246_v9, 7  ;;  %v15019_v2 = vrot.slane %v11292_v29, 7 }
 0x3e0   : > { %v4598_v32 = vrot.slane %v4597_v20, 2  ;;  %v3825_v33 = vadd.f32 %v3793_v47, %v3598_v58  ;;  %3371 = vrot.lane.b32.xlu1 %v3308_v27, %s8450_s30  ;;  %v15018_v62 = vrot.slane %v11434_v3, 7  ;;  %v15020_v10 = vrot.slane %v11436_v0, 7 }
 0x3e1   : > { %v2709_v8 = vsel %vm11440_vm14, %v11139_v17, 0.0  ;;  %v3312_v63 = vsel %vm2200_vm13, %v15027_v51, %v15019_v2  ;;  %v2479_v49 = vadd.f32 %v11041_v5, %v15268_v38  ;;  %v2094_v7 = vand.u32 15, %v2062_v34  ;;  %v15275_v2 = vld [vmem:[#allocation23_spill] sm:$0xff] }
 0x3e2   : > { %v3861_v52 = vadd.f32 %v11095_v54, %v3825_v33  ;;  %3375 = vrot.lane.b32.xlu2 %v3312_v63, %s8450_s30  ;;  %v2765_v17 = vsel %vm2200_vm13, %v15018_v62, %v15020_v10  ;;  %v4585_v30 = vmax.f32 %v4583_v35, %v4584_v1  ;;  %v4605_v28 = vrot.slane %v4604_v11, 2  ;;  %v3129_v47 = vpop.permute.xlu1 %3128  ;;  %v1875_v35 = vpop.f32.mrf.mxu2 }
 0x3e3   : > { %v5370_v60 = vld [vmem:[#allocation4 + $0x28] sm:$0xff]  ;;  %v15021_v5 = vrot.slane %v11434_v3, 1  ;;  %v2978_v34 = vadd.f32 %v8349_v12, %v11170_v61  ;;  %v2741_v37 = vadd.f32 %v2709_v8, %v2479_v49  ;;  %v4592_v58 = vmax.f32 %v4590_v21, %v4591_v22  ;;  %v15269_v61 = vld [vmem:[#allocation12_spill] sm:$0xff]  ;;  %v11496_v22 = vpop.f32.mrf.mxu3  ;;  %1997 = vst.msk [vmem:[#allocation3 + $0x280] sm:$0xff] %vm425_vm1, %v1875_v35 }
 0x3e4   : > { %8201 = vmatmul.msk.f32.gmra.mxu3 %vm425_vm1, %v5370_v60  ;;  %v4599_v27 = vmax.f32 %v4597_v20, %v4598_v32  ;;  %v3893_v33 = vmax.f32 %v3861_v52, 0.0  ;;  %8249 = vmatmul.msk.f32.gmra.mxu0 %vm425_vm1, %v5370_v60  ;;  %v11487_v1 = vrot.slane %v11269_v31, 7  ;;  %v15024_v63 = vrot.slane %v11269_v31, 1  ;;  %15271 = vst [vmem:[#allocation28_spill] sm:$0xff] %v11496_v22  ;;  %v2813_v32 = vpop.permute.xlu0 %2812 }
 0x3e5   : > { %2828 = vrot.lane.b32.xlu0 %v2765_v17, %s8451_s0  ;;  %v15025_v38 = vrot.slane %v11477_v46, 1  ;;  %v3238_v17 = vadd.f32 %v3129_v47, %v2978_v34  ;;  %v2915_v8 = vadd.f32 %v15269_v61, %v2741_v37  ;;  %v3437_v20 = vsel %vm10636_vm7, %v11409_v19, 0.0  ;;  %5714 = vst [vmem:[#allocation5 + $0x78] sm:$0xff] %v11496_v22 }
 0x3e6   : > { %v4586_v49 = vrot.slane %v4585_v30, 1  ;;  %v4606_v52 = vmax.f32 %v4604_v11, %v4605_v28  ;;  %v2591_v60 = vsel %vm2528_vm12, %v15024_v63, %v15021_v5  ;;  %v4593_v34 = vrot.slane %v4592_v58, 1  ;;  %v11511_v11 = vpop.permute.xlu2 %2640 }
 0x3e7   : > { %v3469_v12 = vadd.f32 %v3437_v20, %v3238_v17  ;;  %v4600_v47 = vrot.slane %v4599_v27, 1  ;;  %vm11505_vm11 = vcmp.ge.s32.totalorder %v2094_v7, 1  ;;  %v4609_v37 = vsel %vm4132_vm8, %v3893_v33, -inf  ;;  %v8350_v17 = vld [vmem:[#allocation3 + $0x230] sm:$0xff] }
 0x3e8   : > { %2654 = vrot.lane.b32.xlu1 %v2591_v60, %s8450_s30  ;;  %v3991_v28 = vrot.slane %v3893_v33, 2  ;;  %v3717_v35 = vsel %vm2528_vm12, %v3714_v43, %v15025_v38  ;;  %v11522_v7 = vsel %vm2200_vm13, %v2260_v25, %v11487_v1  ;;  %v11524_v61 = vadd.f32 %v8350_v17, %v2915_v8 }
 0x3e9   : > { %15274 = vst [vmem:[#allocation32_spill] sm:$0xff] %v11522_v7  ;;  %v3992_v21 = vrot.slane %v3893_v33, 4  ;;  %v3993_v20 = vrot.slane %v3893_v33, 6  ;;  %v3599_v60 = vadd.f32 %v11445_v4, %v3469_v12  ;;  %v4587_v62 = vmax.f32 %v4585_v30, %v4586_v49  ;;  %v11535_v4 = vpop.f32.mrf.mxu1 }
 0x3ea   : > { %2824 = vrot.lane.b32.xlu2 %v11522_v7, %s8451_s0  ;;  %v4607_v57 = vrot.slane %v4606_v52, 1  ;;  %v2322_v43 = vsel %vm11505_vm11, %v15275_v2, 0.0  ;;  %v4610_v10 = vrot.slane %v4609_v37, 4  ;;  %v2639_v25 = vpop.permute.xlu1 %2638  ;;  %v4594_v8 = vmax.f32 %v4592_v58, %v4593_v34  ;;  %2020 = vst [vmem:[#allocation3 + $0x338] sm:$0xff] %v11535_v4 }
 0x3eb   : > { %v4601_v17 = vmax.f32 %v4599_v27, %v4600_v47  ;;  %v3826_v5 = vadd.f32 %v3717_v35, %v3599_v60  ;;  %v2744_v33 = vadd.f32 %v2639_v25, %v11404_v50  ;;  %v4616_v12 = vsel %vm4132_vm8, %v3991_v28, -inf }
 0x3ec   : > { %v2886_v30 = vsel %vm11084_vm0, %v2813_v32, 0.0  ;;  %v15022_v49 = vrot.slane %v11292_v29, 1  ;;  %v11543_v2 = vadd.s32 208, %v9408_v41  ;;  %v4623_v58 = vsel %vm4132_vm8, %v3992_v21, -inf  ;;  %v11550_v47 = vpop.permute.xlu0 %3523 }
 0x3ed   : > { %2422 = vrot.lane.b32.xlu0 %v11318_v14, %s8449_s29  ;;  %v4630_v27 = vsel %vm4132_vm8, %v3993_v20, -inf  ;;  %v3862_v50 = vadd.f32 %v11095_v54, %v3826_v5  ;;  %v11548_v34 = vadd.f32 %v2886_v30, %v2744_v33  ;;  %v4608_v28 = vmax.f32 %v4606_v52, %v4607_v57 }
 0x3ee   : > { %v11553_v32 = vadd.f32 %v11361_v45, %v2322_v43  ;;  %v4611_v35 = vmax.f32 %v4609_v37, %v4610_v10  ;;  %v3079_v60 = vsel %vm2528_vm12, %v3076_v13, %v3078_v59  ;;  %v11561_v21 = vsel %vm425_vm1, %v4587_v62, -inf  ;;  %v11570_v45 = vpop.permute.xlu2 %2814 }
 0x3ef   : > { %v11564_v5 = vsel %vm425_vm1, %v4594_v8, -inf  ;;  %v11567_v20 = vsel %vm425_vm1, %v4601_v17, -inf  ;;  %v3894_v52 = vmax.f32 %v3862_v50, 0.0  ;;  %v4617_v10 = vrot.slane %v4616_v12, 4  ;;  %v11588_v50 = vld [vmem:[#allocation3 + $0x280] sm:$0xff] }
 0x3f0   : > { %3142 = vrot.lane.b32.xlu1 %v3079_v60, %s8449_s29  ;;  %v4624_v37 = vrot.slane %v4623_v58, 4  ;;  %v4631_v57 = vrot.slane %v4630_v27, 4  ;;  %v3083_v39 = vsel %vm2528_vm12, %v3080_v16, %v15022_v49  ;;  %v11580_v25 = vsel %vm425_vm1, %v4608_v28, -inf  ;;  %v8351_v16 = vld [vmem:[#allocation3 + $0x248] sm:$0xff] }
 0x3f1   : > { %v3994_v13 = vrot.slane %v3894_v52, 2  ;;  %v3995_v59 = vrot.slane %v3894_v52, 4  ;;  %v3996_v62 = vrot.slane %v3894_v52, 6  ;;  %v4637_v43 = vsel %vm4132_vm8, %v3894_v52, -inf  ;;  %v11593_v49 = vpop.f32.mrf.mxu1 }
 0x3f2   : > { %3146 = vrot.lane.b32.xlu2 %v3083_v39, %s8449_s29  ;;  %v4612_v8 = vrot.slane %v4611_v35, 2  ;;  %v3207_v17 = vsel %vm11440_vm14, %v11457_v48, 0.0  ;;  %v2811_v33 = vpop.permute.xlu1 %2810  ;;  %v2980_v30 = vadd.f32 %v8351_v16, %v11332_v18  ;;  %v4638_v60 = vrot.slane %v4637_v43, 4  ;;  %2023 = vst [vmem:[#allocation3 + $0x350] sm:$0xff] %v11593_v49 }
 0x3f3   : > { %v4644_v52 = vsel %vm4132_vm8, %v3994_v13, -inf  ;;  %v4651_v28 = vsel %vm4132_vm8, %v3995_v59, -inf  ;;  %v4658_v39 = vsel %vm4132_vm8, %v3996_v62, -inf  ;;  %v4618_v6 = vmax.f32 %v4616_v12, %v4617_v10 }
 0x3f4   : > { %v4625_v48 = vmax.f32 %v4623_v58, %v4624_v37  ;;  %v4632_v63 = vmax.f32 %v4630_v27, %v4631_v57  ;;  %v4645_v38 = vrot.slane %v4644_v52, 4  ;;  %v4639_v36 = vmax.f32 %v4637_v43, %v4638_v60  ;;  %v3133_v16 = vpop.permute.xlu0 %3132 }
 0x3f5   : > { %3537 = vrot.lane.b32.xlu0 %v11292_v29, %s8451_s0  ;;  %v4652_v51 = vrot.slane %v4651_v28, 4  ;;  %v4659_v18 = vrot.slane %v4658_v39, 4  ;;  %v15031_v24 = vrot.slane %v11588_v50, 1  ;;  %v11597_v22 = vmax.f32 %v4611_v35, %v4612_v8 }
 0x3f6   : > { %v4646_v13 = vmax.f32 %v4644_v52, %v4645_v38  ;;  %v11600_v59 = vadd.f32 %v2811_v33, %v11419_v23  ;;  %v11602_v62 = vadd.f32 %v3133_v16, %v2980_v30  ;;  %v3239_v12 = vadd.f32 %v3207_v17, %v11524_v61  ;;  %v11612_v8 = vpop.permute.xlu2 %2816 }
 0x3f7   : > { %v4640_v58 = vrot.slane %v4639_v36, 2  ;;  %v4653_v27 = vmax.f32 %v4651_v28, %v4652_v51  ;;  %v4660_v10 = vmax.f32 %v4658_v39, %v4659_v18  ;;  %v4619_v37 = vrot.slane %v4618_v6, 2 }
 0x3f8   : > { %2426 = vrot.lane.b32.xlu1 %v11434_v3, %s8449_s29  ;;  %v4626_v57 = vrot.slane %v4625_v48, 2  ;;  %v4647_v43 = vrot.slane %v4646_v13, 2  ;;  %v15276_v35 = vrot.slane %v11246_v9, 7  ;;  %v15277_v38 = vrot.slane %v11158_v56, 7 }
 0x3f9   : > { %v4641_v33 = vmax.f32 %v4639_v36, %v4640_v58  ;;  %v4654_v30 = vrot.slane %v4653_v27, 2  ;;  %v4661_v61 = vrot.slane %v4660_v10, 2  ;;  %v15278_v51 = vrot.slane %v11477_v46, 1  ;;  %v2756_v58 = vld [vmem:[#allocation3 + $0x348] sm:$0x7f] }
 0x3fa   : > { %v3310_v23 = vsel %vm2200_vm13, %v15277_v38, %v15276_v35  ;;  %3533 = vrot.lane.b32.xlu2 %v11158_v56, %s8451_s0  ;;  %v4614_v60 = vrot.slane %v11597_v22, 1  ;;  %v4633_v52 = vrot.slane %v4632_v63, 2  ;;  %v4648_v28 = vmax.f32 %v4646_v13, %v4647_v43  ;;  %v3362_v16 = vpop.permute.xlu1 %3361  ;;  %v2493_v56 = vld [vmem:[#allocation3 + $0x330] sm:$0x1]  ;;  %v1878_v35 = vpop.f32.mrf.mxu2 }
 0x3fb   : > { %v3719_v17 = vsel %vm2528_vm12, %v15278_v51, %v15031_v24  ;;  %v15279_v39 = vrot.slane %v11269_v31, 1  ;;  %v15280_v36 = vrot.slane %v11318_v14, 1  ;;  %v4642_v38 = vrot.slane %v4641_v33, 1  ;;  %v11628_v24 = vpop.f32.mrf.mxu1  ;;  %2000 = vst.msk [vmem:[#allocation3 + $0x298] sm:$0xff] %vm425_vm1, %v1878_v35 }
 0x3fc   : > { %v4655_v46 = vmax.f32 %v4653_v27, %v4654_v30  ;;  %v4662_v7 = vmax.f32 %v4660_v10, %v4661_v61  ;;  %v3470_v51 = vadd.f32 %v3362_v16, %v3239_v12  ;;  %v4649_v13 = vrot.slane %v4648_v28, 1  ;;  %2026 = vst [vmem:[#allocation3 + $0x368] sm:$0xff] %v11628_v24  ;;  %v11635_v27 = vpop.permute.xlu0 %2416 }
 0x3fd   : > { %3373 = vrot.lane.b32.xlu0 %v3310_v23, %s8450_s30  ;;  %v2589_v18 = vsel %vm2528_vm12, %v15280_v36, %v15279_v39  ;;  %v3795_v31 = vsel %vm11440_vm14, %v3719_v17, 0.0  ;;  %v2592_v43 = vrot.slane %v2493_v56, 1  ;;  %v2766_v14 = vrot.slane %v2756_v58, 7 }
 0x3fe   : > { %v4643_v23 = vmax.f32 %v4641_v33, %v4642_v38  ;;  %v4656_v39 = vrot.slane %v4655_v46, 1  ;;  %v4663_v36 = vrot.slane %v4662_v7, 1  ;;  %v3600_v55 = vadd.f32 %v11550_v47, %v3470_v51 }
 0x3ff   : > { %v4620_v12 = vmax.f32 %v4618_v6, %v4619_v37  ;;  %v4627_v10 = vmax.f32 %v4625_v48, %v4626_v57  ;;  %v11637_v30 = vmax.f32 %v4632_v63, %v4633_v52  ;;  %v4650_v61 = vmax.f32 %v4648_v28, %v4649_v13  ;;  %v11649_v48 = vpop.permute.xlu2 %3367 }
 0x400   : > { %v4657_v16 = vmax.f32 %v4655_v46, %v4656_v39  ;;  %v4664_v35 = vmax.f32 %v4662_v7, %v4663_v36  ;;  %v5126_v42 = vsel %vm425_vm1, %v4643_v23, -inf  ;;  %2652 = vrot.lane.b32.xlu1 %v2589_v18, %s8450_s30  ;;  %v3827_v17 = vadd.f32 %v3795_v31, %v3600_v55 }
 0x401   : > { %v5127_v33 = vmax.f32 %v11561_v21, %v5126_v42  ;;  %v5129_v56 = vsel %vm425_vm1, %v4650_v61, -inf  ;;  %v15281_v47 = vrot.slane %v11434_v3, 1  ;;  %v15282_v6 = vrot.slane %v11436_v0, 7 }
 0x402   : > { %v5130_v7 = vmax.f32 %v11564_v5, %v5129_v56  ;;  %v5132_v37 = vsel %vm425_vm1, %v4657_v16, -inf  ;;  %v5135_v55 = vsel %vm425_vm1, %v4664_v35, -inf  ;;  %v3863_v21 = vadd.f32 %v11095_v54, %v3827_v17  ;;  %v1881_v18 = vpop.f32.mrf.mxu2 }
 0x403   : > { %v2593_v58 = vsel %vm2528_vm12, %v15281_v47, %v2592_v43  ;;  %v2767_v63 = vsel %vm2200_vm13, %v15282_v6, %v2766_v14  ;;  %v5133_v57 = vmax.f32 %v11567_v20, %v5132_v37  ;;  %v5136_v52 = vmax.f32 %v11580_v25, %v5135_v55  ;;  %v11665_v51 = vpop.f32.mrf.mxu1  ;;  %2003 = vst.msk [vmem:[#allocation3 + $0x2b0] sm:$0xff] %vm425_vm1, %v1881_v18 }
 0x404   : > { %2656 = vrot.lane.b32.xlu2 %v2593_v58, %s8450_s30  ;;  %v2096_v0 = vand.u32 15, %v11543_v2  ;;  %v3313_v28 = vrot.slane %v11484_v40, 7  ;;  %v11662_v5 = vmax.f32 %v11597_v22, %v4614_v60  ;;  %v4621_v38 = vrot.slane %v4620_v12, 1  ;;  %2029 = vst [vmem:[#allocation3 + $0x380] sm:$0xff] %v11665_v51  ;;  %v2643_v23 = vpop.permute.xlu0 %2642 }
 0x405   : > { %2830 = vrot.lane.b32.xlu0 %v2767_v63, %s8451_s0  ;;  %v5320_v46 = vsel %vm1295_vm5, %v5130_v7, %v5127_v33  ;;  %v3895_v54 = vmax.f32 %v3863_v21, 0.0  ;;  %v4628_v20 = vrot.slane %v4627_v10, 1  ;;  %v4635_v25 = vrot.slane %v11637_v30, 1  ;;  %v3364_v33 = vpop.permute.xlu1 %3363 }
 0x406   : > { %v2888_v13 = vsel %vm11505_vm11, %v11612_v8, 0.0  ;;  %v5321_v31 = vsel %vm1297_vm6, %v5133_v57, %v5320_v46  ;;  %vm15283_vm7 = vcmask 1043459   ;;  %v15284_v61 = vrot.slane %v11292_v29, 7 }
 0x407   : > { %v3997_v22 = vrot.slane %v3895_v54, 2  ;;  %v3998_v60 = vrot.slane %v3895_v54, 4  ;;  %v3999_v43 = vrot.slane %v3895_v54, 6  ;;  %v4665_v14 = vsel %vm4132_vm8, %v3895_v54, -inf  ;;  %v11692_v37 = vpop.permute.xlu2 %3138 }
 0x408   : > { %v4666_v39 = vrot.slane %v4665_v14, 4  ;;  %v11676_v36 = vsel %vm15283_vm7, %v5136_v52, %v5321_v31  ;;  %v3314_v8 = vsel %vm2200_vm13, %v15284_v61, %v3313_v28  ;;  %v2746_v16 = vadd.f32 %v2643_v23, %v11553_v32  ;;  %v11694_v32 = vld [vmem:[#allocation3 + $0x298] sm:$0xff] }
 0x409   : > { %v4672_v35 = vsel %vm4132_vm8, %v3997_v22, -inf  ;;  %v4679_v42 = vsel %vm4132_vm8, %v3998_v60, -inf  ;;  %v4686_v17 = vsel %vm4132_vm8, %v3999_v43, -inf  ;;  %3377 = vrot.lane.b32.xlu1 %v3314_v8, %s8450_s30  ;;  %v15285_v56 = vrot.slane %v11434_v3, 7 }
 0x40a   : > { %v4667_v58 = vmax.f32 %v4665_v14, %v4666_v39  ;;  %v4673_v6 = vrot.slane %v4672_v35, 4  ;;  %v4680_v63 = vrot.slane %v4679_v42, 4  ;;  %v4687_v7 = vrot.slane %v4686_v17, 4  ;;  %v1884_v31 = vpop.f32.mrf.mxu2 }
 0x40b   : > { %v2763_v47 = vsel %vm2200_vm13, %v11487_v1, %v15285_v56  ;;  %v4622_v55 = vmax.f32 %v4620_v12, %v4621_v38  ;;  %v4629_v21 = vmax.f32 %v4627_v10, %v4628_v20  ;;  %v11697_v57 = vadd.f32 %v2888_v13, %v2746_v16  ;;  %2006 = vst.msk [vmem:[#allocation3 + $0x2c8] sm:$0xff] %vm425_vm1, %v1884_v31 }
 0x40c   : > { %2826 = vrot.lane.b32.xlu2 %v2763_v47, %s8451_s0  ;;  %v3084_v52 = vrot.slane %v11484_v40, 1  ;;  %v4668_v3 = vrot.slane %v4667_v58, 2  ;;  %v4674_v18 = vmax.f32 %v4672_v35, %v4673_v6  ;;  %v4681_v46 = vmax.f32 %v4679_v42, %v4680_v63 }
 0x40d   : > { %v4688_v54 = vmax.f32 %v4686_v17, %v4687_v7  ;;  %3535 = vrot.lane.b32.xlu0 %v11246_v9, %s8451_s0  ;;  %v3439_v22 = vsel %vm10646_vm2, %v3364_v33, 0.0  ;;  %v3088_v12 = vrot.slane %v11593_v49, 1  ;;  %v3319_v10 = vrot.slane %v11628_v24, 7 }
 0x40e   : > { %v3720_v38 = vrot.slane %v11694_v32, 1  ;;  %v4669_v20 = vmax.f32 %v4667_v58, %v4668_v3  ;;  %v4675_v13 = vrot.slane %v4674_v18, 2  ;;  %v4682_v60 = vrot.slane %v4681_v46, 2  ;;  %v8359_v32 = vld [vmem:[#allocation3 + $0x2f0] sm:$0xff] }
 0x40f   : > { %v4689_v43 = vrot.slane %v4688_v54, 2  ;;  %v4636_v14 = vmax.f32 %v11637_v30, %v4635_v25  ;;  %v15286_v9 = vrot.slane %v11292_v29, 1  ;;  %v3086_v23 = vrot.slane %v11535_v4, 1  ;;  %v3526_v58 = vpop.permute.xlu2 %3525  ;;  %v11742_v3 = vpop.permute.xlu1 %3136 }
 0x410   : > { %v3317_v39 = vrot.slane %v11593_v49, 7  ;;  %v4670_v61 = vrot.slane %v4669_v20, 1  ;;  %v4676_v8 = vmax.f32 %v4674_v18, %v4675_v13  ;;  %v4683_v16 = vmax.f32 %v4681_v46, %v4682_v60 }
 0x411   : > { %v3085_v44 = vsel %vm2528_vm12, %v15286_v9, %v3084_v52  ;;  %v4690_v35 = vmax.f32 %v4688_v54, %v4689_v43  ;;  %v3471_v42 = vadd.f32 %v3439_v22, %v11602_v62  ;;  %v3089_v29 = vsel %vm2528_vm12, %v3086_v23, %v3088_v12 }
 0x412   : > { %3148 = vrot.lane.b32.xlu1 %v3085_v44, %s8449_s29  ;;  %v3320_v30 = vsel %vm2200_vm13, %v3317_v39, %v3319_v10  ;;  %v15287_v25 = vrot.slane %v11588_v50, 1  ;;  %v4671_v17 = vmax.f32 %v4669_v20, %v4670_v61  ;;  %v4677_v33 = vrot.slane %v4676_v8, 1  ;;  %v2821_v60 = vpop.permute.xlu0 %2820 }
 0x413   : > { %v4684_v56 = vrot.slane %v4683_v16, 1  ;;  %v4691_v47 = vrot.slane %v4690_v35, 1  ;;  %v5137_v6 = vsel %vm425_vm1, %v11662_v5, -inf  ;;  %v5140_v63 = vsel %vm425_vm1, %v4622_v55, -inf }
 0x414   : > { %v3721_v62 = vsel %vm2528_vm12, %v15287_v25, %v3720_v38  ;;  %vm11738_vm2 = vcmp.ge.s32.totalorder %v2096_v0, 1  ;;  %3152 = vrot.lane.b32.xlu2 %v3089_v29, %s8449_s29  ;;  %v3601_v50 = vadd.f32 %v3526_v58, %v3471_v42  ;;  %v4678_v18 = vmax.f32 %v4676_v8, %v4677_v33 }
 0x415   : > { %v4685_v46 = vmax.f32 %v4683_v16, %v4684_v56  ;;  %v4692_v54 = vmax.f32 %v4690_v35, %v4691_v47  ;;  %v5138_v31 = vsel %vm425_vm1, %v4671_v17, -inf  ;;  %3383 = vrot.lane.b32.xlu0 %v3320_v30, %s8450_s30  ;;  %v5143_v5 = vsel %vm425_vm1, %v4629_v21, -inf  ;;  %v11758_v21 = vld [vmem:[%s14910_s4] ss:$0 sm:$0xff]  ;;  %v11761_v16 = vld [vmem:[#allocation5 + $0x28] sm:$0xff]  ;;  %v11763_v35 = vld [vmem:[#allocation5 + $0x50] sm:$0xff] }
 0x416   : > { %v5146_v2 = vsel %vm425_vm1, %v4636_v14, -inf  ;;  %v5139_v0 = vmax.f32 %v5137_v6, %v5138_v31  ;;  %v3828_v55 = vadd.f32 %v3721_v62, %v3601_v50  ;;  %v5141_v22 = vsel %vm425_vm1, %v4678_v18, -inf  ;;  %v15293_v30 = vld [vmem:[#allocation30_spill] sm:$0xff]  ;;  %v2993_v56 = vld [vmem:[#allocation3 + $0x368] sm:$0x1] }
 0x417   : > { %v5144_v20 = vsel %vm425_vm1, %v4685_v46, -inf  ;;  %v5147_v13 = vsel %vm425_vm1, %v4692_v54, -inf  ;;  %v3315_v43 = vrot.slane %v11535_v4, 7  ;;  %v5142_v9 = vmax.f32 %v5140_v63, %v5141_v22  ;;  %v11778_v33 = vpop.permute.xlu2 %2648  ;;  %v3254_v47 = vld [vmem:[#allocation3 + $0x380] sm:$0x7f]  ;;  %v2647_v63 = vpop.permute.xlu1 %2646 }
 0x418   : > { %v5145_v44 = vmax.f32 %v5143_v5, %v5144_v20  ;;  %v5148_v61 = vmax.f32 %v5146_v2, %v5147_v13  ;;  %vm15290_vm4 = vcmask 1044484   ;;  %v3864_v14 = vadd.f32 %v11758_v21, %v3828_v55 }
 0x419   : > { %v5323_v8 = vsel %vm15290_vm4, %v5139_v0, %v11676_v36  ;;  %v2061_v42 = vadd.s32 184, %v9408_v41  ;;  %vm15291_vm9 = vcmask 1045509   ;;  %vm15292_vm15 = vcmask 1046534  }
 0x41a   : > { %v5324_v29 = vsel %vm15291_vm9, %v5142_v9, %v5323_v8  ;;  %3539 = vrot.lane.b32.xlu1 %v11484_v40, %s8451_s0  ;;  %v2324_v25 = vsel %vm11738_vm2, %v15293_v30, 0.0  ;;  %v3896_v62 = vmax.f32 %v3864_v14, 0.0  ;;  %v3316_v17 = vsel %vm2200_vm13, %v3313_v28, %v3315_v43  ;;  %v11791_v13 = vpop.permute.xlu0 %2414  ;;  %v8353_v9 = vld [vmem:[#allocation3 + $0x278] sm:$0xff] }
 0x41b   : > { %v5325_v36 = vsel %vm15292_vm15, %v5145_v44, %v5324_v29  ;;  %vm15294_vm14 = vcmask 1047559   ;;  %v2486_v6 = vadd.f32 %v11635_v27, %v2324_v25  ;;  %v5794_v50 = vrot.slane %v11761_v16, 7  ;;  %v11796_v29 = vld [vmem:[#allocation3 + $0x2b0] sm:$0xff]  ;;  %v11806_v25 = vld [vmem:[#allocation3 + $0x2c8] sm:$0xff] }
 0x41c   : > { %v5326_v58 = vsel %vm15294_vm14, %v5148_v61, %v5325_v36  ;;  %3379 = vrot.lane.b32.xlu2 %v3316_v17, %s8450_s30  ;;  %v15033_v18 = vrot.slane %v11763_v35, 7  ;;  %v4000_v46 = vrot.slane %v3896_v62, 2  ;;  %v4001_v54 = vrot.slane %v3896_v62, 4 }
 0x41d   : > { %5361 = vst.msk [vmem:[#allocation4 + $0x30] sm:$0xff] %vm425_vm1, %v5326_v58  ;;  %v4002_v28 = vrot.slane %v3896_v62, 6  ;;  %v4693_v31 = vsel %vm4132_vm8, %v3896_v62, -inf  ;;  %3541 = vrot.lane.b32.xlu0 %v11535_v4, %s8451_s0  ;;  %v2093_v5 = vand.u32 15, %v2061_v42  ;;  %v2748_v2 = vadd.f32 %v2647_v63, %v2486_v6 }
 0x41e   : > { %v3090_v27 = vrot.slane %v2993_v56, 1  ;;  %v3321_v0 = vrot.slane %v3254_v47, 7  ;;  %v4694_v55 = vrot.slane %v4693_v31, 4  ;;  %v4700_v22 = vsel %vm4132_vm8, %v4000_v46, -inf }
 0x41f   : > { %v4707_v20 = vsel %vm4132_vm8, %v4001_v54, -inf  ;;  %v2982_v44 = vadd.f32 %v8353_v9, %v11548_v34  ;;  %v4701_v61 = vrot.slane %v4700_v22, 4  ;;  %v2890_v14 = vsel %vm11738_vm2, %v2821_v60, 0.0  ;;  %v11828_v56 = vpop.permute.xlu2 %2420 }
 0x420   : > { %v4708_v8 = vrot.slane %v4707_v20, 4  ;;  %v4714_v42 = vsel %vm4132_vm8, %v4002_v28, -inf  ;;  %v11799_v36 = vadd.f32 %v2890_v14, %v2748_v2  ;;  %v3087_v30 = vsel %vm2528_vm12, %v3084_v52, %v3086_v23  ;;  %v5674_v28 = vpop.f32.mrf.mxu0 }
 0x421   : > { %v11813_v34 = vsel %vm2200_vm13, %v5794_v50, %v15033_v18  ;;  %vm11815_vm7 = vcmp.le.s32.totalorder %v2093_v5, 14  ;;  %v2065_v62 = vadd.s32 216, %v9408_v41  ;;  %v3091_v40 = vsel %vm2528_vm12, %v3088_v12, %v3090_v27  ;;  %v3135_v54 = vpop.permute.xlu1 %3134  ;;  %5723 = vst.msk [vmem:[#allocation5 + $0xc0] sm:$0xff] %vm5702_vm10, %v5674_v28 }
 0x422   : > { %3150 = vrot.lane.b32.xlu1 %v3087_v30, %s8449_s29  ;;  %v3322_v52 = vsel %vm2200_vm13, %v3319_v10, %v3321_v0  ;;  %v3242_v23 = vadd.f32 %v11742_v3, %v2982_v44  ;;  %v4695_v17 = vmax.f32 %v4693_v31, %v4694_v55  ;;  %v3722_v47 = vrot.slane %v11796_v29, 1  ;;  %v15297_v10 = vld [vmem:[#allocation29_spill] sm:$0xff] }
 0x423   : > { %v2068_v58 = vadd.s32 240, %v9408_v41  ;;  %v4702_v6 = vmax.f32 %v4700_v22, %v4701_v61  ;;  %v4709_v63 = vmax.f32 %v4707_v20, %v4708_v8  ;;  %v4715_v46 = vrot.slane %v4714_v42, 4  ;;  %v3530_v22 = vpop.permute.xlu0 %3529  ;;  %v11849_v53 = vpop.f32.mrf.mxu3 }
 0x424   : > { %3154 = vrot.lane.b32.xlu2 %v3091_v40, %s8449_s29  ;;  %v3724_v12 = vrot.slane %v11806_v25, 1  ;;  %v5371_v5 = vld [vmem:[#allocation4 + $0x30] sm:$0xff]  ;;  %v2483_v3 = vadd.f32 %v11428_v15, %v15297_v10  ;;  %v3441_v31 = vsel %vm11084_vm0, %v11649_v48, 0.0  ;;  %v2097_v2 = vand.u32 15, %v2065_v62  ;;  %5719 = vst [vmem:[#allocation5 + $0xa0] sm:$0xff] %v11849_v53  ;;  %s8396_s29 = scalar_lea.hbm %s14917_s11, 2 }
 0x425   : > { %3385 = vrot.lane.b32.xlu0 %v3322_v52, %s8450_s30  ;;  %8202 = vmatmul.msk.f32.gmra.mxu3 %vm425_vm1, %v5371_v5  ;;  %v2713_v27 = vsel %vm11815_vm7, %v11511_v11, 0.0  ;;  %v4696_v0 = vrot.slane %v4695_v17, 2  ;;  %v3473_v55 = vadd.f32 %v3441_v31, %v3242_v23  ;;  %v2100_v20 = vand.u32 15, %v2068_v58  ;;  %p8398_p2 = scmp.lt.s32.totalorder %s8396_s29, %s8392_s15 }
 0x426   : > { %8250 = vmatmul.msk.f32.gmra.mxu0 %vm425_vm1, %v5371_v5  ;;  %v4703_v9 = vrot.slane %v4702_v6, 2  ;;  %v4710_v44 = vrot.slane %v4709_v63, 2  ;;  %v4716_v61 = vmax.f32 %v4714_v42, %v4715_v46  ;;  %v3725_v15 = vsel %vm2528_vm12, %v3722_v47, %v3724_v12 }
 0x427   : > { %v3603_v48 = vadd.f32 %v3530_v22, %v3473_v55  ;;  %v2745_v8 = vadd.f32 %v2713_v27, %v2483_v3  ;;  %vm11852_vm0 = vcmp.le.s32.totalorder %v2097_v2, 14  ;;  %v2063_v11 = vadd.s32 200, %v9408_v41  ;;  %v15304_v3 = vld [vmem:[#allocation32_spill] sm:$0xff]  ;;  %v1887_v55 = vpop.f32.mrf.mxu2  ;;  %p8399_p3 = por %p8398_p2, %p8397_p1 }
 0x428   : > { %v4697_v29 = vmax.f32 %v4695_v17, %v4696_v0  ;;  %v3318_v30 = vsel %vm2200_vm13, %v3315_v43, %v3317_v39  ;;  %vm11864_vm4 = vcmp.ge.s32.totalorder %v2100_v20, 1  ;;  %v4704_v23 = vmax.f32 %v4702_v6, %v4703_v9  ;;  %v8354_v17 = vld [vmem:[#allocation3 + $0x260] sm:$0xff]  ;;  %v15303_v6 = vld [vmem:[#allocation31_spill] sm:$0xff]  ;;  %2009 = vst.msk [vmem:[#allocation3 + $0x2e0] sm:$0xff] %vm425_vm1, %v1887_v55 }
 0x429   : > { %v3830_v42 = vadd.f32 %v3725_v15, %v3603_v48  ;;  %v11869_v52 = vadd.f32 %v11570_v45, %v2745_v8  ;;  %v4717_v58 = vrot.slane %v4716_v61, 2  ;;  %v2419_v46 = vpop.permute.xlu1 %2418  ;;  %v2981_v28 = vadd.f32 %v8354_v17, %v11600_v59  ;;  %v15302_v43 = vld [vmem:[#allocation13_spill] sm:$0xff]  ;;  %p8400_p4 = pnand %p8399_p3, %p8395_p0 }
 0x42a   : > { %3545 = vrot.lane.b32.xlu1 %v11628_v24, %s8451_s0  ;;  %v2823_v62 = vpop.permute.xlu2 %2822  ;;  %v4711_v24 = vmax.f32 %v4709_v63, %v4710_v44  ;;  %v3209_v4 = vsel %vm11377_vm3, %v3135_v54, 0.0  ;;  %v2487_v5 = vadd.f32 %v2419_v46, %v15302_v43  ;;  %v2717_v45 = vsel %vm11852_vm0, %v11778_v33, 0.0 }
 0x42b   : > { %v3866_v39 = vadd.f32 %v11758_v21, %v3830_v42  ;;  %v2485_v63 = vadd.f32 %v11791_v13, %v15303_v6  ;;  %v2095_v10 = vand.u32 15, %v2063_v11  ;;  %v2328_v59 = vsel %vm11864_vm4, %v15304_v3, 0.0  ;;  %v3366_v2 = vpop.permute.xlu0 %3365 }
 0x42c   : > { %3381 = vrot.lane.b32.xlu2 %v3318_v30, %s8450_s30  ;;  %v4698_v54 = vrot.slane %v4697_v29, 1  ;;  %v2749_v27 = vadd.f32 %v2717_v45, %v2487_v5  ;;  %v3723_v0 = vsel %vm2528_vm12, %v3720_v38, %v3722_v47  ;;  %v4705_v22 = vrot.slane %v4704_v23, 1 }
 0x42d   : > { %5836 = vrot.lane.b32.xlu0 %v11761_v16, %s8450_s30  ;;  %v3898_v31 = vmax.f32 %v3866_v39, 0.0  ;;  %v4712_v20 = vrot.slane %v4711_v24, 1  ;;  %v4718_v33 = vmax.f32 %v4716_v61, %v4717_v58  ;;  %v3241_v9 = vadd.f32 %v3209_v4, %v2981_v28 }
 0x42e   : > { %v11892_v11 = vadd.f32 %v2823_v62, %v2749_v27  ;;  %vm11896_vm9 = vcmp.le.s32.totalorder %v2095_v10, 14  ;;  %v3797_v38 = vsel %vm11377_vm3, %v3723_v0, 0.0  ;;  %v4699_v4 = vmax.f32 %v4697_v29, %v4698_v54 }
 0x42f   : > { %v4006_v13 = vrot.slane %v3898_v31, 2  ;;  %v4007_v44 = vrot.slane %v3898_v31, 4  ;;  %v4008_v15 = vrot.slane %v3898_v31, 6  ;;  %v4749_v48 = vsel %vm4132_vm8, %v3898_v31, -inf }
 0x430   : > { %v4750_v8 = vrot.slane %v4749_v48, 4  ;;  %v3472_v30 = vadd.f32 %v3366_v2, %v3241_v9  ;;  %v4719_v39 = vrot.slane %v4718_v33, 1  ;;  %v4706_v3 = vmax.f32 %v4704_v23, %v4705_v22 }
 0x431   : > { %v4756_v47 = vsel %vm4132_vm8, %v4006_v13, -inf  ;;  %v4763_v61 = vsel %vm4132_vm8, %v4007_v44, -inf  ;;  %v4770_v42 = vsel %vm4132_vm8, %v4008_v15, -inf  ;;  %v4713_v31 = vmax.f32 %v4711_v24, %v4712_v20 }
 0x432   : > { %3543 = vrot.lane.b32.xlu1 %v11593_v49, %s8451_s0  ;;  %v3528_v58 = vpop.permute.xlu2 %3527  ;;  %v4751_v62 = vmax.f32 %v4749_v48, %v4750_v8  ;;  %v4757_v46 = vrot.slane %v4756_v47, 4  ;;  %v4764_v17 = vrot.slane %v4763_v61, 4  ;;  %v4771_v28 = vrot.slane %v4770_v42, 4  ;;  %v2645_v49 = vpop.permute.xlu1 %2644 }
 0x433   : > { %v2715_v26 = vsel %vm11896_vm9, %v2645_v49, 0.0  ;;  %v3602_v43 = vadd.f32 %v3528_v58, %v3472_v30  ;;  %v2425_v0 = vpop.permute.xlu0 %2424  ;;  %v3211_v9 = vsel %vm11815_vm7, %v11692_v37, 0.0  ;;  %v4720_v13 = vmax.f32 %v4718_v33, %v4719_v39 }
 0x434   : > { %3547 = vrot.lane.b32.xlu2 %v11665_v51, %s8451_s0  ;;  %v4752_v5 = vrot.slane %v4751_v62, 2  ;;  %v4758_v45 = vmax.f32 %v4756_v47, %v4757_v46  ;;  %v4765_v6 = vmax.f32 %v4763_v61, %v4764_v17  ;;  %v4772_v10 = vmax.f32 %v4770_v42, %v4771_v28  ;;  %v15307_v61 = vld [vmem:[#allocation28_spill] sm:$0xff] }
 0x435   : > { %5842 = vrot.lane.b32.xlu0 %v11849_v53, %s8450_s30  ;;  %v11911_v2 = vadd.f32 %v2715_v26, %v2485_v63  ;;  %v3829_v27 = vadd.f32 %v3797_v38, %v3602_v43  ;;  %v11917_v44 = vadd.f32 %v2425_v0, %v2328_v59  ;;  %v5149_v22 = vsel %vm425_vm1, %v4699_v4, -inf  ;;  %v11926_v42 = vld [vmem:[#allocation3 + $0x2e0] sm:$0xff] }
 0x436   : > { %v4753_v51 = vmax.f32 %v4751_v62, %v4752_v5  ;;  %v4759_v29 = vrot.slane %v4758_v45, 2  ;;  %v4766_v54 = vrot.slane %v4765_v6, 2  ;;  %v4773_v55 = vrot.slane %v4772_v10, 2 }
 0x437   : > { %v3865_v53 = vadd.f32 %v11758_v21, %v3829_v27  ;;  %v5152_v20 = vsel %vm425_vm1, %v4706_v3, -inf  ;;  %v5155_v48 = vsel %vm425_vm1, %v4713_v31, -inf  ;;  %v5158_v30 = vsel %vm425_vm1, %v4720_v13, -inf }
 0x438   : > { %v4754_v15 = vrot.slane %v4753_v51, 1  ;;  %v4760_v23 = vmax.f32 %v4758_v45, %v4759_v29  ;;  %v4767_v24 = vmax.f32 %v4765_v6, %v4766_v54  ;;  %v4774_v63 = vmax.f32 %v4772_v10, %v4773_v55  ;;  %v8355_v55 = vld [vmem:[#allocation3 + $0x290] sm:$0xff] }
 0x439   : > { %v3897_v8 = vmax.f32 %v3865_v53, 0.0  ;;  %v3726_v6 = vrot.slane %v11926_v42, 1  ;;  %v2983_v13 = vadd.f32 %v8355_v55, %v11869_v52  ;;  %v2066_v53 = vadd.s32 224, %v9408_v41 }
 0x43a   : > { %5838 = vrot.lane.b32.xlu1 %v11763_v35, %s8450_s30  ;;  %v4755_v37 = vmax.f32 %v4753_v51, %v4754_v15  ;;  %v4761_v33 = vrot.slane %v4760_v23, 1  ;;  %v4768_v38 = vrot.slane %v4767_v24, 1  ;;  %v4775_v47 = vrot.slane %v4774_v63, 1  ;;  %v3370_v59 = vpop.permute.xlu1 %3369  ;;  %v8356_v15 = vld [vmem:[#allocation3 + $0x2a8] sm:$0xff] }
 0x43b   : > { %v4003_v58 = vrot.slane %v3897_v8, 2  ;;  %v4004_v62 = vrot.slane %v3897_v8, 4  ;;  %v4721_v46 = vsel %vm4132_vm8, %v3897_v8, -inf  ;;  %v4005_v43 = vrot.slane %v3897_v8, 6 }
 0x43c   : > { %5840 = vrot.lane.b32.xlu2 %v15307_v61, %s8450_s30  ;;  %v4762_v17 = vmax.f32 %v4760_v23, %v4761_v33  ;;  %v4769_v28 = vmax.f32 %v4767_v24, %v4768_v38  ;;  %v4776_v49 = vmax.f32 %v4774_v63, %v4775_v47  ;;  %v5150_v4 = vsel %vm425_vm1, %v4755_v37, -inf  ;;  %v11931_v39 = vpop.permute.xlu2 %3375  ;;  %v1890_v47 = vpop.f32.mrf.mxu2 }
 0x43d   : > { %v5151_v26 = vmax.f32 %v5149_v22, %v5150_v4  ;;  %v4728_v5 = vsel %vm4132_vm8, %v4003_v58, -inf  ;;  %v4735_v27 = vsel %vm4132_vm8, %v4004_v62, -inf  ;;  %v4722_v54 = vrot.slane %v4721_v46, 4  ;;  %2012 = vst.msk [vmem:[#allocation3 + $0x2f8] sm:$0xff] %vm425_vm1, %v1890_v47 }
 0x43e   : > { %v3141_v45 = vpop.permute.xlu0 %3140  ;;  %v5153_v10 = vsel %vm425_vm1, %v4762_v17, -inf  ;;  %v5156_v3 = vsel %vm425_vm1, %v4769_v28, -inf  ;;  %v5159_v31 = vsel %vm425_vm1, %v4776_v49, -inf  ;;  %v2984_v23 = vadd.f32 %v8356_v15, %v11697_v57 }
 0x43f   : > { %v5154_v0 = vmax.f32 %v5152_v20, %v5153_v10  ;;  %v5157_v51 = vmax.f32 %v5155_v48, %v5156_v3  ;;  %v5160_v29 = vmax.f32 %v5158_v30, %v5159_v31  ;;  %v4729_v63 = vrot.slane %v4728_v5, 4  ;;  %v15311_v31 = vld [vmem:[#allocation33_spill] sm:$0xff] }
 0x440   : > { %v4736_v22 = vrot.slane %v4735_v27, 4  ;;  %v4742_v8 = vsel %vm4132_vm8, %v4005_v43, -inf  ;;  %v3243_v37 = vadd.f32 %v3211_v9, %v2983_v13  ;;  %v11945_v48 = vadd.f32 %v3141_v45, %v2984_v23 }
 0x441   : > { %v5327_v24 = vsel %vm1295_vm5, %v5154_v0, %v5151_v26  ;;  %v3727_v52 = vsel %vm2528_vm12, %v3724_v12, %v3726_v6  ;;  %v4723_v38 = vmax.f32 %v4721_v46, %v4722_v54  ;;  %v4743_v61 = vrot.slane %v4742_v8, 4 }
 0x442   : > { %v5328_v20 = vsel %vm1297_vm6, %v5157_v51, %v5327_v24  ;;  %v2819_v33 = vpop.permute.xlu1 %2818  ;;  %v3474_v30 = vadd.f32 %v3370_v59, %v3243_v37  ;;  %vm15308_vm3 = vcmask 1043459   ;;  %v2098_v62 = vand.u32 15, %v2066_v53 }
 0x443   : > { %v11953_v57 = vadd.f32 %v2819_v33, %v11911_v2  ;;  %v11956_v9 = vsel %vm15308_vm3, %v5160_v29, %v5328_v20  ;;  %v4730_v17 = vmax.f32 %v4728_v5, %v4729_v63  ;;  %v4737_v28 = vmax.f32 %v4735_v27, %v4736_v22 }
 0x444   : > { %v11958_v58 = vpop.permute.xlu2 %2824  ;;  %v3799_v25 = vsel %vm11815_vm7, %v3727_v52, 0.0  ;;  %v4724_v2 = vrot.slane %v4723_v38, 2  ;;  %v4744_v49 = vmax.f32 %v4742_v8, %v4743_v61  ;;  %vm11963_vm15 = vcmp.ge.s32.totalorder %v2098_v62, 1  ;;  %v1893_v3 = vpop.f32.mrf.mxu2  ;;  %v11980_v37 = vld [vmem:[#allocation3 + $0x2f8] sm:$0xff] }
 0x445   : > { %v4731_v26 = vrot.slane %v4730_v17, 2  ;;  %v4738_v43 = vrot.slane %v4737_v28, 2  ;;  %v2326_v60 = vsel %vm11963_vm15, %v15311_v31, 0.0  ;;  %2015 = vst.msk [vmem:[#allocation3 + $0x310] sm:$0xff] %vm425_vm1, %v1893_v3  ;;  %vm15313_vm14 = vcmask 1045509  }
 0x446   : > { %v3532_v12 = vpop.permute.xlu0 %3531  ;;  %v4725_v5 = vmax.f32 %v4723_v38, %v4724_v2  ;;  %v4745_v27 = vrot.slane %v4744_v49, 2  ;;  %v2488_v29 = vadd.f32 %v11828_v56, %v2326_v60  ;;  %vm15314_vm7 = vcmask 1046534  }
 0x447   : > { %v3604_v46 = vadd.f32 %v3532_v12, %v3474_v30  ;;  %v4732_v54 = vmax.f32 %v4730_v17, %v4731_v26  ;;  %v4739_v55 = vmax.f32 %v4737_v28, %v4738_v43  ;;  %vm15315_vm3 = vcmask 1047559  }
 0x448   : > { %v4726_v63 = vrot.slane %v4725_v5, 1  ;;  %v4746_v20 = vmax.f32 %v4744_v49, %v4745_v27 }
 0x449   : > { %v3831_v4 = vadd.f32 %v3799_v25, %v3604_v46  ;;  %v4733_v62 = vrot.slane %v4732_v54, 1  ;;  %v4740_v17 = vrot.slane %v4739_v55, 1  ;;  %v3728_v25 = vrot.slane %v11980_v37, 1 }
 0x44a   : > { %v11968_v10 = vpop.permute.xlu1 %3144  ;;  %v4727_v26 = vmax.f32 %v4725_v5, %v4726_v63  ;;  %v4747_v43 = vrot.slane %v4746_v20, 1 }
 0x44b   : > { %v3867_v45 = vadd.f32 %v11758_v21, %v3831_v4  ;;  %v3729_v5 = vsel %vm2528_vm12, %v3726_v6, %v3728_v25 }
 0x44c   : > { %v11973_v51 = vpop.permute.xlu2 %3146  ;;  %v1896_v49 = vpop.f32.mrf.mxu2 }
 0x44d   : > { %v3899_v0 = vmax.f32 %v3867_v45, 0.0  ;;  %2018 = vst.msk [vmem:[#allocation3 + $0x328] sm:$0xff] %vm425_vm1, %v1896_v49 }
 0x44f   : > { %v2651_v13 = vpop.permute.xlu0 %2650  ;;  %v4009_v53 = vrot.slane %v3899_v0, 2  ;;  %v4010_v15 = vrot.slane %v3899_v0, 4  ;;  %v4011_v23 = vrot.slane %v3899_v0, 6  ;;  %v4777_v24 = vsel %vm4132_vm8, %v3899_v0, -inf }
 0x450   : > { %v4778_v22 = vrot.slane %v4777_v24, 4  ;;  %v11978_v8 = vadd.f32 %v2651_v13, %v2488_v29  ;;  %v4734_v13 = vmax.f32 %v4732_v54, %v4733_v62 }
 0x451   : > { %v4784_v33 = vsel %vm4132_vm8, %v4009_v53, -inf  ;;  %v4791_v52 = vsel %vm4132_vm8, %v4010_v15, -inf  ;;  %v4798_v56 = vsel %vm4132_vm8, %v4011_v23, -inf  ;;  %v4741_v53 = vmax.f32 %v4739_v55, %v4740_v17 }
 0x452   : > { %v4779_v38 = vmax.f32 %v4777_v24, %v4778_v22  ;;  %v4785_v47 = vrot.slane %v4784_v33, 4  ;;  %v4792_v61 = vrot.slane %v4791_v52, 4  ;;  %v4799_v30 = vrot.slane %v4798_v56, 4  ;;  %v3372_v28 = vpop.permute.xlu1 %3371 }
 0x453   : > { %v3443_v45 = vsel %vm11505_vm11, %v3372_v28, 0.0  ;;  %v4748_v22 = vmax.f32 %v4746_v20, %v4747_v43  ;;  %v5167_v42 = vsel %vm425_vm1, %v4741_v53, -inf  ;;  %vm15312_vm11 = vcmask 1044484  }
 0x454   : > { %v4780_v12 = vrot.slane %v4779_v38, 2  ;;  %v4786_v46 = vmax.f32 %v4784_v33, %v4785_v47  ;;  %v4793_v2 = vmax.f32 %v4791_v52, %v4792_v61  ;;  %v4800_v4 = vmax.f32 %v4798_v56, %v4799_v30  ;;  %v3534_v0 = vpop.permute.xlu2 %3533  ;;  %v8357_v33 = vld [vmem:[#allocation3 + $0x2d8] sm:$0xff] }
 0x455   : > { %v3475_v15 = vadd.f32 %v3443_v45, %v11945_v48  ;;  %v2986_v52 = vadd.f32 %v8357_v33, %v11799_v36  ;;  %v5161_v48 = vsel %vm425_vm1, %v4727_v26, -inf  ;;  %v5164_v61 = vsel %vm425_vm1, %v4734_v13, -inf }
 0x456   : > { %v4781_v3 = vmax.f32 %v4779_v38, %v4780_v12  ;;  %v4787_v31 = vrot.slane %v4786_v46, 2  ;;  %v4794_v60 = vrot.slane %v4793_v2, 2  ;;  %v4801_v27 = vrot.slane %v4800_v4, 2 }
 0x457   : > { %v2829_v29 = vpop.permute.xlu0 %2828  ;;  %v3605_v56 = vadd.f32 %v3534_v0, %v3475_v15  ;;  %v5170_v36 = vsel %vm425_vm1, %v4748_v22, -inf }
 0x458   : > { %v4782_v19 = vrot.slane %v4781_v3, 1  ;;  %v4788_v23 = vmax.f32 %v4786_v46, %v4787_v31  ;;  %v4795_v24 = vmax.f32 %v4793_v2, %v4794_v60  ;;  %v4802_v63 = vmax.f32 %v4800_v4, %v4801_v27  ;;  %v12012_v31 = vld [vmem:[#allocation3 + $0x328] sm:$0xff] }
 0x459   : > { %v3832_v6 = vadd.f32 %v3729_v5, %v3605_v56  ;;  %v2894_v43 = vsel %vm11864_vm4, %v2829_v29, 0.0  ;;  %v3246_v5 = vadd.f32 %v11968_v10, %v2986_v52  ;;  %v2134_v52 = vld [vmem:[#allocation3 + $0x318] sm:$0x7f] }
 0x45a   : > { %v4783_v38 = vmax.f32 %v4781_v3, %v4782_v19  ;;  %v4789_v54 = vrot.slane %v4788_v23, 1  ;;  %v4796_v55 = vrot.slane %v4795_v24, 1  ;;  %v4803_v47 = vrot.slane %v4802_v63, 1  ;;  %v2655_v30 = vpop.permute.xlu1 %2654  ;;  %v12010_v3 = vld [vmem:[#allocation3 + $0x310] sm:$0xff] }
 0x45b   : > { %v3868_v46 = vadd.f32 %v11758_v21, %v3832_v6  ;;  %v2752_v2 = vadd.f32 %v2655_v30, %v11917_v44  ;;  %v3730_v29 = vrot.slane %v12010_v3, 1  ;;  %v3732_v19 = vrot.slane %v12012_v31, 1 }
 0x45c   : > { %v4790_v62 = vmax.f32 %v4788_v23, %v4789_v54  ;;  %v4797_v17 = vmax.f32 %v4795_v24, %v4796_v55  ;;  %v4804_v28 = vmax.f32 %v4802_v63, %v4803_v47  ;;  %v5162_v20 = vsel %vm425_vm1, %v4783_v38, -inf }
 0x45d   : > { %v5163_v12 = vmax.f32 %v5161_v48, %v5162_v20  ;;  %v3900_v13 = vmax.f32 %v3868_v46, 0.0  ;;  %v12016_v53 = vadd.f32 %v2894_v43, %v2752_v2  ;;  %v3733_v30 = vsel %vm2528_vm12, %v3730_v29, %v3732_v19 }
 0x45e   : > { %v5165_v4 = vsel %vm425_vm1, %v4790_v62, -inf  ;;  %v5168_v49 = vsel %vm425_vm1, %v4797_v17, -inf  ;;  %v5171_v26 = vsel %vm425_vm1, %v4804_v28, -inf  ;;  %v12041_v17 = vpop.permute.xlu2 %2656  ;;  %v2264_v20 = vrot.slane %v2134_v52, 7 }
 0x45f   : > { %v12008_v45 = vpop.permute.xlu0 %2422  ;;  %v5166_v60 = vmax.f32 %v5164_v61, %v5165_v4  ;;  %v5169_v27 = vmax.f32 %v5167_v42, %v5168_v49  ;;  %v5172_v0 = vmax.f32 %v5170_v36, %v5171_v26  ;;  %v5330_v44 = vsel %vm15312_vm11, %v5163_v12, %v11956_v9  ;;  %v1899_v61 = vpop.f32.mrf.mxu2 }
 0x460   : > { %v4012_v24 = vrot.slane %v3900_v13, 2  ;;  %v4013_v63 = vrot.slane %v3900_v13, 4  ;;  %v4014_v22 = vrot.slane %v3900_v13, 6  ;;  %v3445_v9 = vsel %vm11738_vm2, %v11931_v39, 0.0  ;;  %2021 = vst.msk [vmem:[#allocation3 + $0x340] sm:$0xff] %vm425_vm1, %v1899_v61 }
 0x461   : > { %v5331_v15 = vsel %vm15313_vm14, %v5166_v60, %v5330_v44  ;;  %v4805_v56 = vsel %vm4132_vm8, %v3900_v13, -inf  ;;  %v5677_v10 = vpop.f32.mrf.mxu0  ;;  %v3477_v42 = vadd.f32 %v3445_v9, %v3246_v5  ;;  %v2265_v60 = vsel %vm2200_vm13, %v11487_v1, %v2264_v20 }
 0x462   : > { %v5332_v23 = vsel %vm15314_vm7, %v5169_v27, %v5331_v15  ;;  %v12028_v38 = vpop.permute.xlu1 %3142  ;;  %v4806_v54 = vrot.slane %v4805_v56, 4  ;;  %v4812_v55 = vsel %vm4132_vm8, %v4012_v24, -inf  ;;  %v4819_v47 = vsel %vm4132_vm8, %v4013_v63, -inf  ;;  %5728 = vst.msk [vmem:[#allocation5 + $0xe8] sm:$0xff] %vm5702_vm10, %v5677_v10 }
 0x463   : > { %v5333_v33 = vsel %vm15315_vm3, %v5172_v0, %v5332_v23  ;;  %v4826_v48 = vsel %vm4132_vm8, %v4014_v22, -inf  ;;  %v4813_v7 = vrot.slane %v4812_v55, 4  ;;  %v4820_v39 = vrot.slane %v4819_v47, 4 }
 0x464   : > { %5362 = vst.msk [vmem:[#allocation4 + $0x38] sm:$0xff] %vm425_vm1, %v5333_v33  ;;  %v4827_v6 = vrot.slane %v4826_v48, 4  ;;  %v4807_v12 = vmax.f32 %v4805_v56, %v4806_v54 }
 0x465   : > { %v4814_v46 = vmax.f32 %v4812_v55, %v4813_v7  ;;  %v4821_v2 = vmax.f32 %v4819_v47, %v4820_v39 }
 0x466   : > { %v4828_v49 = vmax.f32 %v4826_v48, %v4827_v6  ;;  %v4808_v0 = vrot.slane %v4807_v12, 2  ;;  %v12059_v55 = vpop.permute.xlu2 %2826 }
 0x467   : > { %v3538_v62 = vpop.permute.xlu0 %3537  ;;  %v5465_v36 = vpop.f32.mrf.mxu3  ;;  %v4815_v15 = vrot.slane %v4814_v46, 2  ;;  %v4822_v5 = vrot.slane %v4821_v2, 2 }
 0x468   : > { %v3607_v28 = vadd.f32 %v3538_v62, %v3477_v42  ;;  %5724 = vst [vmem:[#allocation5 + $0xc8] sm:$0xff] %v5465_v36  ;;  %5844 = vrot.lane.b32.xlu1 %v5465_v36, %s8450_s30  ;;  %v1902_v13 = vpop.f32.mrf.mxu2  ;;  %v4829_v24 = vrot.slane %v4828_v49, 2  ;;  %v4809_v22 = vmax.f32 %v4807_v12, %v4808_v0 }
 0x469   : > { %2024 = vst.msk [vmem:[#allocation3 + $0x358] sm:$0xff] %vm425_vm1, %v1902_v13  ;;  %v4816_v10 = vmax.f32 %v4814_v46, %v4815_v15  ;;  %v4823_v52 = vmax.f32 %v4821_v2, %v4822_v5 }
 0x46a   : > { %v3834_v4 = vadd.f32 %v3733_v30, %v3607_v28  ;;  %v2427_v43 = vpop.permute.xlu1 %2426  ;;  %v4830_v47 = vmax.f32 %v4828_v49, %v4829_v24  ;;  %v4810_v28 = vrot.slane %v4809_v22, 1  ;;  %v3213_v24 = vsel %vm11896_vm9, %v12028_v38, 0.0 }
 0x46b   : > { %v12047_v27 = vld [vmem:[#allocation4 + $0x38] sm:$0xff]  ;;  %v12049_v44 = vadd.f32 %v2427_v43, %v2265_v60  ;;  %v4824_v49 = vrot.slane %v4823_v52, 1 }
 0x46c   : > { %v3870_v26 = vadd.f32 %v11758_v21, %v3834_v4  ;;  %8203 = vmatmul.msk.f32.gmra.mxu3 %vm425_vm1, %v12047_v27  ;;  %8251 = vmatmul.msk.f32.gmra.mxu0 %vm425_vm1, %v12047_v27  ;;  %v4817_v4 = vrot.slane %v4816_v10, 1  ;;  %v4811_v5 = vmax.f32 %v4809_v22, %v4810_v28 }
 0x46e   : > { %v3902_v23 = vmax.f32 %v3870_v26, 0.0  ;;  %v4831_v26 = vrot.slane %v4830_v47, 1  ;;  %v12074_v28 = vpop.permute.xlu2 %3152 }
 0x46f   : > { %v12056_v63 = vpop.permute.xlu0 %3373 }
 0x470   : > { %v4018_v1 = vrot.slane %v3902_v23, 2  ;;  %v4019_v9 = vrot.slane %v3902_v23, 4  ;;  %v4020_v33 = vrot.slane %v3902_v23, 6  ;;  %v4861_v56 = vsel %vm4132_vm8, %v3902_v23, -inf  ;;  %v1905_v20 = vpop.f32.mrf.mxu2 }
 0x471   : > { %v4862_v54 = vrot.slane %v4861_v56, 4  ;;  %2027 = vst.msk [vmem:[#allocation3 + $0x370] sm:$0xff] %vm425_vm1, %v1905_v20  ;;  %v2069_v23 = vadd.s32 248, %v9408_v41 }
 0x472   : > { %v4868_v48 = vsel %vm4132_vm8, %v4018_v1, -inf  ;;  %v4875_v61 = vsel %vm4132_vm8, %v4019_v9, -inf  ;;  %v4882_v7 = vsel %vm4132_vm8, %v4020_v33, -inf  ;;  %v12064_v62 = vpop.permute.xlu1 %2652 }
 0x473   : > { %v4863_v39 = vmax.f32 %v4861_v56, %v4862_v54  ;;  %v4869_v42 = vrot.slane %v4868_v48, 4  ;;  %v4876_v6 = vrot.slane %v4875_v61, 4  ;;  %v4883_v30 = vrot.slane %v4882_v7, 4  ;;  %v8358_v54 = vld [vmem:[#allocation3 + $0x2c0] sm:$0xff] }
 0x474   : > { %v2101_v38 = vand.u32 15, %v2069_v23 }
 0x475   : > { %v4864_v36 = vrot.slane %v4863_v39, 2  ;;  %v4870_v12 = vmax.f32 %v4868_v48, %v4869_v42  ;;  %v4877_v46 = vmax.f32 %v4875_v61, %v4876_v6  ;;  %v4884_v2 = vmax.f32 %v4882_v7, %v4883_v30 }
 0x476   : > { %v2985_v48 = vadd.f32 %v8358_v54, %v11953_v57  ;;  %v4818_v61 = vmax.f32 %v4816_v10, %v4817_v4  ;;  %v4825_v7 = vmax.f32 %v4823_v52, %v4824_v49  ;;  %v3731_v57 = vsel %vm2528_vm12, %v3728_v25, %v3730_v29 }
 0x477   : > { %v12067_v43 = vpop.permute.xlu0 %2830  ;;  %v4865_v60 = vmax.f32 %v4863_v39, %v4864_v36  ;;  %v4871_v0 = vrot.slane %v4870_v12, 2  ;;  %v4878_v13 = vrot.slane %v4877_v46, 2  ;;  %v4885_v15 = vrot.slane %v4884_v2, 2 }
 0x478   : > { %v4832_v39 = vmax.f32 %v4830_v47, %v4831_v26  ;;  %v5173_v36 = vsel %vm425_vm1, %v4811_v5, -inf  ;;  %v3245_v18 = vadd.f32 %v3213_v24, %v2985_v48  ;;  %v1908_v10 = vpop.f32.mrf.mxu2  ;;  %v5179_v4 = vsel %vm425_vm1, %v4825_v7, -inf }
 0x479   : > { %v4866_v1 = vrot.slane %v4865_v60, 1  ;;  %v4872_v9 = vmax.f32 %v4870_v12, %v4871_v0  ;;  %v4879_v33 = vmax.f32 %v4877_v46, %v4878_v13  ;;  %v4886_v56 = vmax.f32 %v4884_v2, %v4885_v15  ;;  %2030 = vst.msk [vmem:[#allocation3 + $0x388] sm:$0xff] %vm425_vm1, %v1908_v10  ;;  %v8361_v10 = vld [vmem:[#allocation3 + $0x308] sm:$0xff] }
 0x47a   : > { %v5176_v2 = vsel %vm425_vm1, %v4818_v61, -inf  ;;  %v3476_v26 = vadd.f32 %v12056_v63, %v3245_v18  ;;  %v5182_v37 = vsel %vm425_vm1, %v4832_v39, -inf  ;;  %v3801_v23 = vsel %vm11896_vm9, %v3731_v57, 0.0  ;;  %v3380_v39 = vpop.permute.xlu2 %3379 }
 0x47b   : > { %v4867_v42 = vmax.f32 %v4865_v60, %v4866_v1  ;;  %v4873_v6 = vrot.slane %v4872_v9, 1  ;;  %v4880_v30 = vrot.slane %v4879_v33, 1  ;;  %v4887_v22 = vrot.slane %v4886_v56, 1  ;;  %v3378_v20 = vpop.permute.xlu1 %3377  ;;  %v12097_v1 = vld [vmem:[#allocation3 + $0x340] sm:$0xff] }
 0x47c   : > { %v2892_v18 = vsel %vm11963_vm15, %v11958_v58, 0.0  ;;  %v2987_v48 = vadd.f32 %v8359_v32, %v11892_v11  ;;  %vm12105_vm2 = vcmp.le.s32.totalorder %v2101_v38, 14  ;;  %v2067_v7 = vadd.s32 232, %v9408_v41  ;;  %v8360_v38 = vld [vmem:[#allocation3 + $0x338] sm:$0xff] }
 0x47d   : > { %v4874_v52 = vmax.f32 %v4872_v9, %v4873_v6  ;;  %v4881_v47 = vmax.f32 %v4879_v33, %v4880_v30  ;;  %v4888_v12 = vmax.f32 %v4886_v56, %v4887_v22  ;;  %v5174_v46 = vsel %vm425_vm1, %v4867_v42, -inf  ;;  %v15319_v22 = vld [vmem:[#allocation15_spill] sm:$0xff] }
 0x47e   : > { %v5175_v49 = vmax.f32 %v5173_v36, %v5174_v46  ;;  %v2924_v9 = vadd.f32 %v2892_v18, %v11978_v8  ;;  %v3215_v33 = vsel %vm11852_vm0, %v11973_v51, 0.0  ;;  %v3734_v8 = vrot.slane %v12097_v1, 1 }
 0x47f   : > { %v3536_v3 = vpop.permute.xlu0 %3535  ;;  %v5177_v25 = vsel %vm425_vm1, %v4874_v52, -inf  ;;  %v5180_v29 = vsel %vm425_vm1, %v4881_v47, -inf  ;;  %v5183_v60 = vsel %vm425_vm1, %v4888_v12, -inf  ;;  %vm15318_vm9 = vcmask 1043459  }
 0x480   : > { %v5178_v0 = vmax.f32 %v5176_v2, %v5177_v25  ;;  %v5181_v13 = vmax.f32 %v5179_v4, %v5180_v29  ;;  %v5184_v15 = vmax.f32 %v5182_v37, %v5183_v60  ;;  %v3606_v5 = vadd.f32 %v3536_v3, %v3476_v26  ;;  %v1911_v3 = vpop.f32.mrf.mxu2 }
 0x481   : > { %v3247_v51 = vadd.f32 %v3215_v33, %v2987_v48  ;;  %v12119_v11 = vadd.f32 %v12008_v45, %v15319_v22  ;;  %v2721_v36 = vsel %vm12105_vm2, %v12041_v17, 0.0  ;;  %v2990_v57 = vadd.f32 %v8360_v38, %v12016_v53  ;;  %2033 = vst.msk [vmem:[#allocation3 + $0x3a0] sm:$0xff] %vm425_vm1, %v1911_v3 }
 0x482   : > { %v5334_v63 = vsel %vm1295_vm5, %v5178_v0, %v5175_v49  ;;  %v3833_v24 = vadd.f32 %v3801_v23, %v3606_v5  ;;  %v2988_v52 = vadd.f32 %v8361_v10, %v2924_v9  ;;  %v2099_v4 = vand.u32 15, %v2067_v7  ;;  %v3155_v48 = vpop.permute.xlu2 %3154  ;;  %v8362_v10 = vld [vmem:[#allocation3 + $0x350] sm:$0xff] }
 0x483   : > { %v5335_v56 = vsel %vm1297_vm6, %v5181_v13, %v5334_v63  ;;  %v3478_v49 = vadd.f32 %v3378_v20, %v3247_v51  ;;  %v3735_v45 = vsel %vm2528_vm12, %v3732_v19, %v3734_v8  ;;  %v3447_v31 = vsel %vm11963_vm15, %v3380_v39, 0.0  ;;  %vm15322_vm15 = vmmov %vm15312_vm11 }
 0x484   : > { %v3149_v54 = vpop.permute.xlu1 %3148  ;;  %v3869_v58 = vadd.f32 %v11758_v21, %v3833_v24  ;;  %v12113_v42 = vsel %vm15318_vm9, %v5184_v15, %v5335_v56  ;;  %v12133_v15 = vld [vmem:[#allocation3 + $0x358] sm:$0xff]  ;;  %v2753_v19 = vadd.f32 %v2721_v36, %v12049_v44  ;;  %v3803_v5 = vsel %vm11852_vm0, %v3735_v45, 0.0  ;;  %vm15323_vm11 = vmmov %vm15313_vm14 }
 0x485   : > { %v3248_v25 = vadd.f32 %v3149_v54, %v2988_v52  ;;  %v3736_v54 = vrot.slane %v12133_v15, 1  ;;  %v12143_v14 = vadd.f32 %v12074_v28, %v2990_v57  ;;  %vm12145_vm0 = vcmp.le.s32.totalorder %v2099_v4, 14  ;;  %vm15324_vm14 = vmmov %vm15314_vm7 }
 0x486   : > { %v3901_v6 = vmax.f32 %v3869_v58, 0.0  ;;  %v2927_v9 = vadd.f32 %v12067_v43, %v2753_v19  ;;  %v2719_v3 = vsel %vm12145_vm0, %v12064_v62, 0.0  ;;  %vm15325_vm7 = vmmov %vm15315_vm3 }
 0x487   : > { %v12115_v30 = vpop.permute.xlu0 %3383  ;;  %v3479_v56 = vadd.f32 %v3447_v31, %v3248_v25  ;;  %v3737_v28 = vsel %vm2528_vm12, %v3734_v8, %v3736_v54  ;;  %v12162_v8 = vld [vmem:[#allocation3 + $0x388] sm:$0xff] }
 0x488   : > { %v4015_v47 = vrot.slane %v3901_v6, 2  ;;  %v4016_v12 = vrot.slane %v3901_v6, 4  ;;  %v4017_v46 = vrot.slane %v3901_v6, 6  ;;  %v4833_v2 = vsel %vm4132_vm8, %v3901_v6, -inf }
 0x489   : > { %v4834_v26 = vrot.slane %v4833_v2, 4  ;;  %v2991_v52 = vadd.f32 %v8362_v10, %v2927_v9 }
 0x48a   : > { %v4840_v17 = vsel %vm4132_vm8, %v4015_v47, -inf  ;;  %v4847_v37 = vsel %vm4132_vm8, %v4016_v12, -inf  ;;  %v4854_v53 = vsel %vm4132_vm8, %v4017_v46, -inf  ;;  %v3219_v47 = vsel %vm12105_vm2, %v3155_v48, 0.0 }
 0x48b   : > { %v4835_v29 = vmax.f32 %v4833_v2, %v4834_v26  ;;  %v4841_v60 = vrot.slane %v4840_v17, 4  ;;  %v4848_v0 = vrot.slane %v4847_v37, 4  ;;  %v4855_v13 = vrot.slane %v4854_v53, 4 }
 0x48c   : > { %v3540_v20 = vpop.permute.xlu1 %3539 }
 0x48d   : > { %v3608_v23 = vadd.f32 %v3540_v20, %v3478_v49  ;;  %v4836_v18 = vrot.slane %v4835_v29, 2  ;;  %v4842_v63 = vmax.f32 %v4840_v17, %v4841_v60  ;;  %v4849_v24 = vmax.f32 %v4847_v37, %v4848_v0 }
 0x48e   : > { %v4856_v1 = vmax.f32 %v4854_v53, %v4855_v13  ;;  %v3251_v17 = vadd.f32 %v3219_v47, %v2991_v52  ;;  %v3449_v53 = vsel %vm11864_vm4, %v12115_v30, 0.0  ;;  %v3645_v13 = vld [vmem:[#allocation3 + $0x3a0] sm:$0x1]  ;;  %vm15326_vm4 = vmmov %vm15318_vm9 }
 0x48f   : > { %v3835_v33 = vadd.f32 %v3803_v5, %v3608_v23  ;;  %v3542_v32 = vpop.permute.xlu0 %3541  ;;  %v4837_v59 = vmax.f32 %v4835_v29, %v4836_v18  ;;  %v4843_v58 = vrot.slane %v4842_v63, 2  ;;  %v4850_v7 = vrot.slane %v4849_v24, 2 }
 0x490   : > { %v4857_v44 = vrot.slane %v4856_v1, 2  ;;  %v3609_v43 = vadd.f32 %v3542_v32, %v3479_v56  ;;  %v3740_v56 = vrot.slane %v12162_v8, 1  ;;  %v3742_v32 = vrot.slane %v3645_v13, 1 }
 0x491   : > { %v3871_v51 = vadd.f32 %v11758_v21, %v3835_v33  ;;  %v4838_v6 = vrot.slane %v4837_v59, 1  ;;  %v4844_v22 = vmax.f32 %v4842_v63, %v4843_v58  ;;  %v4851_v36 = vmax.f32 %v4849_v24, %v4850_v7  ;;  %v12170_v24 = vld [vmem:[%s14910_s4] ss:$0 sm:$0xff] }
 0x492   : > { %v4858_v38 = vmax.f32 %v4856_v1, %v4857_v44  ;;  %v3836_v4 = vadd.f32 %v3737_v28, %v3609_v43  ;;  %v3481_v61 = vadd.f32 %v3449_v53, %v12143_v14 }
 0x493   : > { %v3903_v12 = vmax.f32 %v3871_v51, 0.0  ;;  %v4845_v57 = vrot.slane %v4844_v22, 1  ;;  %v4852_v46 = vrot.slane %v4851_v36, 1  ;;  %v4839_v37 = vmax.f32 %v4837_v59, %v4838_v6 }
 0x494   : > { %v4859_v2 = vrot.slane %v4858_v38, 1  ;;  %v3872_v1 = vadd.f32 %v12170_v24, %v3836_v4  ;;  %v12180_v47 = vpop.permute.xlu1 %3150 }
 0x495   : > { %v4021_v21 = vrot.slane %v3903_v12, 2  ;;  %v4022_v49 = vrot.slane %v3903_v12, 4  ;;  %v4023_v26 = vrot.slane %v3903_v12, 6  ;;  %v4889_v45 = vsel %vm4132_vm8, %v3903_v12, -inf }
 0x496   : > { %v4890_v25 = vrot.slane %v4889_v45, 4  ;;  %v4846_v20 = vmax.f32 %v4844_v22, %v4845_v57  ;;  %v4853_v31 = vmax.f32 %v4851_v36, %v4852_v46  ;;  %v4860_v19 = vmax.f32 %v4858_v38, %v4859_v2  ;;  %v12178_v22 = vpop.permute.xlu2 %3381 }
 0x497   : > { %v4896_v29 = vsel %vm4132_vm8, %v4021_v21, -inf  ;;  %v4903_v60 = vsel %vm4132_vm8, %v4022_v49, -inf  ;;  %v4910_v0 = vsel %vm4132_vm8, %v4023_v26, -inf  ;;  %v5185_v9 = vsel %vm425_vm1, %v4839_v37, -inf  ;;  %v3386_v26 = vpop.permute.xlu0 %3385 }
 0x498   : > { %v4897_v5 = vrot.slane %v4896_v29, 4  ;;  %v4891_v23 = vmax.f32 %v4889_v45, %v4890_v25  ;;  %v4904_v18 = vrot.slane %v4903_v60, 4  ;;  %v4911_v63 = vrot.slane %v4910_v0, 4 }
 0x499   : > { %v3904_v7 = vmax.f32 %v3872_v1, 0.0  ;;  %v5188_v44 = vsel %vm425_vm1, %v4846_v20, -inf  ;;  %v5191_v51 = vsel %vm425_vm1, %v4853_v31, -inf  ;;  %v5194_v43 = vsel %vm425_vm1, %v4860_v19, -inf }
 0x49a   : > { %v4898_v33 = vmax.f32 %v4896_v29, %v4897_v5  ;;  %v4892_v48 = vrot.slane %v4891_v23, 2  ;;  %v4905_v59 = vmax.f32 %v4903_v60, %v4904_v18  ;;  %v4912_v58 = vmax.f32 %v4910_v0, %v4911_v63 }
 0x49b   : > { %v4024_v52 = vrot.slane %v3904_v7, 2  ;;  %v4025_v28 = vrot.slane %v3904_v7, 4  ;;  %v4917_v57 = vsel %vm4132_vm8, %v3904_v7, -inf  ;;  %v3743_v46 = vsel %vm2528_vm12, %v3740_v56, %v3742_v32 }
 0x49c   : > { %v4899_v6 = vrot.slane %v4898_v33, 2  ;;  %v4893_v36 = vmax.f32 %v4891_v23, %v4892_v48  ;;  %v4906_v38 = vrot.slane %v4905_v59, 2  ;;  %v4913_v10 = vrot.slane %v4912_v58, 2 }
 0x49d   : > { %v4918_v49 = vrot.slane %v4917_v57, 4  ;;  %v4026_v37 = vrot.slane %v3904_v7, 6  ;;  %v4924_v25 = vsel %vm4132_vm8, %v4024_v52, -inf  ;;  %v4931_v29 = vsel %vm4132_vm8, %v4025_v28, -inf }
 0x49e   : > { %v4900_v12 = vmax.f32 %v4898_v33, %v4899_v6  ;;  %v4894_v2 = vrot.slane %v4893_v36, 1  ;;  %v4907_v4 = vmax.f32 %v4905_v59, %v4906_v38  ;;  %v4914_v21 = vmax.f32 %v4912_v58, %v4913_v10 }
 0x49f   : > { %v4919_v20 = vmax.f32 %v4917_v57, %v4918_v49  ;;  %v4925_v19 = vrot.slane %v4924_v25, 4  ;;  %v4932_v5 = vrot.slane %v4931_v29, 4  ;;  %v3482_v23 = vadd.f32 %v3386_v26, %v3251_v17  ;;  %v3548_v57 = vpop.permute.xlu2 %3547 }
 0x4a0   : > { %v4901_v45 = vrot.slane %v4900_v12, 1  ;;  %v4895_v60 = vmax.f32 %v4893_v36, %v4894_v2  ;;  %v4908_v0 = vrot.slane %v4907_v4, 1  ;;  %v4915_v13 = vrot.slane %v4914_v21, 1 }
 0x4a1   : > { %v4920_v33 = vrot.slane %v4919_v20, 2  ;;  %v4926_v59 = vmax.f32 %v4924_v25, %v4925_v19  ;;  %v4938_v58 = vsel %vm4132_vm8, %v4026_v37, -inf  ;;  %v4933_v38 = vmax.f32 %v4931_v29, %v4932_v5  ;;  %v8364_v19 = vld [vmem:[#allocation3 + $0x320] sm:$0xff] }
 0x4a2   : > { %v4902_v31 = vmax.f32 %v4900_v12, %v4901_v45  ;;  %v4909_v18 = vmax.f32 %v4907_v4, %v4908_v0  ;;  %v4916_v63 = vmax.f32 %v4914_v21, %v4915_v13  ;;  %v5186_v1 = vsel %vm425_vm1, %v4895_v60, -inf  ;;  %v3546_v21 = vpop.permute.xlu1 %3545 }
 0x4a3   : > { %v5187_v32 = vmax.f32 %v5185_v9, %v5186_v1  ;;  %v3807_v12 = vsel %vm12105_vm2, %v3743_v46, 0.0  ;;  %v12197_v9 = vld [vmem:[#allocation3 + $0x370] sm:$0xff]  ;;  %v4921_v2 = vmax.f32 %v4919_v20, %v4920_v33  ;;  %v4939_v4 = vrot.slane %v4938_v58, 4 }
 0x4a4   : > { %v5189_v48 = vsel %vm425_vm1, %v4902_v31, -inf  ;;  %v5192_v6 = vsel %vm425_vm1, %v4909_v18, -inf  ;;  %v5195_v36 = vsel %vm425_vm1, %v4916_v63, -inf  ;;  %v4934_v49 = vrot.slane %v4933_v38, 2 }
 0x4a5   : > { %v5190_v7 = vmax.f32 %v5188_v44, %v5189_v48  ;;  %v5193_v10 = vmax.f32 %v5191_v51, %v5192_v6  ;;  %v5196_v52 = vmax.f32 %v5194_v43, %v5195_v36  ;;  %v5337_v17 = vsel %vm15322_vm15, %v5187_v32, %v12113_v42 }
 0x4a6   : > { %v4927_v44 = vrot.slane %v4926_v59, 2  ;;  %v2751_v51 = vadd.f32 %v2719_v3, %v12119_v11  ;;  %v3612_v43 = vadd.f32 %v3548_v57, %v3482_v23  ;;  %v3738_v26 = vrot.slane %v12197_v9, 1 }
 0x4a7   : > { %v5338_v28 = vsel %vm15323_vm11, %v5190_v7, %v5337_v17  ;;  %v3611_v37 = vadd.f32 %v3546_v21, %v3481_v61  ;;  %v4922_v62 = vrot.slane %v4921_v2, 1  ;;  %v4940_v3 = vmax.f32 %v4938_v58, %v4939_v4 }
 0x4a8   : > { %v5339_v42 = vsel %vm15324_vm14, %v5193_v10, %v5338_v28  ;;  %v3839_v45 = vadd.f32 %v3807_v12, %v3612_v43  ;;  %v4928_v11 = vmax.f32 %v4926_v59, %v4927_v44  ;;  %v3741_v40 = vsel %vm2528_vm12, %v3738_v26, %v3740_v56  ;;  %v12241_v15 = vpop.f32.mrf.mxu3 }
 0x4a9   : > { %v5340_v46 = vsel %vm15325_vm7, %v5196_v52, %v5339_v42  ;;  %v2925_v30 = vadd.f32 %v12059_v55, %v2751_v51  ;;  %v3838_v53 = vadd.f32 %v3741_v40, %v3611_v37  ;;  %v4935_v25 = vmax.f32 %v4933_v38, %v4934_v49  ;;  %5846 = vrot.lane.b32.xlu2 %v12241_v15, %s8450_s30 }
 0x4aa   : > { %5363 = vst.msk [vmem:[#allocation4 + $0x40] sm:$0xff] %vm425_vm1, %v5340_v46  ;;  %v3875_v14 = vadd.f32 %v12170_v24, %v3839_v45  ;;  %v4923_v0 = vmax.f32 %v4921_v2, %v4922_v62  ;;  %v4929_v13 = vrot.slane %v4928_v11, 1  ;;  %v4941_v20 = vrot.slane %v4940_v3, 2  ;;  %v3544_v44 = vpop.permute.xlu1 %3543 }
 0x4ab   : > { %v3874_v60 = vadd.f32 %v12170_v24, %v3838_v53  ;;  %v3217_v31 = vsel %vm12145_vm0, %v12180_v47, 0.0  ;;  %v2989_v8 = vadd.f32 %v8364_v19, %v2925_v30  ;;  %v4936_v23 = vrot.slane %v4935_v25, 1 }
 0x4ac   : > { %v3907_v29 = vmax.f32 %v3875_v14, 0.0  ;;  %v4930_v48 = vmax.f32 %v4928_v11, %v4929_v13  ;;  %v4942_v59 = vmax.f32 %v4940_v3, %v4941_v20  ;;  %v12227_v58 = vsel %vm425_vm1, %v4923_v0, -inf  ;;  %v5680_v3 = vpop.f32.mrf.mxu0 }
 0x4ad   : > { %v3906_v63 = vmax.f32 %v3874_v60, 0.0  ;;  %v3249_v1 = vadd.f32 %v3217_v31, %v2989_v8  ;;  %v4937_v10 = vmax.f32 %v4935_v25, %v4936_v23  ;;  %v3739_v51 = vsel %vm2528_vm12, %v3736_v54, %v3738_v26  ;;  %5733 = vst.msk [vmem:[#allocation5 + $0x110] sm:$0xff] %vm5702_vm10, %v5680_v3 }
 0x4ae   : > { %v4033_v5 = vrot.slane %v3907_v29, 2  ;;  %v4034_v56 = vrot.slane %v3907_v29, 4  ;;  %v5001_v55 = vsel %vm4132_vm8, %v3907_v29, -inf  ;;  %v4035_v18 = vrot.slane %v3907_v29, 6 }
 0x4af   : > { %v5002_v47 = vrot.slane %v5001_v55, 4  ;;  %v4030_v7 = vrot.slane %v3906_v63, 2  ;;  %v4031_v6 = vrot.slane %v3906_v63, 4  ;;  %v4032_v36 = vrot.slane %v3906_v63, 6 }
 0x4b0   : > { %v5008_v33 = vsel %vm4132_vm8, %v4033_v5, -inf  ;;  %v5015_v32 = vsel %vm4132_vm8, %v4034_v56, -inf  ;;  %v4973_v38 = vsel %vm4132_vm8, %v3906_v63, -inf  ;;  %v5022_v12 = vsel %vm4132_vm8, %v4035_v18, -inf }
 0x4b1   : > { %v5009_v52 = vrot.slane %v5008_v33, 4  ;;  %v5016_v17 = vrot.slane %v5015_v32, 4  ;;  %v4974_v9 = vrot.slane %v4973_v38, 4  ;;  %v4980_v28 = vsel %vm4132_vm8, %v4030_v7, -inf  ;;  %v12238_v40 = vld [vmem:[#allocation4 + $0x40] sm:$0xff] }
 0x4b2   : > { %v4987_v57 = vsel %vm4132_vm8, %v4031_v6, -inf  ;;  %v4994_v2 = vsel %vm4132_vm8, %v4032_v36, -inf  ;;  %v4943_v4 = vrot.slane %v4942_v59, 1  ;;  %v5003_v21 = vmax.f32 %v5001_v55, %v5002_v47  ;;  %8204 = vmatmul.msk.f32.gmra.mxu3 %vm425_vm1, %v12238_v40  ;;  %8252 = vmatmul.msk.f32.gmra.mxu0 %vm425_vm1, %v12238_v40 }
 0x4b3   : > { %v3480_v61 = vadd.f32 %v12178_v22, %v3249_v1  ;;  %v4975_v42 = vmax.f32 %v4973_v38, %v4974_v9  ;;  %v4981_v43 = vrot.slane %v4980_v28, 4  ;;  %v4988_v46 = vrot.slane %v4987_v57, 4 }
 0x4b4   : > { %v4995_v49 = vrot.slane %v4994_v2, 4  ;;  %v5010_v45 = vmax.f32 %v5008_v33, %v5009_v52  ;;  %v5017_v37 = vmax.f32 %v5015_v32, %v5016_v17  ;;  %v5023_v62 = vrot.slane %v5022_v12, 4 }
 0x4b5   : > { %v3610_v11 = vadd.f32 %v3544_v44, %v3480_v61  ;;  %v4976_v30 = vrot.slane %v4975_v42, 2  ;;  %v4982_v14 = vmax.f32 %v4980_v28, %v4981_v43  ;;  %v4989_v53 = vmax.f32 %v4987_v57, %v4988_v46 }
 0x4b6   : > { %v4996_v25 = vmax.f32 %v4994_v2, %v4995_v49  ;;  %v4944_v54 = vmax.f32 %v4942_v59, %v4943_v4  ;;  %v5200_v22 = vsel %vm425_vm1, %v4930_v48, -inf  ;;  %v5004_v26 = vrot.slane %v5003_v21, 2 }
 0x4b7   : > { %v3805_v29 = vsel %vm12145_vm0, %v3739_v51, 0.0  ;;  %v4977_v60 = vmax.f32 %v4975_v42, %v4976_v30  ;;  %v4983_v0 = vrot.slane %v4982_v14, 2  ;;  %v4990_v13 = vrot.slane %v4989_v53, 2 }
 0x4b8   : > { %v4997_v20 = vrot.slane %v4996_v25, 2  ;;  %v5011_v31 = vrot.slane %v5010_v45, 2  ;;  %v5018_v19 = vrot.slane %v5017_v37, 2  ;;  %v5024_v8 = vmax.f32 %v5022_v12, %v5023_v62 }
 0x4b9   : > { %v3837_v5 = vadd.f32 %v3805_v29, %v3610_v11  ;;  %v4978_v56 = vrot.slane %v4977_v60, 1  ;;  %v4984_v55 = vmax.f32 %v4982_v14, %v4983_v0  ;;  %v4991_v23 = vmax.f32 %v4989_v53, %v4990_v13 }
 0x4ba   : > { %v4998_v18 = vmax.f32 %v4996_v25, %v4997_v20  ;;  %v5203_v39 = vsel %vm425_vm1, %v4937_v10, -inf  ;;  %v5206_v63 = vsel %vm425_vm1, %v4944_v54, -inf  ;;  %v5005_v1 = vmax.f32 %v5003_v21, %v5004_v26 }
 0x4bb   : > { %v3873_v33 = vadd.f32 %v12170_v24, %v3837_v5  ;;  %v4979_v32 = vmax.f32 %v4977_v60, %v4978_v56  ;;  %v4985_v48 = vrot.slane %v4984_v55, 1  ;;  %v4992_v59 = vrot.slane %v4991_v23, 1 }
 0x4bc   : > { %v4999_v47 = vrot.slane %v4998_v18, 1  ;;  %v5012_v7 = vmax.f32 %v5010_v45, %v5011_v31  ;;  %v5019_v6 = vmax.f32 %v5017_v37, %v5018_v19  ;;  %v5025_v36 = vrot.slane %v5024_v8, 2 }
 0x4bd   : > { %v3905_v38 = vmax.f32 %v3873_v33, 0.0  ;;  %v4986_v52 = vmax.f32 %v4984_v55, %v4985_v48  ;;  %v4993_v17 = vmax.f32 %v4991_v23, %v4992_v59  ;;  %v5198_v9 = vsel %vm425_vm1, %v4979_v32, -inf }
 0x4be   : > { %v5000_v12 = vmax.f32 %v4998_v18, %v4999_v47  ;;  %v5199_v10 = vmax.f32 %v12227_v58, %v5198_v9  ;;  %v5026_v46 = vmax.f32 %v5024_v8, %v5025_v36  ;;  %v5006_v30 = vrot.slane %v5005_v1, 1 }
 0x4bf   : > { %v4027_v28 = vrot.slane %v3905_v38, 2  ;;  %v4028_v57 = vrot.slane %v3905_v38, 4  ;;  %v4029_v2 = vrot.slane %v3905_v38, 6  ;;  %v5201_v24 = vsel %vm425_vm1, %v4986_v52, -inf }
 0x4c0   : > { %v5204_v44 = vsel %vm425_vm1, %v4993_v17, -inf  ;;  %v5207_v4 = vsel %vm425_vm1, %v5000_v12, -inf  ;;  %v4945_v21 = vsel %vm4132_vm8, %v3905_v38, -inf  ;;  %v5202_v51 = vmax.f32 %v5200_v22, %v5201_v24  ;;  %v5383_v24 = vld [vmem:[%s14911_s5 + $0x30] sm:$0xff] }
 0x4c1   : > { %v5205_v61 = vmax.f32 %v5203_v39, %v5204_v44  ;;  %v5208_v42 = vmax.f32 %v5206_v63, %v5207_v4  ;;  %v4946_v43 = vrot.slane %v4945_v21, 4  ;;  %v4952_v49 = vsel %vm4132_vm8, %v4027_v28, -inf }
 0x4c2   : > { %v4959_v58 = vsel %vm4132_vm8, %v4028_v57, -inf  ;;  %v4966_v45 = vsel %vm4132_vm8, %v4029_v2, -inf  ;;  %v5341_v37 = vsel %vm1295_vm5, %v5202_v51, %v5199_v10  ;;  %v4953_v11 = vrot.slane %v4952_v49, 4  ;;  %vm15327_vm5 = vmmov %vm15322_vm15 }
 0x4c3   : > { %v4947_v62 = vmax.f32 %v4945_v21, %v4946_v43  ;;  %v4960_v3 = vrot.slane %v4959_v58, 4  ;;  %v5342_v14 = vsel %vm1297_vm6, %v5205_v61, %v5341_v37  ;;  %v4967_v53 = vrot.slane %v4966_v45, 4  ;;  %vm15328_vm6 = vmmov %vm15323_vm11 }
 0x4c4   : > { %v4954_v54 = vmax.f32 %v4952_v49, %v4953_v11  ;;  %v5343_v26 = vsel %vm15326_vm4, %v5208_v42, %v5342_v14  ;;  %v5013_v29 = vrot.slane %v5012_v7, 1  ;;  %v5020_v60 = vrot.slane %v5019_v6, 1  ;;  %v5378_v42 = vld [vmem:[%s14911_s5 + $0x8] sm:$0xff]  ;;  %vm15329_vm8 = vmmov %vm15324_vm14  ;;  %v12323_v14 = vld [vmem:[#allocation4 + $0x10] sm:$0xff] }
 0x4c5   : > { %v4948_v25 = vrot.slane %v4947_v62, 2  ;;  %v4961_v22 = vmax.f32 %v4959_v58, %v4960_v3  ;;  %v4968_v0 = vmax.f32 %v4966_v45, %v4967_v53  ;;  %v5027_v13 = vrot.slane %v5026_v46, 1  ;;  %v12298_v45 = vld [vmem:[#allocation4 + $0x50] sm:$0xff]  ;;  %v12315_v3 = vld [vmem:[#allocation4] sm:$0xff]  ;;  %v12327_v53 = vld [vmem:[#allocation4 + $0x18] sm:$0xff] }
 0x4c6   : > { %v4955_v31 = vrot.slane %v4954_v54, 2  ;;  %v5007_v5 = vmax.f32 %v5005_v1, %v5006_v30  ;;  %v5014_v18 = vmax.f32 %v5012_v7, %v5013_v29  ;;  %v5021_v39 = vmax.f32 %v5019_v6, %v5020_v60  ;;  %v5393_v1 = vld [vmem:[%s14911_s5 + $0x80] sm:$0xff]  ;;  %v5388_v7 = vld [vmem:[%s14911_s5 + $0x58] sm:$0xff]  ;;  %v12319_v30 = vld [vmem:[#allocation4 + $0x8] sm:$0xff] }
 0x4c7   : > { %v4949_v20 = vmax.f32 %v4947_v62, %v4948_v25  ;;  %v4962_v19 = vrot.slane %v4961_v22, 2  ;;  %v4969_v8 = vrot.slane %v4968_v0, 2  ;;  %v5028_v33 = vmax.f32 %v5026_v46, %v5027_v13  ;;  %5498 = vmatpush.msrb.mxu3 %v5393_v1  ;;  %v12305_v62 = vld [vmem:[#allocation4 + $0x58] sm:$0xff]  ;;  %v12331_v25 = vld [vmem:[#allocation4 + $0x20] sm:$0xff] }
 0x4c8   : > { %v4956_v55 = vmax.f32 %v4954_v54, %v4955_v31  ;;  %v5210_v17 = vsel %vm425_vm1, %v5007_v5, -inf  ;;  %v5213_v9 = vsel %vm425_vm1, %v5014_v18, -inf  ;;  %v5216_v57 = vsel %vm425_vm1, %v5021_v39, -inf  ;;  %v12335_v54 = vld [vmem:[#allocation4 + $0x28] sm:$0xff]  ;;  %v5389_v29 = vld [vmem:[%s14911_s5 + $0x60] sm:$0xff]  ;;  %v5384_v60 = vld [vmem:[%s14911_s5 + $0x38] sm:$0xff] }
 0x4c9   : > { %v4950_v56 = vrot.slane %v4949_v20, 1  ;;  %v4963_v23 = vmax.f32 %v4961_v22, %v4962_v19  ;;  %v4970_v63 = vmax.f32 %v4968_v0, %v4969_v8  ;;  %v5219_v2 = vsel %vm425_vm1, %v5028_v33, -inf  ;;  %5499 = vmatpush.msrb.mxu3 %v5388_v7  ;;  %v12339_v22 = vld [vmem:[#allocation4 + $0x30] sm:$0xff] }
 0x4ca   : > { %v4957_v48 = vrot.slane %v4956_v55, 1  ;;  %v5379_v0 = vld [vmem:[%s14911_s5 + $0x10] sm:$0xff] }
 0x4cb   : > { %v4951_v32 = vmax.f32 %v4949_v20, %v4950_v56  ;;  %v4964_v59 = vrot.slane %v4963_v23, 1  ;;  %v4971_v47 = vrot.slane %v4970_v63, 1  ;;  %5500 = vmatpush.msrb.mxu3 %v5383_v24 }
 0x4cc   : > { %v4958_v36 = vmax.f32 %v4956_v55, %v4957_v48  ;;  %v5395_v48 = vld [vmem:[%s14911_s5 + $0x90] sm:$0xff] }
 0x4cd   : > { %v4965_v38 = vmax.f32 %v4963_v23, %v4964_v59  ;;  %v5209_v52 = vsel %vm425_vm1, %v4951_v32, -inf  ;;  %v4972_v6 = vmax.f32 %v4970_v63, %v4971_v47  ;;  %5501 = vmatpush.msrb.mxu3 %v5378_v42 }
 0x4ce   : > { %v5211_v12 = vmax.f32 %v5209_v52, %v5210_v17  ;;  %v5212_v10 = vsel %vm425_vm1, %v4958_v36, -inf  ;;  %v5390_v36 = vld [vmem:[%s14911_s5 + $0x68] sm:$0xff]  ;;  %v5380_v52 = vld [vmem:[%s14911_s5 + $0x18] sm:$0xff] }
 0x4cf   : > { %v5215_v28 = vsel %vm425_vm1, %v4965_v38, -inf  ;;  %v5214_v44 = vmax.f32 %v5212_v10, %v5213_v9  ;;  %v5218_v21 = vsel %vm425_vm1, %v4972_v6, -inf  ;;  %v5385_v38 = vld [vmem:[%s14911_s5 + $0x40] sm:$0xff] }
 0x4d0   : > { %v5217_v4 = vmax.f32 %v5215_v28, %v5216_v57  ;;  %v5344_v51 = vsel %vm15327_vm5, %v5211_v12, %v5343_v26  ;;  %v5220_v61 = vmax.f32 %v5218_v21, %v5219_v2  ;;  %v5394_v26 = vld [vmem:[%s14911_s5 + $0x88] sm:$0xff] }
 0x4d1   : > { %v5345_v43 = vsel %vm15328_vm6, %v5214_v44, %v5344_v51  ;;  %5551 = vmatpush.msra.mxu3 %v5394_v26  ;;  %v5767_v44 = vld [vmem:[#allocation5] sm:$0x80]  ;;  %v5759_v51 = vand.u32 7, %v9408_v41 }
 0x4d2   : > { %v5346_v46 = vsel %vm15329_vm8, %v5217_v4, %v5345_v43  ;;  %v5793_v21 = vrot.slane %v5767_v44, 7 }
 0x4d3   : > { %v5347_v49 = vsel %vm15315_vm3, %v5220_v61, %v5346_v46  ;;  %5552 = vmatpush.msra.mxu3 %v5389_v29  ;;  %vm12441_vm2 = vcmp.ge.s32.totalorder %v5759_v51, 1  ;;  %v5837_v29 = vpop.permute.xlu0 %5836  ;;  %vm12456_vm9 = vcmp.le.s32.totalorder %v5759_v51, 6 }
 0x4d4   : > { %5364 = vst.msk [vmem:[#allocation4 + $0x48] sm:$0xff] %vm425_vm1, %v5347_v49  ;;  %v5795_v46 = vsel %vm2200_vm13, %v5793_v21, %v5794_v50  ;;  %v15345_v21 = vld [vmem:[#allocation18_spill] sm:$0xff] }
 0x4d5   : > { %5553 = vmatpush.msra.mxu3 %v5384_v60  ;;  %v5763_v51 = vand.u32 7, %v15345_v21 }
 0x4d7   : > { %5554 = vmatpush.msra.mxu3 %v5379_v0  ;;  %v15332_v0 = vld [vmem:[#allocation20_spill] sm:$0xff]  ;;  %vm12526_vm7 = vcmp.ge.s32.totalorder %v5763_v51, 1  ;;  %vm12540_vm4 = vcmp.le.s32.totalorder %v5763_v51, 6 }
 0x4d8   : > { %v5760_v16 = vand.u32 7, %v15332_v0 }
 0x4da   : > { %vm12465_vm0 = vcmp.ge.s32.totalorder %v5760_v16, 1  ;;  %vm12479_vm15 = vcmp.le.s32.totalorder %v5760_v16, 6 }
 0x4db   : > { %v12292_v58 = vld [vmem:[#allocation4 + $0x48] sm:$0xff] }
 0x4dc   : > { %8205 = vmatmul.msk.f32.gmra.mxu3 %vm425_vm1, %v12292_v58  ;;  %8253 = vmatmul.msk.f32.gmra.mxu0 %vm425_vm1, %v12292_v58 }
 0x4e4   : > { %8206 = vmatmul.msk.f32.gmra.mxu3 %vm425_vm1, %v12298_v45  ;;  %8254 = vmatmul.msk.f32.gmra.mxu0 %vm425_vm1, %v12298_v45 }
 0x4e9   : > { %v5683_v37 = vpop.f32.mrf.mxu0 }
 0x4ea   : > { %5738 = vst.msk [vmem:[#allocation5 + $0x138] sm:$0xff] %vm5702_vm10, %v5683_v37  ;;  %v5818_v37 = vsel %vm12441_vm2, %v5795_v46, 0.0 }
 0x4eb   : > { %v5860_v60 = vadd.f32 %v5837_v29, %v5818_v37 }
 0x4ec   : > { %8207 = vmatmul.msk.f32.gmra.mxu3 %vm425_vm1, %v12305_v62  ;;  %8255 = vmatmul.msk.f32.gmra.mxu0 %vm425_vm1, %v12305_v62 }
 0x4ef   : > { %v12307_v11 = vpop.f32.mrf.mxu3 }
 0x4f0   : > { %5848 = vrot.lane.b32.xlu0 %v12307_v11, %s8450_s30 }
 0x4f4   : > { %8208 = vmatmul.msk.f32.vlgmr.msrb.gmra.mxu3 %vm425_vm1, %v12315_v3 }
 0x4f5   : > { %5604 = vmatpush.msrb.mxu3 %v5395_v48 }
 0x4f7   : > { %5605 = vmatpush.msrb.mxu3 %v5390_v36 }
 0x4f9   : > { %5606 = vmatpush.msrb.mxu3 %v5385_v38 }
 0x4fb   : > { %5607 = vmatpush.msrb.mxu3 %v5380_v52 }
 0x4fc   : > { %8209 = vmatmul.msk.f32.gmra.mxu3 %vm425_vm1, %v12319_v30 }
 0x504   : > { %8210 = vmatmul.msk.f32.gmra.mxu3 %vm425_vm1, %v12323_v14 }
 0x50c   : > { %8211 = vmatmul.msk.f32.gmra.mxu3 %vm425_vm1, %v12327_v53 }
 0x514   : > { %8212 = vmatmul.msk.f32.gmra.mxu3 %vm425_vm1, %v12331_v25 }
 0x51c   : > { %8213 = vmatmul.msk.f32.gmra.mxu3 %vm425_vm1, %v12335_v54 }
 0x524   : > { %8214 = vmatmul.msk.f32.gmra.mxu3 %vm425_vm1, %v12339_v22 }
 0x52c   : > { %8215 = vmatmul.msk.f32.gmra.mxu3 %vm425_vm1, %v12047_v27 }
 0x52f   : > { %v5686_v13 = vpop.f32.mrf.mxu0 }
 0x530   : > { %5743 = vst.msk [vmem:[#allocation5 + $0x160] sm:$0xff] %vm5702_vm10, %v5686_v13 }
 0x534   : > { %8216 = vmatmul.msk.f32.gmra.mxu3 %vm425_vm1, %v12238_v40 }
 0x535   : > { %v5474_v20 = vpop.f32.mrf.mxu3 }
 0x536   : > { %5739 = vst [vmem:[#allocation5 + $0x140] sm:$0xff] %v5474_v20  ;;  %5850 = vrot.lane.b32.xlu1 %v5474_v20, %s8450_s30 }
 0x53c   : > { %8217 = vmatmul.msk.f32.gmra.mxu3 %vm425_vm1, %v12292_v58 }
 0x544   : > { %8218 = vmatmul.msk.f32.gmra.mxu3 %vm425_vm1, %v12298_v45 }
 0x54c   : > { %8219 = vmatmul.msk.f32.gmra.mxu3 %vm425_vm1, %v12305_v62 }
 0x554   : > { %8220 = vmatmul.msk.f32.vlgmr.msra.gmra.mxu3 %vm425_vm1, %v12315_v3 }
 0x559   : > { %v5689_v31 = vpop.f32.mrf.mxu0 }
 0x55a   : > { %5748 = vst.msk [vmem:[#allocation5 + $0x188] sm:$0xff] %vm5702_vm10, %v5689_v31 }
 0x55c   : > { %8221 = vmatmul.msk.f32.gmra.mxu3 %vm425_vm1, %v12319_v30 }
 0x55f   : > { %v5477_v19 = vpop.f32.mrf.mxu3 }
 0x561   : > { %v5692_v8 = vpop.f32.mrf.mxu0 }
 0x562   : > { %5753 = vst.msk [vmem:[#allocation5 + $0x1b0] sm:$0xff] %vm5702_vm10, %v5692_v8  ;;  %v5839_v8 = vpop.permute.xlu1 %5838 }
 0x564   : > { %8222 = vmatmul.msk.f32.gmra.mxu3 %vm425_vm1, %v12323_v14 }
 0x567   : > { %v5480_v5 = vpop.f32.mrf.mxu3 }
 0x56c   : > { %8223 = vmatmul.msk.f32.gmra.mxu3 %vm425_vm1, %v12327_v53 }
 0x56f   : > { %v5483_v56 = vpop.f32.mrf.mxu3 }
 0x570   : > { %v12472_v56 = vld [vmem:[#allocation5 + $0x78] sm:$0xff] }
 0x574   : > { %8224 = vmatmul.msk.f32.gmra.mxu3 %vm425_vm1, %v12331_v25 }
 0x577   : > { %v5503_v55 = vpop.f32.mrf.mxu3 }
 0x578   : > { %v5798_v55 = vrot.slane %v12472_v56, 7 }
 0x57c   : > { %8225 = vmatmul.msk.f32.gmra.mxu3 %vm425_vm1, %v12335_v54 }
 0x57f   : > { %v5506_v23 = vpop.f32.mrf.mxu3 }
 0x580   : > { %5705 = vst [vmem:[#allocation5 + $0x30] sm:$0xff] %v5506_v23  ;;  %v5819_v23 = vsel %vm12465_vm0, %v11813_v34, 0.0 }
 0x584   : > { %8226 = vmatmul.msk.f32.gmra.mxu3 %vm425_vm1, %v12339_v22 }
 0x587   : > { %v12383_v18 = vpop.f32.mrf.mxu3  ;;  %v5935_v39 = vld [vmem:[#allocation5 + $0x30] sm:$0x80] }
 0x588   : > { %v5939_v63 = vrot.slane %v5935_v39, 7  ;;  %v5940_v33 = vrot.slane %v12383_v18, 7  ;;  %v5868_v41 = vld [vmem:[#allocation5 + $0x30] sm:$0xfe]  ;;  %v5895_v26 = vrot.slane %v12383_v18, 1  ;;  %v15337_v18 = vld [vmem:[#allocation16_spill] sm:$0xff] }
 0x589   : > { %v5761_v39 = vand.u32 7, %v15337_v18 }
 0x58a   : > { %v5941_v32 = vsel %vm2200_vm13, %v5939_v63, %v5940_v33  ;;  %v5861_v63 = vadd.f32 %v5839_v8, %v5819_v23 }
 0x58b   : > { %5956 = vrot.lane.b32.xlu2 %v5941_v32, %s8450_s30  ;;  %vm12489_vm11 = vcmp.ge.s32.totalorder %v5761_v39, 1  ;;  %vm12504_vm14 = vcmp.le.s32.totalorder %v5761_v39, 6 }
 0x58c   : > { %8227 = vmatmul.msk.f32.gmra.mxu3 %vm425_vm1, %v12047_v27 }
 0x58f   : > { %v12393_v59 = vpop.f32.mrf.mxu3 }
 0x590   : > { %v5942_v47 = vrot.slane %v12393_v59, 7  ;;  %v5897_v5 = vrot.slane %v12393_v59, 1 }
 0x592   : > { %v5943_v27 = vsel %vm2200_vm13, %v5940_v33, %v5942_v47 }
 0x593   : > { %5958 = vrot.lane.b32.xlu0 %v5943_v27, %s8450_s30  ;;  %v15342_v27 = vrot.slane %v11763_v35, 7 }
 0x594   : > { %8228 = vmatmul.msk.f32.gmra.mxu3 %vm425_vm1, %v12238_v40 }
 0x595   : > { %v5799_v52 = vsel %vm2200_vm13, %v15342_v27, %v5798_v55 }
 0x597   : > { %v12409_v17 = vpop.f32.mrf.mxu3 }
 0x598   : > { %v5944_v1 = vrot.slane %v12409_v17, 7 }
 0x59a   : > { %v5945_v7 = vsel %vm2200_vm13, %v5942_v47, %v5944_v1 }
 0x59b   : > { %5960 = vrot.lane.b32.xlu1 %v5945_v7, %s8450_s30  ;;  %v5899_v7 = vrot.slane %v12409_v17, 1  ;;  %v12516_v17 = vld [vmem:[#allocation5 + $0xc8] sm:$0xff] }
 0x59c   : > { %8229 = vmatmul.msk.f32.gmra.mxu3 %vm425_vm1, %v12292_v58 }
 0x59d   : > { %v5900_v35 = vsel %vm2528_vm12, %v5897_v5, %v5899_v7 }
 0x59f   : > { %v12416_v6 = vpop.f32.mrf.mxu3 }
 0x5a0   : > { %v5946_v12 = vrot.slane %v12416_v6, 7 }
 0x5a2   : > { %v5947_v9 = vsel %vm2200_vm13, %v5944_v1, %v5946_v12  ;;  %v5841_v1 = vpop.permute.xlu2 %5840 }
 0x5a3   : > { %5962 = vrot.lane.b32.xlu2 %v5947_v9, %s8450_s30 }
 0x5a4   : > { %8230 = vmatmul.msk.f32.gmra.mxu3 %vm425_vm1, %v12298_v45 }
 0x5a7   : > { %v12423_v10 = vpop.f32.mrf.mxu3 }
 0x5a8   : > { %v5948_v28 = vrot.slane %v12423_v10, 7 }
 0x5aa   : > { %v5949_v57 = vsel %vm2200_vm13, %v5946_v12, %v5948_v28  ;;  %v5820_v12 = vsel %vm12489_vm11, %v5799_v52, 0.0 }
 0x5ab   : > { %5964 = vrot.lane.b32.xlu0 %v5949_v57, %s8450_s30  ;;  %v5862_v9 = vadd.f32 %v5841_v1, %v5820_v12 }
 0x5ac   : > { %8231 = vmatmul.msk.f32.gmra.mxu3 %vm425_vm1, %v12305_v62 }
 0x5af   : > { %v12430_v2 = vpop.f32.mrf.mxu3 }
 0x5b0   : > { %v5950_v24 = vrot.slane %v12430_v2, 7 }
 0x5b2   : > { %v5951_v4 = vsel %vm2200_vm13, %v5948_v28, %v5950_v24 }
 0x5b3   : > { %5966 = vrot.lane.b32.xlu1 %v5951_v4, %s8450_s30  ;;  %v5802_v4 = vrot.slane %v12516_v17, 7  ;;  %v6757_v17 = vld [vmem:[%s14913_s7 + $0x3c0] sm:$0xff] }
 0x5b4   : > { %8232 = vmatmul.msk.f32.vlgmr.msrb.gmra.mxu3 %vm425_vm1, %v12315_v3  ;;  %v5894_v3 = vrot.slane %v5868_v41, 1 }
 0x5b6   : > { %v5896_v20 = vsel %vm2528_vm12, %v5894_v3, %v5895_v26  ;;  %v5903_v3 = vrot.slane %v12423_v10, 1 }
 0x5b7   : > { %v12438_v61 = vpop.f32.mrf.mxu3  ;;  %v5919_v31 = vsel %vm12456_vm9, %v5896_v20, 0.0 }
 0x5b8   : > { %v5952_v42 = vrot.slane %v12438_v61, 7  ;;  %v5907_v8 = vrot.slane %v12438_v61, 1 }
 0x5ba   : > { %v5953_v49 = vsel %vm2200_vm13, %v5950_v24, %v5952_v42  ;;  %v5921_v24 = vsel %vm12504_vm14, %v5900_v35, 0.0 }
 0x5bb   : > { %5968 = vrot.lane.b32.xlu2 %v5953_v49, %s8450_s30  ;;  %v12511_v44 = vadd.f32 %v5921_v24, %v5862_v9  ;;  %v12523_v49 = vld [vmem:[#allocation5 + $0xa0] sm:$0xff] }
 0x5bc   : > { %8233 = vmatmul.msk.f32.gmra.mxu3 %vm425_vm1, %v12319_v30  ;;  %v12463_v30 = vadd.f32 %v5919_v31, %v5860_v60  ;;  %v5800_v37 = vrot.slane %v12523_v49, 7 }
 0x5be   : > { %v5801_v43 = vsel %vm2200_vm13, %v5798_v55, %v5800_v37 }
 0x5bf   : > { %v5530_v13 = vpop.f32.mrf.mxu3 }
 0x5c0   : > { %5745 = vst [vmem:[#allocation5 + $0x170] sm:$0xff] %v5530_v13 }
 0x5c4   : > { %8234 = vmatmul.msk.f32.gmra.mxu3 %vm425_vm1, %v12323_v14  ;;  %v5898_v14 = vsel %vm2528_vm12, %v5895_v26, %v5897_v5  ;;  %v8375_v5 = vld [vmem:[#allocation4 + $0x38] sm:$0xff] }
 0x5c5   : > { %v5920_v47 = vsel %vm12479_vm15, %v5898_v14, 0.0 }
 0x5c6   : > { %v12486_v36 = vadd.f32 %v5920_v47, %v5861_v63 }
 0x5c7   : > { %v5533_v33 = vpop.f32.mrf.mxu3  ;;  %v5936_v32 = vld [vmem:[#allocation5 + $0x170] sm:$0x7f] }
 0x5c8   : > { %v5954_v59 = vrot.slane %v5936_v32, 7 }
 0x5ca   : > { %v5955_v38 = vsel %vm2200_vm13, %v5952_v42, %v5954_v59 }
 0x5cb   : > { %5970 = vrot.lane.b32.xlu0 %v5955_v38, %s8450_s30 }
 0x5cc   : > { %8235 = vmatmul.msk.f32.gmra.mxu3 %vm425_vm1, %v12327_v53  ;;  %v5901_v53 = vrot.slane %v12416_v6, 1  ;;  %v5845_v6 = vpop.permute.xlu1 %5844 }
 0x5ce   : > { %v12521_v46 = vsel %vm2528_vm12, %v5899_v7, %v5901_v53  ;;  %v5904_v16 = vsel %vm2528_vm12, %v5901_v53, %v5903_v3  ;;  %v12603_v53 = vpop.permute.xlu2 %5846 }
 0x5cf   : > { %v5536_v28 = vpop.f32.mrf.mxu3  ;;  %v5923_v13 = vsel %vm12540_vm4, %v5904_v16, 0.0  ;;  %v15350_v16 = vld [vmem:[#allocation21_spill] sm:$0xff] }
 0x5d4   : > { %8236 = vmatmul.msk.f32.gmra.mxu3 %vm425_vm1, %v12331_v25  ;;  %v5803_v25 = vsel %vm2200_vm13, %v5800_v37, %v5802_v4 }
 0x5d5   : > { %v5822_v26 = vsel %vm12526_vm7, %v5803_v25, 0.0 }
 0x5d6   : > { %v5864_v29 = vadd.f32 %v5845_v6, %v5822_v26  ;;  %v12609_v26 = vpop.permute.xlu0 %5842 }
 0x5d7   : > { %v5556_v42 = vpop.f32.mrf.mxu3 }
 0x5d8   : > { %v12547_v20 = vadd.f32 %v5923_v13, %v5864_v29  ;;  %v5765_v13 = vand.u32 7, %v15350_v16 }
 0x5da   : > { %vm12625_vm5 = vcmp.le.s32.totalorder %v5765_v13, 6 }
 0x5dc   : > { %8237 = vmatmul.msk.f32.gmra.mxu3 %vm425_vm1, %v12335_v54  ;;  %v5905_v54 = vrot.slane %v12430_v2, 1 }
 0x5de   : > { %v12555_v31 = vsel %vm2528_vm12, %v5903_v3, %v5905_v54 }
 0x5df   : > { %v5559_v60 = vpop.f32.mrf.mxu3 }
 0x5e0   : > { %v5806_v60 = vrot.slane %v12307_v11, 7 }
 0x5e4   : > { %8238 = vmatmul.msk.f32.gmra.mxu3 %vm425_vm1, %v12339_v22  ;;  %v5908_v22 = vsel %vm2528_vm12, %v5905_v54, %v5907_v8 }
 0x5e5   : > { %v12607_v6 = vpop.permute.xlu2 %5956 }
 0x5e7   : > { %v12552_v10 = vpop.f32.mrf.mxu3 }
 0x5e8   : > { %5711 = vst [vmem:[#allocation5 + $0x60] sm:$0xff] %v12552_v10 }
 0x5ec   : > { %8239 = vmatmul.msk.f32.gmra.mxu3 %vm425_vm1, %v8375_v5  ;;  %v5804_v5 = vrot.slane %v12241_v15, 7 }
 0x5ef   : > { %v12560_v23 = vpop.f32.mrf.mxu3  ;;  %v6012_v18 = vld [vmem:[#allocation5 + $0x60] sm:$0xfe] }
 0x5f0   : > { %v6023_v2 = vrot.slane %v6012_v18, 1  ;;  %v6024_v39 = vrot.slane %v12560_v23, 1  ;;  %v6685_v18 = vld [vmem:[%s14913_s7 + $0x180] sm:$0xff] }
 0x5f2   : > { %v6025_v63 = vsel %vm2528_vm12, %v6023_v2, %v6024_v39  ;;  %v5807_v2 = vsel %vm2200_vm13, %v5804_v5, %v5806_v60 }
 0x5f3   : > { %6040 = vrot.lane.b32.xlu1 %v6025_v63, %s8450_s30 }
 0x5f4   : > { %8240 = vmatmul.msk.f32.gmra.mxu3 %vm425_vm1, %v12238_v40 }
 0x5f7   : > { %v12570_v33 = vpop.f32.mrf.mxu3 }
 0x5f8   : > { %v6026_v32 = vrot.slane %v12570_v33, 1 }
 0x5fa   : > { %v6027_v14 = vsel %vm2528_vm12, %v6024_v39, %v6026_v32  ;;  %v5849_v39 = vpop.permute.xlu0 %5848 }
 0x5fb   : > { %6042 = vrot.lane.b32.xlu2 %v6027_v14, %s8450_s30 }
 0x5fc   : > { %8241 = vmatmul.msk.f32.gmra.mxu3 %vm425_vm1, %v12292_v58 }
 0x5fd   : > { %v12611_v29 = vpop.permute.xlu2 %5962 }
 0x5ff   : > { %v12577_v59 = vpop.f32.mrf.mxu3 }
 0x600   : > { %v6028_v47 = vrot.slane %v12577_v59, 1 }
 0x602   : > { %v6029_v38 = vsel %vm2528_vm12, %v6026_v32, %v6028_v47 }
 0x603   : > { %6044 = vrot.lane.b32.xlu0 %v6029_v38, %s8450_s30 }
 0x604   : > { %8242 = vmatmul.msk.f32.gmra.mxu3 %vm425_vm1, %v12298_v45 }
 0x607   : > { %v12584_v40 = vpop.f32.mrf.mxu3 }
 0x608   : > { %v6030_v27 = vrot.slane %v12584_v40, 1 }
 0x60a   : > { %v6031_v52 = vsel %vm2528_vm12, %v6028_v47, %v6030_v27  ;;  %v5925_v47 = vsel %vm12625_vm5, %v5908_v22, 0.0 }
 0x60b   : > { %6046 = vrot.lane.b32.xlu1 %v6031_v52, %s8450_s30 }
 0x60c   : > { %8243 = vmatmul.msk.f32.gmra.mxu3 %vm425_vm1, %v12305_v62  ;;  %vm12616_vm1 = vcmp.ge.s32.totalorder %v5765_v13, 1 }
 0x60d   : > { %v5824_v14 = vsel %vm12616_vm1, %v5807_v2, 0.0 }
 0x60e   : > { %v5866_v38 = vadd.f32 %v5849_v39, %v5824_v14 }
 0x60f   : > { %v12591_v58 = vpop.f32.mrf.mxu3 }
 0x610   : > { %v6032_v1 = vrot.slane %v12591_v58, 1 }
 0x612   : > { %v6033_v7 = vsel %vm2528_vm12, %v6030_v27, %v6032_v1 }
 0x613   : > { %6048 = vrot.lane.b32.xlu2 %v6033_v7, %s8450_s30 }
 0x615   : > { %v5969_v32 = vpop.permute.xlu2 %5968 }
 0x616   : > { %v5986_v27 = vsel %vm12616_vm1, %v5969_v32, 0.0 }
 0x617   : > { %v5580_v45 = vpop.f32.mrf.mxu3 }
 0x618   : > { %v6034_v12 = vrot.slane %v5580_v45, 1 }
 0x61a   : > { %v6035_v9 = vsel %vm2528_vm12, %v6032_v1, %v6034_v12  ;;  %v5933_v1 = vadd.f32 %v5925_v47, %v5866_v38 }
 0x61b   : > { %6050 = vrot.lane.b32.xlu0 %v6035_v9, %s8450_s30 }
 0x61c   : > { %v5994_v7 = vadd.f32 %v5986_v27, %v5933_v1 }
 0x61f   : > { %v12598_v28 = vpop.f32.mrf.mxu3 }
 0x620   : > { %v6036_v35 = vrot.slane %v12598_v28, 1 }
 0x622   : > { %v6037_v62 = vsel %vm2528_vm12, %v6034_v12, %v6036_v35  ;;  %v12635_v12 = vadd.f32 %v5994_v7, %v5580_v45 }
 0x623   : > { %6052 = vrot.lane.b32.xlu1 %v6037_v62, %s8450_s30 }
 0x627   : > { %v5586_v24 = vpop.f32.mrf.mxu3 }
 0x628   : > { %5751 = vst [vmem:[#allocation5 + $0x1a0] sm:$0xff] %v5586_v24 }
 0x62f   : > { %v5589_v21 = vpop.f32.mrf.mxu3  ;;  %v6013_v51 = vld [vmem:[#allocation5 + $0x1a0] sm:$0x1] }
 0x630   : > { %v6038_v42 = vrot.slane %v6013_v51, 1  ;;  %v6761_v21 = vld [vmem:[%s14913_s7 + $0x3e0] sm:$0xff] }
 0x631   : > { %v6697_v51 = vld [vmem:[%s14913_s7 + $0x1e0] sm:$0xff]  ;;  %7196 = vmatpush.msrb.mxu2 %v6761_v21 }
 0x632   : > { %v6039_v25 = vsel %vm2528_vm12, %v6036_v35, %v6038_v42  ;;  %v5959_v42 = vpop.permute.xlu0 %5958  ;;  %7176 = vmatpush.msra.mxu1 %v6697_v51 }
 0x633   : > { %6054 = vrot.lane.b32.xlu2 %v6039_v25, %s8450_s30  ;;  %v12658_v25 = vpop.permute.xlu1 %5850  ;;  %7197 = vmatpush.msrb.mxu2 %v6757_v17 }
 0x637   : > { %v5609_v3 = vpop.f32.mrf.mxu3 }
 0x63a   : > { %v5965_v16 = vpop.permute.xlu0 %5964 }
 0x63b   : > { %v5961_v13 = vpop.permute.xlu1 %5960 }
 0x63f   : > { %v5612_v54 = vpop.f32.mrf.mxu3 }
 0x640   : > { %v5981_v54 = vsel %vm12465_vm0, %v5959_v42, 0.0 }
 0x641   : > { %v5989_v32 = vadd.f32 %v5981_v54, %v12486_v36 }
 0x642   : > { %v12666_v39 = vpop.permute.xlu0 %5970 }
 0x643   : > { %v12670_v38 = vpop.permute.xlu1 %5966  ;;  %v6005_v7 = vadd.f32 %v5989_v32, %v12560_v23 }
 0x647   : > { %v5615_v52 = vpop.f32.mrf.mxu3 }
 0x648   : > { %5712 = vst [vmem:[#allocation5 + $0x68] sm:$0xff] %v5615_v52  ;;  %v5982_v52 = vsel %vm12489_vm11, %v5961_v13, 0.0 }
 0x649   : > { %v5990_v42 = vadd.f32 %v5982_v52, %v12511_v44 }
 0x64b   : > { %v6006_v44 = vadd.f32 %v5990_v42, %v12570_v33  ;;  %v15355_v42 = vld [vmem:[#allocation22_spill] sm:$0xff] }
 0x64f   : > { %v5618_v9 = vpop.f32.mrf.mxu3  ;;  %v6080_v23 = vld [vmem:[#allocation5 + $0x68] sm:$0x80] }
 0x650   : > { %6141 = vrot.lane.b32.xlu0 %v5618_v9, %s8450_s30  ;;  %v6099_v1 = vrot.slane %v5618_v9, 7  ;;  %v6098_v52 = vrot.slane %v6080_v23, 7 }
 0x655   : > { %v6043_v14 = vpop.permute.xlu2 %6042 }
 0x656   : > { %v6065_v27 = vsel %vm12479_vm15, %v6043_v14, 0.0 }
 0x657   : > { %v5621_v35 = vpop.f32.mrf.mxu3  ;;  %v6073_v21 = vadd.f32 %v6065_v27, %v6005_v7 }
 0x658   : > { %6143 = vrot.lane.b32.xlu1 %v5621_v35, %s8450_s30  ;;  %v6101_v47 = vrot.slane %v5621_v35, 7  ;;  %v5980_v35 = vsel %vm12441_vm2, %v12607_v6, 0.0 }
 0x659   : > { %v5988_v13 = vadd.f32 %v5980_v35, %v12463_v30  ;;  %v6100_v30 = vsel %vm2200_vm13, %v6098_v52, %v6099_v1 }
 0x65a   : > { %v6102_v51 = vsel %vm2200_vm13, %v6099_v1, %v6101_v47  ;;  %v6123_v33 = vsel %vm12441_vm2, %v6100_v30, 0.0 }
 0x65b   : > { %v6124_v36 = vsel %vm12465_vm0, %v6102_v51, 0.0  ;;  %v6004_v6 = vadd.f32 %v5988_v13, %v12552_v10  ;;  %v15356_v10 = vld [vmem:[#allocation27_spill] sm:$0xff] }
 0x65c   : > { %v12684_v54 = vadd.f32 %v6124_v36, %v6073_v21  ;;  %v5762_v36 = vand.u32 7, %v15355_v42  ;;  %v5764_v34 = vand.u32 7, %v15356_v10  ;;  %v5876_v42 = vld [vmem:[#allocation5 + $0x170] sm:$0x1] }
 0x65e   : > { %vm12710_vm6 = vcmp.ge.s32.totalorder %v5762_v36, 1  ;;  %vm12719_vm8 = vcmp.ge.s32.totalorder %v5764_v34, 1  ;;  %vm12736_vm3 = vcmp.le.s32.totalorder %v5762_v36, 6  ;;  %vm12740_vm2 = vcmp.le.s32.totalorder %v5764_v34, 6  ;;  %v15365_v34 = vld [vmem:[#allocation17_spill] sm:$0xff] }
 0x65f   : > { %v5624_v62 = vpop.f32.mrf.mxu3  ;;  %v5821_v56 = vsel %vm12710_vm6, %v5801_v43, 0.0  ;;  %v5983_v52 = vsel %vm12710_vm6, %v12611_v29, 0.0  ;;  %v5909_v43 = vrot.slane %v5876_v42, 1 }
 0x660   : > { %6145 = vrot.lane.b32.xlu2 %v5624_v62, %s8450_s30  ;;  %v6103_v14 = vrot.slane %v5624_v62, 7 }
 0x662   : > { %v6104_v7 = vsel %vm2200_vm13, %v6101_v47, %v6103_v14  ;;  %v5984_v47 = vsel %vm12526_vm7, %v5965_v16, 0.0 }
 0x663   : > { %v6125_v62 = vsel %vm12489_vm11, %v6104_v7, 0.0  ;;  %v5992_v23 = vadd.f32 %v5984_v47, %v12547_v20  ;;  %v5805_v20 = vsel %vm2200_vm13, %v5802_v4, %v5804_v5  ;;  %v5922_v4 = vsel %vm12736_vm3, %v12521_v46, 0.0 }
 0x664   : > { %v5823_v55 = vsel %vm12719_vm8, %v5805_v20, 0.0  ;;  %v5985_v46 = vsel %vm12719_vm8, %v12670_v38, 0.0  ;;  %v6693_v38 = vld [vmem:[%s14913_s7 + $0x1c0] sm:$0xff] }
 0x665   : > { %v6041_v32 = vpop.permute.xlu1 %6040  ;;  %v6008_v49 = vadd.f32 %v5992_v23, %v12584_v40  ;;  %v5924_v40 = vsel %vm12740_vm2, %v12555_v31, 0.0  ;;  %7177 = vmatpush.msra.mxu1 %v6693_v38  ;;  %v5766_v23 = vand.u32 7, %v15365_v34 }
 0x666   : > { %v6064_v19 = vsel %vm12456_vm9, %v6041_v32, 0.0  ;;  %v5863_v32 = vadd.f32 %v12609_v26, %v5821_v56  ;;  %v6174_v56 = vld [vmem:[#allocation5 + $0xc0] sm:$0xff] }
 0x667   : > { %v12640_v22 = vpop.f32.mrf.mxu3  ;;  %v6072_v21 = vadd.f32 %v6064_v19, %v6004_v6  ;;  %vm12790_vm0 = vcmp.ge.s32.totalorder %v5766_v23, 1  ;;  %vm12794_vm11 = vcmp.le.s32.totalorder %v5766_v23, 6 }
 0x668   : > { %6147 = vrot.lane.b32.xlu0 %v12640_v22, %s8450_s30  ;;  %v5930_v19 = vadd.f32 %v5922_v4, %v5863_v32  ;;  %v6173_v4 = vld [vmem:[#allocation5 + $0x98] sm:$0xfe]  ;;  %v5987_v11 = vsel %vm12790_vm0, %v12666_v39, 0.0  ;;  %v6689_v32 = vld [vmem:[%s14913_s7 + $0x1a0] sm:$0xff] }
 0x669   : > { %v12705_v35 = vadd.f32 %v6123_v33, %v6072_v21  ;;  %v5775_v33 = vld [vmem:[#allocation5 + $0x140] sm:$0x7f]  ;;  %7178 = vmatpush.msra.mxu1 %v6689_v32 }
 0x66a   : > { %v5991_v26 = vadd.f32 %v5983_v52, %v5930_v19 }
 0x66b   : > { %7179 = vmatpush.msra.mxu1 %v6685_v18 }
 0x66d   : > { %v6049_v13 = vpop.permute.xlu2 %6048 }
 0x66f   : > { %v12644_v24 = vpop.f32.mrf.mxu3 }
 0x670   : > { %6149 = vrot.lane.b32.xlu1 %v12644_v24, %s8450_s30  ;;  %v6107_v16 = vrot.slane %v12644_v24, 7 }
 0x677   : > { %v12648_v45 = vpop.f32.mrf.mxu3 }
 0x678   : > { %6151 = vrot.lane.b32.xlu2 %v12648_v45, %s8450_s30  ;;  %v6109_v6 = vrot.slane %v12648_v45, 7 }
 0x67a   : > { %v6110_v30 = vsel %vm2200_vm13, %v6107_v16, %v6109_v6 }
 0x67b   : > { %v6128_v20 = vsel %vm12719_vm8, %v6110_v30, 0.0  ;;  %v12835_v30 = vld [vmem:[%s14912_s6] ss:$0 sm:$0xff] }
 0x67f   : > { %v12660_v3 = vpop.f32.mrf.mxu3 }
 0x680   : > { %6153 = vrot.lane.b32.xlu0 %v12660_v3, %s8450_s30  ;;  %v6111_v10 = vrot.slane %v12660_v3, 7 }
 0x687   : > { %v5639_v2 = vpop.f32.mrf.mxu3 }
 0x688   : > { %5752 = vst [vmem:[#allocation5 + $0x1a8] sm:$0xff] %v5639_v2  ;;  %6155 = vrot.lane.b32.xlu1 %v5639_v2, %s8450_s30  ;;  %v6045_v2 = vpop.permute.xlu0 %6044 }
 0x689   : > { %v6066_v9 = vsel %vm12504_vm14, %v6045_v2, 0.0  ;;  %v6105_v2 = vrot.slane %v12640_v22, 7 }
 0x68a   : > { %v6074_v27 = vadd.f32 %v6066_v9, %v6006_v44  ;;  %v5865_v44 = vadd.f32 %v12603_v53, %v5823_v55  ;;  %v6047_v53 = vpop.permute.xlu1 %6046 }
 0x68b   : > { %v6106_v9 = vsel %vm2200_vm13, %v6103_v14, %v6105_v2  ;;  %v6068_v14 = vsel %vm12540_vm4, %v6049_v13, 0.0  ;;  %v6108_v24 = vsel %vm2200_vm13, %v6105_v2, %v6107_v16  ;;  %v6067_v41 = vsel %vm12736_vm3, %v6047_v53, 0.0 }
 0x68c   : > { %v12696_v51 = vadd.f32 %v6125_v62, %v6074_v27  ;;  %v6076_v5 = vadd.f32 %v6068_v14, %v6008_v49  ;;  %v6127_v27 = vsel %vm12526_vm7, %v6108_v24, 0.0  ;;  %v5932_v7 = vadd.f32 %v5924_v40, %v5865_v44  ;;  %v6753_v24 = vld [vmem:[%s14913_s7 + $0x3a0] sm:$0xff]  ;;  %v6175_v44 = vld [vmem:[#allocation5 + $0xe8] sm:$0xff] }
 0x68d   : > { %v6007_v2 = vadd.f32 %v5991_v26, %v12577_v59  ;;  %v5808_v13 = vrot.slane %v5775_v33, 7  ;;  %v6126_v16 = vsel %vm12710_vm6, %v6106_v9, 0.0  ;;  %v12788_v14 = vsel %vm2200_vm13, %v6109_v6, %v6111_v10  ;;  %v6055_v22 = vpop.permute.xlu2 %6054  ;;  %7198 = vmatpush.msrb.mxu2 %v6753_v24 }
 0x68e   : > { %v12764_v31 = vadd.f32 %v6127_v27, %v6076_v5  ;;  %v5993_v62 = vadd.f32 %v5985_v46, %v5932_v7  ;;  %v5910_v9 = vsel %vm2528_vm12, %v5907_v8, %v5909_v43  ;;  %v6192_v5 = vrot.slane %v6174_v56, 1  ;;  %v12854_v43 = vld [vmem:[#allocation5 + $0x160] sm:$0xff] }
 0x68f   : > { %v6075_v36 = vadd.f32 %v6067_v41, %v6007_v2  ;;  %v5809_v1 = vsel %vm2200_vm13, %v5806_v60, %v5808_v13  ;;  %v5926_v17 = vsel %vm12794_vm11, %v5910_v9, 0.0  ;;  %v12812_v60 = vld [vmem:[#allocation5 + $0x110] sm:$0xff]  ;;  %v6191_v8 = vrot.slane %v6173_v4, 1  ;;  %v6088_v53 = vld [vmem:[#allocation5 + $0x1a8] sm:$0x7f] }
 0x690   : > { %v6051_v21 = vpop.permute.xlu0 %6050  ;;  %v6009_v45 = vadd.f32 %v5993_v62, %v12591_v58  ;;  %v5825_v55 = vsel %vm12790_vm0, %v5809_v1, 0.0  ;;  %v6196_v52 = vrot.slane %v12812_v60, 1  ;;  %v6194_v7 = vrot.slane %v6175_v44, 1 }
 0x691   : > { %v6069_v29 = vsel %vm12740_vm2, %v6051_v21, 0.0  ;;  %v12785_v58 = vadd.f32 %v6126_v16, %v6075_v36  ;;  %v5867_v40 = vadd.f32 %v12658_v25, %v5825_v55  ;;  %v6193_v39 = vsel %vm2528_vm12, %v6191_v8, %v6192_v5 }
 0x692   : > { %v6077_v47 = vadd.f32 %v6069_v29, %v6009_v45  ;;  %v6071_v6 = vsel %vm12794_vm11, %v6055_v22, 0.0  ;;  %v6216_v62 = vsel %vm12456_vm9, %v6193_v39, 0.0  ;;  %v6197_v29 = vsel %vm2528_vm12, %v6194_v7, %v6196_v52 }
 0x693   : > { %v5934_v61 = vadd.f32 %v5926_v17, %v5867_v40  ;;  %v6113_v38 = vrot.slane %v6088_v53, 7  ;;  %v6195_v36 = vsel %vm2528_vm12, %v6192_v5, %v6194_v7  ;;  %v6129_v22 = vsel %vm12616_vm1, %v12788_v14, 0.0  ;;  %v5695_v5 = vpop.f32.mrf.mxu0 }
 0x694   : > { %v12783_v59 = vadd.f32 %v6128_v20, %v6077_v47  ;;  %v12846_v47 = vld [vmem:[#allocation5 + $0x188] sm:$0xff]  ;;  %v6217_v49 = vsel %vm12479_vm15, %v6195_v36, 0.0  ;;  %v6200_v55 = vrot.slane %v12854_v43, 1  ;;  %5758 = vst.msk [vmem:[#allocation5 + $0x1d8] sm:$0xff] %vm5702_vm10, %v5695_v5 }
 0x695   : > { %v5995_v25 = vadd.f32 %v5987_v11, %v5934_v61  ;;  %v6053_v27 = vpop.permute.xlu1 %6052  ;;  %v6114_v45 = vsel %vm2200_vm13, %v6111_v10, %v6113_v38  ;;  %v6202_v1 = vrot.slane %v12846_v47, 1  ;;  %vm6308_vm13 = vcmask 517120   ;;  %v6749_v11 = vld [vmem:[%s14913_s7 + $0x380] sm:$0xff]  ;;  %v6177_v61 = vld [vmem:[#allocation5 + $0x138] sm:$0xff] }
 0x696   : > { %v6070_v50 = vsel %vm12625_vm5, %v6053_v27, 0.0  ;;  %v6130_v33 = vsel %vm12790_vm0, %v6114_v45, 0.0  ;;  %7199 = vmatpush.msrb.mxu2 %v6749_v11 }
 0x697   : > { %v6011_v21 = vadd.f32 %v5995_v25, %v12598_v28  ;;  %v6218_v28 = vsel %vm12504_vm14, %v6197_v29, 0.0  ;;  %v6078_v23 = vadd.f32 %v6070_v50, %v12635_v12  ;;  %v6203_v14 = vsel %vm2528_vm12, %v6200_v55, %v6202_v1 }
 0x698   : > { %v6221_v7 = vsel %vm12740_vm2, %v6203_v14, 0.0 }
 0x699   : > { %v12868_v17 = vadd.f32 %v6129_v22, %v6078_v23 }
 0x6ba   : > { %v6146_v46 = vpop.permute.xlu2 %6145 }
 0x6bb   : > { %v6167_v41 = vadd.f32 %v6146_v46, %v12696_v51  ;;  %v6198_v46 = vrot.slane %v6177_v61, 1 }
 0x6bd   : > { %v6226_v42 = vadd.f32 %v6218_v28, %v6167_v41  ;;  %v6199_v15 = vsel %vm2528_vm12, %v6196_v52, %v6198_v46 }
 0x6bf   : > { %v6238_v9 = vadd.f32 %v12835_v30, %v6226_v42 }
 0x6c1   : > { %v12881_v8 = vmax.f32 %v6238_v9, 0.0 }
 0x6c2   : > { %v6142_v19 = vpop.permute.xlu0 %6141 }
 0x6c3   : > { %v6165_v26 = vadd.f32 %v6142_v19, %v12705_v35  ;;  %v6079_v35 = vadd.f32 %v6071_v6, %v6011_v21  ;;  %v6268_v53 = vrot.slane %v12881_v8, 6 }
 0x6c5   : > { %v6224_v2 = vadd.f32 %v6216_v62, %v6165_v26  ;;  %v12848_v34 = vadd.f32 %v6130_v33, %v6079_v35  ;;  %v6266_v62 = vrot.slane %v12881_v8, 2  ;;  %v6386_v33 = vsel %vm6308_vm13, %v6268_v53, -inf }
 0x6c6   : > { %v6387_v52 = vrot.slane %v6386_v33, 4 }
 0x6c7   : > { %v6236_v51 = vadd.f32 %v12835_v30, %v6224_v2 }
 0x6c8   : > { %v6388_v18 = vmax.f32 %v6386_v33, %v6387_v52 }
 0x6c9   : > { %v12851_v13 = vmax.f32 %v6236_v51, 0.0  ;;  %v6372_v51 = vsel %vm6308_vm13, %v6266_v62, -inf }
 0x6ca   : > { %v6144_v10 = vpop.permute.xlu1 %6143 }
 0x6cb   : > { %v6166_v57 = vadd.f32 %v6144_v10, %v12684_v54  ;;  %v6260_v20 = vrot.slane %v12851_v13, 2  ;;  %v6262_v16 = vrot.slane %v12851_v13, 6 }
 0x6cd   : > { %v6225_v12 = vadd.f32 %v6217_v49, %v6166_v57  ;;  %v6316_v54 = vsel %vm6308_vm13, %v6260_v20, -inf  ;;  %v6330_v56 = vsel %vm6308_vm13, %v6262_v16, -inf  ;;  %v6219_v20 = vsel %vm12736_vm3, %v6199_v15, 0.0 }
 0x6ce   : > { %v6317_v48 = vrot.slane %v6316_v54, 4  ;;  %v6331_v4 = vrot.slane %v6330_v56, 4  ;;  %v6373_v16 = vrot.slane %v6372_v51, 4 }
 0x6cf   : > { %v6237_v40 = vadd.f32 %v12835_v30, %v6225_v12 }
 0x6d0   : > { %v6332_v32 = vmax.f32 %v6330_v56, %v6331_v4  ;;  %v6318_v44 = vmax.f32 %v6316_v54, %v6317_v48  ;;  %v6201_v54 = vsel %vm2528_vm12, %v6198_v46, %v6200_v55  ;;  %v6374_v14 = vmax.f32 %v6372_v51, %v6373_v16  ;;  %v6745_v51 = vld [vmem:[%s14913_s7 + $0x360] sm:$0xff] }
 0x6d1   : > { %v12883_v24 = vmax.f32 %v6237_v40, 0.0  ;;  %v6389_v46 = vrot.slane %v6388_v18, 2  ;;  %7200 = vmatpush.msrb.mxu2 %v6745_v51 }
 0x6d2   : > { %v6152_v25 = vpop.permute.xlu2 %6151  ;;  %v6333_v6 = vrot.slane %v6332_v32, 2  ;;  %v6319_v26 = vrot.slane %v6318_v44, 2 }
 0x6d3   : > { %v6263_v27 = vrot.slane %v12883_v24, 2  ;;  %v6265_v39 = vrot.slane %v12883_v24, 6  ;;  %v6170_v19 = vadd.f32 %v6152_v25, %v12783_v59 }
 0x6d4   : > { %v6334_v35 = vmax.f32 %v6332_v32, %v6333_v6  ;;  %v6320_v50 = vmax.f32 %v6318_v44, %v6319_v26  ;;  %v6220_v32 = vsel %vm12540_vm4, %v6201_v54, 0.0  ;;  %v6375_v26 = vrot.slane %v6374_v14, 2 }
 0x6d5   : > { %v6344_v21 = vsel %vm6308_vm13, %v6263_v27, -inf  ;;  %v6358_v41 = vsel %vm6308_vm13, %v6265_v39, -inf  ;;  %v6229_v2 = vadd.f32 %v6221_v7, %v6170_v19 }
 0x6d6   : > { %v6345_v29 = vrot.slane %v6344_v21, 4  ;;  %v6359_v38 = vrot.slane %v6358_v41, 4  ;;  %v6335_v23 = vrot.slane %v6334_v35, 1  ;;  %v6321_v60 = vrot.slane %v6320_v50, 1 }
 0x6d7   : > { %v6241_v59 = vadd.f32 %v12835_v30, %v6229_v2 }
 0x6d8   : > { %v6360_v45 = vmax.f32 %v6358_v41, %v6359_v38  ;;  %v6346_v28 = vmax.f32 %v6344_v21, %v6345_v29  ;;  %v6336_v56 = vmax.f32 %v6334_v35, %v6335_v23  ;;  %v6322_v37 = vmax.f32 %v6320_v50, %v6321_v60  ;;  %v12922_v41 = vld [vmem:[#allocation5 + $0x1b0] sm:$0xff]  ;;  %v6681_v23 = vld [vmem:[%s14913_s7 + $0x160] sm:$0xff] }
 0x6d9   : > { %v12900_v42 = vmax.f32 %v6241_v59, 0.0  ;;  %7180 = vmatpush.msra.mxu1 %v6681_v23  ;;  %v6677_v60 = vld [vmem:[%s14913_s7 + $0x140] sm:$0xff] }
 0x6da   : > { %v6148_v36 = vpop.permute.xlu0 %6147  ;;  %v6361_v10 = vrot.slane %v6360_v45, 2  ;;  %v6347_v57 = vrot.slane %v6346_v28, 2  ;;  %v6542_v27 = vsel %vm5702_vm10, %v6336_v56, -inf  ;;  %v6536_v0 = vsel %vm5702_vm10, %v6322_v37, -inf }
 0x6db   : > { %v6168_v43 = vadd.f32 %v6148_v36, %v12785_v58  ;;  %v6275_v49 = vrot.slane %v12900_v42, 2  ;;  %v6277_v9 = vrot.slane %v12900_v42, 6  ;;  %7181 = vmatpush.msra.mxu1 %v6677_v60  ;;  %v6309_v56 = vsel %vm6308_vm13, %v12851_v13, -inf }
 0x6dc   : > { %v6362_v22 = vmax.f32 %v6360_v45, %v6361_v10  ;;  %v6348_v48 = vmax.f32 %v6346_v28, %v6347_v57  ;;  %v6390_v45 = vmax.f32 %v6388_v18, %v6389_v46  ;;  %v6376_v28 = vmax.f32 %v6374_v14, %v6375_v26 }
 0x6dd   : > { %v6227_v12 = vadd.f32 %v6219_v20, %v6168_v43  ;;  %v6456_v4 = vsel %vm6308_vm13, %v6275_v49, -inf  ;;  %v6470_v5 = vsel %vm6308_vm13, %v6277_v9, -inf  ;;  %v6741_v20 = vld [vmem:[%s14913_s7 + $0x340] sm:$0xff] }
 0x6de   : > { %v6363_v40 = vrot.slane %v6362_v22, 1  ;;  %v6349_v11 = vrot.slane %v6348_v48, 1  ;;  %v6457_v55 = vrot.slane %v6456_v4, 4  ;;  %v6471_v19 = vrot.slane %v6470_v5, 4  ;;  %7201 = vmatpush.msrb.mxu2 %v6741_v20 }
 0x6df   : > { %v6239_v58 = vadd.f32 %v12835_v30, %v6227_v12  ;;  %v6391_v16 = vrot.slane %v6390_v45, 1  ;;  %v6377_v52 = vrot.slane %v6376_v28, 1 }
 0x6e0   : > { %v6364_v44 = vmax.f32 %v6362_v22, %v6363_v40  ;;  %v6350_v39 = vmax.f32 %v6348_v48, %v6349_v11  ;;  %v6472_v33 = vmax.f32 %v6470_v5, %v6471_v19  ;;  %v6458_v36 = vmax.f32 %v6456_v4, %v6457_v55 }
 0x6e1   : > { %v12911_v61 = vmax.f32 %v6239_v58, 0.0  ;;  %v6337_v40 = vsel %vm6308_vm13, %v12883_v24, -inf  ;;  %v6392_v37 = vmax.f32 %v6390_v45, %v6391_v16  ;;  %v6378_v14 = vmax.f32 %v6376_v28, %v6377_v52 }
 0x6e2   : > { %v6150_v25 = vpop.permute.xlu1 %6149  ;;  %v6543_v53 = vsel %vm5702_vm10, %v6364_v44, -inf  ;;  %v6537_v21 = vsel %vm5702_vm10, %v6350_v39, -inf  ;;  %v6473_v22 = vrot.slane %v6472_v33, 2  ;;  %v6459_v58 = vrot.slane %v6458_v36, 2 }
 0x6e3   : > { %v6269_v7 = vrot.slane %v12911_v61, 2  ;;  %v6271_v6 = vrot.slane %v12911_v61, 6  ;;  %v6169_v62 = vadd.f32 %v6150_v25, %v12764_v31  ;;  %v6544_v2 = vmax.f32 %v6542_v27, %v6543_v53  ;;  %v6181_v27 = vld [vmem:[#allocation5 + $0x1d8] sm:$0x1] }
 0x6e4   : > { %v6538_v35 = vmax.f32 %v6536_v0, %v6537_v21  ;;  %v6204_v31 = vrot.slane %v12922_v41, 1  ;;  %v6310_v39 = vrot.slane %v6309_v56, 4  ;;  %v6338_v46 = vrot.slane %v6337_v40, 4 }
 0x6e5   : > { %v6400_v29 = vsel %vm6308_vm13, %v6269_v7, -inf  ;;  %v6414_v38 = vsel %vm6308_vm13, %v6271_v6, -inf  ;;  %v6228_v15 = vadd.f32 %v6220_v32, %v6169_v62  ;;  %6596 = vrot.lane.b32.xlu0 %v6544_v2, %s8450_s30  ;;  %v6460_v7 = vmax.f32 %v6458_v36, %v6459_v58 }
 0x6e6   : > { %v6401_v50 = vrot.slane %v6400_v29, 4  ;;  %v6415_v59 = vrot.slane %v6414_v38, 4  ;;  %6587 = vrot.lane.b32.xlu2 %v6538_v35, %s8450_s30  ;;  %v6205_v54 = vsel %vm2528_vm12, %v6202_v1, %v6204_v31  ;;  %v6474_v1 = vmax.f32 %v6472_v33, %v6473_v22 }
 0x6e7   : > { %v6240_v10 = vadd.f32 %v12835_v30, %v6228_v15  ;;  %v6222_v19 = vsel %vm12625_vm5, %v6205_v54, 0.0  ;;  %v6554_v21 = vsel %vm5702_vm10, %v6392_v37, -inf  ;;  %v6461_v51 = vrot.slane %v6460_v7, 1 }
 0x6e8   : > { %v6416_v57 = vmax.f32 %v6414_v38, %v6415_v59  ;;  %v6402_v43 = vmax.f32 %v6400_v29, %v6401_v50  ;;  %v6548_v29 = vsel %vm5702_vm10, %v6378_v14, -inf  ;;  %v6206_v38 = vrot.slane %v6181_v27, 1 }
 0x6e9   : > { %v12942_v49 = vmax.f32 %v6240_v10, 0.0  ;;  %v6475_v2 = vrot.slane %v6474_v1, 1  ;;  %v6673_v10 = vld [vmem:[%s14913_s7 + $0x120] sm:$0xff]  ;;  %v6462_v54 = vmax.f32 %v6460_v7, %v6461_v51 }
 0x6ea   : > { %v6417_v9 = vrot.slane %v6416_v57, 2  ;;  %v6403_v12 = vrot.slane %v6402_v43, 2  ;;  %v6207_v60 = vsel %vm2528_vm12, %v6204_v31, %v6206_v38  ;;  %7182 = vmatpush.msra.mxu1 %v6673_v10  ;;  %v6365_v10 = vsel %vm6308_vm13, %v12881_v8, -inf }
 0x6eb   : > { %v6272_v48 = vrot.slane %v12942_v49, 2  ;;  %v6274_v4 = vrot.slane %v12942_v49, 6  ;;  %v6476_v52 = vmax.f32 %v6474_v1, %v6475_v2  ;;  %v6223_v58 = vsel %vm12794_vm11, %v6207_v60, 0.0 }
 0x6ec   : > { %v6418_v5 = vmax.f32 %v6416_v57, %v6417_v9  ;;  %v6404_v11 = vmax.f32 %v6402_v43, %v6403_v12  ;;  %v6311_v57 = vmax.f32 %v6309_v56, %v6310_v39  ;;  %v6339_v43 = vmax.f32 %v6337_v40, %v6338_v46  ;;  %v6733_v9 = vld [vmem:[%s14913_s7 + $0x300] sm:$0xff] }
 0x6ed   : > { %v6428_v18 = vsel %vm6308_vm13, %v6272_v48, -inf  ;;  %v6442_v47 = vsel %vm6308_vm13, %v6274_v4, -inf  ;;  %v6669_v12 = vld [vmem:[%s14913_s7 + $0x100] sm:$0xff] }
 0x6ee   : > { %v6429_v32 = vrot.slane %v6428_v18, 4  ;;  %v6443_v44 = vrot.slane %v6442_v47, 4  ;;  %v6419_v55 = vrot.slane %v6418_v5, 1  ;;  %v6405_v25 = vrot.slane %v6404_v11, 1  ;;  %7183 = vmatpush.msra.mxu1 %v6669_v12 }
 0x6ef   : > { %v6312_v56 = vrot.slane %v6311_v57, 2  ;;  %v6340_v48 = vrot.slane %v6339_v43, 2 }
 0x6f0   : > { %v6420_v6 = vmax.f32 %v6418_v5, %v6419_v55  ;;  %v6406_v26 = vmax.f32 %v6404_v11, %v6405_v25  ;;  %v6444_v62 = vmax.f32 %v6442_v47, %v6443_v44  ;;  %v6430_v53 = vmax.f32 %v6428_v18, %v6429_v32 }
 0x6f1   : > { %v6313_v37 = vmax.f32 %v6311_v57, %v6312_v56  ;;  %v6567_v18 = vsel %vm5702_vm10, %v6476_v52, -inf  ;;  %v6341_v47 = vmax.f32 %v6339_v43, %v6340_v48  ;;  %v6561_v44 = vsel %vm5702_vm10, %v6462_v54, -inf }
 0x6f2   : > { %v6154_v0 = vpop.permute.xlu0 %6153  ;;  %v6555_v50 = vsel %vm5702_vm10, %v6420_v6, -inf  ;;  %v6549_v59 = vsel %vm5702_vm10, %v6406_v26, -inf  ;;  %v6445_v63 = vrot.slane %v6444_v62, 2  ;;  %v6431_v28 = vrot.slane %v6430_v53, 2 }
 0x6f3   : > { %v6171_v35 = vadd.f32 %v6154_v0, %v12868_v17  ;;  %v6556_v15 = vmax.f32 %v6554_v21, %v6555_v50  ;;  %v6550_v45 = vmax.f32 %v6548_v29, %v6549_v59  ;;  %v6737_v17 = vld [vmem:[%s14913_s7 + $0x320] sm:$0xff]  ;;  %v6314_v7 = vrot.slane %v6313_v37, 1 }
 0x6f4   : > { %v6446_v36 = vmax.f32 %v6444_v62, %v6445_v63  ;;  %v6432_v23 = vmax.f32 %v6430_v53, %v6431_v28  ;;  %7202 = vmatpush.msrb.mxu2 %v6737_v17  ;;  %v6261_v6 = vrot.slane %v12851_v13, 4  ;;  %v6264_v28 = vrot.slane %v12883_v24, 4 }
 0x6f5   : > { %v6230_v33 = vadd.f32 %v6222_v19, %v6171_v35  ;;  %6608 = vrot.lane.b32.xlu2 %v6556_v15, %s8450_s30  ;;  %6602 = vrot.lane.b32.xlu1 %v6550_v45, %s8450_s30  ;;  %v6315_v0 = vmax.f32 %v6313_v37, %v6314_v7  ;;  %v15370_v15 = vlaneseq  ;;  %v6267_v45 = vrot.slane %v12881_v8, 4 }
 0x6f6   : > { %v6447_v16 = vrot.slane %v6446_v36, 1  ;;  %v6433_v22 = vrot.slane %v6432_v23, 1  ;;  %7203 = vmatpush.msrb.mxu2 %v6733_v9  ;;  %v6323_v50 = vsel %vm6308_vm13, %v6261_v6, -inf  ;;  %v6366_v24 = vrot.slane %v6365_v10, 4 }
 0x6f7   : > { %v6242_v20 = vadd.f32 %v12835_v30, %v6230_v33  ;;  %v6533_v63 = vsel %vm5702_vm10, %v6315_v0, -inf  ;;  %vm13007_vm12 = vcmp.lt.s32.totalorder %v15370_v15, 64  ;;  %v6324_v17 = vrot.slane %v6323_v50, 4 }
 0x6f8   : > { %v6448_v41 = vmax.f32 %v6446_v36, %v6447_v16  ;;  %v6434_v40 = vmax.f32 %v6432_v23, %v6433_v22  ;;  %v6351_v22 = vsel %vm6308_vm13, %v6264_v28, -inf  ;;  %vm6590_vm9 = vcmp.ge.s32.totalorder %v15370_v15, 64 }
 0x6f9   : > { %v12982_v4 = vmax.f32 %v6242_v20, 0.0  ;;  %v6325_v60 = vmax.f32 %v6323_v50, %v6324_v17  ;;  %vm6591_vm15 = vcmp.lt.s32.totalorder %v15370_v15, 128  ;;  %v7061_v15 = vld [vmem:[%s14913_s7 + $0xd40] sm:$0xff] }
 0x6fa   : > { %v6156_v31 = vpop.permute.xlu1 %6155  ;;  %v6566_v1 = vsel %vm5702_vm10, %v6448_v41, -inf  ;;  %v6560_v32 = vsel %vm5702_vm10, %v6434_v40, -inf  ;;  %v6379_v41 = vsel %vm6308_vm13, %v6267_v45, -inf  ;;  %vm13117_vm14 = vmand %vm6590_vm9, %vm6591_vm15 }
 0x6fb   : > { %v6278_v5 = vrot.slane %v12982_v4, 2  ;;  %v6280_v11 = vrot.slane %v12982_v4, 6  ;;  %v6172_v14 = vadd.f32 %v6156_v31, %v12848_v34  ;;  %v6568_v25 = vmax.f32 %v6566_v1, %v6567_v18 }
 0x6fc   : > { %v6562_v27 = vmax.f32 %v6560_v32, %v6561_v44  ;;  %v6342_v34 = vrot.slane %v6341_v47, 1  ;;  %v6326_v12 = vrot.slane %v6325_v60, 2  ;;  %v6352_v31 = vrot.slane %v6351_v22, 4 }
 0x6fd   : > { %v6484_v3 = vsel %vm6308_vm13, %v6278_v5, -inf  ;;  %v6498_v55 = vsel %vm6308_vm13, %v6280_v11, -inf  ;;  %v6231_v19 = vadd.f32 %v6223_v58, %v6172_v14  ;;  %6620 = vrot.lane.b32.xlu1 %v6568_v25, %s8450_s30  ;;  %v6449_v58 = vsel %vm6308_vm13, %v12900_v42, -inf }
 0x6fe   : > { %v6485_v39 = vrot.slane %v6484_v3, 4  ;;  %v6499_v46 = vrot.slane %v6498_v55, 4  ;;  %6614 = vrot.lane.b32.xlu0 %v6562_v27, %s8450_s30  ;;  %v6343_v21 = vmax.f32 %v6341_v47, %v6342_v34  ;;  %v6327_v8 = vmax.f32 %v6325_v60, %v6326_v12 }
 0x6ff   : > { %v6243_v26 = vadd.f32 %v12835_v30, %v6231_v19  ;;  %v6380_v11 = vrot.slane %v6379_v41, 4  ;;  %v6353_v18 = vmax.f32 %v6351_v22, %v6352_v31  ;;  %v6367_v47 = vmax.f32 %v6365_v10, %v6366_v24  ;;  %v6713_v30 = vld [vmem:[%s14913_s7 + $0x260] sm:$0xff] }
 0x700   : > { %v6500_v62 = vmax.f32 %v6498_v55, %v6499_v46  ;;  %v6486_v53 = vmax.f32 %v6484_v3, %v6485_v39  ;;  %v6534_v35 = vsel %vm5702_vm10, %v6343_v21, -inf  ;;  %v6276_v14 = vrot.slane %v12900_v42, 4 }
 0x701   : > { %v12999_v29 = vmax.f32 %v6243_v26, 0.0  ;;  %v6535_v51 = vmax.f32 %v6533_v63, %v6534_v35  ;;  %v6328_v3 = vrot.slane %v6327_v8, 1  ;;  %v6354_v55 = vrot.slane %v6353_v18, 2 }
 0x702   : > { %v6501_v38 = vrot.slane %v6500_v62, 2  ;;  %v6487_v2 = vrot.slane %v6486_v53, 2  ;;  %v6450_v25 = vrot.slane %v6449_v58, 4  ;;  %v6393_v27 = vsel %vm6308_vm13, %v12911_v61, -inf }
 0x703   : > { %v6281_v13 = vrot.slane %v12999_v29, 2  ;;  %v6283_v59 = vrot.slane %v12999_v29, 6  ;;  %6585 = vst.msk [vmem:[#allocation6] sm:$0x1] %vm13007_vm12, %v6535_v51  ;;  %v6381_v7 = vmax.f32 %v6379_v41, %v6380_v11  ;;  %v6355_v6 = vmax.f32 %v6353_v18, %v6354_v55 }
 0x704   : > { %v6502_v23 = vmax.f32 %v6500_v62, %v6501_v38  ;;  %v6488_v20 = vmax.f32 %v6486_v53, %v6487_v2  ;;  %v6368_v34 = vrot.slane %v6367_v47, 2  ;;  %v6463_v53 = vsel %vm6308_vm13, %v6276_v14, -inf }
 0x705   : > { %v6512_v33 = vsel %vm6308_vm13, %v6281_v13, -inf  ;;  %v6526_v36 = vsel %vm6308_vm13, %v6283_v59, -inf  ;;  %v6329_v38 = vmax.f32 %v6327_v8, %v6328_v3  ;;  %v6356_v2 = vrot.slane %v6355_v6, 1 }
 0x706   : > { %v6513_v57 = vrot.slane %v6512_v33, 4  ;;  %v6527_v43 = vrot.slane %v6526_v36, 4  ;;  %v6503_v9 = vrot.slane %v6502_v23, 1  ;;  %v6489_v56 = vrot.slane %v6488_v20, 1 }
 0x707   : > { %v6270_v35 = vrot.slane %v12911_v61, 4  ;;  %v6382_v50 = vrot.slane %v6381_v7, 2  ;;  %v6357_v13 = vmax.f32 %v6355_v6, %v6356_v2  ;;  %v6464_v59 = vrot.slane %v6463_v53, 4 }
 0x708   : > { %v6528_v16 = vmax.f32 %v6526_v36, %v6527_v43  ;;  %v6514_v52 = vmax.f32 %v6512_v33, %v6513_v57  ;;  %v6504_v5 = vmax.f32 %v6502_v23, %v6503_v9  ;;  %v6490_v32 = vmax.f32 %v6488_v20, %v6489_v56 }
 0x709   : > { %v6394_v63 = vrot.slane %v6393_v27, 4  ;;  %v6539_v45 = vsel %vm5702_vm10, %v6329_v38, -inf  ;;  %v6540_v28 = vsel %vm5702_vm10, %v6357_v13, -inf  ;;  %v6369_v51 = vmax.f32 %v6367_v47, %v6368_v34 }
 0x70a   : > { %v6529_v54 = vrot.slane %v6528_v16, 2  ;;  %v6515_v48 = vrot.slane %v6514_v52, 2  ;;  %v6578_v19 = vsel %vm5702_vm10, %v6504_v5, -inf  ;;  %v6572_v42 = vsel %vm5702_vm10, %v6490_v32, -inf }
 0x70b   : > { %v6451_v33 = vmax.f32 %v6449_v58, %v6450_v25  ;;  %v6541_v36 = vmax.f32 %v6539_v45, %v6540_v28  ;;  %v6383_v23 = vmax.f32 %v6381_v7, %v6382_v50  ;;  %v6407_v17 = vsel %vm6308_vm13, %v6270_v35, -inf  ;;  %v6729_v58 = vld [vmem:[%s14913_s7 + $0x2e0] sm:$0xff] }
 0x70c   : > { %v6530_v40 = vmax.f32 %v6528_v16, %v6529_v54  ;;  %v6516_v37 = vmax.f32 %v6514_v52, %v6515_v48  ;;  %v6465_v10 = vmax.f32 %v6463_v53, %v6464_v59  ;;  %v6408_v61 = vrot.slane %v6407_v17, 4  ;;  %7204 = vmatpush.msrb.mxu2 %v6729_v58  ;;  %v6725_v58 = vld [vmem:[%s14913_s7 + $0x2c0] sm:$0xff] }
 0x70d   : > { %6594 = vst.msk [vmem:[#allocation6 + $0x1] sm:$0x1] %vm13007_vm12, %v6541_v36  ;;  %v6395_v57 = vmax.f32 %v6393_v27, %v6394_v63  ;;  %v6421_v43 = vsel %vm6308_vm13, %v12942_v49, -inf  ;;  %v6370_v20 = vrot.slane %v6369_v51, 1  ;;  %v6452_v60 = vrot.slane %v6451_v33, 2  ;;  %v7077_v36 = vld [vmem:[%s14913_s7 + $0xdc0] sm:$0xff] }
 0x70e   : > { %v6531_v1 = vrot.slane %v6530_v40, 1  ;;  %v6517_v44 = vrot.slane %v6516_v37, 1  ;;  %v6409_v16 = vmax.f32 %v6407_v17, %v6408_v61  ;;  %v6273_v24 = vrot.slane %v12942_v49, 4  ;;  %7205 = vmatpush.msrb.mxu2 %v6725_v58  ;;  %v6822_v58 = vld [vmem:[%s14913_s7 + $0x5c8] sm:$0xff] }
 0x70f   : > { %v6396_v52 = vrot.slane %v6395_v57, 2  ;;  %v6384_v9 = vrot.slane %v6383_v23, 1  ;;  %v6466_v12 = vrot.slane %v6465_v10, 2  ;;  %v6422_v22 = vrot.slane %v6421_v43, 4 }
 0x710   : > { %v6532_v39 = vmax.f32 %v6530_v40, %v6531_v1  ;;  %v6518_v46 = vmax.f32 %v6516_v37, %v6517_v44  ;;  %v6410_v54 = vrot.slane %v6409_v16, 2  ;;  %v6371_v48 = vmax.f32 %v6369_v51, %v6370_v20  ;;  %v6665_v51 = vld [vmem:[%s14913_s7 + $0xe0] sm:$0xff] }
 0x711   : > { %v6397_v56 = vmax.f32 %v6395_v57, %v6396_v52  ;;  %v6453_v41 = vmax.f32 %v6451_v33, %v6452_v60  ;;  %v6385_v40 = vmax.f32 %v6383_v23, %v6384_v9  ;;  %v6435_v37 = vsel %vm6308_vm13, %v6273_v24, -inf  ;;  %v7081_v33 = vld [vmem:[%s14913_s7 + $0xde0] sm:$0xff]  ;;  %7184 = vmatpush.msra.mxu1 %v6665_v51 }
 0x712   : > { %v6579_v26 = vsel %vm5702_vm10, %v6532_v39, -inf  ;;  %v6573_v62 = vsel %vm5702_vm10, %v6518_v46, -inf  ;;  %v6411_v8 = vmax.f32 %v6409_v16, %v6410_v54  ;;  %v6467_v5 = vmax.f32 %v6465_v10, %v6466_v12  ;;  %7296 = vmatpush.msra.mxu3 %v7081_v33  ;;  %v7141_v23 = vld [vmem:[%s14913_s7 + $0xfc0] sm:$0xff] }
 0x713   : > { %v6580_v0 = vmax.f32 %v6578_v19, %v6579_v26  ;;  %v6574_v21 = vmax.f32 %v6572_v42, %v6573_v62  ;;  %v6398_v31 = vrot.slane %v6397_v56, 1  ;;  %v6436_v18 = vrot.slane %v6435_v37, 4  ;;  %v7073_v9 = vld [vmem:[%s14913_s7 + $0xda0] sm:$0xff] }
 0x714   : > { %v6412_v11 = vrot.slane %v6411_v8, 1  ;;  %v6423_v47 = vmax.f32 %v6421_v43, %v6422_v22  ;;  %v6545_v14 = vsel %vm5702_vm10, %v6371_v48, -inf  ;;  %v6454_v1 = vrot.slane %v6453_v41, 1  ;;  %7297 = vmatpush.msra.mxu3 %v7077_v36  ;;  %v7137_v12 = vld [vmem:[%s14913_s7 + $0xfa0] sm:$0xff] }
 0x715   : > { %6632 = vrot.lane.b32.xlu0 %v6580_v0, %s8450_s30  ;;  %6626 = vrot.lane.b32.xlu2 %v6574_v21, %s8450_s30  ;;  %v6399_v49 = vmax.f32 %v6397_v56, %v6398_v31  ;;  %v6437_v3 = vmax.f32 %v6435_v37, %v6436_v18  ;;  %v6551_v25 = vsel %vm5702_vm10, %v6385_v40, -inf  ;;  %v6468_v19 = vrot.slane %v6467_v5, 1  ;;  %v7069_v22 = vld [vmem:[%s14913_s7 + $0xd80] sm:$0xff]  ;;  %s7968_s30 = scalar_lea.sflag [#allocation8], %s15375_s25 }
 0x716   : > { %v6413_v32 = vmax.f32 %v6411_v8, %v6412_v11  ;;  %v6424_v55 = vrot.slane %v6423_v47, 2  ;;  %v6455_v42 = vmax.f32 %v6453_v41, %v6454_v1  ;;  %v6477_v21 = vsel %vm6308_vm13, %v12982_v4, -inf  ;;  %7298 = vmatpush.msra.mxu3 %v7073_v9  ;;  %v7065_v8 = vld [vmem:[%s14913_s7 + $0xd60] sm:$0xff] }
 0x717   : > { %v6546_v44 = vsel %vm5702_vm10, %v6399_v49, -inf  ;;  %v6438_v46 = vrot.slane %v6437_v3, 2  ;;  %v6469_v53 = vmax.f32 %v6467_v5, %v6468_v19  ;;  %v6279_v50 = vrot.slane %v12982_v4, 4  ;;  %v7145_v4 = vld [vmem:[%s14913_s7 + $0xfe0] sm:$0xff] }
 0x718   : > { %v6547_v27 = vmax.f32 %v6545_v14, %v6546_v44  ;;  %v6552_v39 = vsel %vm5702_vm10, %v6413_v32, -inf  ;;  %v6425_v7 = vmax.f32 %v6423_v47, %v6424_v55  ;;  %v6558_v35 = vsel %vm5702_vm10, %v6455_v42, -inf  ;;  %7316 = vmatpush.msra.mxu0 %v7145_v4  ;;  %v7129_v31 = vld [vmem:[%s14913_s7 + $0xf60] sm:$0xff]  ;;  %7299 = vmatpush.msra.mxu3 %v7069_v22 }
 0x719   : > { %v6553_v6 = vmax.f32 %v6551_v25, %v6552_v39  ;;  %v6439_v34 = vmax.f32 %v6437_v3, %v6438_v46  ;;  %v6478_v59 = vrot.slane %v6477_v21, 4  ;;  %v6564_v45 = vsel %vm5702_vm10, %v6469_v53, -inf  ;;  %v7125_v11 = vld [vmem:[%s14913_s7 + $0xf40] sm:$0xff] }
 0x71a   : > { %6600 = vst.msk [vmem:[#allocation6 + $0x2] sm:$0x1] %vm13007_vm12, %v6547_v27  ;;  %v6426_v26 = vrot.slane %v6425_v7, 1  ;;  %v6491_v17 = vsel %vm6308_vm13, %v6279_v50, -inf  ;;  %v6505_v57 = vsel %vm6308_vm13, %v12999_v29, -inf  ;;  %7317 = vmatpush.msra.mxu0 %v7141_v23  ;;  %v6282_v60 = vrot.slane %v12999_v29, 4  ;;  %7300 = vmatpush.msra.mxu3 %v7065_v8 }
 0x71b   : > { %6606 = vst.msk [vmem:[#allocation6 + $0x3] sm:$0x1] %vm13007_vm12, %v6553_v6  ;;  %v6440_v62 = vrot.slane %v6439_v34, 1  ;;  %v6479_v10 = vmax.f32 %v6477_v21, %v6478_v59  ;;  %v6492_v61 = vrot.slane %v6491_v17, 4  ;;  %v6506_v16 = vrot.slane %v6505_v57, 4  ;;  %v7133_v29 = vld [vmem:[%s14913_s7 + $0xf80] sm:$0xff] }
 0x71c   : > { %v6427_v0 = vmax.f32 %v6425_v7, %v6426_v26  ;;  %v6519_v54 = vsel %vm6308_vm13, %v6282_v60, -inf  ;;  %7318 = vmatpush.msra.mxu0 %v7137_v12  ;;  %v6661_v49 = vld [vmem:[%s14913_s7 + $0xc0] sm:$0xff]  ;;  %7301 = vmatpush.msra.mxu3 %v7061_v15 }
 0x71d   : > { %v6441_v38 = vmax.f32 %v6439_v34, %v6440_v62  ;;  %v6480_v43 = vrot.slane %v6479_v10, 2  ;;  %v6493_v20 = vmax.f32 %v6491_v17, %v6492_v61  ;;  %v6507_v56 = vmax.f32 %v6505_v57, %v6506_v16  ;;  %v7057_v32 = vld [vmem:[%s14913_s7 + $0xd20] sm:$0xff]  ;;  %7185 = vmatpush.msra.mxu1 %v6661_v49  ;;  %v6882_v49 = vld [vmem:[%s14913_s7 + $0x7a8] sm:$0xff] }
 0x71e   : > { %v6557_v2 = vsel %vm5702_vm10, %v6427_v0, -inf  ;;  %v6520_v41 = vrot.slane %v6519_v54, 4  ;;  %7319 = vmatpush.msra.mxu0 %v7133_v29  ;;  %v7121_v44 = vld [vmem:[%s14913_s7 + $0xf20] sm:$0xff]  ;;  %7302 = vmatpush.msra.mxu3 %v7057_v32  ;;  %v6878_v32 = vld [vmem:[%s14913_s7 + $0x788] sm:$0xff] }
 0x71f   : > { %v6559_v13 = vmax.f32 %v6557_v2, %v6558_v35  ;;  %v6563_v63 = vsel %vm5702_vm10, %v6441_v38, -inf  ;;  %v6494_v52 = vrot.slane %v6493_v20, 2  ;;  %v6481_v24 = vmax.f32 %v6479_v10, %v6480_v43  ;;  %v7053_v39 = vld [vmem:[%s14913_s7 + $0xd00] sm:$0xff] }
 0x720   : > { %v6565_v28 = vmax.f32 %v6563_v63, %v6564_v45  ;;  %v6508_v37 = vrot.slane %v6507_v56, 2  ;;  %v6521_v5 = vmax.f32 %v6519_v54, %v6520_v41  ;;  %7320 = vmatpush.msra.mxu0 %v7129_v31  ;;  %v7117_v46 = vld [vmem:[%s14913_s7 + $0xf00] sm:$0xff]  ;;  %7303 = vmatpush.msra.mxu3 %v7053_v39  ;;  %v6890_v41 = vld [vmem:[%s14913_s7 + $0x7e8] sm:$0xff] }
 0x721   : > { %6612 = vst.msk [vmem:[#allocation6 + $0x4] sm:$0x1] %vm13007_vm12, %v6559_v13  ;;  %v6495_v48 = vmax.f32 %v6493_v20, %v6494_v52  ;;  %v6482_v40 = vrot.slane %v6481_v24, 1  ;;  %v7049_v34 = vld [vmem:[%s14913_s7 + $0xce0] sm:$0xff] }
 0x722   : > { %6618 = vst.msk [vmem:[#allocation6 + $0x5] sm:$0x1] %vm13007_vm12, %v6565_v28  ;;  %v6509_v47 = vmax.f32 %v6507_v56, %v6508_v37  ;;  %v6522_v1 = vrot.slane %v6521_v5, 2  ;;  %7321 = vmatpush.msra.mxu0 %v7125_v11  ;;  %v7113_v26 = vld [vmem:[%s14913_s7 + $0xee0] sm:$0xff]  ;;  %7304 = vmatpush.msra.mxu3 %v7049_v34  ;;  %v6818_v11 = vld [vmem:[%s14913_s7 + $0x5a8] sm:$0xff] }
 0x723   : > { %v6496_v14 = vrot.slane %v6495_v48, 1  ;;  %v6483_v55 = vmax.f32 %v6481_v24, %v6482_v40  ;;  %v7045_v0 = vld [vmem:[%s14913_s7 + $0xcc0] sm:$0xff]  ;;  %v6886_v40 = vld [vmem:[%s14913_s7 + $0x7c8] sm:$0xff] }
 0x724   : > { %v6510_v25 = vrot.slane %v6509_v47, 1  ;;  %v6523_v27 = vmax.f32 %v6521_v5, %v6522_v1  ;;  %7322 = vmatpush.msra.mxu0 %v7121_v44  ;;  %v7109_v21 = vld [vmem:[%s14913_s7 + $0xec0] sm:$0xff]  ;;  %7305 = vmatpush.msra.mxu3 %v7045_v0  ;;  %v6814_v1 = vld [vmem:[%s14913_s7 + $0x588] sm:$0xff] }
 0x725   : > { %v6497_v7 = vmax.f32 %v6495_v48, %v6496_v14  ;;  %v6569_v42 = vsel %vm5702_vm10, %v6483_v55, -inf  ;;  %v6657_v13 = vld [vmem:[%s14913_s7 + $0xa0] sm:$0xff]  ;;  %v6826_v48 = vld [vmem:[%s14913_s7 + $0x5e8] sm:$0xff] }
 0x726   : > { %v6511_v19 = vmax.f32 %v6509_v47, %v6510_v25  ;;  %v6524_v6 = vrot.slane %v6523_v27, 1  ;;  %7323 = vmatpush.msra.mxu0 %v7117_v46  ;;  %v6721_v59 = vld [vmem:[%s14913_s7 + $0x2a0] sm:$0xff]  ;;  %7186 = vmatpush.msra.mxu1 %v6657_v13  ;;  %v6810_v55 = vld [vmem:[%s14913_s7 + $0x568] sm:$0xff] }
 0x727   : > { %v6575_v2 = vsel %vm5702_vm10, %v6497_v7, -inf  ;;  %v7041_v63 = vld [vmem:[%s14913_s7 + $0xca0] sm:$0xff]  ;;  %7206 = vmatpush.msrb.mxu2 %v6721_v59  ;;  %v6874_v25 = vld [vmem:[%s14913_s7 + $0x768] sm:$0xff] }
 0x728   : > { %v6570_v62 = vsel %vm5702_vm10, %v6511_v19, -inf  ;;  %v6525_v53 = vmax.f32 %v6523_v27, %v6524_v6  ;;  %7324 = vmatpush.msra.mxu0 %v7113_v26  ;;  %v7105_v45 = vld [vmem:[%s14913_s7 + $0xea0] sm:$0xff]  ;;  %7306 = vmatpush.msra.mxu3 %v7041_v63  ;;  %v6806_v46 = vld [vmem:[%s14913_s7 + $0x548] sm:$0xff] }
 0x729   : > { %v6571_v38 = vmax.f32 %v6569_v42, %v6570_v62  ;;  %v6653_v28 = vld [vmem:[%s14913_s7 + $0x80] sm:$0xff]  ;;  %v6870_v19 = vld [vmem:[%s14913_s7 + $0x748] sm:$0xff] }
 0x72a   : > { %v6576_v35 = vsel %vm5702_vm10, %v6525_v53, -inf  ;;  %7325 = vmatpush.msra.mxu0 %v7109_v21  ;;  %v6717_v51 = vld [vmem:[%s14913_s7 + $0x280] sm:$0xff]  ;;  %7187 = vmatpush.msra.mxu1 %v6653_v28  ;;  %v6802_v34 = vld [vmem:[%s14913_s7 + $0x528] sm:$0xff]  ;;  %vm7965_vm10 = vcmask 73728  }
 0x72b   : > { %6624 = vst.msk [vmem:[#allocation6 + $0x6] sm:$0x1] %vm13007_vm12, %v6571_v38  ;;  %v6577_v50 = vmax.f32 %v6575_v2, %v6576_v35  ;;  %v7037_v33 = vld [vmem:[%s14913_s7 + $0xc80] sm:$0xff]  ;;  %7207 = vmatpush.msrb.mxu2 %v6717_v51  ;;  %v6866_v26 = vld [vmem:[%s14913_s7 + $0x728] sm:$0xff] }
 0x72c   : > { %7326 = vmatpush.msra.mxu0 %v7105_v45  ;;  %v7101_v4 = vld [vmem:[%s14913_s7 + $0xe80] sm:$0xff]  ;;  %7307 = vmatpush.msra.mxu3 %v7037_v33  ;;  %v6798_v53 = vld [vmem:[%s14913_s7 + $0x508] sm:$0xff] }
 0x72d   : > { %6630 = vst.msk [vmem:[#allocation6 + $0x7] sm:$0x1] %vm13007_vm12, %v6577_v50  ;;  %v6649_v36 = vld [vmem:[%s14913_s7 + $0x60] sm:$0xff]  ;;  %7208 = vmatpush.msrb.mxu2 %v6713_v30  ;;  %v6862_v0 = vld [vmem:[%s14913_s7 + $0x708] sm:$0xff] }
 0x72e   : > { %v7033_v23 = vld [vmem:[%s14913_s7 + $0xc60] sm:$0xff]  ;;  %7327 = vmatpush.msra.mxu0 %v7101_v4  ;;  %7188 = vmatpush.msra.mxu1 %v6649_v36  ;;  %v6794_v2 = vld [vmem:[%s14913_s7 + $0x4e8] sm:$0xff] }
 0x72f   : > { %v7097_v17 = vld [vmem:[%s14913_s7 + $0xe60] sm:$0xff]  ;;  %7308 = vmatpush.msra.mxu3 %v7033_v23  ;;  %v6858_v35 = vld [vmem:[%s14913_s7 + $0x6e8] sm:$0xff] }
 0x730   : > { %v6645_v10 = vld [vmem:[%s14913_s7 + $0x40] sm:$0xff]  ;;  %7328 = vmatpush.msra.mxu0 %v7097_v17  ;;  %v6790_v63 = vld [vmem:[%s14913_s7 + $0x4c8] sm:$0xff] }
 0x731   : > { %v6709_v61 = vld [vmem:[%s14913_s7 + $0x240] sm:$0xff]  ;;  %7189 = vmatpush.msra.mxu1 %v6645_v10  ;;  %v6854_v45 = vld [vmem:[%s14913_s7 + $0x6c8] sm:$0xff] }
 0x732   : > { %v7029_v57 = vld [vmem:[%s14913_s7 + $0xc40] sm:$0xff]  ;;  %7209 = vmatpush.msrb.mxu2 %v6709_v61  ;;  %v6786_v33 = vld [vmem:[%s14913_s7 + $0x4a8] sm:$0xff] }
 0x733   : > { %v7093_v43 = vld [vmem:[%s14913_s7 + $0xe40] sm:$0xff]  ;;  %7309 = vmatpush.msra.mxu3 %v7029_v57  ;;  %v6850_v4 = vld [vmem:[%s14913_s7 + $0x6a8] sm:$0xff] }
 0x734   : > { %7329 = vmatpush.msra.mxu0 %v7093_v43  ;;  %v6641_v60 = vld [vmem:[%s14913_s7 + $0x20] sm:$0xff]  ;;  %v6782_v23 = vld [vmem:[%s14913_s7 + $0x488] sm:$0xff] }
 0x735   : > { %v6705_v16 = vld [vmem:[%s14913_s7 + $0x220] sm:$0xff]  ;;  %7190 = vmatpush.msra.mxu1 %v6641_v60  ;;  %v6846_v17 = vld [vmem:[%s14913_s7 + $0x688] sm:$0xff] }
 0x736   : > { %v7025_v52 = vld [vmem:[%s14913_s7 + $0xc20] sm:$0xff]  ;;  %7210 = vmatpush.msrb.mxu2 %v6705_v16  ;;  %v6778_v57 = vld [vmem:[%s14913_s7 + $0x468] sm:$0xff] }
 0x737   : > { %v7089_v24 = vld [vmem:[%s14913_s7 + $0xe20] sm:$0xff]  ;;  %7310 = vmatpush.msra.mxu3 %v7025_v52  ;;  %v6842_v43 = vld [vmem:[%s14913_s7 + $0x668] sm:$0xff] }
 0x738   : > { %v6637_v9 = vld [vmem:[%s14913_s7] sm:$0xff]  ;;  %7330 = vmatpush.msra.mxu0 %v7089_v24  ;;  %v6774_v52 = vld [vmem:[%s14913_s7 + $0x448] sm:$0xff] }
 0x739   : > { %v6701_v12 = vld [vmem:[%s14913_s7 + $0x200] sm:$0xff]  ;;  %7191 = vmatpush.msra.mxu1 %v6637_v9  ;;  %v6838_v24 = vld [vmem:[%s14913_s7 + $0x648] sm:$0xff] }
 0x73a   : > { %v7021_v22 = vld [vmem:[%s14913_s7 + $0xc00] sm:$0xff]  ;;  %7211 = vmatpush.msrb.mxu2 %v6701_v12 }
 0x73b   : > { %v7085_v54 = vld [vmem:[%s14913_s7 + $0xe00] sm:$0xff]  ;;  %7311 = vmatpush.msra.mxu3 %v7021_v22 }
 0x73c   : > { %v6825_v29 = vld [vmem:[%s14913_s7 + $0x5e0] sm:$0xff]  ;;  %7331 = vmatpush.msra.mxu0 %v7085_v54 }
 0x73d   : > { %v6889_v56 = vld [vmem:[%s14913_s7 + $0x7e0] sm:$0xff]  ;;  %7216 = vmatpush.msrb.mxu1 %v6825_v29  ;;  %7376 = vmatpush.msrb.mxu3 %v6826_v48  ;;  %v6770_v29 = vld [vmem:[%s14913_s7 + $0x428] sm:$0xff] }
 0x73e   : > { %v6821_v8 = vld [vmem:[%s14913_s7 + $0x5c0] sm:$0xff]  ;;  %7236 = vmatpush.msra.mxu2 %v6889_v56  ;;  %7396 = vmatpush.msrb.mxu0 %v6890_v41  ;;  %v6834_v56 = vld [vmem:[%s14913_s7 + $0x628] sm:$0xff] }
 0x73f   : > { %v6885_v31 = vld [vmem:[%s14913_s7 + $0x7c0] sm:$0xff]  ;;  %7217 = vmatpush.msrb.mxu1 %v6821_v8  ;;  %7377 = vmatpush.msrb.mxu3 %v6822_v58  ;;  %v6766_v8 = vld [vmem:[%s14913_s7 + $0x408] sm:$0xff] }
 0x740   : > { %v6588_v3 = vpop.permute.xlu2 %6587  ;;  %v6817_v5 = vld [vmem:[%s14913_s7 + $0x5a0] sm:$0xff]  ;;  %7237 = vmatpush.msra.mxu2 %v6885_v31  ;;  %7397 = vmatpush.msrb.mxu0 %v6886_v40  ;;  %v6830_v31 = vld [vmem:[%s14913_s7 + $0x608] sm:$0xff] }
 0x741   : > { %6593 = vst.msk [vmem:[#allocation6] sm:$0x1] %vm13117_vm14, %v6588_v3  ;;  %v6881_v15 = vld [vmem:[%s14913_s7 + $0x7a0] sm:$0xff]  ;;  %7218 = vmatpush.msrb.mxu1 %v6817_v5  ;;  %7378 = vmatpush.msrb.mxu3 %v6818_v11 }
 0x742   : > { %v6813_v47 = vld [vmem:[%s14913_s7 + $0x580] sm:$0xff]  ;;  %7238 = vmatpush.msra.mxu2 %v6881_v15  ;;  %7398 = vmatpush.msrb.mxu0 %v6882_v49 }
 0x743   : > { %v6877_v14 = vld [vmem:[%s14913_s7 + $0x780] sm:$0xff]  ;;  %7219 = vmatpush.msrb.mxu1 %v6813_v47  ;;  %7379 = vmatpush.msrb.mxu3 %v6814_v1  ;;  %v7082_v47 = vld [vmem:[%s14913_s7 + $0xde8] sm:$0xff] }
 0x744   : > { %v6809_v44 = vld [vmem:[%s14913_s7 + $0x560] sm:$0xff]  ;;  %7239 = vmatpush.msra.mxu2 %v6877_v14  ;;  %7399 = vmatpush.msrb.mxu0 %v6878_v32  ;;  %v7146_v14 = vld [vmem:[%s14913_s7 + $0xfe8] sm:$0xff] }
 0x745   : > { %v6873_v3 = vld [vmem:[%s14913_s7 + $0x760] sm:$0xff]  ;;  %7220 = vmatpush.msrb.mxu1 %v6809_v44  ;;  %7380 = vmatpush.msrb.mxu3 %v6810_v55  ;;  %v7078_v44 = vld [vmem:[%s14913_s7 + $0xdc8] sm:$0xff] }
 0x746   : > { %v6805_v27 = vld [vmem:[%s14913_s7 + $0x540] sm:$0xff]  ;;  %7240 = vmatpush.msra.mxu2 %v6873_v3  ;;  %7400 = vmatpush.msrb.mxu0 %v6874_v25  ;;  %v7142_v3 = vld [vmem:[%s14913_s7 + $0xfc8] sm:$0xff] }
 0x747   : > { %v6869_v39 = vld [vmem:[%s14913_s7 + $0x740] sm:$0xff]  ;;  %7221 = vmatpush.msrb.mxu1 %v6805_v27  ;;  %7381 = vmatpush.msrb.mxu3 %v6806_v46  ;;  %v7074_v27 = vld [vmem:[%s14913_s7 + $0xda8] sm:$0xff] }
 0x748   : > { %v6801_v7 = vld [vmem:[%s14913_s7 + $0x520] sm:$0xff]  ;;  %7241 = vmatpush.msra.mxu2 %v6869_v39  ;;  %7401 = vmatpush.msrb.mxu0 %v6870_v19  ;;  %v7138_v39 = vld [vmem:[%s14913_s7 + $0xfa8] sm:$0xff] }
 0x749   : > { %v6865_v6 = vld [vmem:[%s14913_s7 + $0x720] sm:$0xff]  ;;  %7222 = vmatpush.msrb.mxu1 %v6801_v7  ;;  %7382 = vmatpush.msrb.mxu3 %v6802_v34  ;;  %v7070_v7 = vld [vmem:[%s14913_s7 + $0xd88] sm:$0xff] }
 0x74a   : > { %v6797_v42 = vld [vmem:[%s14913_s7 + $0x500] sm:$0xff]  ;;  %7242 = vmatpush.msra.mxu2 %v6865_v6  ;;  %7402 = vmatpush.msrb.mxu0 %v6866_v26  ;;  %v7134_v6 = vld [vmem:[%s14913_s7 + $0xf88] sm:$0xff] }
 0x74b   : > { %v6861_v62 = vld [vmem:[%s14913_s7 + $0x700] sm:$0xff]  ;;  %7223 = vmatpush.msrb.mxu1 %v6797_v42  ;;  %7383 = vmatpush.msrb.mxu3 %v6798_v53  ;;  %v7066_v53 = vld [vmem:[%s14913_s7 + $0xd68] sm:$0xff] }
 0x74c   : > { %v6793_v21 = vld [vmem:[%s14913_s7 + $0x4e0] sm:$0xff]  ;;  %7243 = vmatpush.msra.mxu2 %v6861_v62  ;;  %7403 = vmatpush.msrb.mxu0 %v6862_v0  ;;  %v7130_v0 = vld [vmem:[%s14913_s7 + $0xf68] sm:$0xff] }
 0x74d   : > { %v6857_v38 = vld [vmem:[%s14913_s7 + $0x6e0] sm:$0xff]  ;;  %7224 = vmatpush.msrb.mxu1 %v6793_v21  ;;  %7384 = vmatpush.msrb.mxu3 %v6794_v2  ;;  %v7062_v2 = vld [vmem:[%s14913_s7 + $0xd48] sm:$0xff] }
 0x74e   : > { %v6789_v50 = vld [vmem:[%s14913_s7 + $0x4c0] sm:$0xff]  ;;  %7244 = vmatpush.msra.mxu2 %v6857_v38  ;;  %7404 = vmatpush.msrb.mxu0 %v6858_v35  ;;  %v7126_v35 = vld [vmem:[%s14913_s7 + $0xf48] sm:$0xff] }
 0x74f   : > { %v6609_v20 = vpop.permute.xlu2 %6608  ;;  %v6853_v13 = vld [vmem:[%s14913_s7 + $0x6c0] sm:$0xff]  ;;  %7225 = vmatpush.msrb.mxu1 %v6789_v50  ;;  %7385 = vmatpush.msrb.mxu3 %v6790_v63  ;;  %v7122_v63 = vld [vmem:[%s14913_s7 + $0xf28] sm:$0xff] }
 0x750   : > { %6611 = vst.msk [vmem:[#allocation6 + $0x3] sm:$0x1] %vm13117_vm14, %v6609_v20  ;;  %v6785_v28 = vld [vmem:[%s14913_s7 + $0x4a0] sm:$0xff]  ;;  %7245 = vmatpush.msra.mxu2 %v6853_v13  ;;  %7405 = vmatpush.msrb.mxu0 %v6854_v45 }
 0x751   : > { %v6849_v51 = vld [vmem:[%s14913_s7 + $0x6a0] sm:$0xff]  ;;  %7226 = vmatpush.msrb.mxu1 %v6785_v28  ;;  %7386 = vmatpush.msrb.mxu3 %v6786_v33  ;;  %v7118_v33 = vld [vmem:[%s14913_s7 + $0xf08] sm:$0xff] }
 0x752   : > { %v6781_v36 = vld [vmem:[%s14913_s7 + $0x480] sm:$0xff]  ;;  %7246 = vmatpush.msra.mxu2 %v6849_v51  ;;  %7406 = vmatpush.msrb.mxu0 %v6850_v4  ;;  %v7054_v51 = vld [vmem:[%s14913_s7 + $0xd08] sm:$0xff] }
 0x753   : > { %v6845_v30 = vld [vmem:[%s14913_s7 + $0x680] sm:$0xff]  ;;  %7227 = vmatpush.msrb.mxu1 %v6781_v36  ;;  %7387 = vmatpush.msrb.mxu3 %v6782_v23  ;;  %v7114_v23 = vld [vmem:[%s14913_s7 + $0xee8] sm:$0xff] }
 0x754   : > { %v6777_v10 = vld [vmem:[%s14913_s7 + $0x460] sm:$0xff]  ;;  %7247 = vmatpush.msra.mxu2 %v6845_v30  ;;  %7407 = vmatpush.msrb.mxu0 %v6846_v17  ;;  %v7050_v30 = vld [vmem:[%s14913_s7 + $0xce8] sm:$0xff] }
 0x755   : > { %v6841_v61 = vld [vmem:[%s14913_s7 + $0x660] sm:$0xff]  ;;  %7228 = vmatpush.msrb.mxu1 %v6777_v10  ;;  %7388 = vmatpush.msrb.mxu3 %v6778_v57  ;;  %v7110_v57 = vld [vmem:[%s14913_s7 + $0xec8] sm:$0xff] }
 0x756   : > { %v6773_v20 = vld [vmem:[%s14913_s7 + $0x440] sm:$0xff]  ;;  %7248 = vmatpush.msra.mxu2 %v6841_v61  ;;  %7408 = vmatpush.msrb.mxu0 %v6842_v43  ;;  %v7046_v61 = vld [vmem:[%s14913_s7 + $0xcc8] sm:$0xff] }
 0x757   : > { %v6597_v37 = vpop.permute.xlu0 %6596  ;;  %v6837_v60 = vld [vmem:[%s14913_s7 + $0x640] sm:$0xff]  ;;  %7229 = vmatpush.msrb.mxu1 %v6773_v20  ;;  %7389 = vmatpush.msrb.mxu3 %v6774_v52 }
 0x758   : > { %6599 = vst.msk [vmem:[#allocation6 + $0x1] sm:$0x1] %vm13117_vm14, %v6597_v37  ;;  %v6769_v22 = vld [vmem:[%s14913_s7 + $0x420] sm:$0xff]  ;;  %7249 = vmatpush.msra.mxu2 %v6837_v60  ;;  %7409 = vmatpush.msrb.mxu0 %v6838_v24  ;;  %v7042_v60 = vld [vmem:[%s14913_s7 + $0xca8] sm:$0xff] }
 0x759   : > { %v6833_v54 = vld [vmem:[%s14913_s7 + $0x620] sm:$0xff]  ;;  %7230 = vmatpush.msrb.mxu1 %v6769_v22  ;;  %7390 = vmatpush.msrb.mxu3 %v6770_v29  ;;  %v7034_v29 = vld [vmem:[%s14913_s7 + $0xc68] sm:$0xff] }
 0x75a   : > { %v6765_v48 = vld [vmem:[%s14913_s7 + $0x400] sm:$0xff]  ;;  %7250 = vmatpush.msra.mxu2 %v6833_v54  ;;  %7410 = vmatpush.msrb.mxu0 %v6834_v56  ;;  %v7098_v56 = vld [vmem:[%s14913_s7 + $0xe68] sm:$0xff] }
 0x75b   : > { %v6829_v41 = vld [vmem:[%s14913_s7 + $0x600] sm:$0xff]  ;;  %7231 = vmatpush.msrb.mxu1 %v6765_v48  ;;  %7391 = vmatpush.msrb.mxu3 %v6766_v8  ;;  %v7030_v8 = vld [vmem:[%s14913_s7 + $0xc48] sm:$0xff] }
 0x75c   : > { %7251 = vmatpush.msra.mxu2 %v6829_v41  ;;  %7411 = vmatpush.msrb.mxu0 %v6830_v31  ;;  %v6953_v15 = vld [vmem:[%s14913_s7 + $0x9e0] sm:$0xff]  ;;  %v7094_v31 = vld [vmem:[%s14913_s7 + $0xe48] sm:$0xff] }
 0x75d   : > { %v7017_v11 = vld [vmem:[%s14913_s7 + $0xbe0] sm:$0xff] }
 0x75e   : > { %v6949_v1 = vld [vmem:[%s14913_s7 + $0x9c0] sm:$0xff] }
 0x75f   : > { %v7013_v32 = vld [vmem:[%s14913_s7 + $0xbc0] sm:$0xff] }
 0x760   : > { %v6945_v55 = vld [vmem:[%s14913_s7 + $0x9a0] sm:$0xff] }
 0x761   : > { %v7009_v25 = vld [vmem:[%s14913_s7 + $0xba0] sm:$0xff] }
 0x762   : > { %v6941_v46 = vld [vmem:[%s14913_s7 + $0x980] sm:$0xff] }
 0x763   : > { %v7005_v19 = vld [vmem:[%s14913_s7 + $0xb80] sm:$0xff] }
 0x764   : > { %v6937_v42 = vld [vmem:[%s14913_s7 + $0x960] sm:$0xff] }
 0x765   : > { %v7001_v62 = vld [vmem:[%s14913_s7 + $0xb60] sm:$0xff] }
 0x766   : > { %v6933_v21 = vld [vmem:[%s14913_s7 + $0x940] sm:$0xff] }
 0x767   : > { %v6603_v59 = vpop.permute.xlu1 %6602  ;;  %v6997_v38 = vld [vmem:[%s14913_s7 + $0xb40] sm:$0xff] }
 0x768   : > { %6605 = vst.msk [vmem:[#allocation6 + $0x2] sm:$0x1] %vm13117_vm14, %v6603_v59  ;;  %v6929_v50 = vld [vmem:[%s14913_s7 + $0x920] sm:$0xff]  ;;  %v7058_v59 = vld [vmem:[%s14913_s7 + $0xd28] sm:$0xff] }
 0x769   : > { %v6993_v13 = vld [vmem:[%s14913_s7 + $0xb20] sm:$0xff] }
 0x76a   : > { %v6925_v45 = vld [vmem:[%s14913_s7 + $0x900] sm:$0xff] }
 0x76b   : > { %v6989_v28 = vld [vmem:[%s14913_s7 + $0xb00] sm:$0xff] }
 0x76c   : > { %v6921_v4 = vld [vmem:[%s14913_s7 + $0x8e0] sm:$0xff] }
 0x76d   : > { %v6985_v36 = vld [vmem:[%s14913_s7 + $0xae0] sm:$0xff] }
 0x76e   : > { %v6917_v17 = vld [vmem:[%s14913_s7 + $0x8c0] sm:$0xff] }
 0x76f   : > { %v6627_v16 = vpop.permute.xlu2 %6626  ;;  %v6621_v9 = vpop.permute.xlu1 %6620  ;;  %v6981_v10 = vld [vmem:[%s14913_s7 + $0xac0] sm:$0xff] }
 0x770   : > { %v6615_v12 = vpop.permute.xlu0 %6614  ;;  %6629 = vst.msk [vmem:[#allocation6 + $0x6] sm:$0x1] %vm13117_vm14, %v6627_v16  ;;  %v6913_v43 = vld [vmem:[%s14913_s7 + $0x8a0] sm:$0xff]  ;;  %v7106_v16 = vld [vmem:[%s14913_s7 + $0xea8] sm:$0xff] }
 0x771   : > { %6623 = vst.msk [vmem:[#allocation6 + $0x5] sm:$0x1] %vm13117_vm14, %v6621_v9  ;;  %v6977_v20 = vld [vmem:[%s14913_s7 + $0xaa0] sm:$0xff]  ;;  %v7038_v9 = vld [vmem:[%s14913_s7 + $0xc88] sm:$0xff] }
 0x772   : > { %6617 = vst.msk [vmem:[#allocation6 + $0x4] sm:$0x1] %vm13117_vm14, %v6615_v12  ;;  %v6909_v52 = vld [vmem:[%s14913_s7 + $0x880] sm:$0xff]  ;;  %v7102_v12 = vld [vmem:[%s14913_s7 + $0xe88] sm:$0xff] }
 0x773   : > { %v6973_v24 = vld [vmem:[%s14913_s7 + $0xa80] sm:$0xff] }
 0x774   : > { %v6905_v22 = vld [vmem:[%s14913_s7 + $0x860] sm:$0xff] }
 0x775   : > { %v6969_v54 = vld [vmem:[%s14913_s7 + $0xa60] sm:$0xff] }
 0x776   : > { %v6901_v48 = vld [vmem:[%s14913_s7 + $0x840] sm:$0xff] }
 0x777   : > { %v6965_v41 = vld [vmem:[%s14913_s7 + $0xa40] sm:$0xff] }
 0x787   : > { %v6633_v58 = vpop.permute.xlu0 %6632 }
 0x788   : > { %6635 = vst.msk [vmem:[#allocation6 + $0x7] sm:$0x1] %vm13117_vm14, %v6633_v58  ;;  %v6897_v58 = vld [vmem:[%s14913_s7 + $0x820] sm:$0xff] }
 0x78f   : > { %v13433_v40 = vld [vmem:[#allocation6] sm:$0xff] }
 0x790   : > { %v13436_v37 = vperm.slane %v13433_v40, 0  ;;  %v13439_v5 = vperm.slane %v13433_v40, 1  ;;  %v13448_v49 = vperm.slane %v13433_v40, 6  ;;  %v13451_v18 = vperm.slane %v13433_v40, 7 }
 0x791   : > { %v13500_v34 = vperm.slane %v13433_v40, 2  ;;  %v13503_v26 = vperm.slane %v13433_v40, 3 }
 0x792   : > { %7192 = vmatmul.f32.vlgmr.msra.gmra.mxu1 %v13436_v37  ;;  %7212 = vmatmul.f32.vlgmr.msrb.gmra.mxu2 %v13439_v5 }
 0x793   : > { %7256 = vmatpush.msra.mxu1 %v6953_v15  ;;  %7276 = vmatpush.msrb.mxu2 %v7017_v11  ;;  %v6961_v15 = vld [vmem:[%s14913_s7 + $0xa20] sm:$0xff]  ;;  %v7026_v11 = vld [vmem:[%s14913_s7 + $0xc28] sm:$0xff] }
 0x794   : > { %7312 = vmatmul.f32.vlgmr.msra.gmra.mxu3 %v13448_v49  ;;  %7332 = vmatmul.f32.vlgmr.msra.gmra.mxu0 %v13451_v18 }
 0x795   : > { %7456 = vmatpush.msra.mxu3 %v7082_v47  ;;  %7476 = vmatpush.msra.mxu0 %v7146_v14  ;;  %v7090_v47 = vld [vmem:[%s14913_s7 + $0xe28] sm:$0xff]  ;;  %v6893_v14 = vld [vmem:[%s14913_s7 + $0x800] sm:$0xff] }
 0x796   : > { %7257 = vmatpush.msra.mxu1 %v6949_v1  ;;  %7277 = vmatpush.msrb.mxu2 %v7013_v32  ;;  %v6957_v1 = vld [vmem:[%s14913_s7 + $0xa00] sm:$0xff]  ;;  %v7022_v32 = vld [vmem:[%s14913_s7 + $0xc08] sm:$0xff] }
 0x797   : > { %7457 = vmatpush.msra.mxu3 %v7078_v44  ;;  %7477 = vmatpush.msra.mxu0 %v7142_v3  ;;  %v7086_v44 = vld [vmem:[%s14913_s7 + $0xe08] sm:$0xff]  ;;  %v13654_v3 = vperm.slane %v13433_v40, 4 }
 0x798   : > { %7258 = vmatpush.msra.mxu1 %v6945_v55  ;;  %7278 = vmatpush.msrb.mxu2 %v7009_v25  ;;  %v13657_v55 = vperm.slane %v13433_v40, 5  ;;  %v6698_v25 = vld [vmem:[%s14913_s7 + $0x1e8] sm:$0xff]  ;;  %v6891_v40 = vld [vmem:[%s14913_s7 + $0x7f0] sm:$0xff] }
 0x799   : > { %7458 = vmatpush.msra.mxu3 %v7074_v27  ;;  %7478 = vmatpush.msra.mxu0 %v7138_v39  ;;  %v6762_v27 = vld [vmem:[%s14913_s7 + $0x3e8] sm:$0xff]  ;;  %v6827_v39 = vld [vmem:[%s14913_s7 + $0x5f0] sm:$0xff] }
 0x79a   : > { %7259 = vmatpush.msra.mxu1 %v6941_v46  ;;  %7279 = vmatpush.msrb.mxu2 %v7005_v19  ;;  %v6694_v46 = vld [vmem:[%s14913_s7 + $0x1c8] sm:$0xff] }
 0x79b   : > { %7459 = vmatpush.msra.mxu3 %v7070_v7  ;;  %7479 = vmatpush.msra.mxu0 %v7134_v6  ;;  %v6758_v19 = vld [vmem:[%s14913_s7 + $0x3c8] sm:$0xff]  ;;  %v6823_v7 = vld [vmem:[%s14913_s7 + $0x5d0] sm:$0xff] }
 0x79c   : > { %7232 = vmatmul.f32.vlgmr.msrb.gmra.mxu1 %v13500_v34  ;;  %7252 = vmatmul.f32.vlgmr.msra.gmra.mxu2 %v13503_v26  ;;  %v6887_v6 = vld [vmem:[%s14913_s7 + $0x7d0] sm:$0xff] }
 0x79d   : > { %7260 = vmatpush.msra.mxu1 %v6937_v42  ;;  %7280 = vmatpush.msrb.mxu2 %v7001_v62  ;;  %v6690_v42 = vld [vmem:[%s14913_s7 + $0x1a8] sm:$0xff] }
 0x79e   : > { %7392 = vmatmul.f32.vlgmr.msrb.gmra.mxu3 %v13500_v34  ;;  %7412 = vmatmul.f32.vlgmr.msrb.gmra.mxu0 %v13503_v26  ;;  %v6754_v62 = vld [vmem:[%s14913_s7 + $0x3a8] sm:$0xff] }
 0x79f   : > { %7460 = vmatpush.msra.mxu3 %v7066_v53  ;;  %7480 = vmatpush.msra.mxu0 %v7130_v0  ;;  %v6819_v53 = vld [vmem:[%s14913_s7 + $0x5b0] sm:$0xff] }
 0x7a0   : > { %7261 = vmatpush.msra.mxu1 %v6933_v21  ;;  %7281 = vmatpush.msrb.mxu2 %v6997_v38  ;;  %v6883_v0 = vld [vmem:[%s14913_s7 + $0x7b0] sm:$0xff]  ;;  %v6686_v21 = vld [vmem:[%s14913_s7 + $0x188] sm:$0xff] }
 0x7a1   : > { %7461 = vmatpush.msra.mxu3 %v7062_v2  ;;  %7481 = vmatpush.msra.mxu0 %v7126_v35  ;;  %v6750_v38 = vld [vmem:[%s14913_s7 + $0x388] sm:$0xff]  ;;  %v6815_v2 = vld [vmem:[%s14913_s7 + $0x590] sm:$0xff] }
 0x7a2   : > { %7262 = vmatpush.msra.mxu1 %v6929_v50  ;;  %7282 = vmatpush.msrb.mxu2 %v6993_v13  ;;  %v6879_v35 = vld [vmem:[%s14913_s7 + $0x790] sm:$0xff]  ;;  %v6682_v50 = vld [vmem:[%s14913_s7 + $0x168] sm:$0xff] }
 0x7a3   : > { %7462 = vmatpush.msra.mxu3 %v7058_v59  ;;  %7482 = vmatpush.msra.mxu0 %v7122_v63  ;;  %v6746_v13 = vld [vmem:[%s14913_s7 + $0x368] sm:$0xff]  ;;  %v6811_v59 = vld [vmem:[%s14913_s7 + $0x570] sm:$0xff] }
 0x7a4   : > { %7263 = vmatpush.msra.mxu1 %v6925_v45  ;;  %7283 = vmatpush.msrb.mxu2 %v6989_v28  ;;  %v6875_v63 = vld [vmem:[%s14913_s7 + $0x770] sm:$0xff]  ;;  %v6678_v45 = vld [vmem:[%s14913_s7 + $0x148] sm:$0xff] }
 0x7a5   : > { %7463 = vmatpush.msra.mxu3 %v7054_v51  ;;  %7483 = vmatpush.msra.mxu0 %v7118_v33  ;;  %v6742_v28 = vld [vmem:[%s14913_s7 + $0x348] sm:$0xff]  ;;  %v6807_v51 = vld [vmem:[%s14913_s7 + $0x550] sm:$0xff] }
 0x7a6   : > { %7264 = vmatpush.msra.mxu1 %v6921_v4  ;;  %7284 = vmatpush.msrb.mxu2 %v6985_v36  ;;  %v6871_v33 = vld [vmem:[%s14913_s7 + $0x750] sm:$0xff]  ;;  %v6674_v4 = vld [vmem:[%s14913_s7 + $0x128] sm:$0xff] }
 0x7a7   : > { %7464 = vmatpush.msra.mxu3 %v7050_v30  ;;  %7484 = vmatpush.msra.mxu0 %v7114_v23  ;;  %v6738_v36 = vld [vmem:[%s14913_s7 + $0x328] sm:$0xff]  ;;  %v6803_v30 = vld [vmem:[%s14913_s7 + $0x530] sm:$0xff] }
 0x7a8   : > { %7265 = vmatpush.msra.mxu1 %v6917_v17  ;;  %7285 = vmatpush.msrb.mxu2 %v6981_v10  ;;  %v6867_v23 = vld [vmem:[%s14913_s7 + $0x730] sm:$0xff]  ;;  %v6670_v17 = vld [vmem:[%s14913_s7 + $0x108] sm:$0xff] }
 0x7a9   : > { %7465 = vmatpush.msra.mxu3 %v7046_v61  ;;  %7485 = vmatpush.msra.mxu0 %v7110_v57  ;;  %v6734_v10 = vld [vmem:[%s14913_s7 + $0x308] sm:$0xff]  ;;  %v6799_v61 = vld [vmem:[%s14913_s7 + $0x510] sm:$0xff] }
 0x7aa   : > { %7266 = vmatpush.msra.mxu1 %v6913_v43  ;;  %7286 = vmatpush.msrb.mxu2 %v6977_v20  ;;  %v6863_v57 = vld [vmem:[%s14913_s7 + $0x710] sm:$0xff]  ;;  %v6666_v43 = vld [vmem:[%s14913_s7 + $0xe8] sm:$0xff] }
 0x7ab   : > { %7466 = vmatpush.msra.mxu3 %v7042_v60  ;;  %7486 = vmatpush.msra.mxu0 %v7106_v16  ;;  %v6730_v20 = vld [vmem:[%s14913_s7 + $0x2e8] sm:$0xff]  ;;  %v6795_v60 = vld [vmem:[%s14913_s7 + $0x4f0] sm:$0xff] }
 0x7ac   : > { %7267 = vmatpush.msra.mxu1 %v6909_v52  ;;  %7287 = vmatpush.msrb.mxu2 %v6973_v24  ;;  %v6859_v16 = vld [vmem:[%s14913_s7 + $0x6f0] sm:$0xff]  ;;  %v6662_v52 = vld [vmem:[%s14913_s7 + $0xc8] sm:$0xff] }
 0x7ad   : > { %7467 = vmatpush.msra.mxu3 %v7038_v9  ;;  %7487 = vmatpush.msra.mxu0 %v7102_v12  ;;  %v6726_v24 = vld [vmem:[%s14913_s7 + $0x2c8] sm:$0xff]  ;;  %v6791_v9 = vld [vmem:[%s14913_s7 + $0x4d0] sm:$0xff] }
 0x7ae   : > { %7268 = vmatpush.msra.mxu1 %v6905_v22  ;;  %7288 = vmatpush.msrb.mxu2 %v6969_v54  ;;  %v6855_v12 = vld [vmem:[%s14913_s7 + $0x6d0] sm:$0xff]  ;;  %v6658_v22 = vld [vmem:[%s14913_s7 + $0xa8] sm:$0xff] }
 0x7af   : > { %7468 = vmatpush.msra.mxu3 %v7034_v29  ;;  %7488 = vmatpush.msra.mxu0 %v7098_v56  ;;  %v6722_v54 = vld [vmem:[%s14913_s7 + $0x2a8] sm:$0xff]  ;;  %v6787_v29 = vld [vmem:[%s14913_s7 + $0x4b0] sm:$0xff] }
 0x7b0   : > { %7269 = vmatpush.msra.mxu1 %v6901_v48  ;;  %7289 = vmatpush.msrb.mxu2 %v6965_v41  ;;  %v6851_v56 = vld [vmem:[%s14913_s7 + $0x6b0] sm:$0xff]  ;;  %v6654_v48 = vld [vmem:[%s14913_s7 + $0x88] sm:$0xff] }
 0x7b1   : > { %7469 = vmatpush.msra.mxu3 %v7030_v8  ;;  %7489 = vmatpush.msra.mxu0 %v7094_v31  ;;  %v6718_v41 = vld [vmem:[%s14913_s7 + $0x288] sm:$0xff]  ;;  %v6783_v8 = vld [vmem:[%s14913_s7 + $0x490] sm:$0xff] }
 0x7b2   : > { %7270 = vmatpush.msra.mxu1 %v6897_v58  ;;  %7290 = vmatpush.msrb.mxu2 %v6961_v15  ;;  %v6847_v31 = vld [vmem:[%s14913_s7 + $0x690] sm:$0xff]  ;;  %v6650_v58 = vld [vmem:[%s14913_s7 + $0x68] sm:$0xff] }
 0x7b3   : > { %7470 = vmatpush.msra.mxu3 %v7026_v11  ;;  %7490 = vmatpush.msra.mxu0 %v7090_v47  ;;  %v6714_v15 = vld [vmem:[%s14913_s7 + $0x268] sm:$0xff]  ;;  %v6779_v11 = vld [vmem:[%s14913_s7 + $0x470] sm:$0xff] }
 0x7b4   : > { %7271 = vmatpush.msra.mxu1 %v6893_v14  ;;  %7291 = vmatpush.msrb.mxu2 %v6957_v1  ;;  %v6843_v47 = vld [vmem:[%s14913_s7 + $0x670] sm:$0xff]  ;;  %v6646_v14 = vld [vmem:[%s14913_s7 + $0x48] sm:$0xff] }
 0x7b5   : > { %7471 = vmatpush.msra.mxu3 %v7022_v32  ;;  %7491 = vmatpush.msra.mxu0 %v7086_v44  ;;  %v6710_v1 = vld [vmem:[%s14913_s7 + $0x248] sm:$0xff]  ;;  %v6775_v32 = vld [vmem:[%s14913_s7 + $0x450] sm:$0xff] }
 0x7b6   : > { %7272 = vmatmul.f32.vlgmr.msra.gmra.mxu1 %v13654_v3  ;;  %7292 = vmatmul.f32.vlgmr.msrb.gmra.mxu2 %v13657_v55  ;;  %v6839_v44 = vld [vmem:[%s14913_s7 + $0x650] sm:$0xff] }
 0x7b7   : > { %7336 = vmatpush.msrb.mxu1 %v6698_v25  ;;  %7356 = vmatpush.msra.mxu2 %v6762_v27  ;;  %v6642_v25 = vld [vmem:[%s14913_s7 + $0x28] sm:$0xff] }
 0x7b8   : > { %7472 = vmatmul.f32.vlgmr.msra.gmra.mxu3 %v13448_v49  ;;  %7492 = vmatmul.f32.vlgmr.msra.gmra.mxu0 %v13451_v18  ;;  %v6706_v27 = vld [vmem:[%s14913_s7 + $0x228] sm:$0xff] }
 0x7b9   : > { %7536 = vmatpush.msrb.mxu3 %v6827_v39  ;;  %7556 = vmatpush.msrb.mxu0 %v6891_v40  ;;  %v6771_v39 = vld [vmem:[%s14913_s7 + $0x430] sm:$0xff] }
 0x7ba   : > { %7337 = vmatpush.msrb.mxu1 %v6694_v46  ;;  %7357 = vmatpush.msra.mxu2 %v6758_v19  ;;  %v6835_v40 = vld [vmem:[%s14913_s7 + $0x630] sm:$0xff]  ;;  %v6638_v46 = vld [vmem:[%s14913_s7 + $0x8] sm:$0xff] }
 0x7bb   : > { %7537 = vmatpush.msrb.mxu3 %v6823_v7  ;;  %7557 = vmatpush.msrb.mxu0 %v6887_v6  ;;  %v6702_v19 = vld [vmem:[%s14913_s7 + $0x208] sm:$0xff]  ;;  %v6767_v7 = vld [vmem:[%s14913_s7 + $0x410] sm:$0xff] }
 0x7bc   : > { %7338 = vmatpush.msrb.mxu1 %v6690_v42  ;;  %7358 = vmatpush.msra.mxu2 %v6754_v62  ;;  %v6831_v6 = vld [vmem:[%s14913_s7 + $0x610] sm:$0xff]  ;;  %v6954_v42 = vld [vmem:[%s14913_s7 + $0x9e8] sm:$0xff] }
 0x7bd   : > { %7538 = vmatpush.msrb.mxu3 %v6819_v53  ;;  %7558 = vmatpush.msrb.mxu0 %v6883_v0  ;;  %v7018_v62 = vld [vmem:[%s14913_s7 + $0xbe8] sm:$0xff]  ;;  %v7083_v53 = vld [vmem:[%s14913_s7 + $0xdf0] sm:$0xff] }
 0x7be   : > { %7339 = vmatpush.msrb.mxu1 %v6686_v21  ;;  %7359 = vmatpush.msra.mxu2 %v6750_v38  ;;  %v7147_v0 = vld [vmem:[%s14913_s7 + $0xff0] sm:$0xff]  ;;  %v6950_v21 = vld [vmem:[%s14913_s7 + $0x9c8] sm:$0xff] }
 0x7bf   : > { %7539 = vmatpush.msrb.mxu3 %v6815_v2  ;;  %7559 = vmatpush.msrb.mxu0 %v6879_v35  ;;  %v7014_v38 = vld [vmem:[%s14913_s7 + $0xbc8] sm:$0xff]  ;;  %v7079_v2 = vld [vmem:[%s14913_s7 + $0xdd0] sm:$0xff] }
 0x7c0   : > { %7340 = vmatpush.msrb.mxu1 %v6682_v50  ;;  %7360 = vmatpush.msra.mxu2 %v6746_v13  ;;  %v7143_v35 = vld [vmem:[%s14913_s7 + $0xfd0] sm:$0xff]  ;;  %v6946_v50 = vld [vmem:[%s14913_s7 + $0x9a8] sm:$0xff] }
 0x7c1   : > { %7540 = vmatpush.msrb.mxu3 %v6811_v59  ;;  %7560 = vmatpush.msrb.mxu0 %v6875_v63  ;;  %v7010_v13 = vld [vmem:[%s14913_s7 + $0xba8] sm:$0xff]  ;;  %v7075_v59 = vld [vmem:[%s14913_s7 + $0xdb0] sm:$0xff] }
 0x7c2   : > { %7341 = vmatpush.msrb.mxu1 %v6678_v45  ;;  %7361 = vmatpush.msra.mxu2 %v6742_v28  ;;  %v7139_v63 = vld [vmem:[%s14913_s7 + $0xfb0] sm:$0xff]  ;;  %v6942_v45 = vld [vmem:[%s14913_s7 + $0x988] sm:$0xff] }
 0x7c3   : > { %7541 = vmatpush.msrb.mxu3 %v6807_v51  ;;  %7561 = vmatpush.msrb.mxu0 %v6871_v33  ;;  %v7006_v28 = vld [vmem:[%s14913_s7 + $0xb88] sm:$0xff]  ;;  %v7071_v51 = vld [vmem:[%s14913_s7 + $0xd90] sm:$0xff] }
 0x7c4   : > { %7342 = vmatpush.msrb.mxu1 %v6674_v4  ;;  %7362 = vmatpush.msra.mxu2 %v6738_v36  ;;  %v7135_v33 = vld [vmem:[%s14913_s7 + $0xf90] sm:$0xff]  ;;  %v6938_v4 = vld [vmem:[%s14913_s7 + $0x968] sm:$0xff] }
 0x7c5   : > { %7542 = vmatpush.msrb.mxu3 %v6803_v30  ;;  %7562 = vmatpush.msrb.mxu0 %v6867_v23  ;;  %v7002_v36 = vld [vmem:[%s14913_s7 + $0xb68] sm:$0xff]  ;;  %v7067_v30 = vld [vmem:[%s14913_s7 + $0xd70] sm:$0xff] }
 0x7c6   : > { %7343 = vmatpush.msrb.mxu1 %v6670_v17  ;;  %7363 = vmatpush.msra.mxu2 %v6734_v10  ;;  %v7131_v23 = vld [vmem:[%s14913_s7 + $0xf70] sm:$0xff]  ;;  %v6934_v17 = vld [vmem:[%s14913_s7 + $0x948] sm:$0xff] }
 0x7c7   : > { %7543 = vmatpush.msrb.mxu3 %v6799_v61  ;;  %7563 = vmatpush.msrb.mxu0 %v6863_v57  ;;  %v6998_v10 = vld [vmem:[%s14913_s7 + $0xb48] sm:$0xff]  ;;  %v7063_v61 = vld [vmem:[%s14913_s7 + $0xd50] sm:$0xff] }
 0x7c8   : > { %7344 = vmatpush.msrb.mxu1 %v6666_v43  ;;  %7364 = vmatpush.msra.mxu2 %v6730_v20  ;;  %v7127_v57 = vld [vmem:[%s14913_s7 + $0xf50] sm:$0xff]  ;;  %v6930_v43 = vld [vmem:[%s14913_s7 + $0x928] sm:$0xff] }
 0x7c9   : > { %7544 = vmatpush.msrb.mxu3 %v6795_v60  ;;  %7564 = vmatpush.msrb.mxu0 %v6859_v16  ;;  %v6994_v20 = vld [vmem:[%s14913_s7 + $0xb28] sm:$0xff]  ;;  %v7059_v60 = vld [vmem:[%s14913_s7 + $0xd30] sm:$0xff] }
 0x7ca   : > { %7345 = vmatpush.msrb.mxu1 %v6662_v52  ;;  %7365 = vmatpush.msra.mxu2 %v6726_v24  ;;  %v7123_v16 = vld [vmem:[%s14913_s7 + $0xf30] sm:$0xff]  ;;  %v6926_v52 = vld [vmem:[%s14913_s7 + $0x908] sm:$0xff] }
 0x7cb   : > { %7545 = vmatpush.msrb.mxu3 %v6791_v9  ;;  %7565 = vmatpush.msrb.mxu0 %v6855_v12  ;;  %v6990_v24 = vld [vmem:[%s14913_s7 + $0xb08] sm:$0xff]  ;;  %v7055_v9 = vld [vmem:[%s14913_s7 + $0xd10] sm:$0xff] }
 0x7cc   : > { %7346 = vmatpush.msrb.mxu1 %v6658_v22  ;;  %7366 = vmatpush.msra.mxu2 %v6722_v54  ;;  %v7119_v12 = vld [vmem:[%s14913_s7 + $0xf10] sm:$0xff]  ;;  %v6922_v22 = vld [vmem:[%s14913_s7 + $0x8e8] sm:$0xff] }
 0x7cd   : > { %7546 = vmatpush.msrb.mxu3 %v6787_v29  ;;  %7566 = vmatpush.msrb.mxu0 %v6851_v56  ;;  %v6986_v54 = vld [vmem:[%s14913_s7 + $0xae8] sm:$0xff]  ;;  %v7051_v29 = vld [vmem:[%s14913_s7 + $0xcf0] sm:$0xff] }
 0x7ce   : > { %7347 = vmatpush.msrb.mxu1 %v6654_v48  ;;  %7367 = vmatpush.msra.mxu2 %v6718_v41  ;;  %v7115_v56 = vld [vmem:[%s14913_s7 + $0xef0] sm:$0xff]  ;;  %v6918_v48 = vld [vmem:[%s14913_s7 + $0x8c8] sm:$0xff] }
 0x7cf   : > { %7547 = vmatpush.msrb.mxu3 %v6783_v8  ;;  %7567 = vmatpush.msrb.mxu0 %v6847_v31  ;;  %v6982_v41 = vld [vmem:[%s14913_s7 + $0xac8] sm:$0xff]  ;;  %v7047_v8 = vld [vmem:[%s14913_s7 + $0xcd0] sm:$0xff] }
 0x7d0   : > { %7348 = vmatpush.msrb.mxu1 %v6650_v58  ;;  %7368 = vmatpush.msra.mxu2 %v6714_v15  ;;  %v7111_v31 = vld [vmem:[%s14913_s7 + $0xed0] sm:$0xff]  ;;  %v6914_v58 = vld [vmem:[%s14913_s7 + $0x8a8] sm:$0xff] }
 0x7d1   : > { %7548 = vmatpush.msrb.mxu3 %v6779_v11  ;;  %7568 = vmatpush.msrb.mxu0 %v6843_v47  ;;  %v6978_v15 = vld [vmem:[%s14913_s7 + $0xaa8] sm:$0xff]  ;;  %v1774_v11 = vpop.f32.mrf.mxu1  ;;  %v7043_v47 = vld [vmem:[%s14913_s7 + $0xcb0] sm:$0xff] }
 0x7d2   : > { %7349 = vmatpush.msrb.mxu1 %v6646_v14  ;;  %7369 = vmatpush.msra.mxu2 %v6710_v1  ;;  %v7107_v14 = vld [vmem:[%s14913_s7 + $0xeb0] sm:$0xff]  ;;  %v6910_v1 = vld [vmem:[%s14913_s7 + $0x888] sm:$0xff]  ;;  %v6800_v11 = vld [vmem:[%s14913_s7 + $0x518] sm:$0xff] }
 0x7d3   : > { %7549 = vmatpush.msrb.mxu3 %v6775_v32  ;;  %7569 = vmatpush.msrb.mxu0 %v6839_v44  ;;  %v6974_v32 = vld [vmem:[%s14913_s7 + $0xa88] sm:$0xff]  ;;  %v7039_v44 = vld [vmem:[%s14913_s7 + $0xc90] sm:$0xff] }
 0x7d4   : > { %7350 = vmatpush.msrb.mxu1 %v6642_v25  ;;  %7370 = vmatpush.msra.mxu2 %v6706_v27  ;;  %v7103_v25 = vld [vmem:[%s14913_s7 + $0xe90] sm:$0xff]  ;;  %v6906_v27 = vld [vmem:[%s14913_s7 + $0x868] sm:$0xff] }
 0x7d5   : > { %7550 = vmatpush.msrb.mxu3 %v6771_v39  ;;  %7570 = vmatpush.msrb.mxu0 %v6835_v40  ;;  %v6970_v39 = vld [vmem:[%s14913_s7 + $0xa68] sm:$0xff]  ;;  %v7035_v40 = vld [vmem:[%s14913_s7 + $0xc70] sm:$0xff] }
 0x7d6   : > { %7351 = vmatpush.msrb.mxu1 %v6638_v46  ;;  %7371 = vmatpush.msra.mxu2 %v6702_v19  ;;  %v7099_v46 = vld [vmem:[%s14913_s7 + $0xe70] sm:$0xff]  ;;  %v6902_v19 = vld [vmem:[%s14913_s7 + $0x848] sm:$0xff] }
 0x7d7   : > { %7551 = vmatpush.msrb.mxu3 %v6767_v7  ;;  %7571 = vmatpush.msrb.mxu0 %v6831_v6  ;;  %v6966_v7 = vld [vmem:[%s14913_s7 + $0xa48] sm:$0xff]  ;;  %v7031_v6 = vld [vmem:[%s14913_s7 + $0xc50] sm:$0xff] }
 0x7d8   : > { %7352 = vmatmul.f32.vlgmr.msrb.gmra.mxu1 %v13436_v37  ;;  %7372 = vmatmul.f32.vlgmr.msra.gmra.mxu2 %v13439_v5 }
 0x7d9   : > { %7416 = vmatpush.msra.mxu1 %v6954_v42  ;;  %7436 = vmatpush.msrb.mxu2 %v7018_v62  ;;  %v7095_v42 = vld [vmem:[%s14913_s7 + $0xe50] sm:$0xff]  ;;  %v6898_v62 = vld [vmem:[%s14913_s7 + $0x828] sm:$0xff] }
 0x7da   : > { %7552 = vmatmul.f32.vlgmr.msrb.gmra.mxu3 %v13500_v34  ;;  %7572 = vmatmul.f32.vlgmr.msrb.gmra.mxu0 %v13503_v26 }
 0x7db   : > { %7616 = vmatpush.msra.mxu3 %v7083_v53  ;;  %7636 = vmatpush.msra.mxu0 %v7147_v0  ;;  %v6962_v53 = vld [vmem:[%s14913_s7 + $0xa28] sm:$0xff]  ;;  %v1777_v0 = vpop.f32.mrf.mxu1 }
 0x7dc   : > { %7417 = vmatpush.msra.mxu1 %v6950_v21  ;;  %7437 = vmatpush.msrb.mxu2 %v7014_v38  ;;  %v7027_v21 = vld [vmem:[%s14913_s7 + $0xc30] sm:$0xff]  ;;  %v6848_v0 = vld [vmem:[%s14913_s7 + $0x698] sm:$0xff] }
 0x7dd   : > { %7617 = vmatpush.msra.mxu3 %v7079_v2  ;;  %7637 = vmatpush.msra.mxu0 %v7143_v35  ;;  %v7091_v38 = vld [vmem:[%s14913_s7 + $0xe30] sm:$0xff]  ;;  %v6894_v2 = vld [vmem:[%s14913_s7 + $0x808] sm:$0xff] }
 0x7de   : > { %7418 = vmatpush.msra.mxu1 %v6946_v50  ;;  %7438 = vmatpush.msrb.mxu2 %v7010_v13  ;;  %v6958_v35 = vld [vmem:[%s14913_s7 + $0xa08] sm:$0xff]  ;;  %v7023_v50 = vld [vmem:[%s14913_s7 + $0xc10] sm:$0xff] }
 0x7df   : > { %7618 = vmatpush.msra.mxu3 %v7075_v59  ;;  %7638 = vmatpush.msra.mxu0 %v7139_v63  ;;  %v7087_v13 = vld [vmem:[%s14913_s7 + $0xe10] sm:$0xff] }
 0x7e0   : > { %7419 = vmatpush.msra.mxu1 %v6942_v45  ;;  %7439 = vmatpush.msrb.mxu2 %v7006_v28  ;;  %v6699_v59 = vld [vmem:[%s14913_s7 + $0x1f0] sm:$0xff]  ;;  %v1914_v45 = vpop.f32.mrf.mxu2  ;;  %v6828_v28 = vld [vmem:[%s14913_s7 + $0x5f8] sm:$0xff] }
 0x7e1   : > { %7619 = vmatpush.msra.mxu3 %v7071_v51  ;;  %7639 = vmatpush.msra.mxu0 %v7135_v33  ;;  %v6763_v63 = vld [vmem:[%s14913_s7 + $0x3f0] sm:$0xff]  ;;  %v6892_v51 = vld [vmem:[%s14913_s7 + $0x7f8] sm:$0xff]  ;;  %v5642_v33 = vpop.f32.mrf.mxu3 }
 0x7e2   : > { %7420 = vmatpush.msra.mxu1 %v6938_v4  ;;  %7440 = vmatpush.msrb.mxu2 %v7002_v36  ;;  %v6695_v4 = vld [vmem:[%s14913_s7 + $0x1d0] sm:$0xff]  ;;  %v6836_v33 = vld [vmem:[%s14913_s7 + $0x638] sm:$0xff] }
 0x7e3   : > { %7620 = vmatpush.msra.mxu3 %v7067_v30  ;;  %7640 = vmatpush.msra.mxu0 %v7131_v23  ;;  %v6759_v36 = vld [vmem:[%s14913_s7 + $0x3d0] sm:$0xff]  ;;  %v6824_v30 = vld [vmem:[%s14913_s7 + $0x5d8] sm:$0xff] }
 0x7e4   : > { %7421 = vmatpush.msra.mxu1 %v6934_v17  ;;  %7441 = vmatpush.msrb.mxu2 %v6998_v10  ;;  %v6888_v23 = vld [vmem:[%s14913_s7 + $0x7d8] sm:$0xff]  ;;  %v6691_v17 = vld [vmem:[%s14913_s7 + $0x1b0] sm:$0xff] }
 0x7e5   : > { %7621 = vmatpush.msra.mxu3 %v7063_v61  ;;  %7641 = vmatpush.msra.mxu0 %v7127_v57  ;;  %v6755_v10 = vld [vmem:[%s14913_s7 + $0x3b0] sm:$0xff]  ;;  %v6820_v61 = vld [vmem:[%s14913_s7 + $0x5b8] sm:$0xff] }
 0x7e6   : > { %7422 = vmatpush.msra.mxu1 %v6930_v43  ;;  %7442 = vmatpush.msrb.mxu2 %v6994_v20  ;;  %v6884_v57 = vld [vmem:[%s14913_s7 + $0x7b8] sm:$0xff]  ;;  %v6687_v43 = vld [vmem:[%s14913_s7 + $0x190] sm:$0xff] }
 0x7e7   : > { %7622 = vmatpush.msra.mxu3 %v7059_v60  ;;  %7642 = vmatpush.msra.mxu0 %v7123_v16  ;;  %v6751_v20 = vld [vmem:[%s14913_s7 + $0x390] sm:$0xff]  ;;  %v6816_v60 = vld [vmem:[%s14913_s7 + $0x598] sm:$0xff] }
 0x7e8   : > { %7423 = vmatpush.msra.mxu1 %v6926_v52  ;;  %7443 = vmatpush.msrb.mxu2 %v6990_v24  ;;  %v6880_v16 = vld [vmem:[%s14913_s7 + $0x798] sm:$0xff]  ;;  %v6683_v52 = vld [vmem:[%s14913_s7 + $0x170] sm:$0xff] }
 0x7e9   : > { %7623 = vmatpush.msra.mxu3 %v7055_v9  ;;  %7643 = vmatpush.msra.mxu0 %v7119_v12  ;;  %v6747_v24 = vld [vmem:[%s14913_s7 + $0x370] sm:$0xff]  ;;  %v6812_v9 = vld [vmem:[%s14913_s7 + $0x578] sm:$0xff] }
 0x7ea   : > { %7424 = vmatpush.msra.mxu1 %v6922_v22  ;;  %7444 = vmatpush.msrb.mxu2 %v6986_v54  ;;  %v6876_v12 = vld [vmem:[%s14913_s7 + $0x778] sm:$0xff]  ;;  %v6679_v22 = vld [vmem:[%s14913_s7 + $0x150] sm:$0xff] }
 0x7eb   : > { %7624 = vmatpush.msra.mxu3 %v7051_v29  ;;  %7644 = vmatpush.msra.mxu0 %v7115_v56  ;;  %v6743_v54 = vld [vmem:[%s14913_s7 + $0x350] sm:$0xff]  ;;  %v6808_v29 = vld [vmem:[%s14913_s7 + $0x558] sm:$0xff] }
 0x7ec   : > { %7425 = vmatpush.msra.mxu1 %v6918_v48  ;;  %7445 = vmatpush.msrb.mxu2 %v6982_v41  ;;  %v6872_v56 = vld [vmem:[%s14913_s7 + $0x758] sm:$0xff]  ;;  %v6675_v48 = vld [vmem:[%s14913_s7 + $0x130] sm:$0xff] }
 0x7ed   : > { %7625 = vmatpush.msra.mxu3 %v7047_v8  ;;  %7645 = vmatpush.msra.mxu0 %v7111_v31  ;;  %v6739_v41 = vld [vmem:[%s14913_s7 + $0x330] sm:$0xff]  ;;  %v6804_v8 = vld [vmem:[%s14913_s7 + $0x538] sm:$0xff] }
 0x7ee   : > { %7426 = vmatpush.msra.mxu1 %v6914_v58  ;;  %7446 = vmatpush.msrb.mxu2 %v6978_v15  ;;  %v6868_v31 = vld [vmem:[%s14913_s7 + $0x738] sm:$0xff]  ;;  %v6671_v58 = vld [vmem:[%s14913_s7 + $0x110] sm:$0xff] }
 0x7ef   : > { %7626 = vmatpush.msra.mxu3 %v7043_v47  ;;  %7646 = vmatpush.msra.mxu0 %v7107_v14  ;;  %v6735_v15 = vld [vmem:[%s14913_s7 + $0x310] sm:$0xff]  ;;  %v6864_v47 = vld [vmem:[%s14913_s7 + $0x718] sm:$0xff] }
 0x7f0   : > { %7427 = vmatpush.msra.mxu1 %v6910_v1  ;;  %7447 = vmatpush.msrb.mxu2 %v6974_v32  ;;  %v6667_v14 = vld [vmem:[%s14913_s7 + $0xf0] sm:$0xff]  ;;  %v6796_v32 = vld [vmem:[%s14913_s7 + $0x4f8] sm:$0xff] }
 0x7f1   : > { %7627 = vmatpush.msra.mxu3 %v7039_v44  ;;  %7647 = vmatpush.msra.mxu0 %v7103_v25  ;;  %v6731_v1 = vld [vmem:[%s14913_s7 + $0x2f0] sm:$0xff]  ;;  %v6860_v44 = vld [vmem:[%s14913_s7 + $0x6f8] sm:$0xff] }
 0x7f2   : > { %7428 = vmatpush.msra.mxu1 %v6906_v27  ;;  %7448 = vmatpush.msrb.mxu2 %v6970_v39  ;;  %v6663_v25 = vld [vmem:[%s14913_s7 + $0xd0] sm:$0xff]  ;;  %v6792_v39 = vld [vmem:[%s14913_s7 + $0x4d8] sm:$0xff] }
 0x7f3   : > { %7628 = vmatpush.msra.mxu3 %v7035_v40  ;;  %7648 = vmatpush.msra.mxu0 %v7099_v46  ;;  %v6727_v27 = vld [vmem:[%s14913_s7 + $0x2d0] sm:$0xff]  ;;  %v6856_v40 = vld [vmem:[%s14913_s7 + $0x6d8] sm:$0xff] }
 0x7f4   : > { %7429 = vmatpush.msra.mxu1 %v6902_v19  ;;  %7449 = vmatpush.msrb.mxu2 %v6966_v7  ;;  %v6659_v46 = vld [vmem:[%s14913_s7 + $0xb0] sm:$0xff]  ;;  %v6788_v7 = vld [vmem:[%s14913_s7 + $0x4b8] sm:$0xff] }
 0x7f5   : > { %7629 = vmatpush.msra.mxu3 %v7031_v6  ;;  %7649 = vmatpush.msra.mxu0 %v7095_v42  ;;  %v6723_v19 = vld [vmem:[%s14913_s7 + $0x2b0] sm:$0xff]  ;;  %v6852_v6 = vld [vmem:[%s14913_s7 + $0x6b8] sm:$0xff] }
 0x7f6   : > { %7430 = vmatpush.msra.mxu1 %v6898_v62  ;;  %7450 = vmatpush.msrb.mxu2 %v6962_v53  ;;  %v6655_v42 = vld [vmem:[%s14913_s7 + $0x90] sm:$0xff]  ;;  %v6784_v53 = vld [vmem:[%s14913_s7 + $0x498] sm:$0xff] }
 0x7f7   : > { %7630 = vmatpush.msra.mxu3 %v7027_v21  ;;  %7650 = vmatpush.msra.mxu0 %v7091_v38  ;;  %v6719_v62 = vld [vmem:[%s14913_s7 + $0x290] sm:$0xff] }
 0x7f8   : > { %7431 = vmatpush.msra.mxu1 %v6894_v2  ;;  %7451 = vmatpush.msrb.mxu2 %v6958_v35  ;;  %v6651_v21 = vld [vmem:[%s14913_s7 + $0x70] sm:$0xff]  ;;  %v6780_v2 = vld [vmem:[%s14913_s7 + $0x478] sm:$0xff] }
 0x7f9   : > { %7631 = vmatpush.msra.mxu3 %v7023_v50  ;;  %7651 = vmatpush.msra.mxu0 %v7087_v13  ;;  %v6715_v38 = vld [vmem:[%s14913_s7 + $0x270] sm:$0xff]  ;;  %v6844_v35 = vld [vmem:[%s14913_s7 + $0x678] sm:$0xff] }
 0x7fa   : > { %7432 = vmatmul.f32.vlgmr.msra.gmra.mxu1 %v13654_v3  ;;  %7452 = vmatmul.f32.vlgmr.msrb.gmra.mxu2 %v13657_v55  ;;  %v6647_v50 = vld [vmem:[%s14913_s7 + $0x50] sm:$0xff] }
 0x7fb   : > { %7496 = vmatpush.msrb.mxu1 %v6699_v59  ;;  %7516 = vmatpush.msra.mxu2 %v6763_v63  ;;  %v6711_v13 = vld [vmem:[%s14913_s7 + $0x250] sm:$0xff]  ;;  %v6776_v59 = vld [vmem:[%s14913_s7 + $0x458] sm:$0xff] }
 0x7fc   : > { %7632 = vmatmul.f32.vlgmr.msra.gmra.mxu3 %v13448_v49  ;;  %7652 = vmatmul.f32.vlgmr.msra.gmra.mxu0 %v13451_v18  ;;  %v6840_v63 = vld [vmem:[%s14913_s7 + $0x658] sm:$0xff]  ;;  %v6643_v45 = vld [vmem:[%s14913_s7 + $0x30] sm:$0xff] }
 0x7fd   : > { %7696 = vmatpush.msrb.mxu3 %v6828_v28  ;;  %7716 = vmatpush.msrb.mxu0 %v6892_v51  ;;  %v6707_v28 = vld [vmem:[%s14913_s7 + $0x230] sm:$0xff]  ;;  %v6772_v51 = vld [vmem:[%s14913_s7 + $0x438] sm:$0xff] }
 0x7fe   : > { %7497 = vmatpush.msrb.mxu1 %v6695_v4  ;;  %7517 = vmatpush.msra.mxu2 %v6759_v36  ;;  %v6639_v4 = vld [vmem:[%s14913_s7 + $0x10] sm:$0xff] }
 0x7ff   : > { %7697 = vmatpush.msrb.mxu3 %v6824_v30  ;;  %7717 = vmatpush.msrb.mxu0 %v6888_v23  ;;  %v6703_v36 = vld [vmem:[%s14913_s7 + $0x210] sm:$0xff]  ;;  %v6768_v30 = vld [vmem:[%s14913_s7 + $0x418] sm:$0xff] }
 0x800   : > { %7498 = vmatpush.msrb.mxu1 %v6691_v17  ;;  %7518 = vmatpush.msra.mxu2 %v6755_v10  ;;  %v6832_v23 = vld [vmem:[%s14913_s7 + $0x618] sm:$0xff]  ;;  %v6955_v17 = vld [vmem:[%s14913_s7 + $0x9f0] sm:$0xff] }
 0x801   : > { %7698 = vmatpush.msrb.mxu3 %v6820_v61  ;;  %7718 = vmatpush.msrb.mxu0 %v6884_v57  ;;  %v7019_v10 = vld [vmem:[%s14913_s7 + $0xbf0] sm:$0xff]  ;;  %v7084_v61 = vld [vmem:[%s14913_s7 + $0xdf8] sm:$0xff] }
 0x802   : > { %7499 = vmatpush.msrb.mxu1 %v6687_v43  ;;  %7519 = vmatpush.msra.mxu2 %v6751_v20  ;;  %v7148_v57 = vld [vmem:[%s14913_s7 + $0xff8] sm:$0xff]  ;;  %v6951_v43 = vld [vmem:[%s14913_s7 + $0x9d0] sm:$0xff] }
 0x803   : > { %7699 = vmatpush.msrb.mxu3 %v6816_v60  ;;  %7719 = vmatpush.msrb.mxu0 %v6880_v16  ;;  %v7015_v20 = vld [vmem:[%s14913_s7 + $0xbd0] sm:$0xff]  ;;  %v7080_v60 = vld [vmem:[%s14913_s7 + $0xdd8] sm:$0xff] }
 0x804   : > { %7500 = vmatpush.msrb.mxu1 %v6683_v52  ;;  %7520 = vmatpush.msra.mxu2 %v6747_v24  ;;  %v7144_v16 = vld [vmem:[%s14913_s7 + $0xfd8] sm:$0xff]  ;;  %v6947_v52 = vld [vmem:[%s14913_s7 + $0x9b0] sm:$0xff] }
 0x805   : > { %7700 = vmatpush.msrb.mxu3 %v6812_v9  ;;  %7720 = vmatpush.msrb.mxu0 %v6876_v12  ;;  %v7140_v24 = vld [vmem:[%s14913_s7 + $0xfb8] sm:$0xff]  ;;  %v6943_v9 = vld [vmem:[%s14913_s7 + $0x990] sm:$0xff] }
 0x806   : > { %7501 = vmatpush.msrb.mxu1 %v6679_v22  ;;  %7521 = vmatpush.msra.mxu2 %v6743_v54  ;;  %v7007_v12 = vld [vmem:[%s14913_s7 + $0xb90] sm:$0xff]  ;;  %v7072_v22 = vld [vmem:[%s14913_s7 + $0xd98] sm:$0xff] }
 0x807   : > { %7701 = vmatpush.msrb.mxu3 %v6808_v29  ;;  %7721 = vmatpush.msrb.mxu0 %v6872_v56  ;;  %v7136_v54 = vld [vmem:[%s14913_s7 + $0xf98] sm:$0xff]  ;;  %v6939_v29 = vld [vmem:[%s14913_s7 + $0x970] sm:$0xff] }
 0x808   : > { %7502 = vmatpush.msrb.mxu1 %v6675_v48  ;;  %7522 = vmatpush.msra.mxu2 %v6739_v41  ;;  %v7003_v56 = vld [vmem:[%s14913_s7 + $0xb70] sm:$0xff]  ;;  %v7068_v48 = vld [vmem:[%s14913_s7 + $0xd78] sm:$0xff] }
 0x809   : > { %7702 = vmatpush.msrb.mxu3 %v6804_v8  ;;  %7722 = vmatpush.msrb.mxu0 %v6868_v31  ;;  %v7132_v41 = vld [vmem:[%s14913_s7 + $0xf78] sm:$0xff]  ;;  %v6935_v8 = vld [vmem:[%s14913_s7 + $0x950] sm:$0xff] }
 0x80a   : > { %7503 = vmatpush.msrb.mxu1 %v6671_v58  ;;  %7523 = vmatpush.msra.mxu2 %v6735_v15  ;;  %v6999_v31 = vld [vmem:[%s14913_s7 + $0xb50] sm:$0xff]  ;;  %v7064_v58 = vld [vmem:[%s14913_s7 + $0xd58] sm:$0xff] }
 0x80b   : > { %7703 = vmatpush.msrb.mxu3 %v6800_v11  ;;  %7723 = vmatpush.msrb.mxu0 %v6864_v47  ;;  %v7128_v15 = vld [vmem:[%s14913_s7 + $0xf58] sm:$0xff]  ;;  %v6931_v11 = vld [vmem:[%s14913_s7 + $0x930] sm:$0xff] }
 0x80c   : > { %7504 = vmatpush.msrb.mxu1 %v6667_v14  ;;  %7524 = vmatpush.msra.mxu2 %v6731_v1  ;;  %v6995_v47 = vld [vmem:[%s14913_s7 + $0xb30] sm:$0xff]  ;;  %v7060_v14 = vld [vmem:[%s14913_s7 + $0xd38] sm:$0xff] }
 0x80d   : > { %7704 = vmatpush.msrb.mxu3 %v6796_v32  ;;  %7724 = vmatpush.msrb.mxu0 %v6860_v44  ;;  %v7124_v1 = vld [vmem:[%s14913_s7 + $0xf38] sm:$0xff]  ;;  %v6927_v32 = vld [vmem:[%s14913_s7 + $0x910] sm:$0xff] }
 0x80e   : > { %7505 = vmatpush.msrb.mxu1 %v6663_v25  ;;  %7525 = vmatpush.msra.mxu2 %v6727_v27  ;;  %v6991_v44 = vld [vmem:[%s14913_s7 + $0xb10] sm:$0xff]  ;;  %v7056_v25 = vld [vmem:[%s14913_s7 + $0xd18] sm:$0xff] }
 0x80f   : > { %7705 = vmatpush.msrb.mxu3 %v6792_v39  ;;  %7725 = vmatpush.msrb.mxu0 %v6856_v40  ;;  %v7120_v27 = vld [vmem:[%s14913_s7 + $0xf18] sm:$0xff]  ;;  %v6923_v39 = vld [vmem:[%s14913_s7 + $0x8f0] sm:$0xff] }
 0x810   : > { %7506 = vmatpush.msrb.mxu1 %v6659_v46  ;;  %7526 = vmatpush.msra.mxu2 %v6723_v19  ;;  %v6987_v40 = vld [vmem:[%s14913_s7 + $0xaf0] sm:$0xff]  ;;  %v7052_v46 = vld [vmem:[%s14913_s7 + $0xcf8] sm:$0xff] }
 0x811   : > { %7706 = vmatpush.msrb.mxu3 %v6788_v7  ;;  %7726 = vmatpush.msrb.mxu0 %v6852_v6  ;;  %v7116_v19 = vld [vmem:[%s14913_s7 + $0xef8] sm:$0xff]  ;;  %v6919_v7 = vld [vmem:[%s14913_s7 + $0x8d0] sm:$0xff] }
 0x812   : > { %7507 = vmatpush.msrb.mxu1 %v6655_v42  ;;  %7527 = vmatpush.msra.mxu2 %v6719_v62  ;;  %v6983_v6 = vld [vmem:[%s14913_s7 + $0xad0] sm:$0xff]  ;;  %v7048_v42 = vld [vmem:[%s14913_s7 + $0xcd8] sm:$0xff] }
 0x813   : > { %7707 = vmatpush.msrb.mxu3 %v6784_v53  ;;  %7727 = vmatpush.msrb.mxu0 %v6848_v0  ;;  %v7112_v62 = vld [vmem:[%s14913_s7 + $0xed8] sm:$0xff]  ;;  %v6915_v53 = vld [vmem:[%s14913_s7 + $0x8b0] sm:$0xff] }
 0x814   : > { %7508 = vmatpush.msrb.mxu1 %v6651_v21  ;;  %7528 = vmatpush.msra.mxu2 %v6715_v38  ;;  %v6979_v0 = vld [vmem:[%s14913_s7 + $0xab0] sm:$0xff]  ;;  %v7044_v21 = vld [vmem:[%s14913_s7 + $0xcb8] sm:$0xff] }
 0x815   : > { %7708 = vmatpush.msrb.mxu3 %v6780_v2  ;;  %7728 = vmatpush.msrb.mxu0 %v6844_v35  ;;  %v7108_v38 = vld [vmem:[%s14913_s7 + $0xeb8] sm:$0xff]  ;;  %v6911_v2 = vld [vmem:[%s14913_s7 + $0x890] sm:$0xff] }
 0x816   : > { %7509 = vmatpush.msrb.mxu1 %v6647_v50  ;;  %7529 = vmatpush.msra.mxu2 %v6711_v13  ;;  %v6975_v35 = vld [vmem:[%s14913_s7 + $0xa90] sm:$0xff]  ;;  %v7040_v50 = vld [vmem:[%s14913_s7 + $0xc98] sm:$0xff] }
 0x817   : > { %7709 = vmatpush.msrb.mxu3 %v6776_v59  ;;  %7729 = vmatpush.msrb.mxu0 %v6840_v63  ;;  %v7104_v13 = vld [vmem:[%s14913_s7 + $0xe98] sm:$0xff]  ;;  %v6907_v59 = vld [vmem:[%s14913_s7 + $0x870] sm:$0xff] }
 0x818   : > { %7510 = vmatpush.msrb.mxu1 %v6643_v45  ;;  %7530 = vmatpush.msra.mxu2 %v6707_v28  ;;  %v6971_v63 = vld [vmem:[%s14913_s7 + $0xa70] sm:$0xff]  ;;  %v7036_v45 = vld [vmem:[%s14913_s7 + $0xc78] sm:$0xff] }
 0x819   : > { %7710 = vmatpush.msrb.mxu3 %v6772_v51  ;;  %7730 = vmatpush.msrb.mxu0 %v6836_v33  ;;  %v7100_v28 = vld [vmem:[%s14913_s7 + $0xe78] sm:$0xff]  ;;  %v6903_v51 = vld [vmem:[%s14913_s7 + $0x850] sm:$0xff] }
 0x81a   : > { %7511 = vmatpush.msrb.mxu1 %v6639_v4  ;;  %7531 = vmatpush.msra.mxu2 %v6703_v36  ;;  %v6967_v33 = vld [vmem:[%s14913_s7 + $0xa50] sm:$0xff]  ;;  %v7032_v4 = vld [vmem:[%s14913_s7 + $0xc58] sm:$0xff] }
 0x81b   : > { %7711 = vmatpush.msrb.mxu3 %v6768_v30  ;;  %7731 = vmatpush.msrb.mxu0 %v6832_v23  ;;  %v7096_v36 = vld [vmem:[%s14913_s7 + $0xe58] sm:$0xff]  ;;  %v6899_v30 = vld [vmem:[%s14913_s7 + $0x830] sm:$0xff] }
 0x81c   : > { %7512 = vmatmul.f32.vlgmr.msrb.gmra.mxu1 %v13436_v37  ;;  %7532 = vmatmul.f32.vlgmr.msra.gmra.mxu2 %v13439_v5  ;;  %v6963_v23 = vld [vmem:[%s14913_s7 + $0xa30] sm:$0xff] }
 0x81d   : > { %7576 = vmatpush.msra.mxu1 %v6955_v17  ;;  %7596 = vmatpush.msrb.mxu2 %v7019_v10  ;;  %v7028_v17 = vld [vmem:[%s14913_s7 + $0xc38] sm:$0xff] }
 0x81e   : > { %7712 = vmatmul.f32.vlgmr.msrb.gmra.mxu3 %v13500_v34  ;;  %7732 = vmatmul.f32.vlgmr.msrb.gmra.mxu0 %v13503_v26  ;;  %v7011_v34 = vld [vmem:[%s14913_s7 + $0xbb0] sm:$0xff]  ;;  %v7076_v26 = vld [vmem:[%s14913_s7 + $0xdb8] sm:$0xff] }
 0x81f   : > { %7776 = vmatpush.msra.mxu3 %v7084_v61  ;;  %7796 = vmatpush.msra.mxu0 %v7148_v57  ;;  %v7092_v10 = vld [vmem:[%s14913_s7 + $0xe38] sm:$0xff]  ;;  %v6895_v61 = vld [vmem:[%s14913_s7 + $0x810] sm:$0xff] }
 0x820   : > { %7577 = vmatpush.msra.mxu1 %v6951_v43  ;;  %7597 = vmatpush.msrb.mxu2 %v7015_v20  ;;  %v6959_v57 = vld [vmem:[%s14913_s7 + $0xa10] sm:$0xff]  ;;  %v7024_v43 = vld [vmem:[%s14913_s7 + $0xc18] sm:$0xff] }
 0x821   : > { %7777 = vmatpush.msra.mxu3 %v7080_v60  ;;  %7797 = vmatpush.msra.mxu0 %v7144_v16  ;;  %v7088_v20 = vld [vmem:[%s14913_s7 + $0xe18] sm:$0xff] }
 0x822   : > { %7578 = vmatpush.msra.mxu1 %v6947_v52  ;;  %7598 = vmatpush.msrb.mxu2 %v7011_v34  ;;  %v6700_v60 = vld [vmem:[%s14913_s7 + $0x1f8] sm:$0xff] }
 0x823   : > { %7778 = vmatpush.msra.mxu3 %v7076_v26  ;;  %7798 = vmatpush.msra.mxu0 %v7140_v24  ;;  %v6764_v16 = vld [vmem:[%s14913_s7 + $0x3f8] sm:$0xff] }
 0x824   : > { %7579 = vmatpush.msra.mxu1 %v6943_v9  ;;  %7599 = vmatpush.msrb.mxu2 %v7007_v12  ;;  %v6696_v52 = vld [vmem:[%s14913_s7 + $0x1d8] sm:$0xff] }
 0x825   : > { %7779 = vmatpush.msra.mxu3 %v7072_v22  ;;  %7799 = vmatpush.msra.mxu0 %v7136_v54  ;;  %v6760_v34 = vld [vmem:[%s14913_s7 + $0x3d8] sm:$0xff] }
 0x826   : > { %7580 = vmatpush.msra.mxu1 %v6939_v29  ;;  %7600 = vmatpush.msrb.mxu2 %v7003_v56  ;;  %v6692_v26 = vld [vmem:[%s14913_s7 + $0x1b8] sm:$0xff] }
 0x827   : > { %7780 = vmatpush.msra.mxu3 %v7068_v48  ;;  %7800 = vmatpush.msra.mxu0 %v7132_v41  ;;  %v6756_v24 = vld [vmem:[%s14913_s7 + $0x3b8] sm:$0xff] }
 0x828   : > { %7581 = vmatpush.msra.mxu1 %v6935_v8  ;;  %7601 = vmatpush.msrb.mxu2 %v6999_v31  ;;  %v6688_v9 = vld [vmem:[%s14913_s7 + $0x198] sm:$0xff] }
 0x829   : > { %7781 = vmatpush.msra.mxu3 %v7064_v58  ;;  %7801 = vmatpush.msra.mxu0 %v7128_v15  ;;  %v6748_v12 = vld [vmem:[%s14913_s7 + $0x378] sm:$0xff] }
 0x82a   : > { %7582 = vmatpush.msra.mxu1 %v6931_v11  ;;  %7602 = vmatpush.msrb.mxu2 %v6995_v47  ;;  %v6680_v22 = vld [vmem:[%s14913_s7 + $0x158] sm:$0xff] }
 0x82b   : > { %7782 = vmatpush.msra.mxu3 %v7060_v14  ;;  %7802 = vmatpush.msra.mxu0 %v7124_v1  ;;  %v6744_v54 = vld [vmem:[%s14913_s7 + $0x358] sm:$0xff] }
 0x82c   : > { %7583 = vmatpush.msra.mxu1 %v6927_v32  ;;  %7603 = vmatpush.msrb.mxu2 %v6991_v44  ;;  %v6676_v29 = vld [vmem:[%s14913_s7 + $0x138] sm:$0xff] }
 0x82d   : > { %7783 = vmatpush.msra.mxu3 %v7056_v25  ;;  %7803 = vmatpush.msra.mxu0 %v7120_v27  ;;  %v6740_v56 = vld [vmem:[%s14913_s7 + $0x338] sm:$0xff] }
 0x82e   : > { %7584 = vmatpush.msra.mxu1 %v6923_v39  ;;  %7604 = vmatpush.msrb.mxu2 %v6987_v40  ;;  %v6672_v48 = vld [vmem:[%s14913_s7 + $0x118] sm:$0xff] }
 0x82f   : > { %7784 = vmatpush.msra.mxu3 %v7052_v46  ;;  %7804 = vmatpush.msra.mxu0 %v7116_v19  ;;  %v6736_v41 = vld [vmem:[%s14913_s7 + $0x318] sm:$0xff] }
 0x830   : > { %7585 = vmatpush.msra.mxu1 %v6919_v7  ;;  %7605 = vmatpush.msrb.mxu2 %v6983_v6  ;;  %v6668_v8 = vld [vmem:[%s14913_s7 + $0xf8] sm:$0xff] }
 0x831   : > { %7785 = vmatpush.msra.mxu3 %v7048_v42  ;;  %7805 = vmatpush.msra.mxu0 %v7112_v62  ;;  %v6732_v31 = vld [vmem:[%s14913_s7 + $0x2f8] sm:$0xff] }
 0x832   : > { %7586 = vmatpush.msra.mxu1 %v6915_v53  ;;  %7606 = vmatpush.msrb.mxu2 %v6979_v0  ;;  %v6664_v58 = vld [vmem:[%s14913_s7 + $0xd8] sm:$0xff] }
 0x833   : > { %7786 = vmatpush.msra.mxu3 %v7044_v21  ;;  %7806 = vmatpush.msra.mxu0 %v7108_v38  ;;  %v6728_v15 = vld [vmem:[%s14913_s7 + $0x2d8] sm:$0xff] }
 0x834   : > { %7587 = vmatpush.msra.mxu1 %v6911_v2  ;;  %7607 = vmatpush.msrb.mxu2 %v6975_v35  ;;  %v6660_v11 = vld [vmem:[%s14913_s7 + $0xb8] sm:$0xff]  ;;  %v14575_v2 = vpop.f32.mrf.mxu1 }
 0x835   : > { %7787 = vmatpush.msra.mxu3 %v7040_v50  ;;  %7807 = vmatpush.msra.mxu0 %v7104_v13  ;;  %v6724_v47 = vld [vmem:[%s14913_s7 + $0x2b8] sm:$0xff]  ;;  %v14583_v13 = vpop.f32.mrf.mxu2 }
 0x836   : > { %7588 = vmatpush.msra.mxu1 %v6907_v59  ;;  %7608 = vmatpush.msrb.mxu2 %v6971_v63  ;;  %v6656_v14 = vld [vmem:[%s14913_s7 + $0x98] sm:$0xff] }
 0x837   : > { %7788 = vmatpush.msra.mxu3 %v7036_v45  ;;  %7808 = vmatpush.msra.mxu0 %v7100_v28  ;;  %v6720_v1 = vld [vmem:[%s14913_s7 + $0x298] sm:$0xff] }
 0x838   : > { %7589 = vmatpush.msra.mxu1 %v6903_v51  ;;  %7609 = vmatpush.msrb.mxu2 %v6967_v33  ;;  %v6652_v32 = vld [vmem:[%s14913_s7 + $0x78] sm:$0xff] }
 0x839   : > { %7789 = vmatpush.msra.mxu3 %v7032_v4  ;;  %7809 = vmatpush.msra.mxu0 %v7096_v36  ;;  %v6716_v44 = vld [vmem:[%s14913_s7 + $0x278] sm:$0xff] }
 0x83a   : > { %7590 = vmatpush.msra.mxu1 %v6899_v30  ;;  %7610 = vmatpush.msrb.mxu2 %v6963_v23  ;;  %v6648_v25 = vld [vmem:[%s14913_s7 + $0x58] sm:$0xff] }
 0x83b   : > { %7790 = vmatpush.msra.mxu3 %v7028_v17  ;;  %7810 = vmatpush.msra.mxu0 %v7092_v10  ;;  %v6712_v27 = vld [vmem:[%s14913_s7 + $0x258] sm:$0xff] }
 0x83c   : > { %7591 = vmatpush.msra.mxu1 %v6895_v61  ;;  %7611 = vmatpush.msrb.mxu2 %v6959_v57  ;;  %v6644_v39 = vld [vmem:[%s14913_s7 + $0x38] sm:$0xff]  ;;  %v14609_v30 = vpop.f32.mrf.mxu1 }
 0x83d   : > { %7791 = vmatpush.msra.mxu3 %v7024_v43  ;;  %7811 = vmatpush.msra.mxu0 %v7088_v20  ;;  %v6708_v40 = vld [vmem:[%s14913_s7 + $0x238] sm:$0xff]  ;;  %v14617_v10 = vpop.f32.mrf.mxu2 }
 0x83e   : > { %7592 = vmatmul.f32.vlgmr.msra.gmra.mxu1 %v13654_v3  ;;  %7612 = vmatmul.f32.vlgmr.msrb.gmra.mxu2 %v13657_v55  ;;  %v6640_v46 = vld [vmem:[%s14913_s7 + $0x18] sm:$0xff] }
 0x83f   : > { %7656 = vmatpush.msrb.mxu1 %v6700_v60  ;;  %7676 = vmatpush.msra.mxu2 %v6764_v16  ;;  %v6704_v19 = vld [vmem:[%s14913_s7 + $0x218] sm:$0xff] }
 0x840   : > { %7792 = vmatmul.f32.vlgmr.msra.gmra.mxu3 %v13448_v49  ;;  %7812 = vmatmul.f32.vlgmr.msra.gmra.mxu0 %v13451_v18  ;;  %v6752_v49 = vld [vmem:[%s14913_s7 + $0x398] sm:$0xff] }
 0x841   : > { %7657 = vmatpush.msrb.mxu1 %v6696_v52  ;;  %7677 = vmatpush.msra.mxu2 %v6760_v34  ;;  %v6684_v18 = vld [vmem:[%s14913_s7 + $0x178] sm:$0xff] }
 0x842   : > { %v6956_v7 = vld [vmem:[%s14913_s7 + $0x9f8] sm:$0xff] }
 0x843   : > { %7658 = vmatpush.msrb.mxu1 %v6692_v26  ;;  %7678 = vmatpush.msra.mxu2 %v6756_v24  ;;  %v7020_v6 = vld [vmem:[%s14913_s7 + $0xbf8] sm:$0xff] }
 0x844   : > { %v6952_v42 = vld [vmem:[%s14913_s7 + $0x9d8] sm:$0xff]  ;;  %v14637_v52 = vpop.f32.mrf.mxu1 }
 0x845   : > { %7659 = vmatpush.msrb.mxu1 %v6688_v9  ;;  %7679 = vmatpush.msra.mxu2 %v6752_v49  ;;  %v7016_v62 = vld [vmem:[%s14913_s7 + $0xbd8] sm:$0xff]  ;;  %v14645_v24 = vpop.f32.mrf.mxu2 }
 0x846   : > { %v6948_v53 = vld [vmem:[%s14913_s7 + $0x9b8] sm:$0xff] }
 0x847   : > { %7660 = vmatpush.msrb.mxu1 %v6684_v18  ;;  %7680 = vmatpush.msra.mxu2 %v6748_v12  ;;  %v7008_v0 = vld [vmem:[%s14913_s7 + $0xb98] sm:$0xff] }
 0x848   : > { %v6940_v21 = vld [vmem:[%s14913_s7 + $0x978] sm:$0xff] }
 0x849   : > { %7661 = vmatpush.msrb.mxu1 %v6680_v22  ;;  %7681 = vmatpush.msra.mxu2 %v6744_v54  ;;  %v7004_v38 = vld [vmem:[%s14913_s7 + $0xb78] sm:$0xff]  ;;  %v14662_v22 = vld [vmem:[%s14914_s8] sm:$0xf]  ;;  %v14664_v54 = vpop.f32.mrf.mxu3 }
 0x84a   : > { %v6936_v35 = vld [vmem:[%s14913_s7 + $0x958] sm:$0xff] }
 0x84b   : > { %7662 = vmatpush.msrb.mxu1 %v6676_v29  ;;  %7682 = vmatpush.msra.mxu2 %v6740_v56  ;;  %v7000_v50 = vld [vmem:[%s14913_s7 + $0xb58] sm:$0xff]  ;;  %v7169_v29 = vperm.slane %v14662_v22, 1  ;;  %v7834_v56 = vld [vmem:[%s14915_s9 + $0x70] sm:$0xff] }
 0x84c   : > { %v6932_v59 = vld [vmem:[%s14913_s7 + $0x938] sm:$0xff] }
 0x84d   : > { %7663 = vmatpush.msrb.mxu1 %v6672_v48  ;;  %7683 = vmatpush.msra.mxu2 %v6736_v41  ;;  %v6996_v63 = vld [vmem:[%s14913_s7 + $0xb38] sm:$0xff]  ;;  %v7850_v48 = vld [vmem:[%s14915_s9 + $0xf0] sm:$0xff] }
 0x84e   : > { %v6928_v45 = vld [vmem:[%s14913_s7 + $0x918] sm:$0xff] }
 0x84f   : > { %7664 = vmatpush.msrb.mxu1 %v6668_v8  ;;  %7684 = vmatpush.msra.mxu2 %v6732_v31  ;;  %v6992_v28 = vld [vmem:[%s14913_s7 + $0xb18] sm:$0xff]  ;;  %v7168_v8 = vperm.slane %v14662_v22, 0  ;;  %v7833_v31 = vld [vmem:[%s14915_s9 + $0x68] sm:$0xff] }
 0x850   : > { %v6924_v51 = vld [vmem:[%s14913_s7 + $0x8f8] sm:$0xff] }
 0x851   : > { %7665 = vmatpush.msrb.mxu1 %v6664_v58  ;;  %7685 = vmatpush.msra.mxu2 %v6728_v15  ;;  %v6988_v33 = vld [vmem:[%s14913_s7 + $0xaf8] sm:$0xff] }
 0x852   : > { %v6920_v4 = vld [vmem:[%s14913_s7 + $0x8d8] sm:$0xff] }
 0x853   : > { %7666 = vmatpush.msrb.mxu1 %v6660_v11  ;;  %7686 = vmatpush.msra.mxu2 %v6724_v47  ;;  %v6984_v36 = vld [vmem:[%s14913_s7 + $0xad8] sm:$0xff]  ;;  %v7832_v11 = vld [vmem:[%s14915_s9 + $0x60] sm:$0xff] }
 0x854   : > { %v6916_v23 = vld [vmem:[%s14913_s7 + $0x8b8] sm:$0xff]  ;;  %v7848_v47 = vld [vmem:[%s14915_s9 + $0xe0] sm:$0xff] }
 0x855   : > { %7667 = vmatpush.msrb.mxu1 %v6656_v14  ;;  %7687 = vmatpush.msra.mxu2 %v6720_v1  ;;  %v6980_v17 = vld [vmem:[%s14913_s7 + $0xab8] sm:$0xff]  ;;  %v7353_v41 = vpop.f32.mrf.mxu1  ;;  %v7866_v1 = vld [vmem:[%s14915_s9 + $0x170] sm:$0xff] }
 0x856   : > { %v6912_v61 = vld [vmem:[%s14913_s7 + $0x898] sm:$0xff]  ;;  %v7354_v15 = vadd.f32 %v7353_v41, %v7169_v29  ;;  %v7820_v29 = vld [vmem:[%s14915_s9] sm:$0xff] }
 0x857   : > { %7668 = vmatpush.msrb.mxu1 %v6652_v32  ;;  %7688 = vmatpush.msra.mxu2 %v6716_v44  ;;  %v6976_v57 = vld [vmem:[%s14913_s7 + $0xa98] sm:$0xff]  ;;  %v7194_v32 = vadd.f32 %v14575_v2, %v7168_v8 }
 0x858   : > { %v6908_v43 = vld [vmem:[%s14913_s7 + $0x878] sm:$0xff] }
 0x859   : > { %7669 = vmatpush.msrb.mxu1 %v6648_v25  ;;  %7689 = vmatpush.msra.mxu2 %v6712_v27  ;;  %v6972_v20 = vld [vmem:[%s14913_s7 + $0xa78] sm:$0xff] }
 0x85a   : > { %v6904_v60 = vld [vmem:[%s14913_s7 + $0x858] sm:$0xff] }
 0x85b   : > { %7670 = vmatpush.msrb.mxu1 %v6644_v39  ;;  %7690 = vmatpush.msra.mxu2 %v6708_v40  ;;  %v6968_v16 = vld [vmem:[%s14913_s7 + $0xa58] sm:$0xff]  ;;  %v7373_v58 = vpop.f32.mrf.mxu2  ;;  %v7865_v39 = vld [vmem:[%s14915_s9 + $0x168] sm:$0xff]  ;;  %v7214_v40 = vadd.f32 %v14583_v13, %v7194_v32 }
 0x85c   : > { %v6900_v34 = vld [vmem:[%s14913_s7 + $0x838] sm:$0xff]  ;;  %v7374_v44 = vadd.f32 %v7373_v58, %v7354_v15  ;;  %v7854_v15 = vld [vmem:[%s14915_s9 + $0x110] sm:$0xff] }
 0x85d   : > { %7671 = vmatpush.msrb.mxu1 %v6640_v46  ;;  %7691 = vmatpush.msra.mxu2 %v6704_v19  ;;  %v6964_v26 = vld [vmem:[%s14913_s7 + $0xa38] sm:$0xff]  ;;  %v7830_v46 = vld [vmem:[%s14915_s9 + $0x50] sm:$0xff] }
 0x85e   : > { %7672 = vmatmul.f32.vlgmr.msrb.gmra.mxu1 %v13436_v37  ;;  %7692 = vmatmul.f32.vlgmr.msra.gmra.mxu2 %v13439_v5  ;;  %v7012_v37 = vld [vmem:[%s14913_s7 + $0xbb8] sm:$0xff]  ;;  %v7846_v19 = vld [vmem:[%s14915_s9 + $0xd0] sm:$0xff] }
 0x85f   : > { %7736 = vmatpush.msra.mxu1 %v6956_v7  ;;  %7756 = vmatpush.msrb.mxu2 %v7020_v6  ;;  %v6944_v5 = vld [vmem:[%s14913_s7 + $0x998] sm:$0xff]  ;;  %v7393_v7 = vpop.f32.mrf.mxu3  ;;  %v7864_v6 = vld [vmem:[%s14915_s9 + $0x160] sm:$0xff] }
 0x860   : > { %v6896_v9 = vld [vmem:[%s14913_s7 + $0x818] sm:$0xff] }
 0x861   : > { %7737 = vmatpush.msra.mxu1 %v6952_v42  ;;  %7757 = vmatpush.msrb.mxu2 %v7016_v62  ;;  %v6960_v49 = vld [vmem:[%s14913_s7 + $0xa18] sm:$0xff]  ;;  %v7394_v42 = vadd.f32 %v7393_v7, %v7374_v44  ;;  %v7829_v62 = vld [vmem:[%s14915_s9 + $0x48] sm:$0xff] }
 0x862   : > { %v7835_v18 = vld [vmem:[%s14915_s9 + $0x78] sm:$0xff] }
 0x863   : > { %7738 = vmatpush.msra.mxu1 %v6948_v53  ;;  %7758 = vmatpush.msrb.mxu2 %v7012_v37  ;;  %v7851_v12 = vld [vmem:[%s14915_s9 + $0xf8] sm:$0xff]  ;;  %v7845_v53 = vld [vmem:[%s14915_s9 + $0xc8] sm:$0xff] }
 0x864   : > { %v7867_v14 = vld [vmem:[%s14915_s9 + $0x178] sm:$0xff] }
 0x865   : > { %7739 = vmatpush.msra.mxu1 %v6944_v5  ;;  %7759 = vmatpush.msrb.mxu2 %v7008_v0  ;;  %v7831_v25 = vld [vmem:[%s14915_s9 + $0x58] sm:$0xff]  ;;  %v7234_v5 = vadd.f32 %v14609_v30, %v7214_v40  ;;  %v7828_v0 = vld [vmem:[%s14915_s9 + $0x40] sm:$0xff] }
 0x866   : > { %v7847_v27 = vld [vmem:[%s14915_s9 + $0xd8] sm:$0xff]  ;;  %7925 = vmatpush.msrb.mxu3 %v7867_v14  ;;  %v7860_v30 = vld [vmem:[%s14915_s9 + $0x140] sm:$0xff]  ;;  %v7170_v14 = vperm.slane %v14662_v22, 2 }
 0x867   : > { %7740 = vmatpush.msra.mxu1 %v6940_v21  ;;  %7760 = vmatpush.msrb.mxu2 %v7004_v38  ;;  %v7863_v37 = vld [vmem:[%s14915_s9 + $0x158] sm:$0xff]  ;;  %v7844_v21 = vld [vmem:[%s14915_s9 + $0xc0] sm:$0xff] }
 0x868   : > { %7926 = vmatpush.msrb.mxu3 %v7866_v1  ;;  %v7859_v8 = vld [vmem:[%s14915_s9 + $0x138] sm:$0xff] }
 0x869   : > { %7741 = vmatpush.msra.mxu1 %v6936_v35  ;;  %7761 = vmatpush.msrb.mxu2 %v7000_v50  ;;  %v7862_v35 = vld [vmem:[%s14915_s9 + $0x150] sm:$0xff]  ;;  %v7254_v50 = vadd.f32 %v14617_v10, %v7234_v5  ;;  %v7825_v10 = vld [vmem:[%s14915_s9 + $0x28] sm:$0xff]  ;;  %v7855_v58 = vld [vmem:[%s14915_s9 + $0x118] sm:$0xff] }
 0x86a   : > { %7927 = vmatpush.msrb.mxu3 %v7865_v39  ;;  %v7882_v5 = vld [vmem:[%s14915_s9 + $0x1f0] sm:$0xff] }
 0x86b   : > { %7742 = vmatpush.msra.mxu1 %v6932_v59  ;;  %7762 = vmatpush.msrb.mxu2 %v6996_v63  ;;  %v7827_v59 = vld [vmem:[%s14915_s9 + $0x38] sm:$0xff] }
 0x86c   : > { %7928 = vmatpush.msrb.mxu3 %v7864_v6  ;;  %v7843_v63 = vld [vmem:[%s14915_s9 + $0xb8] sm:$0xff] }
 0x86d   : > { %7743 = vmatpush.msra.mxu1 %v6928_v45  ;;  %7763 = vmatpush.msrb.mxu2 %v6992_v28  ;;  %v7861_v28 = vld [vmem:[%s14915_s9 + $0x148] sm:$0xff] }
 0x86e   : > { %7929 = vmatpush.msrb.mxu3 %v7863_v37  ;;  %v7883_v37 = vld [vmem:[%s14915_s9 + $0x1f8] sm:$0xff] }
 0x86f   : > { %7744 = vmatpush.msra.mxu1 %v6924_v51  ;;  %7764 = vmatpush.msrb.mxu2 %v6988_v33  ;;  %v7274_v51 = vadd.f32 %v14637_v52, %v7254_v50  ;;  %v7823_v52 = vld [vmem:[%s14915_s9 + $0x18] sm:$0xff] }
 0x870   : > { %7930 = vmatpush.msrb.mxu3 %v7862_v35  ;;  %7945 = vmatpush.msrb.mxu0 %v7883_v37  ;;  %v7880_v35 = vld [vmem:[%s14915_s9 + $0x1e0] sm:$0xff]  ;;  %v7879_v50 = vld [vmem:[%s14915_s9 + $0x1d8] sm:$0xff] }
 0x871   : > { %7745 = vmatpush.msra.mxu1 %v6920_v4  ;;  %7765 = vmatpush.msrb.mxu2 %v6984_v36  ;;  %v7826_v4 = vld [vmem:[%s14915_s9 + $0x30] sm:$0xff] }
 0x872   : > { %v7842_v36 = vld [vmem:[%s14915_s9 + $0xb0] sm:$0xff]  ;;  %7931 = vmatpush.msrb.mxu3 %v7861_v28  ;;  %7946 = vmatpush.msrb.mxu0 %v7882_v5 }
 0x873   : > { %7746 = vmatpush.msra.mxu1 %v6916_v23  ;;  %7766 = vmatpush.msrb.mxu2 %v6980_v17  ;;  %v7294_v23 = vadd.f32 %v14645_v24, %v7274_v51  ;;  %v7838_v24 = vld [vmem:[%s14915_s9 + $0x90] sm:$0xff]  ;;  %v7873_v51 = vld [vmem:[%s14915_s9 + $0x1a8] sm:$0xff] }
 0x874   : > { %7932 = vmatpush.msrb.mxu3 %v7860_v30  ;;  %v7874_v28 = vld [vmem:[%s14915_s9 + $0x1b0] sm:$0xff]  ;;  %v7869_v30 = vld [vmem:[%s14915_s9 + $0x188] sm:$0xff] }
 0x875   : > { %7747 = vmatpush.msra.mxu1 %v6912_v61  ;;  %7767 = vmatpush.msrb.mxu2 %v6976_v57  ;;  %v7841_v61 = vld [vmem:[%s14915_s9 + $0xa8] sm:$0xff]  ;;  %v7824_v57 = vld [vmem:[%s14915_s9 + $0x20] sm:$0xff] }
 0x876   : > { %7933 = vmatpush.msrb.mxu3 %v7859_v8 }
 0x877   : > { %7748 = vmatpush.msra.mxu1 %v6908_v43  ;;  %7768 = vmatpush.msrb.mxu2 %v6972_v20  ;;  %v7433_v2 = vpop.f32.mrf.mxu1  ;;  %v7840_v43 = vld [vmem:[%s14915_s9 + $0xa0] sm:$0xff]  ;;  %v7473_v20 = vpop.f32.mrf.mxu3 }
 0x879   : > { %7749 = vmatpush.msra.mxu1 %v6904_v60  ;;  %7769 = vmatpush.msrb.mxu2 %v6968_v16  ;;  %v7314_v60 = vadd.f32 %v14664_v54, %v7294_v23  ;;  %v7837_v54 = vld [vmem:[%s14915_s9 + $0x88] sm:$0xff]  ;;  %v7868_v23 = vld [vmem:[%s14915_s9 + $0x180] sm:$0xff] }
 0x87b   : > { %7750 = vmatpush.msra.mxu1 %v6900_v34  ;;  %7770 = vmatpush.msrb.mxu2 %v6964_v26  ;;  %v7839_v34 = vld [vmem:[%s14915_s9 + $0x98] sm:$0xff]  ;;  %v7822_v26 = vld [vmem:[%s14915_s9 + $0x10] sm:$0xff] }
 0x87d   : > { %7751 = vmatpush.msra.mxu1 %v6896_v9  ;;  %7771 = vmatpush.msrb.mxu2 %v6960_v49  ;;  %v7453_v45 = vpop.f32.mrf.mxu2 }
 0x87e   : > { %7752 = vmatmul.f32.vlgmr.msra.gmra.mxu1 %v13654_v3  ;;  %7772 = vmatmul.f32.vlgmr.msrb.gmra.mxu2 %v13657_v55  ;;  %v7849_v3 = vld [vmem:[%s14915_s9 + $0xe8] sm:$0xff]  ;;  %v14682_v55 = vpop.f32.mrf.mxu0 }
 0x87f   : > { %7885 = vmatpush.msrb.mxu1 %v7835_v18  ;;  %7905 = vmatpush.msra.mxu2 %v7851_v12  ;;  %v7334_v49 = vadd.f32 %v14682_v55, %v7314_v60  ;;  %v7821_v12 = vld [vmem:[%s14915_s9 + $0x8] sm:$0xff]  ;;  %v7856_v55 = vld [vmem:[%s14915_s9 + $0x120] sm:$0xff] }
 0x881   : > { %7886 = vmatpush.msrb.mxu1 %v7834_v56  ;;  %7906 = vmatpush.msra.mxu2 %v7850_v48  ;;  %v7836_v56 = vld [vmem:[%s14915_s9 + $0x80] sm:$0xff]  ;;  %v7816_v48 = vmax.f32 %v7334_v49, 0.0 }
 0x883   : > { %7887 = vmatpush.msrb.mxu1 %v7833_v31  ;;  %7907 = vmatpush.msra.mxu2 %v7849_v3  ;;  %v7858_v31 = vld [vmem:[%s14915_s9 + $0x130] sm:$0xff]  ;;  %v7857_v3 = vld [vmem:[%s14915_s9 + $0x128] sm:$0xff] }
 0x884   : > { %7934 = vmatpush.msrb.mxu3 %v7858_v31 }
 0x885   : > { %7888 = vmatpush.msrb.mxu1 %v7832_v11  ;;  %7908 = vmatpush.msra.mxu2 %v7848_v47  ;;  %v7853_v11 = vld [vmem:[%s14915_s9 + $0x108] sm:$0xff]  ;;  %v7852_v47 = vld [vmem:[%s14915_s9 + $0x100] sm:$0xff] }
 0x886   : > { %v7413_v38 = vpop.f32.mrf.mxu0  ;;  %7935 = vmatpush.msrb.mxu3 %v7857_v3 }
 0x887   : > { %7889 = vmatpush.msrb.mxu1 %v7831_v25  ;;  %7909 = vmatpush.msra.mxu2 %v7847_v27  ;;  %v7414_v13 = vadd.f32 %v7413_v38, %v7394_v42  ;;  %v7553_v27 = vpop.f32.mrf.mxu3  ;;  %v7881_v38 = vld [vmem:[%s14915_s9 + $0x1e8] sm:$0xff] }
 0x888   : > { %7936 = vmatpush.msrb.mxu3 %v7856_v55  ;;  %7947 = vmatpush.msrb.mxu0 %v7881_v38 }
 0x889   : > { %7890 = vmatpush.msrb.mxu1 %v7830_v46  ;;  %7910 = vmatpush.msra.mxu2 %v7846_v19  ;;  %v7434_v33 = vadd.f32 %v7433_v2, %v7414_v13  ;;  %v7878_v13 = vld [vmem:[%s14915_s9 + $0x1d0] sm:$0xff] }
 0x88a   : > { %7937 = vmatpush.msrb.mxu3 %v7855_v58  ;;  %7948 = vmatpush.msrb.mxu0 %v7880_v35 }
 0x88b   : > { %7891 = vmatpush.msrb.mxu1 %v7829_v62  ;;  %7911 = vmatpush.msra.mxu2 %v7845_v53  ;;  %v7454_v17 = vadd.f32 %v7453_v45, %v7434_v33  ;;  %v7875_v45 = vld [vmem:[%s14915_s9 + $0x1b8] sm:$0xff]  ;;  %v7872_v33 = vld [vmem:[%s14915_s9 + $0x1a0] sm:$0xff] }
 0x88c   : > { %7938 = vmatpush.msrb.mxu3 %v7854_v15  ;;  %7949 = vmatpush.msrb.mxu0 %v7879_v50 }
 0x88d   : > { %7892 = vmatpush.msrb.mxu1 %v7828_v0  ;;  %7912 = vmatpush.msra.mxu2 %v7844_v21  ;;  %v7474_v16 = vadd.f32 %v7473_v20, %v7454_v17  ;;  %v7171_v17 = vperm.slane %v14662_v22, 3 }
 0x88e   : > { %v7493_v9 = vpop.f32.mrf.mxu0  ;;  %7939 = vmatpush.msrb.mxu3 %v7853_v11  ;;  %7950 = vmatpush.msrb.mxu0 %v7878_v13 }
 0x88f   : > { %7893 = vmatpush.msrb.mxu1 %v7827_v59  ;;  %7913 = vmatpush.msra.mxu2 %v7843_v63  ;;  %v7494_v18 = vadd.f32 %v7493_v9, %v7474_v16  ;;  %v7633_v62 = vpop.f32.mrf.mxu3  ;;  %v7877_v59 = vld [vmem:[%s14915_s9 + $0x1c8] sm:$0xff]  ;;  %v7876_v63 = vld [vmem:[%s14915_s9 + $0x1c0] sm:$0xff] }
 0x890   : > { %7940 = vmatpush.msrb.mxu3 %v7852_v47  ;;  %7951 = vmatpush.msrb.mxu0 %v7877_v59 }
 0x891   : > { %7894 = vmatpush.msrb.mxu1 %v7826_v4  ;;  %7914 = vmatpush.msra.mxu2 %v7842_v36  ;;  %v7817_v41 = vmax.f32 %v7494_v18, 0.0  ;;  %v7871_v4 = vld [vmem:[%s14915_s9 + $0x198] sm:$0xff]  ;;  %v7870_v36 = vld [vmem:[%s14915_s9 + $0x190] sm:$0xff] }
 0x892   : > { %7952 = vmatpush.msrb.mxu0 %v7876_v63 }
 0x893   : > { %7895 = vmatpush.msrb.mxu1 %v7825_v10  ;;  %7915 = vmatpush.msra.mxu2 %v7841_v61 }
 0x894   : > { %7953 = vmatpush.msrb.mxu0 %v7875_v45 }
 0x895   : > { %7896 = vmatpush.msrb.mxu1 %v7824_v57  ;;  %7916 = vmatpush.msra.mxu2 %v7840_v43 }
 0x896   : > { %v7573_v40 = vpop.f32.mrf.mxu0  ;;  %7954 = vmatpush.msrb.mxu0 %v7874_v28 }
 0x897   : > { %7897 = vmatpush.msrb.mxu1 %v7823_v52  ;;  %7917 = vmatpush.msra.mxu2 %v7839_v34 }
 0x898   : > { %7955 = vmatpush.msrb.mxu0 %v7873_v51 }
 0x899   : > { %7898 = vmatpush.msrb.mxu1 %v7822_v26  ;;  %7918 = vmatpush.msra.mxu2 %v7838_v24  ;;  %v7513_v1 = vpop.f32.mrf.mxu1 }
 0x89a   : > { %v7514_v44 = vadd.f32 %v7513_v1, %v7170_v14  ;;  %7956 = vmatpush.msrb.mxu0 %v7872_v33 }
 0x89b   : > { %7899 = vmatpush.msrb.mxu1 %v7821_v12  ;;  %7919 = vmatpush.msra.mxu2 %v7837_v54 }
 0x89c   : > { %7957 = vmatpush.msrb.mxu0 %v7871_v4 }
 0x89d   : > { %7900 = vmatpush.msrb.mxu1 %v7820_v29  ;;  %7920 = vmatpush.msra.mxu2 %v7836_v56  ;;  %v7884_v29 = vld [vmem:[%s14916_s10] sm:$0x1] }
 0x89e   : > { %7901 = vmatmul.f32.vlgmr.msrb.gmra.mxu1 %v7816_v48  ;;  %7921 = vmatmul.f32.vlgmr.msra.gmra.mxu2 %v7817_v41  ;;  %v7653_v0 = vpop.f32.mrf.mxu0 }
 0x89f   : > { %v7533_v32 = vpop.f32.mrf.mxu2  ;;  %7958 = vmatpush.msrb.mxu0 %v7870_v36 }
 0x8a0   : > { %v7534_v25 = vadd.f32 %v7533_v32, %v7514_v44 }
 0x8a1   : > { %7959 = vmatpush.msrb.mxu0 %v7869_v30  ;;  %v7713_v20 = vpop.f32.mrf.mxu3 }
 0x8a2   : > { %v7554_v39 = vadd.f32 %v7553_v27, %v7534_v25 }
 0x8a3   : > { %7960 = vmatpush.msrb.mxu0 %v7868_v23 }
 0x8a4   : > { %v7574_v19 = vadd.f32 %v7573_v40, %v7554_v39 }
 0x8a6   : > { %v7733_v16 = vpop.f32.mrf.mxu0 }
 0x8bb   : > { %v7593_v46 = vpop.f32.mrf.mxu1 }
 0x8bc   : > { %v7594_v7 = vadd.f32 %v7593_v46, %v7574_v19 }
 0x8bd   : > { %v7813_v12 = vpop.f32.mrf.mxu0 }
 0x8c1   : > { %v7613_v6 = vpop.f32.mrf.mxu2 }
 0x8c2   : > { %v7614_v42 = vadd.f32 %v7613_v6, %v7594_v7 }
 0x8c3   : > { %v7793_v49 = vpop.f32.mrf.mxu3 }
 0x8c4   : > { %v7634_v53 = vadd.f32 %v7633_v62, %v7614_v42 }
 0x8c6   : > { %v7654_v21 = vadd.f32 %v7653_v0, %v7634_v53 }
 0x8c8   : > { %v7818_v2 = vmax.f32 %v7654_v21, 0.0 }
 0x8ca   : > { %7941 = vmatmul.f32.vlgmr.msrb.gmra.mxu3 %v7818_v2 }
 0x8db   : > { %v7673_v10 = vpop.f32.mrf.mxu1 }
 0x8dc   : > { %v7674_v57 = vadd.f32 %v7673_v10, %v7171_v17 }
 0x8e1   : > { %v7693_v61 = vpop.f32.mrf.mxu2 }
 0x8e2   : > { %v7694_v43 = vadd.f32 %v7693_v61, %v7674_v57 }
 0x8e4   : > { %v7714_v60 = vadd.f32 %v7713_v20, %v7694_v43 }
 0x8e6   : > { %v7734_v34 = vadd.f32 %v7733_v16, %v7714_v60 }
 0x8fb   : > { %v7753_v52 = vpop.f32.mrf.mxu1 }
 0x8fc   : > { %v7754_v26 = vadd.f32 %v7753_v52, %v7734_v34 }
 0x901   : > { %v7773_v24 = vpop.f32.mrf.mxu2 }
 0x902   : > { %v7774_v9 = vadd.f32 %v7773_v24, %v7754_v26 }
 0x904   : > { %v7794_v18 = vadd.f32 %v7793_v49, %v7774_v9 }
 0x906   : > { %v7814_v54 = vadd.f32 %v7813_v12, %v7794_v18 }
 0x908   : > { %v7819_v22 = vmax.f32 %v7814_v54, 0.0 }
 0x90a   : > { %7961 = vmatmul.f32.vlgmr.msrb.gmra.mxu0 %v7819_v22 }
 0x91b   : > { %v7902_v56 = vpop.f32.mrf.mxu1 }
 0x91c   : > { %v7903_v41 = vadd.f32 %v7902_v56, %v7884_v29 }
 0x921   : > { %v7922_v48 = vpop.f32.mrf.mxu2 }
 0x922   : > { %v7923_v31 = vadd.f32 %v7922_v48, %v7903_v41 }
 0x94d   : > { %v7942_v8 = vpop.f32.mrf.mxu3 }
 0x94e   : > { %v7943_v3 = vadd.f32 %v7942_v8, %v7923_v31 }
 0x987   : > { %v7962_v55 = vpop.f32.mrf.mxu0 }
 0x988   : > { %v7963_v58 = vadd.f32 %v7962_v55, %v7943_v3 }
 0x98a   : > { %7966 = vst.msk [vmem:[%s8622_s16] sm:$0x1] %vm7965_vm10, %v7963_v58 }
 0x98b   : > { %8403 = shalt.err (!%p8400_p4)
}
 0x98c   : > { %8274 = dma.vmem_to_hbm [thread:$0]  (%p8550_p5), %s7979_s14, 16, %s7981_s24, %s7968_s30  }
 0x98d PF: > { %p8280_p7 = scmp.ge.s32.totalorder %s8442_s20, 2  ;;  %s7992_s16 = sand.u32 1, %s8430_s17  }
 0x98e   : > { %s7993_s25 = scalar_lea.sflag [#allocation8], %s7992_s16 }
 0x98f   : > { %p8277_p8 = pnand %p8280_p7, %p8554_p6 }
 0x991   : > { %p8278_p9 = pneg %p8277_p8 }
 0x993   : > { %8425 = dma.done.wait (%p8278_p9), %s7993_s25, 16  }
 0x994   : > { %8427 = vsyncadd (%p8278_p9), %s7993_s25, 4294967280  ;;  %p21_p10 = scmp.ge.s32.totalorder %s8537_s23, 4   ;;  %s15376_s17 = smov %s8434_s18 }
 0x995   : > { %s15377_s18 = smov %s8438_s19  ;;  %s15378_s19 = smov %s8548_s26 }
 0x996   : > { %s15379_s20 = smov %s8537_s23  ;;  %23 = sbr.rel (!%p21_p10) target bundleno = 5 (0x5), region = 120 }
 0x99b   :  { %7998 = vsyncpa [#allocation8], 1 }
 0x99c   :  { %8000 = vsyncpa [#allocation8 + $0x1], 1 }

</bundles_post_ra>
